<compile_context>
chip_gen: v5e
topology: v5e:2x2
jax: 0.10.0
libtpu: 0.0.40
codegen_flags: <defaults>
</compile_context>

<pallas_src>
import functools
import math

import jax
import jax.numpy as jnp
from jax.experimental import pallas as pl
from jax.experimental.pallas import tpu as pltpu

NEG_INF = jnp.float32(-1e30)   # finite "-inf": fully-masked rows give a uniform softmax
                               # instead of NaN (documented deviation from PyTorch).
LN_EPS = 1e-5

ENC_KEYS = ("wqkv", "bqkv", "wo", "bo", "ln1_g", "ln1_b",
            "w1", "b1", "w2", "b2", "ln2_g", "ln2_b")
DEC_KEYS = ("wqkv_s", "bqkv_s", "wo_s", "bo_s", "wqkv_c", "bqkv_c", "wo_c", "bo_c",
            "ln1_g", "ln1_b", "ln2_g", "ln2_b", "ln3_g", "ln3_b",
            "w1", "b1", "w2", "b2")


# ----------------------------------------------------------------------------
# In-kernel helpers (traced inside the fused kernels; all data stays in VMEM)
# ----------------------------------------------------------------------------
def _layernorm(x2d, g, b):
    mu = jnp.mean(x2d, axis=-1, keepdims=True)
    var = jnp.mean((x2d - mu) ** 2, axis=-1, keepdims=True)
    return (x2d - mu) * jax.lax.rsqrt(var + LN_EPS) * g + b


def _mha(xq_f32, xkv_f32, wqkv_ref, bqkv_ref, wo_ref, bo_ref, bias,
         B, Sq, Sk, H, scale):
    """Multi-head attention with per-head weights pre-split on a leading axis.

    xq_f32: (B*Sq, D) f32, xkv_f32: (B*Sk, D) f32.
    wqkv_ref: (3*H, D, Dh) bf16, bqkv_ref: (3*H, 1, Dh) f32 (q/k/v blocks of H heads).
    wo_ref: (H, Dh, D) bf16 (row-blocks of the out projection), bo_ref: (1, D) f32.
    bias: additive mask broadcastable to (B, Sq, Sk).
    """
    D = xq_f32.shape[-1]
    xq = xq_f32.astype(jnp.bfloat16)
    xkv = xkv_f32.astype(jnp.bfloat16)
    out = jnp.zeros((B * Sq, D), jnp.float32)
    for h in range(H):                              # static unroll; no lane slicing
        q = jnp.dot(xq, wqkv_ref[0 * H + h], preferred_element_type=jnp.float32) \
            + bqkv_ref[0 * H + h]
        k = jnp.dot(xkv, wqkv_ref[1 * H + h], preferred_element_type=jnp.float32) \
            + bqkv_ref[1 * H + h]
        v = jnp.dot(xkv, wqkv_ref[2 * H + h], preferred_element_type=jnp.float32) \
            + bqkv_ref[2 * H + h]
        s = jnp.einsum('bqd,bkd->bqk',
                       q.reshape(B, Sq, -1), k.reshape(B, Sk, -1),
                       preferred_element_type=jnp.float32) * scale + bias
        s = s - jnp.max(s, axis=-1, keepdims=True)
        p = jnp.exp(s)
        p = p / jnp.sum(p, axis=-1, keepdims=True)
        ctx = jnp.einsum('bqk,bkd->bqd', p, v.reshape(B, Sk, -1),
                         preferred_element_type=jnp.float32)
        # concat_h(ctx_h) @ Wo  ==  sum_h ctx_h @ Wo_rows[h]   (no lane concat)
        out = out + jnp.dot(ctx.reshape(B * Sq, -1).astype(jnp.bfloat16), wo_ref[h],
                            preferred_element_type=jnp.float32)
    return out + bo_ref[...]


def _ffn(x2d, w1, b1, w2, b2):
    h = jnp.dot(x2d.astype(jnp.bfloat16), w1, preferred_element_type=jnp.float32) + b1
    h = jnp.maximum(h, 0.0)                          # ReLU (PyTorch default)
    return jnp.dot(h.astype(jnp.bfloat16), w2, preferred_element_type=jnp.float32) + b2


# ----------------------------------------------------------------------------
# Fused stack kernels (grid axis = layer index, "arbitrary"; output block is the
# residual-stream accumulator kept in VMEM across all layers)
# ----------------------------------------------------------------------------
def enc_stack_kernel(mem_ref, kbias_ref,
                     wqkv_ref, bqkv_ref, wo_ref, bo_ref,
                     ln1g_ref, ln1b_ref, w1_ref, b1_ref, w2_ref, b2_ref,
                     ln2g_ref, ln2b_ref, o_ref, *, nhead, scale):
    B, S, D = mem_ref.shape

    @pl.when(pl.program_id(0) == 0)
    def _():
        o_ref[...] = mem_ref[...]

    x = o_ref[...].astype(jnp.float32).reshape(B * S, D)
    bias = kbias_ref[...][:, None, :]                       # (B, 1, S) key-pad bias

    attn = _mha(x, x, wqkv_ref, bqkv_ref, wo_ref, bo_ref, bias,
                B, S, S, nhead, scale)
    x1 = _layernorm(x + attn, ln1g_ref[...], ln1b_ref[...])
    f = _ffn(x1, w1_ref[...], b1_ref[...], w2_ref[...], b2_ref[...])
    x2 = _layernorm(x1 + f, ln2g_ref[...], ln2b_ref[...])
    o_ref[...] = x2.reshape(B, S, D).astype(o_ref.dtype)


def dec_stack_kernel(tgt_ref, mem_ref, tpad_ref, mpad_ref, causal_ref,
                     wqkv_s_ref, bqkv_s_ref, wo_s_ref, bo_s_ref,
                     wqkv_c_ref, bqkv_c_ref, wo_c_ref, bo_c_ref,
                     ln1g_ref, ln1b_ref, ln2g_ref, ln2b_ref, ln3g_ref, ln3b_ref,
                     w1_ref, b1_ref, w2_ref, b2_ref,
                     o_ref, *, nhead, scale):
    B, St, D = tgt_ref.shape
    Sm = mem_ref.shape[1]

    @pl.when(pl.program_id(0) == 0)
    def _():
        o_ref[...] = tgt_ref[...]

    x = o_ref[...].astype(jnp.float32).reshape(B * St, D)
    mem = mem_ref[...].astype(jnp.float32).reshape(B * Sm, D)

    # additive masks built in-kernel from tiny inputs
    self_bias = tpad_ref[...][:, None, :] + causal_ref[...][None, :, :]   # (B, St, St)
    cross_bias = mpad_ref[...][:, None, :]                                # (B, 1, Sm)

    # masked (causal + key-pad) self attention
    a = _mha(x, x, wqkv_s_ref, bqkv_s_ref, wo_s_ref, bo_s_ref, self_bias,
             B, St, St, nhead, scale)
    x1 = _layernorm(x + a, ln1g_ref[...], ln1b_ref[...])

    # cross attention over encoder memory
    c = _mha(x1, mem, wqkv_c_ref, bqkv_c_ref, wo_c_ref, bo_c_ref, cross_bias,
             B, St, Sm, nhead, scale)
    x2 = _layernorm(x1 + c, ln2g_ref[...], ln2b_ref[...])

    # feed-forward
    f = _ffn(x2, w1_ref[...], b1_ref[...], w2_ref[...], b2_ref[...])
    x3 = _layernorm(x2 + f, ln3g_ref[...], ln3b_ref[...])
    o_ref[...] = x3.reshape(B, St, D).astype(o_ref.dtype)


def lm_head_kernel(x_ref, w_ref, o_ref):
    # bias-free vocab projection; bf16 inputs, f32 accumulation / output.
    o_ref[...] = jnp.dot(x_ref[...], w_ref[...], preferred_element_type=jnp.float32)


# ----------------------------------------------------------------------------
# BlockSpec helpers
# ----------------------------------------------------------------------------
def _const_spec(x):
    zeros = (0,) * x.ndim
    return pl.BlockSpec(tuple(x.shape), lambda l, _z=zeros: _z)


def _layer_spec(x):
    """Stacked-per-layer weight: leading (squeezed) layer axis indexed by the grid."""
    zeros = (0,) * (x.ndim - 1)
    return pl.BlockSpec((None,) + tuple(x.shape[1:]), lambda l, _z=zeros: (l,) + _z)


# ----------------------------------------------------------------------------
# pallas_call wrappers
# ----------------------------------------------------------------------------
def encoder_stack(p, memory, mem_kbias, nhead):
    B, S, D = memory.shape
    n_layers = p["wqkv"].shape[0]
    scale = 1.0 / math.sqrt(D // nhead)
    weights = [p[k] for k in ENC_KEYS]
    return pl.pallas_call(
        functools.partial(enc_stack_kernel, nhead=nhead, scale=scale),
        out_shape=jax.ShapeDtypeStruct((B, S, D), jnp.float32),
        grid=(n_layers,),
        in_specs=[_const_spec(memory), _const_spec(mem_kbias)]
                 + [_layer_spec(w) for w in weights],
        out_specs=pl.BlockSpec((B, S, D), lambda l: (0, 0, 0)),
        compiler_params=pltpu.CompilerParams(dimension_semantics=("arbitrary",)),
    )(memory, mem_kbias, *weights)


def decoder_stack(p, tgt0, memory, tgt_kbias, mem_kbias, causal, nhead):
    B, St, D = tgt0.shape
    n_layers = p["wqkv_s"].shape[0]
    scale = 1.0 / math.sqrt(D // nhead)
    weights = [p[k] for k in DEC_KEYS]
    return pl.pallas_call(
        functools.partial(dec_stack_kernel, nhead=nhead, scale=scale),
        out_shape=jax.ShapeDtypeStruct((B, St, D), jnp.float32),
        grid=(n_layers,),
        in_specs=[_const_spec(tgt0), _const_spec(memory), _const_spec(tgt_kbias),
                  _const_spec(mem_kbias), _const_spec(causal)]
                 + [_layer_spec(w) for w in weights],
        out_specs=pl.BlockSpec((B, St, D), lambda l: (0, 0, 0)),
        compiler_params=pltpu.CompilerParams(dimension_semantics=("arbitrary",)),
    )(tgt0, memory, tgt_kbias, mem_kbias, causal, *weights)


def lm_head(x2d_bf16, w_bf16, vocab, tile_n):
    M, D = x2d_bf16.shape
    return pl.pallas_call(
        lm_head_kernel,
        out_shape=jax.ShapeDtypeStruct((M, vocab), jnp.float32),   # no post-slice
        grid=(pl.cdiv(vocab, tile_n),),
        in_specs=[pl.BlockSpec((M, D), lambda j: (0, 0)),          # grid-invariant
                  pl.BlockSpec((D, tile_n), lambda j: (0, j))],
        out_specs=pl.BlockSpec((M, tile_n), lambda j: (0, j)),     # partial last block
        compiler_params=pltpu.CompilerParams(dimension_semantics=("parallel",)),
    )(x2d_bf16, w_bf16)


# ----------------------------------------------------------------------------
# Forward pass (nhead / vocab / tile_n are static Python ints via partial)
# ----------------------------------------------------------------------------
def residual_model_forward(params, tgt, memory, tgt_mask, memory_mask, att_mask,
                           *, nhead, vocab, tile_n):
    B, Sm, D = memory.shape
    inp0 = tgt[0]                       # only tgt[0] is consumed (as in forward())
    St = inp0.shape[1]

    # tiny additive padding biases (masks themselves are expanded in-kernel)
    mem_kbias = jnp.where(memory_mask, NEG_INF, jnp.float32(0.0)).astype(jnp.float32)
    tgt_kbias = jnp.where(tgt_mask, NEG_INF, jnp.float32(0.0)).astype(jnp.float32)
    causal = att_mask.astype(jnp.float32)

    memory = encoder_stack(params["encoder"], memory, mem_kbias, nhead)
    dec_out = decoder_stack(params["decoder"], inp0, memory,
                            tgt_kbias, mem_kbias, causal, nhead)

    x2d = dec_out.reshape(B * St, D).astype(jnp.bfloat16)   # cast once, in the wrapper
    logits = lm_head(x2d, params["lm_head_w"], vocab, tile_n)
    return logits.reshape(B, St, vocab)


# ----------------------------------------------------------------------------
# Deterministic parameter init (weights stacked per layer, matmul weights bf16)
# ----------------------------------------------------------------------------
def init_params(key, d, nhead, n_enc, n_dec, dff, vocab):
    dh = d // nhead
    ks = iter(jax.random.split(key, 12))
    s = 0.02

    def nrm(shape):
        return (jax.random.normal(next(ks), shape, jnp.float32) * s).astype(jnp.bfloat16)

    def zeros(shape):
        return jnp.zeros(shape, jnp.float32)

    def ones(shape):
        return jnp.ones(shape, jnp.float32)

    enc = dict(
        wqkv=nrm((n_enc, 3 * nhead, d, dh)),
        bqkv=zeros((n_enc, 3 * nhead, 1, dh)),
        wo=nrm((n_enc, nhead, dh, d)),
        bo=zeros((n_enc, 1, d)),
        ln1_g=ones((n_enc, 1, d)), ln1_b=zeros((n_enc, 1, d)),
        w1=nrm((n_enc, d, dff)), b1=zeros((n_enc, 1, dff)),
        w2=nrm((n_enc, dff, d)), b2=zeros((n_enc, 1, d)),
        ln2_g=ones((n_enc, 1, d)), ln2_b=zeros((n_enc, 1, d)),
    )
    dec = dict(
        wqkv_s=nrm((n_dec, 3 * nhead, d, dh)),
        bqkv_s=zeros((n_dec, 3 * nhead, 1, dh)),
        wo_s=nrm((n_dec, nhead, dh, d)), bo_s=zeros((n_dec, 1, d)),
        wqkv_c=nrm((n_dec, 3 * nhead, d, dh)),
        bqkv_c=zeros((n_dec, 3 * nhead, 1, dh)),
        wo_c=nrm((n_dec, nhead, dh, d)), bo_c=zeros((n_dec, 1, d)),
        ln1_g=ones((n_dec, 1, d)), ln1_b=zeros((n_dec, 1, d)),
        ln2_g=ones((n_dec, 1, d)), ln2_b=zeros((n_dec, 1, d)),
        ln3_g=ones((n_dec, 1, d)), ln3_b=zeros((n_dec, 1, d)),
        w1=nrm((n_dec, d, dff)), b1=zeros((n_dec, 1, dff)),
        w2=nrm((n_dec, dff, d)), b2=zeros((n_dec, 1, d)),
    )
    lm_w = nrm((d, vocab))                    # un-padded bf16; no bias (bias=False)
    return dict(encoder=enc, decoder=dec, lm_head_w=lm_w)


# ----------------------------------------------------------------------------
# Main
# ----------------------------------------------------------------------------
if __name__ == "__main__":
    B, S_TGT, S_MEM, D = 2, 8, 8, 32
    NHEAD, N_ENC, N_DEC = 4, 2, 2
    DFF = 2048            # PyTorch TransformerEncoderLayer default
    VOCAB = 50257
    TILE_N = 16384        # 4 parallel lm_head tiles (2 per TC on v7x; few steps on v5e/v6e)

    root = jax.random.PRNGKey(0)
    k_par, k_t0, k_t1, k_mem = jax.random.split(root, 4)

    params = init_params(k_par, D, NHEAD, N_ENC, N_DEC, DFF, VOCAB)

    # `tgt` is an indexable collection of hidden states; only tgt[0] is used.
    tgt = [
        jax.random.normal(k_t0, (B, S_TGT, D), jnp.float32),
        jax.random.normal(k_t1, (B, S_TGT, D), jnp.float32),
    ]
    memory = jax.random.normal(k_mem, (B, S_MEM, D), jnp.float32)

    # Key padding masks (True = padded position), pad at sequence end only.
    tgt_mask = jnp.array(
        [[False] * S_TGT, [False] * (S_TGT - 2) + [True] * 2], dtype=bool)
    memory_mask = jnp.array(
        [[False] * S_MEM, [False] * (S_MEM - 1) + [True]], dtype=bool)

    # Causal additive attention mask for decoder self-attention.
    causal_bool = jnp.triu(jnp.ones((S_TGT, S_TGT), dtype=bool), k=1)
    att_mask = jnp.where(causal_bool, NEG_INF, jnp.float32(0.0))

    fwd = jax.jit(functools.partial(
        residual_model_forward, nhead=NHEAD, vocab=VOCAB, tile_n=TILE_N))
    out = fwd(params, tgt, memory, tgt_mask, memory_mask, att_mask)
    out = jax.block_until_ready(out)

    assert out.shape == (B, S_TGT, VOCAB), out.shape
    assert out.dtype == jnp.float32
    assert bool(jnp.all(jnp.isfinite(out)))
    print("KERNEL_OK")
</pallas_src>

<mosaic_0001>
module attributes {stable_mosaic.version = 11 : i64} {
  func.func @lm_head_kernel(%arg0: i32, %arg1: memref<16x32xbf16, #tpu.memory_space<vmem>>, %arg2: memref<32x16384xbf16, #tpu.memory_space<vmem>>, %arg3: memref<16x16384xf32, #tpu.memory_space<vmem>>) attributes {dimension_semantics = [#tpu.dimension_semantics<parallel>], iteration_bounds = array<i64: 4>, scalar_prefetch = 0 : i64, scratch_operands = 0 : i64, tpu.core_type = #tpu.core_type<tc>, window_params = [{pipeline_mode = #tpu.pipeline_mode<synchronous>, transform_indices = @transform_0, window_bounds = array<i64: 16, 32>}, {transform_indices = @transform_1, window_bounds = array<i64: 32, 16384>}, {transform_indices = @transform_2, window_bounds = array<i64: 16, 16384>}]} {
    %c0 = arith.constant 0 : index
    %c0_0 = arith.constant 0 : index
    %0 = vector.load %arg1[%c0, %c0_0] : memref<16x32xbf16, #tpu.memory_space<vmem>>, vector<16x32xbf16>
    %c0_1 = arith.constant 0 : index
    %c0_2 = arith.constant 0 : index
    %1 = vector.load %arg2[%c0_1, %c0_2] : memref<32x16384xbf16, #tpu.memory_space<vmem>>, vector<32x16384xbf16>
    %cst = arith.constant dense<0.000000e+00> : vector<16x16384xf32>
    %2 = tpu.matmul %0, %1, %cst {dimension_numbers = #tpu.dot_dimension_numbers<[1], [0], [0], [1], [0, 0, 1, 1], [], []>} : vector<16x32xbf16>, vector<32x16384xbf16>, vector<16x16384xf32> -> vector<16x16384xf32>
    %c0_3 = arith.constant 0 : index
    %c0_4 = arith.constant 0 : index
    %3 = vector.load %arg3[%c0_3, %c0_4] : memref<16x16384xf32, #tpu.memory_space<vmem>>, vector<16x16384xf32>
    tpu.vector_store %arg3[%c0_3, %c0_4], %2 {strides = array<i32>} : memref<16x16384xf32, #tpu.memory_space<vmem>>, vector<16x16384xf32>,
    return
  }
  func.func @transform_0(%arg0: i32) -> (i32, i32) {
    %c0_i32 = arith.constant 0 : i32
    %c0_i32_0 = arith.constant 0 : i32
    %c0_i32_1 = arith.constant 0 : i32
    return %c0_i32, %c0_i32_0 : i32, i32
  }
  func.func @transform_1(%arg0: i32) -> (i32, i32) {
    %c0_i32 = arith.constant 0 : i32
    %c0_i32_0 = arith.constant 0 : i32
    return %c0_i32, %arg0 : i32, i32
  }
  func.func @transform_2(%arg0: i32) -> (i32, i32) {
    %c0_i32 = arith.constant 0 : i32
    %c0_i32_0 = arith.constant 0 : i32
    return %c0_i32, %arg0 : i32, i32
  }
}

module attributes {stable_mosaic.version = 11 : i64} {
  func.func @enc_stack_kernel(%arg0: i32, %arg1: memref<2x8x32xf32, #tpu.memory_space<vmem>>, %arg2: memref<2x8xf32, #tpu.memory_space<vmem>>, %arg3: memref<1x12x32x8xbf16, #tpu.memory_space<vmem>>, %arg4: memref<1x12x1x8xf32, #tpu.memory_space<vmem>>, %arg5: memref<1x4x8x32xbf16, #tpu.memory_space<vmem>>, %arg6: memref<1x1x32xf32, #tpu.memory_space<vmem>>, %arg7: memref<1x1x32xf32, #tpu.memory_space<vmem>>, %arg8: memref<1x1x32xf32, #tpu.memory_space<vmem>>, %arg9: memref<1x32x2048xbf16, #tpu.memory_space<vmem>>, %arg10: memref<1x1x2048xf32, #tpu.memory_space<vmem>>, %arg11: memref<1x2048x32xbf16, #tpu.memory_space<vmem>>, %arg12: memref<1x1x32xf32, #tpu.memory_space<vmem>>, %arg13: memref<1x1x32xf32, #tpu.memory_space<vmem>>, %arg14: memref<1x1x32xf32, #tpu.memory_space<vmem>>, %arg15: memref<2x8x32xf32, #tpu.memory_space<vmem>>) attributes {dimension_semantics = [#tpu.dimension_semantics<arbitrary>], iteration_bounds = array<i64: 2>, scalar_prefetch = 0 : i64, scratch_operands = 0 : i64, tpu.core_type = #tpu.core_type<tc>, window_params = [{pipeline_mode = #tpu.pipeline_mode<synchronous>, transform_indices = @transform_0, window_bounds = array<i64: 2, 8, 32>}, {pipeline_mode = #tpu.pipeline_mode<synchronous>, transform_indices = @transform_1, window_bounds = array<i64: 2, 8>}, {transform_indices = @transform_2, window_bounds = array<i64: 1, 12, 32, 8>}, {transform_indices = @transform_3, window_bounds = array<i64: 1, 12, 1, 8>}, {transform_indices = @transform_4, window_bounds = array<i64: 1, 4, 8, 32>}, {transform_indices = @transform_5, window_bounds = array<i64: 1, 1, 32>}, {transform_indices = @transform_6, window_bounds = array<i64: 1, 1, 32>}, {transform_indices = @transform_7, window_bounds = array<i64: 1, 1, 32>}, {transform_indices = @transform_8, window_bounds = array<i64: 1, 32, 2048>}, {transform_indices = @transform_9, window_bounds = array<i64: 1, 1, 2048>}, {transform_indices = @transform_10, window_bounds = array<i64: 1, 2048, 32>}, {transform_indices = @transform_11, window_bounds = array<i64: 1, 1, 32>}, {transform_indices = @transform_12, window_bounds = array<i64: 1, 1, 32>}, {transform_indices = @transform_13, window_bounds = array<i64: 1, 1, 32>}, {pipeline_mode = #tpu.pipeline_mode<synchronous>, transform_indices = @transform_14, window_bounds = array<i64: 2, 8, 32>}]} {
    %c0_i32 = arith.constant 0 : i32
    %0 = arith.cmpi eq, %arg0, %c0_i32 : i32
    %1 = arith.extui %0 : i1 to i32
    %c0_i32_0 = arith.constant 0 : i32
    %2 = arith.cmpi ne, %1, %c0_i32_0 : i32
    scf.if %2 {
      %c0_185 = arith.constant 0 : index
      %c0_186 = arith.constant 0 : index
      %c0_187 = arith.constant 0 : index
      %268 = vector.load %arg1[%c0_185, %c0_186, %c0_187] : memref<2x8x32xf32, #tpu.memory_space<vmem>>, vector<2x8x32xf32>
      %c0_188 = arith.constant 0 : index
      %c0_189 = arith.constant 0 : index
      %c0_190 = arith.constant 0 : index
      %269 = vector.load %arg15[%c0_188, %c0_189, %c0_190] : memref<2x8x32xf32, #tpu.memory_space<vmem>>, vector<2x8x32xf32>
      tpu.vector_store %arg15[%c0_188, %c0_189, %c0_190], %268 {strides = array<i32>} : memref<2x8x32xf32, #tpu.memory_space<vmem>>, vector<2x8x32xf32>,
    } else {
    }
    %c0 = arith.constant 0 : index
    %c0_1 = arith.constant 0 : index
    %c0_2 = arith.constant 0 : index
    %3 = vector.load %arg15[%c0, %c0_1, %c0_2] : memref<2x8x32xf32, #tpu.memory_space<vmem>>, vector<2x8x32xf32>
    %4 = vector.shape_cast %3 : vector<2x8x32xf32> to vector<16x32xf32>
    %c0_3 = arith.constant 0 : index
    %c0_4 = arith.constant 0 : index
    %5 = vector.load %arg2[%c0_3, %c0_4] : memref<2x8xf32, #tpu.memory_space<vmem>>, vector<2x8xf32>
    %6 = vector.shape_cast %5 : vector<2x8xf32> to vector<2x1x8xf32>
    %7 = arith.truncf %4 : vector<16x32xf32> to vector<16x32xbf16>
    %8 = arith.truncf %4 : vector<16x32xf32> to vector<16x32xbf16>
    %cst = arith.constant 0.000000e+00 : f32
    %9 = vector.broadcast %cst : f32 to vector<16x32xf32>
    %c0_5 = arith.constant 0 : index
    %c0_6 = arith.constant 0 : index
    %c0_7 = arith.constant 0 : index
    %c0_8 = arith.constant 0 : index
    %10 = vector.load %arg3[%c0_5, %c0_6, %c0_7, %c0_8] : memref<1x12x32x8xbf16, #tpu.memory_space<vmem>>, vector<1x1x32x8xbf16>
    %11 = vector.shape_cast %10 : vector<1x1x32x8xbf16> to vector<32x8xbf16>
    %cst_9 = arith.constant dense<0.000000e+00> : vector<16x8xf32>
    %12 = tpu.matmul %7, %11, %cst_9 {dimension_numbers = #tpu.dot_dimension_numbers<[1], [0], [0], [1], [0, 0, 1, 1], [], []>} : vector<16x32xbf16>, vector<32x8xbf16>, vector<16x8xf32> -> vector<16x8xf32>
    %c0_10 = arith.constant 0 : index
    %c0_11 = arith.constant 0 : index
    %c0_12 = arith.constant 0 : index
    %c0_13 = arith.constant 0 : index
    %13 = vector.load %arg4[%c0_10, %c0_11, %c0_12, %c0_13] : memref<1x12x1x8xf32, #tpu.memory_space<vmem>>, vector<1x1x1x8xf32>
    %14 = vector.shape_cast %13 : vector<1x1x1x8xf32> to vector<1x8xf32>
    %15 = vector.broadcast %14 : vector<1x8xf32> to vector<16x8xf32>
    %16 = arith.addf %12, %15 : vector<16x8xf32>
    %c0_14 = arith.constant 0 : index
    %c4 = arith.constant 4 : index
    %c0_15 = arith.constant 0 : index
    %c0_16 = arith.constant 0 : index
    %17 = vector.load %arg3[%c0_14, %c4, %c0_15, %c0_16] : memref<1x12x32x8xbf16, #tpu.memory_space<vmem>>, vector<1x1x32x8xbf16>
    %18 = vector.shape_cast %17 : vector<1x1x32x8xbf16> to vector<32x8xbf16>
    %cst_17 = arith.constant dense<0.000000e+00> : vector<16x8xf32>
    %19 = tpu.matmul %8, %18, %cst_17 {dimension_numbers = #tpu.dot_dimension_numbers<[1], [0], [0], [1], [0, 0, 1, 1], [], []>} : vector<16x32xbf16>, vector<32x8xbf16>, vector<16x8xf32> -> vector<16x8xf32>
    %c0_18 = arith.constant 0 : index
    %c4_19 = arith.constant 4 : index
    %c0_20 = arith.constant 0 : index
    %c0_21 = arith.constant 0 : index
    %20 = vector.load %arg4[%c0_18, %c4_19, %c0_20, %c0_21] : memref<1x12x1x8xf32, #tpu.memory_space<vmem>>, vector<1x1x1x8xf32>
    %21 = vector.shape_cast %20 : vector<1x1x1x8xf32> to vector<1x8xf32>
    %22 = vector.broadcast %21 : vector<1x8xf32> to vector<16x8xf32>
    %23 = arith.addf %19, %22 : vector<16x8xf32>
    %c0_22 = arith.constant 0 : index
    %c8 = arith.constant 8 : index
    %c0_23 = arith.constant 0 : index
    %c0_24 = arith.constant 0 : index
    %24 = vector.load %arg3[%c0_22, %c8, %c0_23, %c0_24] : memref<1x12x32x8xbf16, #tpu.memory_space<vmem>>, vector<1x1x32x8xbf16>
    %25 = vector.shape_cast %24 : vector<1x1x32x8xbf16> to vector<32x8xbf16>
    %cst_25 = arith.constant dense<0.000000e+00> : vector<16x8xf32>
    %26 = tpu.matmul %8, %25, %cst_25 {dimension_numbers = #tpu.dot_dimension_numbers<[1], [0], [0], [1], [0, 0, 1, 1], [], []>} : vector<16x32xbf16>, vector<32x8xbf16>, vector<16x8xf32> -> vector<16x8xf32>
    %c0_26 = arith.constant 0 : index
    %c8_27 = arith.constant 8 : index
    %c0_28 = arith.constant 0 : index
    %c0_29 = arith.constant 0 : index
    %27 = vector.load %arg4[%c0_26, %c8_27, %c0_28, %c0_29] : memref<1x12x1x8xf32, #tpu.memory_space<vmem>>, vector<1x1x1x8xf32>
    %28 = vector.shape_cast %27 : vector<1x1x1x8xf32> to vector<1x8xf32>
    %29 = vector.broadcast %28 : vector<1x8xf32> to vector<16x8xf32>
    %30 = arith.addf %26, %29 : vector<16x8xf32>
    %31 = vector.shape_cast %16 : vector<16x8xf32> to vector<2x8x8xf32>
    %32 = vector.shape_cast %23 : vector<16x8xf32> to vector<2x8x8xf32>
    "tpu.trace_start"() <{level = 10 : i32, message = "bqd,bkd->bqk"}> : () -> ()
    %cst_30 = arith.constant dense<0.000000e+00> : vector<2x8x8xf32>
    %33 = tpu.matmul %31, %32, %cst_30 {dimension_numbers = #tpu.dot_dimension_numbers<[2], [2], [1], [1], [0, 0, 0, 1, 1, 1], [0], [0]>} : vector<2x8x8xf32>, vector<2x8x8xf32>, vector<2x8x8xf32> -> vector<2x8x8xf32>
    "tpu.trace_stop"() : () -> ()
    %cst_31 = arith.constant 0.353553385 : f32
    %34 = vector.broadcast %cst_31 : f32 to vector<2x8x8xf32>
    %35 = arith.mulf %33, %34 : vector<2x8x8xf32>
    %36 = vector.broadcast %6 : vector<2x1x8xf32> to vector<2x8x8xf32>
    %37 = arith.addf %35, %36 : vector<2x8x8xf32>
    %cst_32 = arith.constant dense<0xFF800000> : vector<2x8xf32>
    %38 = vector.multi_reduction <maximumf>, %37, %cst_32 [2] : vector<2x8x8xf32> to vector<2x8xf32>
    %39 = vector.shape_cast %38 : vector<2x8xf32> to vector<2x8x1xf32>
    %40 = vector.broadcast %39 : vector<2x8x1xf32> to vector<2x8x8xf32>
    %41 = arith.subf %37, %40 : vector<2x8x8xf32>
    %42 = math.exp %41 : vector<2x8x8xf32>
    %cst_33 = arith.constant dense<0.000000e+00> : vector<2x8xf32>
    %43 = vector.multi_reduction <add>, %42, %cst_33 [2] : vector<2x8x8xf32> to vector<2x8xf32>
    %44 = vector.shape_cast %43 : vector<2x8xf32> to vector<2x8x1xf32>
    %45 = vector.broadcast %44 : vector<2x8x1xf32> to vector<2x8x8xf32>
    %46 = arith.divf %42, %45 : vector<2x8x8xf32>
    %47 = vector.shape_cast %30 : vector<16x8xf32> to vector<2x8x8xf32>
    "tpu.trace_start"() <{level = 10 : i32, message = "bqk,bkd->bqd"}> : () -> ()
    %cst_34 = arith.constant dense<0.000000e+00> : vector<2x8x8xf32>
    %48 = tpu.matmul %46, %47, %cst_34 {dimension_numbers = #tpu.dot_dimension_numbers<[2], [1], [1], [2], [0, 0, 0, 1, 1, 2], [0], [0]>} : vector<2x8x8xf32>, vector<2x8x8xf32>, vector<2x8x8xf32> -> vector<2x8x8xf32>
    "tpu.trace_stop"() : () -> ()
    %49 = vector.shape_cast %48 : vector<2x8x8xf32> to vector<16x8xf32>
    %50 = arith.truncf %49 : vector<16x8xf32> to vector<16x8xbf16>
    %c0_35 = arith.constant 0 : index
    %c0_36 = arith.constant 0 : index
    %c0_37 = arith.constant 0 : index
    %c0_38 = arith.constant 0 : index
    %51 = vector.load %arg5[%c0_35, %c0_36, %c0_37, %c0_38] : memref<1x4x8x32xbf16, #tpu.memory_space<vmem>>, vector<1x1x8x32xbf16>
    %52 = vector.shape_cast %51 : vector<1x1x8x32xbf16> to vector<8x32xbf16>
    %cst_39 = arith.constant dense<0.000000e+00> : vector<16x32xf32>
    %53 = tpu.matmul %50, %52, %cst_39 {dimension_numbers = #tpu.dot_dimension_numbers<[1], [0], [0], [1], [0, 0, 1, 1], [], []>} : vector<16x8xbf16>, vector<8x32xbf16>, vector<16x32xf32> -> vector<16x32xf32>
    %54 = arith.addf %9, %53 : vector<16x32xf32>
    %c0_40 = arith.constant 0 : index
    %c1 = arith.constant 1 : index
    %c0_41 = arith.constant 0 : index
    %c0_42 = arith.constant 0 : index
    %55 = vector.load %arg3[%c0_40, %c1, %c0_41, %c0_42] : memref<1x12x32x8xbf16, #tpu.memory_space<vmem>>, vector<1x1x32x8xbf16>
    %56 = vector.shape_cast %55 : vector<1x1x32x8xbf16> to vector<32x8xbf16>
    %cst_43 = arith.constant dense<0.000000e+00> : vector<16x8xf32>
    %57 = tpu.matmul %7, %56, %cst_43 {dimension_numbers = #tpu.dot_dimension_numbers<[1], [0], [0], [1], [0, 0, 1, 1], [], []>} : vector<16x32xbf16>, vector<32x8xbf16>, vector<16x8xf32> -> vector<16x8xf32>
    %c0_44 = arith.constant 0 : index
    %c1_45 = arith.constant 1 : index
    %c0_46 = arith.constant 0 : index
    %c0_47 = arith.constant 0 : index
    %58 = vector.load %arg4[%c0_44, %c1_45, %c0_46, %c0_47] : memref<1x12x1x8xf32, #tpu.memory_space<vmem>>, vector<1x1x1x8xf32>
    %59 = vector.shape_cast %58 : vector<1x1x1x8xf32> to vector<1x8xf32>
    %60 = vector.broadcast %59 : vector<1x8xf32> to vector<16x8xf32>
    %61 = arith.addf %57, %60 : vector<16x8xf32>
    %c0_48 = arith.constant 0 : index
    %c5 = arith.constant 5 : index
    %c0_49 = arith.constant 0 : index
    %c0_50 = arith.constant 0 : index
    %62 = vector.load %arg3[%c0_48, %c5, %c0_49, %c0_50] : memref<1x12x32x8xbf16, #tpu.memory_space<vmem>>, vector<1x1x32x8xbf16>
    %63 = vector.shape_cast %62 : vector<1x1x32x8xbf16> to vector<32x8xbf16>
    %cst_51 = arith.constant dense<0.000000e+00> : vector<16x8xf32>
    %64 = tpu.matmul %8, %63, %cst_51 {dimension_numbers = #tpu.dot_dimension_numbers<[1], [0], [0], [1], [0, 0, 1, 1], [], []>} : vector<16x32xbf16>, vector<32x8xbf16>, vector<16x8xf32> -> vector<16x8xf32>
    %c0_52 = arith.constant 0 : index
    %c5_53 = arith.constant 5 : index
    %c0_54 = arith.constant 0 : index
    %c0_55 = arith.constant 0 : index
    %65 = vector.load %arg4[%c0_52, %c5_53, %c0_54, %c0_55] : memref<1x12x1x8xf32, #tpu.memory_space<vmem>>, vector<1x1x1x8xf32>
    %66 = vector.shape_cast %65 : vector<1x1x1x8xf32> to vector<1x8xf32>
    %67 = vector.broadcast %66 : vector<1x8xf32> to vector<16x8xf32>
    %68 = arith.addf %64, %67 : vector<16x8xf32>
    %c0_56 = arith.constant 0 : index
    %c9 = arith.constant 9 : index
    %c0_57 = arith.constant 0 : index
    %c0_58 = arith.constant 0 : index
    %69 = vector.load %arg3[%c0_56, %c9, %c0_57, %c0_58] : memref<1x12x32x8xbf16, #tpu.memory_space<vmem>>, vector<1x1x32x8xbf16>
    %70 = vector.shape_cast %69 : vector<1x1x32x8xbf16> to vector<32x8xbf16>
    %cst_59 = arith.constant dense<0.000000e+00> : vector<16x8xf32>
    %71 = tpu.matmul %8, %70, %cst_59 {dimension_numbers = #tpu.dot_dimension_numbers<[1], [0], [0], [1], [0, 0, 1, 1], [], []>} : vector<16x32xbf16>, vector<32x8xbf16>, vector<16x8xf32> -> vector<16x8xf32>
    %c0_60 = arith.constant 0 : index
    %c9_61 = arith.constant 9 : index
    %c0_62 = arith.constant 0 : index
    %c0_63 = arith.constant 0 : index
    %72 = vector.load %arg4[%c0_60, %c9_61, %c0_62, %c0_63] : memref<1x12x1x8xf32, #tpu.memory_space<vmem>>, vector<1x1x1x8xf32>
    %73 = vector.shape_cast %72 : vector<1x1x1x8xf32> to vector<1x8xf32>
    %74 = vector.broadcast %73 : vector<1x8xf32> to vector<16x8xf32>
    %75 = arith.addf %71, %74 : vector<16x8xf32>
    %76 = vector.shape_cast %61 : vector<16x8xf32> to vector<2x8x8xf32>
    %77 = vector.shape_cast %68 : vector<16x8xf32> to vector<2x8x8xf32>
    "tpu.trace_start"() <{level = 10 : i32, message = "bqd,bkd->bqk"}> : () -> ()
    %cst_64 = arith.constant dense<0.000000e+00> : vector<2x8x8xf32>
    %78 = tpu.matmul %76, %77, %cst_64 {dimension_numbers = #tpu.dot_dimension_numbers<[2], [2], [1], [1], [0, 0, 0, 1, 1, 1], [0], [0]>} : vector<2x8x8xf32>, vector<2x8x8xf32>, vector<2x8x8xf32> -> vector<2x8x8xf32>
    "tpu.trace_stop"() : () -> ()
    %cst_65 = arith.constant 0.353553385 : f32
    %79 = vector.broadcast %cst_65 : f32 to vector<2x8x8xf32>
    %80 = arith.mulf %78, %79 : vector<2x8x8xf32>
    %81 = vector.broadcast %6 : vector<2x1x8xf32> to vector<2x8x8xf32>
    %82 = arith.addf %80, %81 : vector<2x8x8xf32>
    %cst_66 = arith.constant dense<0xFF800000> : vector<2x8xf32>
    %83 = vector.multi_reduction <maximumf>, %82, %cst_66 [2] : vector<2x8x8xf32> to vector<2x8xf32>
    %84 = vector.shape_cast %83 : vector<2x8xf32> to vector<2x8x1xf32>
    %85 = vector.broadcast %84 : vector<2x8x1xf32> to vector<2x8x8xf32>
    %86 = arith.subf %82, %85 : vector<2x8x8xf32>
    %87 = math.exp %86 : vector<2x8x8xf32>
    %cst_67 = arith.constant dense<0.000000e+00> : vector<2x8xf32>
    %88 = vector.multi_reduction <add>, %87, %cst_67 [2] : vector<2x8x8xf32> to vector<2x8xf32>
    %89 = vector.shape_cast %88 : vector<2x8xf32> to vector<2x8x1xf32>
    %90 = vector.broadcast %89 : vector<2x8x1xf32> to vector<2x8x8xf32>
    %91 = arith.divf %87, %90 : vector<2x8x8xf32>
    %92 = vector.shape_cast %75 : vector<16x8xf32> to vector<2x8x8xf32>
    "tpu.trace_start"() <{level = 10 : i32, message = "bqk,bkd->bqd"}> : () -> ()
    %cst_68 = arith.constant dense<0.000000e+00> : vector<2x8x8xf32>
    %93 = tpu.matmul %91, %92, %cst_68 {dimension_numbers = #tpu.dot_dimension_numbers<[2], [1], [1], [2], [0, 0, 0, 1, 1, 2], [0], [0]>} : vector<2x8x8xf32>, vector<2x8x8xf32>, vector<2x8x8xf32> -> vector<2x8x8xf32>
    "tpu.trace_stop"() : () -> ()
    %94 = vector.shape_cast %93 : vector<2x8x8xf32> to vector<16x8xf32>
    %95 = arith.truncf %94 : vector<16x8xf32> to vector<16x8xbf16>
    %c0_69 = arith.constant 0 : index
    %c1_70 = arith.constant 1 : index
    %c0_71 = arith.constant 0 : index
    %c0_72 = arith.constant 0 : index
    %96 = vector.load %arg5[%c0_69, %c1_70, %c0_71, %c0_72] : memref<1x4x8x32xbf16, #tpu.memory_space<vmem>>, vector<1x1x8x32xbf16>
    %97 = vector.shape_cast %96 : vector<1x1x8x32xbf16> to vector<8x32xbf16>
    %cst_73 = arith.constant dense<0.000000e+00> : vector<16x32xf32>
    %98 = tpu.matmul %95, %97, %cst_73 {dimension_numbers = #tpu.dot_dimension_numbers<[1], [0], [0], [1], [0, 0, 1, 1], [], []>} : vector<16x8xbf16>, vector<8x32xbf16>, vector<16x32xf32> -> vector<16x32xf32>
    %99 = arith.addf %54, %98 : vector<16x32xf32>
    %c0_74 = arith.constant 0 : index
    %c2 = arith.constant 2 : index
    %c0_75 = arith.constant 0 : index
    %c0_76 = arith.constant 0 : index
    %100 = vector.load %arg3[%c0_74, %c2, %c0_75, %c0_76] : memref<1x12x32x8xbf16, #tpu.memory_space<vmem>>, vector<1x1x32x8xbf16>
    %101 = vector.shape_cast %100 : vector<1x1x32x8xbf16> to vector<32x8xbf16>
    %cst_77 = arith.constant dense<0.000000e+00> : vector<16x8xf32>
    %102 = tpu.matmul %7, %101, %cst_77 {dimension_numbers = #tpu.dot_dimension_numbers<[1], [0], [0], [1], [0, 0, 1, 1], [], []>} : vector<16x32xbf16>, vector<32x8xbf16>, vector<16x8xf32> -> vector<16x8xf32>
    %c0_78 = arith.constant 0 : index
    %c2_79 = arith.constant 2 : index
    %c0_80 = arith.constant 0 : index
    %c0_81 = arith.constant 0 : index
    %103 = vector.load %arg4[%c0_78, %c2_79, %c0_80, %c0_81] : memref<1x12x1x8xf32, #tpu.memory_space<vmem>>, vector<1x1x1x8xf32>
    %104 = vector.shape_cast %103 : vector<1x1x1x8xf32> to vector<1x8xf32>
    %105 = vector.broadcast %104 : vector<1x8xf32> to vector<16x8xf32>
    %106 = arith.addf %102, %105 : vector<16x8xf32>
    %c0_82 = arith.constant 0 : index
    %c6 = arith.constant 6 : index
    %c0_83 = arith.constant 0 : index
    %c0_84 = arith.constant 0 : index
    %107 = vector.load %arg3[%c0_82, %c6, %c0_83, %c0_84] : memref<1x12x32x8xbf16, #tpu.memory_space<vmem>>, vector<1x1x32x8xbf16>
    %108 = vector.shape_cast %107 : vector<1x1x32x8xbf16> to vector<32x8xbf16>
    %cst_85 = arith.constant dense<0.000000e+00> : vector<16x8xf32>
    %109 = tpu.matmul %8, %108, %cst_85 {dimension_numbers = #tpu.dot_dimension_numbers<[1], [0], [0], [1], [0, 0, 1, 1], [], []>} : vector<16x32xbf16>, vector<32x8xbf16>, vector<16x8xf32> -> vector<16x8xf32>
    %c0_86 = arith.constant 0 : index
    %c6_87 = arith.constant 6 : index
    %c0_88 = arith.constant 0 : index
    %c0_89 = arith.constant 0 : index
    %110 = vector.load %arg4[%c0_86, %c6_87, %c0_88, %c0_89] : memref<1x12x1x8xf32, #tpu.memory_space<vmem>>, vector<1x1x1x8xf32>
    %111 = vector.shape_cast %110 : vector<1x1x1x8xf32> to vector<1x8xf32>
    %112 = vector.broadcast %111 : vector<1x8xf32> to vector<16x8xf32>
    %113 = arith.addf %109, %112 : vector<16x8xf32>
    %c0_90 = arith.constant 0 : index
    %c10 = arith.constant 10 : index
    %c0_91 = arith.constant 0 : index
    %c0_92 = arith.constant 0 : index
    %114 = vector.load %arg3[%c0_90, %c10, %c0_91, %c0_92] : memref<1x12x32x8xbf16, #tpu.memory_space<vmem>>, vector<1x1x32x8xbf16>
    %115 = vector.shape_cast %114 : vector<1x1x32x8xbf16> to vector<32x8xbf16>
    %cst_93 = arith.constant dense<0.000000e+00> : vector<16x8xf32>
    %116 = tpu.matmul %8, %115, %cst_93 {dimension_numbers = #tpu.dot_dimension_numbers<[1], [0], [0], [1], [0, 0, 1, 1], [], []>} : vector<16x32xbf16>, vector<32x8xbf16>, vector<16x8xf32> -> vector<16x8xf32>
    %c0_94 = arith.constant 0 : index
    %c10_95 = arith.constant 10 : index
    %c0_96 = arith.constant 0 : index
    %c0_97 = arith.constant 0 : index
    %117 = vector.load %arg4[%c0_94, %c10_95, %c0_96, %c0_97] : memref<1x12x1x8xf32, #tpu.memory_space<vmem>>, vector<1x1x1x8xf32>
    %118 = vector.shape_cast %117 : vector<1x1x1x8xf32> to vector<1x8xf32>
    %119 = vector.broadcast %118 : vector<1x8xf32> to vector<16x8xf32>
    %120 = arith.addf %116, %119 : vector<16x8xf32>
    %121 = vector.shape_cast %106 : vector<16x8xf32> to vector<2x8x8xf32>
    %122 = vector.shape_cast %113 : vector<16x8xf32> to vector<2x8x8xf32>
    "tpu.trace_start"() <{level = 10 : i32, message = "bqd,bkd->bqk"}> : () -> ()
    %cst_98 = arith.constant dense<0.000000e+00> : vector<2x8x8xf32>
    %123 = tpu.matmul %121, %122, %cst_98 {dimension_numbers = #tpu.dot_dimension_numbers<[2], [2], [1], [1], [0, 0, 0, 1, 1, 1], [0], [0]>} : vector<2x8x8xf32>, vector<2x8x8xf32>, vector<2x8x8xf32> -> vector<2x8x8xf32>
    "tpu.trace_stop"() : () -> ()
    %cst_99 = arith.constant 0.353553385 : f32
    %124 = vector.broadcast %cst_99 : f32 to vector<2x8x8xf32>
    %125 = arith.mulf %123, %124 : vector<2x8x8xf32>
    %126 = vector.broadcast %6 : vector<2x1x8xf32> to vector<2x8x8xf32>
    %127 = arith.addf %125, %126 : vector<2x8x8xf32>
    %cst_100 = arith.constant dense<0xFF800000> : vector<2x8xf32>
    %128 = vector.multi_reduction <maximumf>, %127, %cst_100 [2] : vector<2x8x8xf32> to vector<2x8xf32>
    %129 = vector.shape_cast %128 : vector<2x8xf32> to vector<2x8x1xf32>
    %130 = vector.broadcast %129 : vector<2x8x1xf32> to vector<2x8x8xf32>
    %131 = arith.subf %127, %130 : vector<2x8x8xf32>
    %132 = math.exp %131 : vector<2x8x8xf32>
    %cst_101 = arith.constant dense<0.000000e+00> : vector<2x8xf32>
    %133 = vector.multi_reduction <add>, %132, %cst_101 [2] : vector<2x8x8xf32> to vector<2x8xf32>
    %134 = vector.shape_cast %133 : vector<2x8xf32> to vector<2x8x1xf32>
    %135 = vector.broadcast %134 : vector<2x8x1xf32> to vector<2x8x8xf32>
    %136 = arith.divf %132, %135 : vector<2x8x8xf32>
    %137 = vector.shape_cast %120 : vector<16x8xf32> to vector<2x8x8xf32>
    "tpu.trace_start"() <{level = 10 : i32, message = "bqk,bkd->bqd"}> : () -> ()
    %cst_102 = arith.constant dense<0.000000e+00> : vector<2x8x8xf32>
    %138 = tpu.matmul %136, %137, %cst_102 {dimension_numbers = #tpu.dot_dimension_numbers<[2], [1], [1], [2], [0, 0, 0, 1, 1, 2], [0], [0]>} : vector<2x8x8xf32>, vector<2x8x8xf32>, vector<2x8x8xf32> -> vector<2x8x8xf32>
    "tpu.trace_stop"() : () -> ()
    %139 = vector.shape_cast %138 : vector<2x8x8xf32> to vector<16x8xf32>
    %140 = arith.truncf %139 : vector<16x8xf32> to vector<16x8xbf16>
    %c0_103 = arith.constant 0 : index
    %c2_104 = arith.constant 2 : index
    %c0_105 = arith.constant 0 : index
    %c0_106 = arith.constant 0 : index
    %141 = vector.load %arg5[%c0_103, %c2_104, %c0_105, %c0_106] : memref<1x4x8x32xbf16, #tpu.memory_space<vmem>>, vector<1x1x8x32xbf16>
    %142 = vector.shape_cast %141 : vector<1x1x8x32xbf16> to vector<8x32xbf16>
    %cst_107 = arith.constant dense<0.000000e+00> : vector<16x32xf32>
    %143 = tpu.matmul %140, %142, %cst_107 {dimension_numbers = #tpu.dot_dimension_numbers<[1], [0], [0], [1], [0, 0, 1, 1], [], []>} : vector<16x8xbf16>, vector<8x32xbf16>, vector<16x32xf32> -> vector<16x32xf32>
    %144 = arith.addf %99, %143 : vector<16x32xf32>
    %c0_108 = arith.constant 0 : index
    %c3 = arith.constant 3 : index
    %c0_109 = arith.constant 0 : index
    %c0_110 = arith.constant 0 : index
    %145 = vector.load %arg3[%c0_108, %c3, %c0_109, %c0_110] : memref<1x12x32x8xbf16, #tpu.memory_space<vmem>>, vector<1x1x32x8xbf16>
    %146 = vector.shape_cast %145 : vector<1x1x32x8xbf16> to vector<32x8xbf16>
    %cst_111 = arith.constant dense<0.000000e+00> : vector<16x8xf32>
    %147 = tpu.matmul %7, %146, %cst_111 {dimension_numbers = #tpu.dot_dimension_numbers<[1], [0], [0], [1], [0, 0, 1, 1], [], []>} : vector<16x32xbf16>, vector<32x8xbf16>, vector<16x8xf32> -> vector<16x8xf32>
    %c0_112 = arith.constant 0 : index
    %c3_113 = arith.constant 3 : index
    %c0_114 = arith.constant 0 : index
    %c0_115 = arith.constant 0 : index
    %148 = vector.load %arg4[%c0_112, %c3_113, %c0_114, %c0_115] : memref<1x12x1x8xf32, #tpu.memory_space<vmem>>, vector<1x1x1x8xf32>
    %149 = vector.shape_cast %148 : vector<1x1x1x8xf32> to vector<1x8xf32>
    %150 = vector.broadcast %149 : vector<1x8xf32> to vector<16x8xf32>
    %151 = arith.addf %147, %150 : vector<16x8xf32>
    %c0_116 = arith.constant 0 : index
    %c7 = arith.constant 7 : index
    %c0_117 = arith.constant 0 : index
    %c0_118 = arith.constant 0 : index
    %152 = vector.load %arg3[%c0_116, %c7, %c0_117, %c0_118] : memref<1x12x32x8xbf16, #tpu.memory_space<vmem>>, vector<1x1x32x8xbf16>
    %153 = vector.shape_cast %152 : vector<1x1x32x8xbf16> to vector<32x8xbf16>
    %cst_119 = arith.constant dense<0.000000e+00> : vector<16x8xf32>
    %154 = tpu.matmul %8, %153, %cst_119 {dimension_numbers = #tpu.dot_dimension_numbers<[1], [0], [0], [1], [0, 0, 1, 1], [], []>} : vector<16x32xbf16>, vector<32x8xbf16>, vector<16x8xf32> -> vector<16x8xf32>
    %c0_120 = arith.constant 0 : index
    %c7_121 = arith.constant 7 : index
    %c0_122 = arith.constant 0 : index
    %c0_123 = arith.constant 0 : index
    %155 = vector.load %arg4[%c0_120, %c7_121, %c0_122, %c0_123] : memref<1x12x1x8xf32, #tpu.memory_space<vmem>>, vector<1x1x1x8xf32>
    %156 = vector.shape_cast %155 : vector<1x1x1x8xf32> to vector<1x8xf32>
    %157 = vector.broadcast %156 : vector<1x8xf32> to vector<16x8xf32>
    %158 = arith.addf %154, %157 : vector<16x8xf32>
    %c0_124 = arith.constant 0 : index
    %c11 = arith.constant 11 : index
    %c0_125 = arith.constant 0 : index
    %c0_126 = arith.constant 0 : index
    %159 = vector.load %arg3[%c0_124, %c11, %c0_125, %c0_126] : memref<1x12x32x8xbf16, #tpu.memory_space<vmem>>, vector<1x1x32x8xbf16>
    %160 = vector.shape_cast %159 : vector<1x1x32x8xbf16> to vector<32x8xbf16>
    %cst_127 = arith.constant dense<0.000000e+00> : vector<16x8xf32>
    %161 = tpu.matmul %8, %160, %cst_127 {dimension_numbers = #tpu.dot_dimension_numbers<[1], [0], [0], [1], [0, 0, 1, 1], [], []>} : vector<16x32xbf16>, vector<32x8xbf16>, vector<16x8xf32> -> vector<16x8xf32>
    %c0_128 = arith.constant 0 : index
    %c11_129 = arith.constant 11 : index
    %c0_130 = arith.constant 0 : index
    %c0_131 = arith.constant 0 : index
    %162 = vector.load %arg4[%c0_128, %c11_129, %c0_130, %c0_131] : memref<1x12x1x8xf32, #tpu.memory_space<vmem>>, vector<1x1x1x8xf32>
    %163 = vector.shape_cast %162 : vector<1x1x1x8xf32> to vector<1x8xf32>
    %164 = vector.broadcast %163 : vector<1x8xf32> to vector<16x8xf32>
    %165 = arith.addf %161, %164 : vector<16x8xf32>
    %166 = vector.shape_cast %151 : vector<16x8xf32> to vector<2x8x8xf32>
    %167 = vector.shape_cast %158 : vector<16x8xf32> to vector<2x8x8xf32>
    "tpu.trace_start"() <{level = 10 : i32, message = "bqd,bkd->bqk"}> : () -> ()
    %cst_132 = arith.constant dense<0.000000e+00> : vector<2x8x8xf32>
    %168 = tpu.matmul %166, %167, %cst_132 {dimension_numbers = #tpu.dot_dimension_numbers<[2], [2], [1], [1], [0, 0, 0, 1, 1, 1], [0], [0]>} : vector<2x8x8xf32>, vector<2x8x8xf32>, vector<2x8x8xf32> -> vector<2x8x8xf32>
    "tpu.trace_stop"() : () -> ()
    %cst_133 = arith.constant 0.353553385 : f32
    %169 = vector.broadcast %cst_133 : f32 to vector<2x8x8xf32>
    %170 = arith.mulf %168, %169 : vector<2x8x8xf32>
    %171 = vector.broadcast %6 : vector<2x1x8xf32> to vector<2x8x8xf32>
    %172 = arith.addf %170, %171 : vector<2x8x8xf32>
    %cst_134 = arith.constant dense<0xFF800000> : vector<2x8xf32>
    %173 = vector.multi_reduction <maximumf>, %172, %cst_134 [2] : vector<2x8x8xf32> to vector<2x8xf32>
    %174 = vector.shape_cast %173 : vector<2x8xf32> to vector<2x8x1xf32>
    %175 = vector.broadcast %174 : vector<2x8x1xf32> to vector<2x8x8xf32>
    %176 = arith.subf %172, %175 : vector<2x8x8xf32>
    %177 = math.exp %176 : vector<2x8x8xf32>
    %cst_135 = arith.constant dense<0.000000e+00> : vector<2x8xf32>
    %178 = vector.multi_reduction <add>, %177, %cst_135 [2] : vector<2x8x8xf32> to vector<2x8xf32>
    %179 = vector.shape_cast %178 : vector<2x8xf32> to vector<2x8x1xf32>
    %180 = vector.broadcast %179 : vector<2x8x1xf32> to vector<2x8x8xf32>
    %181 = arith.divf %177, %180 : vector<2x8x8xf32>
    %182 = vector.shape_cast %165 : vector<16x8xf32> to vector<2x8x8xf32>
    "tpu.trace_start"() <{level = 10 : i32, message = "bqk,bkd->bqd"}> : () -> ()
    %cst_136 = arith.constant dense<0.000000e+00> : vector<2x8x8xf32>
    %183 = tpu.matmul %181, %182, %cst_136 {dimension_numbers = #tpu.dot_dimension_numbers<[2], [1], [1], [2], [0, 0, 0, 1, 1, 2], [0], [0]>} : vector<2x8x8xf32>, vector<2x8x8xf32>, vector<2x8x8xf32> -> vector<2x8x8xf32>
    "tpu.trace_stop"() : () -> ()
    %184 = vector.shape_cast %183 : vector<2x8x8xf32> to vector<16x8xf32>
    %185 = arith.truncf %184 : vector<16x8xf32> to vector<16x8xbf16>
    %c0_137 = arith.constant 0 : index
    %c3_138 = arith.constant 3 : index
    %c0_139 = arith.constant 0 : index
    %c0_140 = arith.constant 0 : index
    %186 = vector.load %arg5[%c0_137, %c3_138, %c0_139, %c0_140] : memref<1x4x8x32xbf16, #tpu.memory_space<vmem>>, vector<1x1x8x32xbf16>
    %187 = vector.shape_cast %186 : vector<1x1x8x32xbf16> to vector<8x32xbf16>
    %cst_141 = arith.constant dense<0.000000e+00> : vector<16x32xf32>
    %188 = tpu.matmul %185, %187, %cst_141 {dimension_numbers = #tpu.dot_dimension_numbers<[1], [0], [0], [1], [0, 0, 1, 1], [], []>} : vector<16x8xbf16>, vector<8x32xbf16>, vector<16x32xf32> -> vector<16x32xf32>
    %189 = arith.addf %144, %188 : vector<16x32xf32>
    %c0_142 = arith.constant 0 : index
    %c0_143 = arith.constant 0 : index
    %c0_144 = arith.constant 0 : index
    %190 = vector.load %arg6[%c0_142, %c0_143, %c0_144] : memref<1x1x32xf32, #tpu.memory_space<vmem>>, vector<1x1x32xf32>
    %191 = vector.shape_cast %190 : vector<1x1x32xf32> to vector<1x32xf32>
    %192 = vector.broadcast %191 : vector<1x32xf32> to vector<16x32xf32>
    %193 = arith.addf %189, %192 : vector<16x32xf32>
    %194 = arith.addf %4, %193 : vector<16x32xf32>
    %c0_145 = arith.constant 0 : index
    %c0_146 = arith.constant 0 : index
    %c0_147 = arith.constant 0 : index
    %195 = vector.load %arg7[%c0_145, %c0_146, %c0_147] : memref<1x1x32xf32, #tpu.memory_space<vmem>>, vector<1x1x32xf32>
    %196 = vector.shape_cast %195 : vector<1x1x32xf32> to vector<1x32xf32>
    %c0_148 = arith.constant 0 : index
    %c0_149 = arith.constant 0 : index
    %c0_150 = arith.constant 0 : index
    %197 = vector.load %arg8[%c0_148, %c0_149, %c0_150] : memref<1x1x32xf32, #tpu.memory_space<vmem>>, vector<1x1x32xf32>
    %198 = vector.shape_cast %197 : vector<1x1x32xf32> to vector<1x32xf32>
    %cst_151 = arith.constant dense<0.000000e+00> : vector<16xf32>
    %199 = vector.multi_reduction <add>, %194, %cst_151 [1] : vector<16x32xf32> to vector<16xf32>
    %200 = vector.shape_cast %199 : vector<16xf32> to vector<16x1xf32>
    %cst_152 = arith.constant 3.200000e+01 : f32
    %201 = vector.broadcast %cst_152 : f32 to vector<16x1xf32>
    %202 = arith.divf %200, %201 : vector<16x1xf32>
    %203 = vector.broadcast %202 : vector<16x1xf32> to vector<16x32xf32>
    %204 = arith.subf %194, %203 : vector<16x32xf32>
    %205 = arith.mulf %204, %204 : vector<16x32xf32>
    %cst_153 = arith.constant dense<0.000000e+00> : vector<16xf32>
    %206 = vector.multi_reduction <add>, %205, %cst_153 [1] : vector<16x32xf32> to vector<16xf32>
    %207 = vector.shape_cast %206 : vector<16xf32> to vector<16x1xf32>
    %cst_154 = arith.constant 3.200000e+01 : f32
    %208 = vector.broadcast %cst_154 : f32 to vector<16x1xf32>
    %209 = arith.divf %207, %208 : vector<16x1xf32>
    %210 = vector.broadcast %202 : vector<16x1xf32> to vector<16x32xf32>
    %211 = arith.subf %194, %210 : vector<16x32xf32>
    %cst_155 = arith.constant 9.99999974E-6 : f32
    %212 = vector.broadcast %cst_155 : f32 to vector<16x1xf32>
    %213 = arith.addf %209, %212 : vector<16x1xf32>
    %214 = math.rsqrt %213 : vector<16x1xf32>
    %215 = vector.broadcast %214 : vector<16x1xf32> to vector<16x32xf32>
    %216 = arith.mulf %211, %215 : vector<16x32xf32>
    %217 = vector.broadcast %196 : vector<1x32xf32> to vector<16x32xf32>
    %218 = arith.mulf %216, %217 : vector<16x32xf32>
    %219 = vector.broadcast %198 : vector<1x32xf32> to vector<16x32xf32>
    %220 = arith.addf %218, %219 : vector<16x32xf32>
    %c0_156 = arith.constant 0 : index
    %c0_157 = arith.constant 0 : index
    %c0_158 = arith.constant 0 : index
    %221 = vector.load %arg9[%c0_156, %c0_157, %c0_158] : memref<1x32x2048xbf16, #tpu.memory_space<vmem>>, vector<1x32x2048xbf16>
    %222 = vector.shape_cast %221 : vector<1x32x2048xbf16> to vector<32x2048xbf16>
    %c0_159 = arith.constant 0 : index
    %c0_160 = arith.constant 0 : index
    %c0_161 = arith.constant 0 : index
    %223 = vector.load %arg10[%c0_159, %c0_160, %c0_161] : memref<1x1x2048xf32, #tpu.memory_space<vmem>>, vector<1x1x2048xf32>
    %224 = vector.shape_cast %223 : vector<1x1x2048xf32> to vector<1x2048xf32>
    %c0_162 = arith.constant 0 : index
    %c0_163 = arith.constant 0 : index
    %c0_164 = arith.constant 0 : index
    %225 = vector.load %arg11[%c0_162, %c0_163, %c0_164] : memref<1x2048x32xbf16, #tpu.memory_space<vmem>>, vector<1x2048x32xbf16>
    %226 = vector.shape_cast %225 : vector<1x2048x32xbf16> to vector<2048x32xbf16>
    %c0_165 = arith.constant 0 : index
    %c0_166 = arith.constant 0 : index
    %c0_167 = arith.constant 0 : index
    %227 = vector.load %arg12[%c0_165, %c0_166, %c0_167] : memref<1x1x32xf32, #tpu.memory_space<vmem>>, vector<1x1x32xf32>
    %228 = vector.shape_cast %227 : vector<1x1x32xf32> to vector<1x32xf32>
    %229 = arith.truncf %220 : vector<16x32xf32> to vector<16x32xbf16>
    %cst_168 = arith.constant dense<0.000000e+00> : vector<16x2048xf32>
    %230 = tpu.matmul %229, %222, %cst_168 {dimension_numbers = #tpu.dot_dimension_numbers<[1], [0], [0], [1], [0, 0, 1, 1], [], []>} : vector<16x32xbf16>, vector<32x2048xbf16>, vector<16x2048xf32> -> vector<16x2048xf32>
    %231 = vector.broadcast %224 : vector<1x2048xf32> to vector<16x2048xf32>
    %232 = arith.addf %230, %231 : vector<16x2048xf32>
    %cst_169 = arith.constant 0.000000e+00 : f32
    %233 = vector.broadcast %cst_169 : f32 to vector<16x2048xf32>
    %234 = arith.maximumf %232, %233 : vector<16x2048xf32>
    %235 = arith.truncf %234 : vector<16x2048xf32> to vector<16x2048xbf16>
    %cst_170 = arith.constant dense<0.000000e+00> : vector<16x32xf32>
    %236 = tpu.matmul %235, %226, %cst_170 {dimension_numbers = #tpu.dot_dimension_numbers<[1], [0], [0], [1], [0, 0, 1, 1], [], []>} : vector<16x2048xbf16>, vector<2048x32xbf16>, vector<16x32xf32> -> vector<16x32xf32>
    %237 = vector.broadcast %228 : vector<1x32xf32> to vector<16x32xf32>
    %238 = arith.addf %236, %237 : vector<16x32xf32>
    %239 = arith.addf %220, %238 : vector<16x32xf32>
    %c0_171 = arith.constant 0 : index
    %c0_172 = arith.constant 0 : index
    %c0_173 = arith.constant 0 : index
    %240 = vector.load %arg13[%c0_171, %c0_172, %c0_173] : memref<1x1x32xf32, #tpu.memory_space<vmem>>, vector<1x1x32xf32>
    %241 = vector.shape_cast %240 : vector<1x1x32xf32> to vector<1x32xf32>
    %c0_174 = arith.constant 0 : index
    %c0_175 = arith.constant 0 : index
    %c0_176 = arith.constant 0 : index
    %242 = vector.load %arg14[%c0_174, %c0_175, %c0_176] : memref<1x1x32xf32, #tpu.memory_space<vmem>>, vector<1x1x32xf32>
    %243 = vector.shape_cast %242 : vector<1x1x32xf32> to vector<1x32xf32>
    %cst_177 = arith.constant dense<0.000000e+00> : vector<16xf32>
    %244 = vector.multi_reduction <add>, %239, %cst_177 [1] : vector<16x32xf32> to vector<16xf32>
    %245 = vector.shape_cast %244 : vector<16xf32> to vector<16x1xf32>
    %cst_178 = arith.constant 3.200000e+01 : f32
    %246 = vector.broadcast %cst_178 : f32 to vector<16x1xf32>
    %247 = arith.divf %245, %246 : vector<16x1xf32>
    %248 = vector.broadcast %247 : vector<16x1xf32> to vector<16x32xf32>
    %249 = arith.subf %239, %248 : vector<16x32xf32>
    %250 = arith.mulf %249, %249 : vector<16x32xf32>
    %cst_179 = arith.constant dense<0.000000e+00> : vector<16xf32>
    %251 = vector.multi_reduction <add>, %250, %cst_179 [1] : vector<16x32xf32> to vector<16xf32>
    %252 = vector.shape_cast %251 : vector<16xf32> to vector<16x1xf32>
    %cst_180 = arith.constant 3.200000e+01 : f32
    %253 = vector.broadcast %cst_180 : f32 to vector<16x1xf32>
    %254 = arith.divf %252, %253 : vector<16x1xf32>
    %255 = vector.broadcast %247 : vector<16x1xf32> to vector<16x32xf32>
    %256 = arith.subf %239, %255 : vector<16x32xf32>
    %cst_181 = arith.constant 9.99999974E-6 : f32
    %257 = vector.broadcast %cst_181 : f32 to vector<16x1xf32>
    %258 = arith.addf %254, %257 : vector<16x1xf32>
    %259 = math.rsqrt %258 : vector<16x1xf32>
    %260 = vector.broadcast %259 : vector<16x1xf32> to vector<16x32xf32>
    %261 = arith.mulf %256, %260 : vector<16x32xf32>
    %262 = vector.broadcast %241 : vector<1x32xf32> to vector<16x32xf32>
    %263 = arith.mulf %261, %262 : vector<16x32xf32>
    %264 = vector.broadcast %243 : vector<1x32xf32> to vector<16x32xf32>
    %265 = arith.addf %263, %264 : vector<16x32xf32>
    %266 = vector.shape_cast %265 : vector<16x32xf32> to vector<2x8x32xf32>
    %c0_182 = arith.constant 0 : index
    %c0_183 = arith.constant 0 : index
    %c0_184 = arith.constant 0 : index
    %267 = vector.load %arg15[%c0_182, %c0_183, %c0_184] : memref<2x8x32xf32, #tpu.memory_space<vmem>>, vector<2x8x32xf32>
    tpu.vector_store %arg15[%c0_182, %c0_183, %c0_184], %266 {strides = array<i32>} : memref<2x8x32xf32, #tpu.memory_space<vmem>>, vector<2x8x32xf32>,
    return
  }
  func.func @transform_0(%arg0: i32) -> (i32, i32, i32) {
    %c0_i32 = arith.constant 0 : i32
    %c0_i32_0 = arith.constant 0 : i32
    %c0_i32_1 = arith.constant 0 : i32
    %c0_i32_2 = arith.constant 0 : i32
    return %c0_i32, %c0_i32_0, %c0_i32_1 : i32, i32, i32
  }
  func.func @transform_1(%arg0: i32) -> (i32, i32) {
    %c0_i32 = arith.constant 0 : i32
    %c0_i32_0 = arith.constant 0 : i32
    %c0_i32_1 = arith.constant 0 : i32
    return %c0_i32, %c0_i32_0 : i32, i32
  }
  func.func @transform_2(%arg0: i32) -> (i32, i32, i32, i32) {
    %c0_i32 = arith.constant 0 : i32
    %c0_i32_0 = arith.constant 0 : i32
    %c0_i32_1 = arith.constant 0 : i32
    %c0_i32_2 = arith.constant 0 : i32
    return %arg0, %c0_i32, %c0_i32_0, %c0_i32_1 : i32, i32, i32, i32
  }
  func.func @transform_3(%arg0: i32) -> (i32, i32, i32, i32) {
    %c0_i32 = arith.constant 0 : i32
    %c0_i32_0 = arith.constant 0 : i32
    %c0_i32_1 = arith.constant 0 : i32
    %c0_i32_2 = arith.constant 0 : i32
    return %arg0, %c0_i32, %c0_i32_0, %c0_i32_1 : i32, i32, i32, i32
  }
  func.func @transform_4(%arg0: i32) -> (i32, i32, i32, i32) {
    %c0_i32 = arith.constant 0 : i32
    %c0_i32_0 = arith.constant 0 : i32
    %c0_i32_1 = arith.constant 0 : i32
    %c0_i32_2 = arith.constant 0 : i32
    return %arg0, %c0_i32, %c0_i32_0, %c0_i32_1 : i32, i32, i32, i32
  }
  func.func @transform_5(%arg0: i32) -> (i32, i32, i32) {
    %c0_i32 = arith.constant 0 : i32
    %c0_i32_0 = arith.constant 0 : i32
    %c0_i32_1 = arith.constant 0 : i32
    return %arg0, %c0_i32, %c0_i32_0 : i32, i32, i32
  }
  func.func @transform_6(%arg0: i32) -> (i32, i32, i32) {
    %c0_i32 = arith.constant 0 : i32
    %c0_i32_0 = arith.constant 0 : i32
    %c0_i32_1 = arith.constant 0 : i32
    return %arg0, %c0_i32, %c0_i32_0 : i32, i32, i32
  }
  func.func @transform_7(%arg0: i32) -> (i32, i32, i32) {
    %c0_i32 = arith.constant 0 : i32
    %c0_i32_0 = arith.constant 0 : i32
    %c0_i32_1 = arith.constant 0 : i32
    return %arg0, %c0_i32, %c0_i32_0 : i32, i32, i32
  }
  func.func @transform_8(%arg0: i32) -> (i32, i32, i32) {
    %c0_i32 = arith.constant 0 : i32
    %c0_i32_0 = arith.constant 0 : i32
    %c0_i32_1 = arith.constant 0 : i32
    return %arg0, %c0_i32, %c0_i32_0 : i32, i32, i32
  }
  func.func @transform_9(%arg0: i32) -> (i32, i32, i32) {
    %c0_i32 = arith.constant 0 : i32
    %c0_i32_0 = arith.constant 0 : i32
    %c0_i32_1 = arith.constant 0 : i32
    return %arg0, %c0_i32, %c0_i32_0 : i32, i32, i32
  }
  func.func @transform_10(%arg0: i32) -> (i32, i32, i32) {
    %c0_i32 = arith.constant 0 : i32
    %c0_i32_0 = arith.constant 0 : i32
    %c0_i32_1 = arith.constant 0 : i32
    return %arg0, %c0_i32, %c0_i32_0 : i32, i32, i32
  }
  func.func @transform_11(%arg0: i32) -> (i32, i32, i32) {
    %c0_i32 = arith.constant 0 : i32
    %c0_i32_0 = arith.constant 0 : i32
    %c0_i32_1 = arith.constant 0 : i32
    return %arg0, %c0_i32, %c0_i32_0 : i32, i32, i32
  }
  func.func @transform_12(%arg0: i32) -> (i32, i32, i32) {
    %c0_i32 = arith.constant 0 : i32
    %c0_i32_0 = arith.constant 0 : i32
    %c0_i32_1 = arith.constant 0 : i32
    return %arg0, %c0_i32, %c0_i32_0 : i32, i32, i32
  }
  func.func @transform_13(%arg0: i32) -> (i32, i32, i32) {
    %c0_i32 = arith.constant 0 : i32
    %c0_i32_0 = arith.constant 0 : i32
    %c0_i32_1 = arith.constant 0 : i32
    return %arg0, %c0_i32, %c0_i32_0 : i32, i32, i32
  }
  func.func @transform_14(%arg0: i32) -> (i32, i32, i32) {
    %c0_i32 = arith.constant 0 : i32
    %c0_i32_0 = arith.constant 0 : i32
    %c0_i32_1 = arith.constant 0 : i32
    %c0_i32_2 = arith.constant 0 : i32
    return %c0_i32, %c0_i32_0, %c0_i32_1 : i32, i32, i32
  }
}

module attributes {stable_mosaic.version = 11 : i64} {
  func.func @dec_stack_kernel(%arg0: i32, %arg1: memref<2x8x32xf32, #tpu.memory_space<vmem>>, %arg2: memref<2x8x32xf32, #tpu.memory_space<vmem>>, %arg3: memref<2x8xf32, #tpu.memory_space<vmem>>, %arg4: memref<2x8xf32, #tpu.memory_space<vmem>>, %arg5: memref<8x8xf32, #tpu.memory_space<vmem>>, %arg6: memref<1x12x32x8xbf16, #tpu.memory_space<vmem>>, %arg7: memref<1x12x1x8xf32, #tpu.memory_space<vmem>>, %arg8: memref<1x4x8x32xbf16, #tpu.memory_space<vmem>>, %arg9: memref<1x1x32xf32, #tpu.memory_space<vmem>>, %arg10: memref<1x12x32x8xbf16, #tpu.memory_space<vmem>>, %arg11: memref<1x12x1x8xf32, #tpu.memory_space<vmem>>, %arg12: memref<1x4x8x32xbf16, #tpu.memory_space<vmem>>, %arg13: memref<1x1x32xf32, #tpu.memory_space<vmem>>, %arg14: memref<1x1x32xf32, #tpu.memory_space<vmem>>, %arg15: memref<1x1x32xf32, #tpu.memory_space<vmem>>, %arg16: memref<1x1x32xf32, #tpu.memory_space<vmem>>, %arg17: memref<1x1x32xf32, #tpu.memory_space<vmem>>, %arg18: memref<1x1x32xf32, #tpu.memory_space<vmem>>, %arg19: memref<1x1x32xf32, #tpu.memory_space<vmem>>, %arg20: memref<1x32x2048xbf16, #tpu.memory_space<vmem>>, %arg21: memref<1x1x2048xf32, #tpu.memory_space<vmem>>, %arg22: memref<1x2048x32xbf16, #tpu.memory_space<vmem>>, %arg23: memref<1x1x32xf32, #tpu.memory_space<vmem>>, %arg24: memref<2x8x32xf32, #tpu.memory_space<vmem>>) attributes {dimension_semantics = [#tpu.dimension_semantics<arbitrary>], iteration_bounds = array<i64: 2>, scalar_prefetch = 0 : i64, scratch_operands = 0 : i64, tpu.core_type = #tpu.core_type<tc>, window_params = [{pipeline_mode = #tpu.pipeline_mode<synchronous>, transform_indices = @transform_0, window_bounds = array<i64: 2, 8, 32>}, {pipeline_mode = #tpu.pipeline_mode<synchronous>, transform_indices = @transform_1, window_bounds = array<i64: 2, 8, 32>}, {pipeline_mode = #tpu.pipeline_mode<synchronous>, transform_indices = @transform_2, window_bounds = array<i64: 2, 8>}, {pipeline_mode = #tpu.pipeline_mode<synchronous>, transform_indices = @transform_3, window_bounds = array<i64: 2, 8>}, {pipeline_mode = #tpu.pipeline_mode<synchronous>, transform_indices = @transform_4, window_bounds = array<i64: 8, 8>}, {transform_indices = @transform_5, window_bounds = array<i64: 1, 12, 32, 8>}, {transform_indices = @transform_6, window_bounds = array<i64: 1, 12, 1, 8>}, {transform_indices = @transform_7, window_bounds = array<i64: 1, 4, 8, 32>}, {transform_indices = @transform_8, window_bounds = array<i64: 1, 1, 32>}, {transform_indices = @transform_9, window_bounds = array<i64: 1, 12, 32, 8>}, {transform_indices = @transform_10, window_bounds = array<i64: 1, 12, 1, 8>}, {transform_indices = @transform_11, window_bounds = array<i64: 1, 4, 8, 32>}, {transform_indices = @transform_12, window_bounds = array<i64: 1, 1, 32>}, {transform_indices = @transform_13, window_bounds = array<i64: 1, 1, 32>}, {transform_indices = @transform_14, window_bounds = array<i64: 1, 1, 32>}, {transform_indices = @transform_15, window_bounds = array<i64: 1, 1, 32>}, {transform_indices = @transform_16, window_bounds = array<i64: 1, 1, 32>}, {transform_indices = @transform_17, window_bounds = array<i64: 1, 1, 32>}, {transform_indices = @transform_18, window_bounds = array<i64: 1, 1, 32>}, {transform_indices = @transform_19, window_bounds = array<i64: 1, 32, 2048>}, {transform_indices = @transform_20, window_bounds = array<i64: 1, 1, 2048>}, {transform_indices = @transform_21, window_bounds = array<i64: 1, 2048, 32>}, {transform_indices = @transform_22, window_bounds = array<i64: 1, 1, 32>}, {pipeline_mode = #tpu.pipeline_mode<synchronous>, transform_indices = @transform_23, window_bounds = array<i64: 2, 8, 32>}]} {
    %c0_i32 = arith.constant 0 : i32
    %0 = arith.cmpi eq, %arg0, %c0_i32 : i32
    %1 = arith.extui %0 : i1 to i32
    %c0_i32_0 = arith.constant 0 : i32
    %2 = arith.cmpi ne, %1, %c0_i32_0 : i32
    scf.if %2 {
      %c0_355 = arith.constant 0 : index
      %c0_356 = arith.constant 0 : index
      %c0_357 = arith.constant 0 : index
      %487 = vector.load %arg1[%c0_355, %c0_356, %c0_357] : memref<2x8x32xf32, #tpu.memory_space<vmem>>, vector<2x8x32xf32>
      %c0_358 = arith.constant 0 : index
      %c0_359 = arith.constant 0 : index
      %c0_360 = arith.constant 0 : index
      %488 = vector.load %arg24[%c0_358, %c0_359, %c0_360] : memref<2x8x32xf32, #tpu.memory_space<vmem>>, vector<2x8x32xf32>
      tpu.vector_store %arg24[%c0_358, %c0_359, %c0_360], %487 {strides = array<i32>} : memref<2x8x32xf32, #tpu.memory_space<vmem>>, vector<2x8x32xf32>,
    } else {
    }
    %c0 = arith.constant 0 : index
    %c0_1 = arith.constant 0 : index
    %c0_2 = arith.constant 0 : index
    %3 = vector.load %arg24[%c0, %c0_1, %c0_2] : memref<2x8x32xf32, #tpu.memory_space<vmem>>, vector<2x8x32xf32>
    %4 = vector.shape_cast %3 : vector<2x8x32xf32> to vector<16x32xf32>
    %c0_3 = arith.constant 0 : index
    %c0_4 = arith.constant 0 : index
    %c0_5 = arith.constant 0 : index
    %5 = vector.load %arg2[%c0_3, %c0_4, %c0_5] : memref<2x8x32xf32, #tpu.memory_space<vmem>>, vector<2x8x32xf32>
    %6 = vector.shape_cast %5 : vector<2x8x32xf32> to vector<16x32xf32>
    %c0_6 = arith.constant 0 : index
    %c0_7 = arith.constant 0 : index
    %7 = vector.load %arg3[%c0_6, %c0_7] : memref<2x8xf32, #tpu.memory_space<vmem>>, vector<2x8xf32>
    %8 = vector.shape_cast %7 : vector<2x8xf32> to vector<2x1x8xf32>
    %c0_8 = arith.constant 0 : index
    %c0_9 = arith.constant 0 : index
    %9 = vector.load %arg5[%c0_8, %c0_9] : memref<8x8xf32, #tpu.memory_space<vmem>>, vector<8x8xf32>
    %10 = vector.shape_cast %9 : vector<8x8xf32> to vector<1x8x8xf32>
    %11 = vector.broadcast %8 : vector<2x1x8xf32> to vector<2x8x8xf32>
    %12 = vector.broadcast %10 : vector<1x8x8xf32> to vector<2x8x8xf32>
    %13 = arith.addf %11, %12 : vector<2x8x8xf32>
    %c0_10 = arith.constant 0 : index
    %c0_11 = arith.constant 0 : index
    %14 = vector.load %arg4[%c0_10, %c0_11] : memref<2x8xf32, #tpu.memory_space<vmem>>, vector<2x8xf32>
    %15 = vector.shape_cast %14 : vector<2x8xf32> to vector<2x1x8xf32>
    %16 = arith.truncf %4 : vector<16x32xf32> to vector<16x32xbf16>
    %17 = arith.truncf %4 : vector<16x32xf32> to vector<16x32xbf16>
    %cst = arith.constant 0.000000e+00 : f32
    %18 = vector.broadcast %cst : f32 to vector<16x32xf32>
    %c0_12 = arith.constant 0 : index
    %c0_13 = arith.constant 0 : index
    %c0_14 = arith.constant 0 : index
    %c0_15 = arith.constant 0 : index
    %19 = vector.load %arg6[%c0_12, %c0_13, %c0_14, %c0_15] : memref<1x12x32x8xbf16, #tpu.memory_space<vmem>>, vector<1x1x32x8xbf16>
    %20 = vector.shape_cast %19 : vector<1x1x32x8xbf16> to vector<32x8xbf16>
    %cst_16 = arith.constant dense<0.000000e+00> : vector<16x8xf32>
    %21 = tpu.matmul %16, %20, %cst_16 {dimension_numbers = #tpu.dot_dimension_numbers<[1], [0], [0], [1], [0, 0, 1, 1], [], []>} : vector<16x32xbf16>, vector<32x8xbf16>, vector<16x8xf32> -> vector<16x8xf32>
    %c0_17 = arith.constant 0 : index
    %c0_18 = arith.constant 0 : index
    %c0_19 = arith.constant 0 : index
    %c0_20 = arith.constant 0 : index
    %22 = vector.load %arg7[%c0_17, %c0_18, %c0_19, %c0_20] : memref<1x12x1x8xf32, #tpu.memory_space<vmem>>, vector<1x1x1x8xf32>
    %23 = vector.shape_cast %22 : vector<1x1x1x8xf32> to vector<1x8xf32>
    %24 = vector.broadcast %23 : vector<1x8xf32> to vector<16x8xf32>
    %25 = arith.addf %21, %24 : vector<16x8xf32>
    %c0_21 = arith.constant 0 : index
    %c4 = arith.constant 4 : index
    %c0_22 = arith.constant 0 : index
    %c0_23 = arith.constant 0 : index
    %26 = vector.load %arg6[%c0_21, %c4, %c0_22, %c0_23] : memref<1x12x32x8xbf16, #tpu.memory_space<vmem>>, vector<1x1x32x8xbf16>
    %27 = vector.shape_cast %26 : vector<1x1x32x8xbf16> to vector<32x8xbf16>
    %cst_24 = arith.constant dense<0.000000e+00> : vector<16x8xf32>
    %28 = tpu.matmul %17, %27, %cst_24 {dimension_numbers = #tpu.dot_dimension_numbers<[1], [0], [0], [1], [0, 0, 1, 1], [], []>} : vector<16x32xbf16>, vector<32x8xbf16>, vector<16x8xf32> -> vector<16x8xf32>
    %c0_25 = arith.constant 0 : index
    %c4_26 = arith.constant 4 : index
    %c0_27 = arith.constant 0 : index
    %c0_28 = arith.constant 0 : index
    %29 = vector.load %arg7[%c0_25, %c4_26, %c0_27, %c0_28] : memref<1x12x1x8xf32, #tpu.memory_space<vmem>>, vector<1x1x1x8xf32>
    %30 = vector.shape_cast %29 : vector<1x1x1x8xf32> to vector<1x8xf32>
    %31 = vector.broadcast %30 : vector<1x8xf32> to vector<16x8xf32>
    %32 = arith.addf %28, %31 : vector<16x8xf32>
    %c0_29 = arith.constant 0 : index
    %c8 = arith.constant 8 : index
    %c0_30 = arith.constant 0 : index
    %c0_31 = arith.constant 0 : index
    %33 = vector.load %arg6[%c0_29, %c8, %c0_30, %c0_31] : memref<1x12x32x8xbf16, #tpu.memory_space<vmem>>, vector<1x1x32x8xbf16>
    %34 = vector.shape_cast %33 : vector<1x1x32x8xbf16> to vector<32x8xbf16>
    %cst_32 = arith.constant dense<0.000000e+00> : vector<16x8xf32>
    %35 = tpu.matmul %17, %34, %cst_32 {dimension_numbers = #tpu.dot_dimension_numbers<[1], [0], [0], [1], [0, 0, 1, 1], [], []>} : vector<16x32xbf16>, vector<32x8xbf16>, vector<16x8xf32> -> vector<16x8xf32>
    %c0_33 = arith.constant 0 : index
    %c8_34 = arith.constant 8 : index
    %c0_35 = arith.constant 0 : index
    %c0_36 = arith.constant 0 : index
    %36 = vector.load %arg7[%c0_33, %c8_34, %c0_35, %c0_36] : memref<1x12x1x8xf32, #tpu.memory_space<vmem>>, vector<1x1x1x8xf32>
    %37 = vector.shape_cast %36 : vector<1x1x1x8xf32> to vector<1x8xf32>
    %38 = vector.broadcast %37 : vector<1x8xf32> to vector<16x8xf32>
    %39 = arith.addf %35, %38 : vector<16x8xf32>
    %40 = vector.shape_cast %25 : vector<16x8xf32> to vector<2x8x8xf32>
    %41 = vector.shape_cast %32 : vector<16x8xf32> to vector<2x8x8xf32>
    "tpu.trace_start"() <{level = 10 : i32, message = "bqd,bkd->bqk"}> : () -> ()
    %cst_37 = arith.constant dense<0.000000e+00> : vector<2x8x8xf32>
    %42 = tpu.matmul %40, %41, %cst_37 {dimension_numbers = #tpu.dot_dimension_numbers<[2], [2], [1], [1], [0, 0, 0, 1, 1, 1], [0], [0]>} : vector<2x8x8xf32>, vector<2x8x8xf32>, vector<2x8x8xf32> -> vector<2x8x8xf32>
    "tpu.trace_stop"() : () -> ()
    %cst_38 = arith.constant 0.353553385 : f32
    %43 = vector.broadcast %cst_38 : f32 to vector<2x8x8xf32>
    %44 = arith.mulf %42, %43 : vector<2x8x8xf32>
    %45 = arith.addf %44, %13 : vector<2x8x8xf32>
    %cst_39 = arith.constant dense<0xFF800000> : vector<2x8xf32>
    %46 = vector.multi_reduction <maximumf>, %45, %cst_39 [2] : vector<2x8x8xf32> to vector<2x8xf32>
    %47 = vector.shape_cast %46 : vector<2x8xf32> to vector<2x8x1xf32>
    %48 = vector.broadcast %47 : vector<2x8x1xf32> to vector<2x8x8xf32>
    %49 = arith.subf %45, %48 : vector<2x8x8xf32>
    %50 = math.exp %49 : vector<2x8x8xf32>
    %cst_40 = arith.constant dense<0.000000e+00> : vector<2x8xf32>
    %51 = vector.multi_reduction <add>, %50, %cst_40 [2] : vector<2x8x8xf32> to vector<2x8xf32>
    %52 = vector.shape_cast %51 : vector<2x8xf32> to vector<2x8x1xf32>
    %53 = vector.broadcast %52 : vector<2x8x1xf32> to vector<2x8x8xf32>
    %54 = arith.divf %50, %53 : vector<2x8x8xf32>
    %55 = vector.shape_cast %39 : vector<16x8xf32> to vector<2x8x8xf32>
    "tpu.trace_start"() <{level = 10 : i32, message = "bqk,bkd->bqd"}> : () -> ()
    %cst_41 = arith.constant dense<0.000000e+00> : vector<2x8x8xf32>
    %56 = tpu.matmul %54, %55, %cst_41 {dimension_numbers = #tpu.dot_dimension_numbers<[2], [1], [1], [2], [0, 0, 0, 1, 1, 2], [0], [0]>} : vector<2x8x8xf32>, vector<2x8x8xf32>, vector<2x8x8xf32> -> vector<2x8x8xf32>
    "tpu.trace_stop"() : () -> ()
    %57 = vector.shape_cast %56 : vector<2x8x8xf32> to vector<16x8xf32>
    %58 = arith.truncf %57 : vector<16x8xf32> to vector<16x8xbf16>
    %c0_42 = arith.constant 0 : index
    %c0_43 = arith.constant 0 : index
    %c0_44 = arith.constant 0 : index
    %c0_45 = arith.constant 0 : index
    %59 = vector.load %arg8[%c0_42, %c0_43, %c0_44, %c0_45] : memref<1x4x8x32xbf16, #tpu.memory_space<vmem>>, vector<1x1x8x32xbf16>
    %60 = vector.shape_cast %59 : vector<1x1x8x32xbf16> to vector<8x32xbf16>
    %cst_46 = arith.constant dense<0.000000e+00> : vector<16x32xf32>
    %61 = tpu.matmul %58, %60, %cst_46 {dimension_numbers = #tpu.dot_dimension_numbers<[1], [0], [0], [1], [0, 0, 1, 1], [], []>} : vector<16x8xbf16>, vector<8x32xbf16>, vector<16x32xf32> -> vector<16x32xf32>
    %62 = arith.addf %18, %61 : vector<16x32xf32>
    %c0_47 = arith.constant 0 : index
    %c1 = arith.constant 1 : index
    %c0_48 = arith.constant 0 : index
    %c0_49 = arith.constant 0 : index
    %63 = vector.load %arg6[%c0_47, %c1, %c0_48, %c0_49] : memref<1x12x32x8xbf16, #tpu.memory_space<vmem>>, vector<1x1x32x8xbf16>
    %64 = vector.shape_cast %63 : vector<1x1x32x8xbf16> to vector<32x8xbf16>
    %cst_50 = arith.constant dense<0.000000e+00> : vector<16x8xf32>
    %65 = tpu.matmul %16, %64, %cst_50 {dimension_numbers = #tpu.dot_dimension_numbers<[1], [0], [0], [1], [0, 0, 1, 1], [], []>} : vector<16x32xbf16>, vector<32x8xbf16>, vector<16x8xf32> -> vector<16x8xf32>
    %c0_51 = arith.constant 0 : index
    %c1_52 = arith.constant 1 : index
    %c0_53 = arith.constant 0 : index
    %c0_54 = arith.constant 0 : index
    %66 = vector.load %arg7[%c0_51, %c1_52, %c0_53, %c0_54] : memref<1x12x1x8xf32, #tpu.memory_space<vmem>>, vector<1x1x1x8xf32>
    %67 = vector.shape_cast %66 : vector<1x1x1x8xf32> to vector<1x8xf32>
    %68 = vector.broadcast %67 : vector<1x8xf32> to vector<16x8xf32>
    %69 = arith.addf %65, %68 : vector<16x8xf32>
    %c0_55 = arith.constant 0 : index
    %c5 = arith.constant 5 : index
    %c0_56 = arith.constant 0 : index
    %c0_57 = arith.constant 0 : index
    %70 = vector.load %arg6[%c0_55, %c5, %c0_56, %c0_57] : memref<1x12x32x8xbf16, #tpu.memory_space<vmem>>, vector<1x1x32x8xbf16>
    %71 = vector.shape_cast %70 : vector<1x1x32x8xbf16> to vector<32x8xbf16>
    %cst_58 = arith.constant dense<0.000000e+00> : vector<16x8xf32>
    %72 = tpu.matmul %17, %71, %cst_58 {dimension_numbers = #tpu.dot_dimension_numbers<[1], [0], [0], [1], [0, 0, 1, 1], [], []>} : vector<16x32xbf16>, vector<32x8xbf16>, vector<16x8xf32> -> vector<16x8xf32>
    %c0_59 = arith.constant 0 : index
    %c5_60 = arith.constant 5 : index
    %c0_61 = arith.constant 0 : index
    %c0_62 = arith.constant 0 : index
    %73 = vector.load %arg7[%c0_59, %c5_60, %c0_61, %c0_62] : memref<1x12x1x8xf32, #tpu.memory_space<vmem>>, vector<1x1x1x8xf32>
    %74 = vector.shape_cast %73 : vector<1x1x1x8xf32> to vector<1x8xf32>
    %75 = vector.broadcast %74 : vector<1x8xf32> to vector<16x8xf32>
    %76 = arith.addf %72, %75 : vector<16x8xf32>
    %c0_63 = arith.constant 0 : index
    %c9 = arith.constant 9 : index
    %c0_64 = arith.constant 0 : index
    %c0_65 = arith.constant 0 : index
    %77 = vector.load %arg6[%c0_63, %c9, %c0_64, %c0_65] : memref<1x12x32x8xbf16, #tpu.memory_space<vmem>>, vector<1x1x32x8xbf16>
    %78 = vector.shape_cast %77 : vector<1x1x32x8xbf16> to vector<32x8xbf16>
    %cst_66 = arith.constant dense<0.000000e+00> : vector<16x8xf32>
    %79 = tpu.matmul %17, %78, %cst_66 {dimension_numbers = #tpu.dot_dimension_numbers<[1], [0], [0], [1], [0, 0, 1, 1], [], []>} : vector<16x32xbf16>, vector<32x8xbf16>, vector<16x8xf32> -> vector<16x8xf32>
    %c0_67 = arith.constant 0 : index
    %c9_68 = arith.constant 9 : index
    %c0_69 = arith.constant 0 : index
    %c0_70 = arith.constant 0 : index
    %80 = vector.load %arg7[%c0_67, %c9_68, %c0_69, %c0_70] : memref<1x12x1x8xf32, #tpu.memory_space<vmem>>, vector<1x1x1x8xf32>
    %81 = vector.shape_cast %80 : vector<1x1x1x8xf32> to vector<1x8xf32>
    %82 = vector.broadcast %81 : vector<1x8xf32> to vector<16x8xf32>
    %83 = arith.addf %79, %82 : vector<16x8xf32>
    %84 = vector.shape_cast %69 : vector<16x8xf32> to vector<2x8x8xf32>
    %85 = vector.shape_cast %76 : vector<16x8xf32> to vector<2x8x8xf32>
    "tpu.trace_start"() <{level = 10 : i32, message = "bqd,bkd->bqk"}> : () -> ()
    %cst_71 = arith.constant dense<0.000000e+00> : vector<2x8x8xf32>
    %86 = tpu.matmul %84, %85, %cst_71 {dimension_numbers = #tpu.dot_dimension_numbers<[2], [2], [1], [1], [0, 0, 0, 1, 1, 1], [0], [0]>} : vector<2x8x8xf32>, vector<2x8x8xf32>, vector<2x8x8xf32> -> vector<2x8x8xf32>
    "tpu.trace_stop"() : () -> ()
    %cst_72 = arith.constant 0.353553385 : f32
    %87 = vector.broadcast %cst_72 : f32 to vector<2x8x8xf32>
    %88 = arith.mulf %86, %87 : vector<2x8x8xf32>
    %89 = arith.addf %88, %13 : vector<2x8x8xf32>
    %cst_73 = arith.constant dense<0xFF800000> : vector<2x8xf32>
    %90 = vector.multi_reduction <maximumf>, %89, %cst_73 [2] : vector<2x8x8xf32> to vector<2x8xf32>
    %91 = vector.shape_cast %90 : vector<2x8xf32> to vector<2x8x1xf32>
    %92 = vector.broadcast %91 : vector<2x8x1xf32> to vector<2x8x8xf32>
    %93 = arith.subf %89, %92 : vector<2x8x8xf32>
    %94 = math.exp %93 : vector<2x8x8xf32>
    %cst_74 = arith.constant dense<0.000000e+00> : vector<2x8xf32>
    %95 = vector.multi_reduction <add>, %94, %cst_74 [2] : vector<2x8x8xf32> to vector<2x8xf32>
    %96 = vector.shape_cast %95 : vector<2x8xf32> to vector<2x8x1xf32>
    %97 = vector.broadcast %96 : vector<2x8x1xf32> to vector<2x8x8xf32>
    %98 = arith.divf %94, %97 : vector<2x8x8xf32>
    %99 = vector.shape_cast %83 : vector<16x8xf32> to vector<2x8x8xf32>
    "tpu.trace_start"() <{level = 10 : i32, message = "bqk,bkd->bqd"}> : () -> ()
    %cst_75 = arith.constant dense<0.000000e+00> : vector<2x8x8xf32>
    %100 = tpu.matmul %98, %99, %cst_75 {dimension_numbers = #tpu.dot_dimension_numbers<[2], [1], [1], [2], [0, 0, 0, 1, 1, 2], [0], [0]>} : vector<2x8x8xf32>, vector<2x8x8xf32>, vector<2x8x8xf32> -> vector<2x8x8xf32>
    "tpu.trace_stop"() : () -> ()
    %101 = vector.shape_cast %100 : vector<2x8x8xf32> to vector<16x8xf32>
    %102 = arith.truncf %101 : vector<16x8xf32> to vector<16x8xbf16>
    %c0_76 = arith.constant 0 : index
    %c1_77 = arith.constant 1 : index
    %c0_78 = arith.constant 0 : index
    %c0_79 = arith.constant 0 : index
    %103 = vector.load %arg8[%c0_76, %c1_77, %c0_78, %c0_79] : memref<1x4x8x32xbf16, #tpu.memory_space<vmem>>, vector<1x1x8x32xbf16>
    %104 = vector.shape_cast %103 : vector<1x1x8x32xbf16> to vector<8x32xbf16>
    %cst_80 = arith.constant dense<0.000000e+00> : vector<16x32xf32>
    %105 = tpu.matmul %102, %104, %cst_80 {dimension_numbers = #tpu.dot_dimension_numbers<[1], [0], [0], [1], [0, 0, 1, 1], [], []>} : vector<16x8xbf16>, vector<8x32xbf16>, vector<16x32xf32> -> vector<16x32xf32>
    %106 = arith.addf %62, %105 : vector<16x32xf32>
    %c0_81 = arith.constant 0 : index
    %c2 = arith.constant 2 : index
    %c0_82 = arith.constant 0 : index
    %c0_83 = arith.constant 0 : index
    %107 = vector.load %arg6[%c0_81, %c2, %c0_82, %c0_83] : memref<1x12x32x8xbf16, #tpu.memory_space<vmem>>, vector<1x1x32x8xbf16>
    %108 = vector.shape_cast %107 : vector<1x1x32x8xbf16> to vector<32x8xbf16>
    %cst_84 = arith.constant dense<0.000000e+00> : vector<16x8xf32>
    %109 = tpu.matmul %16, %108, %cst_84 {dimension_numbers = #tpu.dot_dimension_numbers<[1], [0], [0], [1], [0, 0, 1, 1], [], []>} : vector<16x32xbf16>, vector<32x8xbf16>, vector<16x8xf32> -> vector<16x8xf32>
    %c0_85 = arith.constant 0 : index
    %c2_86 = arith.constant 2 : index
    %c0_87 = arith.constant 0 : index
    %c0_88 = arith.constant 0 : index
    %110 = vector.load %arg7[%c0_85, %c2_86, %c0_87, %c0_88] : memref<1x12x1x8xf32, #tpu.memory_space<vmem>>, vector<1x1x1x8xf32>
    %111 = vector.shape_cast %110 : vector<1x1x1x8xf32> to vector<1x8xf32>
    %112 = vector.broadcast %111 : vector<1x8xf32> to vector<16x8xf32>
    %113 = arith.addf %109, %112 : vector<16x8xf32>
    %c0_89 = arith.constant 0 : index
    %c6 = arith.constant 6 : index
    %c0_90 = arith.constant 0 : index
    %c0_91 = arith.constant 0 : index
    %114 = vector.load %arg6[%c0_89, %c6, %c0_90, %c0_91] : memref<1x12x32x8xbf16, #tpu.memory_space<vmem>>, vector<1x1x32x8xbf16>
    %115 = vector.shape_cast %114 : vector<1x1x32x8xbf16> to vector<32x8xbf16>
    %cst_92 = arith.constant dense<0.000000e+00> : vector<16x8xf32>
    %116 = tpu.matmul %17, %115, %cst_92 {dimension_numbers = #tpu.dot_dimension_numbers<[1], [0], [0], [1], [0, 0, 1, 1], [], []>} : vector<16x32xbf16>, vector<32x8xbf16>, vector<16x8xf32> -> vector<16x8xf32>
    %c0_93 = arith.constant 0 : index
    %c6_94 = arith.constant 6 : index
    %c0_95 = arith.constant 0 : index
    %c0_96 = arith.constant 0 : index
    %117 = vector.load %arg7[%c0_93, %c6_94, %c0_95, %c0_96] : memref<1x12x1x8xf32, #tpu.memory_space<vmem>>, vector<1x1x1x8xf32>
    %118 = vector.shape_cast %117 : vector<1x1x1x8xf32> to vector<1x8xf32>
    %119 = vector.broadcast %118 : vector<1x8xf32> to vector<16x8xf32>
    %120 = arith.addf %116, %119 : vector<16x8xf32>
    %c0_97 = arith.constant 0 : index
    %c10 = arith.constant 10 : index
    %c0_98 = arith.constant 0 : index
    %c0_99 = arith.constant 0 : index
    %121 = vector.load %arg6[%c0_97, %c10, %c0_98, %c0_99] : memref<1x12x32x8xbf16, #tpu.memory_space<vmem>>, vector<1x1x32x8xbf16>
    %122 = vector.shape_cast %121 : vector<1x1x32x8xbf16> to vector<32x8xbf16>
    %cst_100 = arith.constant dense<0.000000e+00> : vector<16x8xf32>
    %123 = tpu.matmul %17, %122, %cst_100 {dimension_numbers = #tpu.dot_dimension_numbers<[1], [0], [0], [1], [0, 0, 1, 1], [], []>} : vector<16x32xbf16>, vector<32x8xbf16>, vector<16x8xf32> -> vector<16x8xf32>
    %c0_101 = arith.constant 0 : index
    %c10_102 = arith.constant 10 : index
    %c0_103 = arith.constant 0 : index
    %c0_104 = arith.constant 0 : index
    %124 = vector.load %arg7[%c0_101, %c10_102, %c0_103, %c0_104] : memref<1x12x1x8xf32, #tpu.memory_space<vmem>>, vector<1x1x1x8xf32>
    %125 = vector.shape_cast %124 : vector<1x1x1x8xf32> to vector<1x8xf32>
    %126 = vector.broadcast %125 : vector<1x8xf32> to vector<16x8xf32>
    %127 = arith.addf %123, %126 : vector<16x8xf32>
    %128 = vector.shape_cast %113 : vector<16x8xf32> to vector<2x8x8xf32>
    %129 = vector.shape_cast %120 : vector<16x8xf32> to vector<2x8x8xf32>
    "tpu.trace_start"() <{level = 10 : i32, message = "bqd,bkd->bqk"}> : () -> ()
    %cst_105 = arith.constant dense<0.000000e+00> : vector<2x8x8xf32>
    %130 = tpu.matmul %128, %129, %cst_105 {dimension_numbers = #tpu.dot_dimension_numbers<[2], [2], [1], [1], [0, 0, 0, 1, 1, 1], [0], [0]>} : vector<2x8x8xf32>, vector<2x8x8xf32>, vector<2x8x8xf32> -> vector<2x8x8xf32>
    "tpu.trace_stop"() : () -> ()
    %cst_106 = arith.constant 0.353553385 : f32
    %131 = vector.broadcast %cst_106 : f32 to vector<2x8x8xf32>
    %132 = arith.mulf %130, %131 : vector<2x8x8xf32>
    %133 = arith.addf %132, %13 : vector<2x8x8xf32>
    %cst_107 = arith.constant dense<0xFF800000> : vector<2x8xf32>
    %134 = vector.multi_reduction <maximumf>, %133, %cst_107 [2] : vector<2x8x8xf32> to vector<2x8xf32>
    %135 = vector.shape_cast %134 : vector<2x8xf32> to vector<2x8x1xf32>
    %136 = vector.broadcast %135 : vector<2x8x1xf32> to vector<2x8x8xf32>
    %137 = arith.subf %133, %136 : vector<2x8x8xf32>
    %138 = math.exp %137 : vector<2x8x8xf32>
    %cst_108 = arith.constant dense<0.000000e+00> : vector<2x8xf32>
    %139 = vector.multi_reduction <add>, %138, %cst_108 [2] : vector<2x8x8xf32> to vector<2x8xf32>
    %140 = vector.shape_cast %139 : vector<2x8xf32> to vector<2x8x1xf32>
    %141 = vector.broadcast %140 : vector<2x8x1xf32> to vector<2x8x8xf32>
    %142 = arith.divf %138, %141 : vector<2x8x8xf32>
    %143 = vector.shape_cast %127 : vector<16x8xf32> to vector<2x8x8xf32>
    "tpu.trace_start"() <{level = 10 : i32, message = "bqk,bkd->bqd"}> : () -> ()
    %cst_109 = arith.constant dense<0.000000e+00> : vector<2x8x8xf32>
    %144 = tpu.matmul %142, %143, %cst_109 {dimension_numbers = #tpu.dot_dimension_numbers<[2], [1], [1], [2], [0, 0, 0, 1, 1, 2], [0], [0]>} : vector<2x8x8xf32>, vector<2x8x8xf32>, vector<2x8x8xf32> -> vector<2x8x8xf32>
    "tpu.trace_stop"() : () -> ()
    %145 = vector.shape_cast %144 : vector<2x8x8xf32> to vector<16x8xf32>
    %146 = arith.truncf %145 : vector<16x8xf32> to vector<16x8xbf16>
    %c0_110 = arith.constant 0 : index
    %c2_111 = arith.constant 2 : index
    %c0_112 = arith.constant 0 : index
    %c0_113 = arith.constant 0 : index
    %147 = vector.load %arg8[%c0_110, %c2_111, %c0_112, %c0_113] : memref<1x4x8x32xbf16, #tpu.memory_space<vmem>>, vector<1x1x8x32xbf16>
    %148 = vector.shape_cast %147 : vector<1x1x8x32xbf16> to vector<8x32xbf16>
    %cst_114 = arith.constant dense<0.000000e+00> : vector<16x32xf32>
    %149 = tpu.matmul %146, %148, %cst_114 {dimension_numbers = #tpu.dot_dimension_numbers<[1], [0], [0], [1], [0, 0, 1, 1], [], []>} : vector<16x8xbf16>, vector<8x32xbf16>, vector<16x32xf32> -> vector<16x32xf32>
    %150 = arith.addf %106, %149 : vector<16x32xf32>
    %c0_115 = arith.constant 0 : index
    %c3 = arith.constant 3 : index
    %c0_116 = arith.constant 0 : index
    %c0_117 = arith.constant 0 : index
    %151 = vector.load %arg6[%c0_115, %c3, %c0_116, %c0_117] : memref<1x12x32x8xbf16, #tpu.memory_space<vmem>>, vector<1x1x32x8xbf16>
    %152 = vector.shape_cast %151 : vector<1x1x32x8xbf16> to vector<32x8xbf16>
    %cst_118 = arith.constant dense<0.000000e+00> : vector<16x8xf32>
    %153 = tpu.matmul %16, %152, %cst_118 {dimension_numbers = #tpu.dot_dimension_numbers<[1], [0], [0], [1], [0, 0, 1, 1], [], []>} : vector<16x32xbf16>, vector<32x8xbf16>, vector<16x8xf32> -> vector<16x8xf32>
    %c0_119 = arith.constant 0 : index
    %c3_120 = arith.constant 3 : index
    %c0_121 = arith.constant 0 : index
    %c0_122 = arith.constant 0 : index
    %154 = vector.load %arg7[%c0_119, %c3_120, %c0_121, %c0_122] : memref<1x12x1x8xf32, #tpu.memory_space<vmem>>, vector<1x1x1x8xf32>
    %155 = vector.shape_cast %154 : vector<1x1x1x8xf32> to vector<1x8xf32>
    %156 = vector.broadcast %155 : vector<1x8xf32> to vector<16x8xf32>
    %157 = arith.addf %153, %156 : vector<16x8xf32>
    %c0_123 = arith.constant 0 : index
    %c7 = arith.constant 7 : index
    %c0_124 = arith.constant 0 : index
    %c0_125 = arith.constant 0 : index
    %158 = vector.load %arg6[%c0_123, %c7, %c0_124, %c0_125] : memref<1x12x32x8xbf16, #tpu.memory_space<vmem>>, vector<1x1x32x8xbf16>
    %159 = vector.shape_cast %158 : vector<1x1x32x8xbf16> to vector<32x8xbf16>
    %cst_126 = arith.constant dense<0.000000e+00> : vector<16x8xf32>
    %160 = tpu.matmul %17, %159, %cst_126 {dimension_numbers = #tpu.dot_dimension_numbers<[1], [0], [0], [1], [0, 0, 1, 1], [], []>} : vector<16x32xbf16>, vector<32x8xbf16>, vector<16x8xf32> -> vector<16x8xf32>
    %c0_127 = arith.constant 0 : index
    %c7_128 = arith.constant 7 : index
    %c0_129 = arith.constant 0 : index
    %c0_130 = arith.constant 0 : index
    %161 = vector.load %arg7[%c0_127, %c7_128, %c0_129, %c0_130] : memref<1x12x1x8xf32, #tpu.memory_space<vmem>>, vector<1x1x1x8xf32>
    %162 = vector.shape_cast %161 : vector<1x1x1x8xf32> to vector<1x8xf32>
    %163 = vector.broadcast %162 : vector<1x8xf32> to vector<16x8xf32>
    %164 = arith.addf %160, %163 : vector<16x8xf32>
    %c0_131 = arith.constant 0 : index
    %c11 = arith.constant 11 : index
    %c0_132 = arith.constant 0 : index
    %c0_133 = arith.constant 0 : index
    %165 = vector.load %arg6[%c0_131, %c11, %c0_132, %c0_133] : memref<1x12x32x8xbf16, #tpu.memory_space<vmem>>, vector<1x1x32x8xbf16>
    %166 = vector.shape_cast %165 : vector<1x1x32x8xbf16> to vector<32x8xbf16>
    %cst_134 = arith.constant dense<0.000000e+00> : vector<16x8xf32>
    %167 = tpu.matmul %17, %166, %cst_134 {dimension_numbers = #tpu.dot_dimension_numbers<[1], [0], [0], [1], [0, 0, 1, 1], [], []>} : vector<16x32xbf16>, vector<32x8xbf16>, vector<16x8xf32> -> vector<16x8xf32>
    %c0_135 = arith.constant 0 : index
    %c11_136 = arith.constant 11 : index
    %c0_137 = arith.constant 0 : index
    %c0_138 = arith.constant 0 : index
    %168 = vector.load %arg7[%c0_135, %c11_136, %c0_137, %c0_138] : memref<1x12x1x8xf32, #tpu.memory_space<vmem>>, vector<1x1x1x8xf32>
    %169 = vector.shape_cast %168 : vector<1x1x1x8xf32> to vector<1x8xf32>
    %170 = vector.broadcast %169 : vector<1x8xf32> to vector<16x8xf32>
    %171 = arith.addf %167, %170 : vector<16x8xf32>
    %172 = vector.shape_cast %157 : vector<16x8xf32> to vector<2x8x8xf32>
    %173 = vector.shape_cast %164 : vector<16x8xf32> to vector<2x8x8xf32>
    "tpu.trace_start"() <{level = 10 : i32, message = "bqd,bkd->bqk"}> : () -> ()
    %cst_139 = arith.constant dense<0.000000e+00> : vector<2x8x8xf32>
    %174 = tpu.matmul %172, %173, %cst_139 {dimension_numbers = #tpu.dot_dimension_numbers<[2], [2], [1], [1], [0, 0, 0, 1, 1, 1], [0], [0]>} : vector<2x8x8xf32>, vector<2x8x8xf32>, vector<2x8x8xf32> -> vector<2x8x8xf32>
    "tpu.trace_stop"() : () -> ()
    %cst_140 = arith.constant 0.353553385 : f32
    %175 = vector.broadcast %cst_140 : f32 to vector<2x8x8xf32>
    %176 = arith.mulf %174, %175 : vector<2x8x8xf32>
    %177 = arith.addf %176, %13 : vector<2x8x8xf32>
    %cst_141 = arith.constant dense<0xFF800000> : vector<2x8xf32>
    %178 = vector.multi_reduction <maximumf>, %177, %cst_141 [2] : vector<2x8x8xf32> to vector<2x8xf32>
    %179 = vector.shape_cast %178 : vector<2x8xf32> to vector<2x8x1xf32>
    %180 = vector.broadcast %179 : vector<2x8x1xf32> to vector<2x8x8xf32>
    %181 = arith.subf %177, %180 : vector<2x8x8xf32>
    %182 = math.exp %181 : vector<2x8x8xf32>
    %cst_142 = arith.constant dense<0.000000e+00> : vector<2x8xf32>
    %183 = vector.multi_reduction <add>, %182, %cst_142 [2] : vector<2x8x8xf32> to vector<2x8xf32>
    %184 = vector.shape_cast %183 : vector<2x8xf32> to vector<2x8x1xf32>
    %185 = vector.broadcast %184 : vector<2x8x1xf32> to vector<2x8x8xf32>
    %186 = arith.divf %182, %185 : vector<2x8x8xf32>
    %187 = vector.shape_cast %171 : vector<16x8xf32> to vector<2x8x8xf32>
    "tpu.trace_start"() <{level = 10 : i32, message = "bqk,bkd->bqd"}> : () -> ()
    %cst_143 = arith.constant dense<0.000000e+00> : vector<2x8x8xf32>
    %188 = tpu.matmul %186, %187, %cst_143 {dimension_numbers = #tpu.dot_dimension_numbers<[2], [1], [1], [2], [0, 0, 0, 1, 1, 2], [0], [0]>} : vector<2x8x8xf32>, vector<2x8x8xf32>, vector<2x8x8xf32> -> vector<2x8x8xf32>
    "tpu.trace_stop"() : () -> ()
    %189 = vector.shape_cast %188 : vector<2x8x8xf32> to vector<16x8xf32>
    %190 = arith.truncf %189 : vector<16x8xf32> to vector<16x8xbf16>
    %c0_144 = arith.constant 0 : index
    %c3_145 = arith.constant 3 : index
    %c0_146 = arith.constant 0 : index
    %c0_147 = arith.constant 0 : index
    %191 = vector.load %arg8[%c0_144, %c3_145, %c0_146, %c0_147] : memref<1x4x8x32xbf16, #tpu.memory_space<vmem>>, vector<1x1x8x32xbf16>
    %192 = vector.shape_cast %191 : vector<1x1x8x32xbf16> to vector<8x32xbf16>
    %cst_148 = arith.constant dense<0.000000e+00> : vector<16x32xf32>
    %193 = tpu.matmul %190, %192, %cst_148 {dimension_numbers = #tpu.dot_dimension_numbers<[1], [0], [0], [1], [0, 0, 1, 1], [], []>} : vector<16x8xbf16>, vector<8x32xbf16>, vector<16x32xf32> -> vector<16x32xf32>
    %194 = arith.addf %150, %193 : vector<16x32xf32>
    %c0_149 = arith.constant 0 : index
    %c0_150 = arith.constant 0 : index
    %c0_151 = arith.constant 0 : index
    %195 = vector.load %arg9[%c0_149, %c0_150, %c0_151] : memref<1x1x32xf32, #tpu.memory_space<vmem>>, vector<1x1x32xf32>
    %196 = vector.shape_cast %195 : vector<1x1x32xf32> to vector<1x32xf32>
    %197 = vector.broadcast %196 : vector<1x32xf32> to vector<16x32xf32>
    %198 = arith.addf %194, %197 : vector<16x32xf32>
    %199 = arith.addf %4, %198 : vector<16x32xf32>
    %c0_152 = arith.constant 0 : index
    %c0_153 = arith.constant 0 : index
    %c0_154 = arith.constant 0 : index
    %200 = vector.load %arg14[%c0_152, %c0_153, %c0_154] : memref<1x1x32xf32, #tpu.memory_space<vmem>>, vector<1x1x32xf32>
    %201 = vector.shape_cast %200 : vector<1x1x32xf32> to vector<1x32xf32>
    %c0_155 = arith.constant 0 : index
    %c0_156 = arith.constant 0 : index
    %c0_157 = arith.constant 0 : index
    %202 = vector.load %arg15[%c0_155, %c0_156, %c0_157] : memref<1x1x32xf32, #tpu.memory_space<vmem>>, vector<1x1x32xf32>
    %203 = vector.shape_cast %202 : vector<1x1x32xf32> to vector<1x32xf32>
    %cst_158 = arith.constant dense<0.000000e+00> : vector<16xf32>
    %204 = vector.multi_reduction <add>, %199, %cst_158 [1] : vector<16x32xf32> to vector<16xf32>
    %205 = vector.shape_cast %204 : vector<16xf32> to vector<16x1xf32>
    %cst_159 = arith.constant 3.200000e+01 : f32
    %206 = vector.broadcast %cst_159 : f32 to vector<16x1xf32>
    %207 = arith.divf %205, %206 : vector<16x1xf32>
    %208 = vector.broadcast %207 : vector<16x1xf32> to vector<16x32xf32>
    %209 = arith.subf %199, %208 : vector<16x32xf32>
    %210 = arith.mulf %209, %209 : vector<16x32xf32>
    %cst_160 = arith.constant dense<0.000000e+00> : vector<16xf32>
    %211 = vector.multi_reduction <add>, %210, %cst_160 [1] : vector<16x32xf32> to vector<16xf32>
    %212 = vector.shape_cast %211 : vector<16xf32> to vector<16x1xf32>
    %cst_161 = arith.constant 3.200000e+01 : f32
    %213 = vector.broadcast %cst_161 : f32 to vector<16x1xf32>
    %214 = arith.divf %212, %213 : vector<16x1xf32>
    %215 = vector.broadcast %207 : vector<16x1xf32> to vector<16x32xf32>
    %216 = arith.subf %199, %215 : vector<16x32xf32>
    %cst_162 = arith.constant 9.99999974E-6 : f32
    %217 = vector.broadcast %cst_162 : f32 to vector<16x1xf32>
    %218 = arith.addf %214, %217 : vector<16x1xf32>
    %219 = math.rsqrt %218 : vector<16x1xf32>
    %220 = vector.broadcast %219 : vector<16x1xf32> to vector<16x32xf32>
    %221 = arith.mulf %216, %220 : vector<16x32xf32>
    %222 = vector.broadcast %201 : vector<1x32xf32> to vector<16x32xf32>
    %223 = arith.mulf %221, %222 : vector<16x32xf32>
    %224 = vector.broadcast %203 : vector<1x32xf32> to vector<16x32xf32>
    %225 = arith.addf %223, %224 : vector<16x32xf32>
    %226 = arith.truncf %225 : vector<16x32xf32> to vector<16x32xbf16>
    %227 = arith.truncf %6 : vector<16x32xf32> to vector<16x32xbf16>
    %cst_163 = arith.constant 0.000000e+00 : f32
    %228 = vector.broadcast %cst_163 : f32 to vector<16x32xf32>
    %c0_164 = arith.constant 0 : index
    %c0_165 = arith.constant 0 : index
    %c0_166 = arith.constant 0 : index
    %c0_167 = arith.constant 0 : index
    %229 = vector.load %arg10[%c0_164, %c0_165, %c0_166, %c0_167] : memref<1x12x32x8xbf16, #tpu.memory_space<vmem>>, vector<1x1x32x8xbf16>
    %230 = vector.shape_cast %229 : vector<1x1x32x8xbf16> to vector<32x8xbf16>
    %cst_168 = arith.constant dense<0.000000e+00> : vector<16x8xf32>
    %231 = tpu.matmul %226, %230, %cst_168 {dimension_numbers = #tpu.dot_dimension_numbers<[1], [0], [0], [1], [0, 0, 1, 1], [], []>} : vector<16x32xbf16>, vector<32x8xbf16>, vector<16x8xf32> -> vector<16x8xf32>
    %c0_169 = arith.constant 0 : index
    %c0_170 = arith.constant 0 : index
    %c0_171 = arith.constant 0 : index
    %c0_172 = arith.constant 0 : index
    %232 = vector.load %arg11[%c0_169, %c0_170, %c0_171, %c0_172] : memref<1x12x1x8xf32, #tpu.memory_space<vmem>>, vector<1x1x1x8xf32>
    %233 = vector.shape_cast %232 : vector<1x1x1x8xf32> to vector<1x8xf32>
    %234 = vector.broadcast %233 : vector<1x8xf32> to vector<16x8xf32>
    %235 = arith.addf %231, %234 : vector<16x8xf32>
    %c0_173 = arith.constant 0 : index
    %c4_174 = arith.constant 4 : index
    %c0_175 = arith.constant 0 : index
    %c0_176 = arith.constant 0 : index
    %236 = vector.load %arg10[%c0_173, %c4_174, %c0_175, %c0_176] : memref<1x12x32x8xbf16, #tpu.memory_space<vmem>>, vector<1x1x32x8xbf16>
    %237 = vector.shape_cast %236 : vector<1x1x32x8xbf16> to vector<32x8xbf16>
    %cst_177 = arith.constant dense<0.000000e+00> : vector<16x8xf32>
    %238 = tpu.matmul %227, %237, %cst_177 {dimension_numbers = #tpu.dot_dimension_numbers<[1], [0], [0], [1], [0, 0, 1, 1], [], []>} : vector<16x32xbf16>, vector<32x8xbf16>, vector<16x8xf32> -> vector<16x8xf32>
    %c0_178 = arith.constant 0 : index
    %c4_179 = arith.constant 4 : index
    %c0_180 = arith.constant 0 : index
    %c0_181 = arith.constant 0 : index
    %239 = vector.load %arg11[%c0_178, %c4_179, %c0_180, %c0_181] : memref<1x12x1x8xf32, #tpu.memory_space<vmem>>, vector<1x1x1x8xf32>
    %240 = vector.shape_cast %239 : vector<1x1x1x8xf32> to vector<1x8xf32>
    %241 = vector.broadcast %240 : vector<1x8xf32> to vector<16x8xf32>
    %242 = arith.addf %238, %241 : vector<16x8xf32>
    %c0_182 = arith.constant 0 : index
    %c8_183 = arith.constant 8 : index
    %c0_184 = arith.constant 0 : index
    %c0_185 = arith.constant 0 : index
    %243 = vector.load %arg10[%c0_182, %c8_183, %c0_184, %c0_185] : memref<1x12x32x8xbf16, #tpu.memory_space<vmem>>, vector<1x1x32x8xbf16>
    %244 = vector.shape_cast %243 : vector<1x1x32x8xbf16> to vector<32x8xbf16>
    %cst_186 = arith.constant dense<0.000000e+00> : vector<16x8xf32>
    %245 = tpu.matmul %227, %244, %cst_186 {dimension_numbers = #tpu.dot_dimension_numbers<[1], [0], [0], [1], [0, 0, 1, 1], [], []>} : vector<16x32xbf16>, vector<32x8xbf16>, vector<16x8xf32> -> vector<16x8xf32>
    %c0_187 = arith.constant 0 : index
    %c8_188 = arith.constant 8 : index
    %c0_189 = arith.constant 0 : index
    %c0_190 = arith.constant 0 : index
    %246 = vector.load %arg11[%c0_187, %c8_188, %c0_189, %c0_190] : memref<1x12x1x8xf32, #tpu.memory_space<vmem>>, vector<1x1x1x8xf32>
    %247 = vector.shape_cast %246 : vector<1x1x1x8xf32> to vector<1x8xf32>
    %248 = vector.broadcast %247 : vector<1x8xf32> to vector<16x8xf32>
    %249 = arith.addf %245, %248 : vector<16x8xf32>
    %250 = vector.shape_cast %235 : vector<16x8xf32> to vector<2x8x8xf32>
    %251 = vector.shape_cast %242 : vector<16x8xf32> to vector<2x8x8xf32>
    "tpu.trace_start"() <{level = 10 : i32, message = "bqd,bkd->bqk"}> : () -> ()
    %cst_191 = arith.constant dense<0.000000e+00> : vector<2x8x8xf32>
    %252 = tpu.matmul %250, %251, %cst_191 {dimension_numbers = #tpu.dot_dimension_numbers<[2], [2], [1], [1], [0, 0, 0, 1, 1, 1], [0], [0]>} : vector<2x8x8xf32>, vector<2x8x8xf32>, vector<2x8x8xf32> -> vector<2x8x8xf32>
    "tpu.trace_stop"() : () -> ()
    %cst_192 = arith.constant 0.353553385 : f32
    %253 = vector.broadcast %cst_192 : f32 to vector<2x8x8xf32>
    %254 = arith.mulf %252, %253 : vector<2x8x8xf32>
    %255 = vector.broadcast %15 : vector<2x1x8xf32> to vector<2x8x8xf32>
    %256 = arith.addf %254, %255 : vector<2x8x8xf32>
    %cst_193 = arith.constant dense<0xFF800000> : vector<2x8xf32>
    %257 = vector.multi_reduction <maximumf>, %256, %cst_193 [2] : vector<2x8x8xf32> to vector<2x8xf32>
    %258 = vector.shape_cast %257 : vector<2x8xf32> to vector<2x8x1xf32>
    %259 = vector.broadcast %258 : vector<2x8x1xf32> to vector<2x8x8xf32>
    %260 = arith.subf %256, %259 : vector<2x8x8xf32>
    %261 = math.exp %260 : vector<2x8x8xf32>
    %cst_194 = arith.constant dense<0.000000e+00> : vector<2x8xf32>
    %262 = vector.multi_reduction <add>, %261, %cst_194 [2] : vector<2x8x8xf32> to vector<2x8xf32>
    %263 = vector.shape_cast %262 : vector<2x8xf32> to vector<2x8x1xf32>
    %264 = vector.broadcast %263 : vector<2x8x1xf32> to vector<2x8x8xf32>
    %265 = arith.divf %261, %264 : vector<2x8x8xf32>
    %266 = vector.shape_cast %249 : vector<16x8xf32> to vector<2x8x8xf32>
    "tpu.trace_start"() <{level = 10 : i32, message = "bqk,bkd->bqd"}> : () -> ()
    %cst_195 = arith.constant dense<0.000000e+00> : vector<2x8x8xf32>
    %267 = tpu.matmul %265, %266, %cst_195 {dimension_numbers = #tpu.dot_dimension_numbers<[2], [1], [1], [2], [0, 0, 0, 1, 1, 2], [0], [0]>} : vector<2x8x8xf32>, vector<2x8x8xf32>, vector<2x8x8xf32> -> vector<2x8x8xf32>
    "tpu.trace_stop"() : () -> ()
    %268 = vector.shape_cast %267 : vector<2x8x8xf32> to vector<16x8xf32>
    %269 = arith.truncf %268 : vector<16x8xf32> to vector<16x8xbf16>
    %c0_196 = arith.constant 0 : index
    %c0_197 = arith.constant 0 : index
    %c0_198 = arith.constant 0 : index
    %c0_199 = arith.constant 0 : index
    %270 = vector.load %arg12[%c0_196, %c0_197, %c0_198, %c0_199] : memref<1x4x8x32xbf16, #tpu.memory_space<vmem>>, vector<1x1x8x32xbf16>
    %271 = vector.shape_cast %270 : vector<1x1x8x32xbf16> to vector<8x32xbf16>
    %cst_200 = arith.constant dense<0.000000e+00> : vector<16x32xf32>
    %272 = tpu.matmul %269, %271, %cst_200 {dimension_numbers = #tpu.dot_dimension_numbers<[1], [0], [0], [1], [0, 0, 1, 1], [], []>} : vector<16x8xbf16>, vector<8x32xbf16>, vector<16x32xf32> -> vector<16x32xf32>
    %273 = arith.addf %228, %272 : vector<16x32xf32>
    %c0_201 = arith.constant 0 : index
    %c1_202 = arith.constant 1 : index
    %c0_203 = arith.constant 0 : index
    %c0_204 = arith.constant 0 : index
    %274 = vector.load %arg10[%c0_201, %c1_202, %c0_203, %c0_204] : memref<1x12x32x8xbf16, #tpu.memory_space<vmem>>, vector<1x1x32x8xbf16>
    %275 = vector.shape_cast %274 : vector<1x1x32x8xbf16> to vector<32x8xbf16>
    %cst_205 = arith.constant dense<0.000000e+00> : vector<16x8xf32>
    %276 = tpu.matmul %226, %275, %cst_205 {dimension_numbers = #tpu.dot_dimension_numbers<[1], [0], [0], [1], [0, 0, 1, 1], [], []>} : vector<16x32xbf16>, vector<32x8xbf16>, vector<16x8xf32> -> vector<16x8xf32>
    %c0_206 = arith.constant 0 : index
    %c1_207 = arith.constant 1 : index
    %c0_208 = arith.constant 0 : index
    %c0_209 = arith.constant 0 : index
    %277 = vector.load %arg11[%c0_206, %c1_207, %c0_208, %c0_209] : memref<1x12x1x8xf32, #tpu.memory_space<vmem>>, vector<1x1x1x8xf32>
    %278 = vector.shape_cast %277 : vector<1x1x1x8xf32> to vector<1x8xf32>
    %279 = vector.broadcast %278 : vector<1x8xf32> to vector<16x8xf32>
    %280 = arith.addf %276, %279 : vector<16x8xf32>
    %c0_210 = arith.constant 0 : index
    %c5_211 = arith.constant 5 : index
    %c0_212 = arith.constant 0 : index
    %c0_213 = arith.constant 0 : index
    %281 = vector.load %arg10[%c0_210, %c5_211, %c0_212, %c0_213] : memref<1x12x32x8xbf16, #tpu.memory_space<vmem>>, vector<1x1x32x8xbf16>
    %282 = vector.shape_cast %281 : vector<1x1x32x8xbf16> to vector<32x8xbf16>
    %cst_214 = arith.constant dense<0.000000e+00> : vector<16x8xf32>
    %283 = tpu.matmul %227, %282, %cst_214 {dimension_numbers = #tpu.dot_dimension_numbers<[1], [0], [0], [1], [0, 0, 1, 1], [], []>} : vector<16x32xbf16>, vector<32x8xbf16>, vector<16x8xf32> -> vector<16x8xf32>
    %c0_215 = arith.constant 0 : index
    %c5_216 = arith.constant 5 : index
    %c0_217 = arith.constant 0 : index
    %c0_218 = arith.constant 0 : index
    %284 = vector.load %arg11[%c0_215, %c5_216, %c0_217, %c0_218] : memref<1x12x1x8xf32, #tpu.memory_space<vmem>>, vector<1x1x1x8xf32>
    %285 = vector.shape_cast %284 : vector<1x1x1x8xf32> to vector<1x8xf32>
    %286 = vector.broadcast %285 : vector<1x8xf32> to vector<16x8xf32>
    %287 = arith.addf %283, %286 : vector<16x8xf32>
    %c0_219 = arith.constant 0 : index
    %c9_220 = arith.constant 9 : index
    %c0_221 = arith.constant 0 : index
    %c0_222 = arith.constant 0 : index
    %288 = vector.load %arg10[%c0_219, %c9_220, %c0_221, %c0_222] : memref<1x12x32x8xbf16, #tpu.memory_space<vmem>>, vector<1x1x32x8xbf16>
    %289 = vector.shape_cast %288 : vector<1x1x32x8xbf16> to vector<32x8xbf16>
    %cst_223 = arith.constant dense<0.000000e+00> : vector<16x8xf32>
    %290 = tpu.matmul %227, %289, %cst_223 {dimension_numbers = #tpu.dot_dimension_numbers<[1], [0], [0], [1], [0, 0, 1, 1], [], []>} : vector<16x32xbf16>, vector<32x8xbf16>, vector<16x8xf32> -> vector<16x8xf32>
    %c0_224 = arith.constant 0 : index
    %c9_225 = arith.constant 9 : index
    %c0_226 = arith.constant 0 : index
    %c0_227 = arith.constant 0 : index
    %291 = vector.load %arg11[%c0_224, %c9_225, %c0_226, %c0_227] : memref<1x12x1x8xf32, #tpu.memory_space<vmem>>, vector<1x1x1x8xf32>
    %292 = vector.shape_cast %291 : vector<1x1x1x8xf32> to vector<1x8xf32>
    %293 = vector.broadcast %292 : vector<1x8xf32> to vector<16x8xf32>
    %294 = arith.addf %290, %293 : vector<16x8xf32>
    %295 = vector.shape_cast %280 : vector<16x8xf32> to vector<2x8x8xf32>
    %296 = vector.shape_cast %287 : vector<16x8xf32> to vector<2x8x8xf32>
    "tpu.trace_start"() <{level = 10 : i32, message = "bqd,bkd->bqk"}> : () -> ()
    %cst_228 = arith.constant dense<0.000000e+00> : vector<2x8x8xf32>
    %297 = tpu.matmul %295, %296, %cst_228 {dimension_numbers = #tpu.dot_dimension_numbers<[2], [2], [1], [1], [0, 0, 0, 1, 1, 1], [0], [0]>} : vector<2x8x8xf32>, vector<2x8x8xf32>, vector<2x8x8xf32> -> vector<2x8x8xf32>
    "tpu.trace_stop"() : () -> ()
    %cst_229 = arith.constant 0.353553385 : f32
    %298 = vector.broadcast %cst_229 : f32 to vector<2x8x8xf32>
    %299 = arith.mulf %297, %298 : vector<2x8x8xf32>
    %300 = vector.broadcast %15 : vector<2x1x8xf32> to vector<2x8x8xf32>
    %301 = arith.addf %299, %300 : vector<2x8x8xf32>
    %cst_230 = arith.constant dense<0xFF800000> : vector<2x8xf32>
    %302 = vector.multi_reduction <maximumf>, %301, %cst_230 [2] : vector<2x8x8xf32> to vector<2x8xf32>
    %303 = vector.shape_cast %302 : vector<2x8xf32> to vector<2x8x1xf32>
    %304 = vector.broadcast %303 : vector<2x8x1xf32> to vector<2x8x8xf32>
    %305 = arith.subf %301, %304 : vector<2x8x8xf32>
    %306 = math.exp %305 : vector<2x8x8xf32>
    %cst_231 = arith.constant dense<0.000000e+00> : vector<2x8xf32>
    %307 = vector.multi_reduction <add>, %306, %cst_231 [2] : vector<2x8x8xf32> to vector<2x8xf32>
    %308 = vector.shape_cast %307 : vector<2x8xf32> to vector<2x8x1xf32>
    %309 = vector.broadcast %308 : vector<2x8x1xf32> to vector<2x8x8xf32>
    %310 = arith.divf %306, %309 : vector<2x8x8xf32>
    %311 = vector.shape_cast %294 : vector<16x8xf32> to vector<2x8x8xf32>
    "tpu.trace_start"() <{level = 10 : i32, message = "bqk,bkd->bqd"}> : () -> ()
    %cst_232 = arith.constant dense<0.000000e+00> : vector<2x8x8xf32>
    %312 = tpu.matmul %310, %311, %cst_232 {dimension_numbers = #tpu.dot_dimension_numbers<[2], [1], [1], [2], [0, 0, 0, 1, 1, 2], [0], [0]>} : vector<2x8x8xf32>, vector<2x8x8xf32>, vector<2x8x8xf32> -> vector<2x8x8xf32>
    "tpu.trace_stop"() : () -> ()
    %313 = vector.shape_cast %312 : vector<2x8x8xf32> to vector<16x8xf32>
    %314 = arith.truncf %313 : vector<16x8xf32> to vector<16x8xbf16>
    %c0_233 = arith.constant 0 : index
    %c1_234 = arith.constant 1 : index
    %c0_235 = arith.constant 0 : index
    %c0_236 = arith.constant 0 : index
    %315 = vector.load %arg12[%c0_233, %c1_234, %c0_235, %c0_236] : memref<1x4x8x32xbf16, #tpu.memory_space<vmem>>, vector<1x1x8x32xbf16>
    %316 = vector.shape_cast %315 : vector<1x1x8x32xbf16> to vector<8x32xbf16>
    %cst_237 = arith.constant dense<0.000000e+00> : vector<16x32xf32>
    %317 = tpu.matmul %314, %316, %cst_237 {dimension_numbers = #tpu.dot_dimension_numbers<[1], [0], [0], [1], [0, 0, 1, 1], [], []>} : vector<16x8xbf16>, vector<8x32xbf16>, vector<16x32xf32> -> vector<16x32xf32>
    %318 = arith.addf %273, %317 : vector<16x32xf32>
    %c0_238 = arith.constant 0 : index
    %c2_239 = arith.constant 2 : index
    %c0_240 = arith.constant 0 : index
    %c0_241 = arith.constant 0 : index
    %319 = vector.load %arg10[%c0_238, %c2_239, %c0_240, %c0_241] : memref<1x12x32x8xbf16, #tpu.memory_space<vmem>>, vector<1x1x32x8xbf16>
    %320 = vector.shape_cast %319 : vector<1x1x32x8xbf16> to vector<32x8xbf16>
    %cst_242 = arith.constant dense<0.000000e+00> : vector<16x8xf32>
    %321 = tpu.matmul %226, %320, %cst_242 {dimension_numbers = #tpu.dot_dimension_numbers<[1], [0], [0], [1], [0, 0, 1, 1], [], []>} : vector<16x32xbf16>, vector<32x8xbf16>, vector<16x8xf32> -> vector<16x8xf32>
    %c0_243 = arith.constant 0 : index
    %c2_244 = arith.constant 2 : index
    %c0_245 = arith.constant 0 : index
    %c0_246 = arith.constant 0 : index
    %322 = vector.load %arg11[%c0_243, %c2_244, %c0_245, %c0_246] : memref<1x12x1x8xf32, #tpu.memory_space<vmem>>, vector<1x1x1x8xf32>
    %323 = vector.shape_cast %322 : vector<1x1x1x8xf32> to vector<1x8xf32>
    %324 = vector.broadcast %323 : vector<1x8xf32> to vector<16x8xf32>
    %325 = arith.addf %321, %324 : vector<16x8xf32>
    %c0_247 = arith.constant 0 : index
    %c6_248 = arith.constant 6 : index
    %c0_249 = arith.constant 0 : index
    %c0_250 = arith.constant 0 : index
    %326 = vector.load %arg10[%c0_247, %c6_248, %c0_249, %c0_250] : memref<1x12x32x8xbf16, #tpu.memory_space<vmem>>, vector<1x1x32x8xbf16>
    %327 = vector.shape_cast %326 : vector<1x1x32x8xbf16> to vector<32x8xbf16>
    %cst_251 = arith.constant dense<0.000000e+00> : vector<16x8xf32>
    %328 = tpu.matmul %227, %327, %cst_251 {dimension_numbers = #tpu.dot_dimension_numbers<[1], [0], [0], [1], [0, 0, 1, 1], [], []>} : vector<16x32xbf16>, vector<32x8xbf16>, vector<16x8xf32> -> vector<16x8xf32>
    %c0_252 = arith.constant 0 : index
    %c6_253 = arith.constant 6 : index
    %c0_254 = arith.constant 0 : index
    %c0_255 = arith.constant 0 : index
    %329 = vector.load %arg11[%c0_252, %c6_253, %c0_254, %c0_255] : memref<1x12x1x8xf32, #tpu.memory_space<vmem>>, vector<1x1x1x8xf32>
    %330 = vector.shape_cast %329 : vector<1x1x1x8xf32> to vector<1x8xf32>
    %331 = vector.broadcast %330 : vector<1x8xf32> to vector<16x8xf32>
    %332 = arith.addf %328, %331 : vector<16x8xf32>
    %c0_256 = arith.constant 0 : index
    %c10_257 = arith.constant 10 : index
    %c0_258 = arith.constant 0 : index
    %c0_259 = arith.constant 0 : index
    %333 = vector.load %arg10[%c0_256, %c10_257, %c0_258, %c0_259] : memref<1x12x32x8xbf16, #tpu.memory_space<vmem>>, vector<1x1x32x8xbf16>
    %334 = vector.shape_cast %333 : vector<1x1x32x8xbf16> to vector<32x8xbf16>
    %cst_260 = arith.constant dense<0.000000e+00> : vector<16x8xf32>
    %335 = tpu.matmul %227, %334, %cst_260 {dimension_numbers = #tpu.dot_dimension_numbers<[1], [0], [0], [1], [0, 0, 1, 1], [], []>} : vector<16x32xbf16>, vector<32x8xbf16>, vector<16x8xf32> -> vector<16x8xf32>
    %c0_261 = arith.constant 0 : index
    %c10_262 = arith.constant 10 : index
    %c0_263 = arith.constant 0 : index
    %c0_264 = arith.constant 0 : index
    %336 = vector.load %arg11[%c0_261, %c10_262, %c0_263, %c0_264] : memref<1x12x1x8xf32, #tpu.memory_space<vmem>>, vector<1x1x1x8xf32>
    %337 = vector.shape_cast %336 : vector<1x1x1x8xf32> to vector<1x8xf32>
    %338 = vector.broadcast %337 : vector<1x8xf32> to vector<16x8xf32>
    %339 = arith.addf %335, %338 : vector<16x8xf32>
    %340 = vector.shape_cast %325 : vector<16x8xf32> to vector<2x8x8xf32>
    %341 = vector.shape_cast %332 : vector<16x8xf32> to vector<2x8x8xf32>
    "tpu.trace_start"() <{level = 10 : i32, message = "bqd,bkd->bqk"}> : () -> ()
    %cst_265 = arith.constant dense<0.000000e+00> : vector<2x8x8xf32>
    %342 = tpu.matmul %340, %341, %cst_265 {dimension_numbers = #tpu.dot_dimension_numbers<[2], [2], [1], [1], [0, 0, 0, 1, 1, 1], [0], [0]>} : vector<2x8x8xf32>, vector<2x8x8xf32>, vector<2x8x8xf32> -> vector<2x8x8xf32>
    "tpu.trace_stop"() : () -> ()
    %cst_266 = arith.constant 0.353553385 : f32
    %343 = vector.broadcast %cst_266 : f32 to vector<2x8x8xf32>
    %344 = arith.mulf %342, %343 : vector<2x8x8xf32>
    %345 = vector.broadcast %15 : vector<2x1x8xf32> to vector<2x8x8xf32>
    %346 = arith.addf %344, %345 : vector<2x8x8xf32>
    %cst_267 = arith.constant dense<0xFF800000> : vector<2x8xf32>
    %347 = vector.multi_reduction <maximumf>, %346, %cst_267 [2] : vector<2x8x8xf32> to vector<2x8xf32>
    %348 = vector.shape_cast %347 : vector<2x8xf32> to vector<2x8x1xf32>
    %349 = vector.broadcast %348 : vector<2x8x1xf32> to vector<2x8x8xf32>
    %350 = arith.subf %346, %349 : vector<2x8x8xf32>
    %351 = math.exp %350 : vector<2x8x8xf32>
    %cst_268 = arith.constant dense<0.000000e+00> : vector<2x8xf32>
    %352 = vector.multi_reduction <add>, %351, %cst_268 [2] : vector<2x8x8xf32> to vector<2x8xf32>
    %353 = vector.shape_cast %352 : vector<2x8xf32> to vector<2x8x1xf32>
    %354 = vector.broadcast %353 : vector<2x8x1xf32> to vector<2x8x8xf32>
    %355 = arith.divf %351, %354 : vector<2x8x8xf32>
    %356 = vector.shape_cast %339 : vector<16x8xf32> to vector<2x8x8xf32>
    "tpu.trace_start"() <{level = 10 : i32, message = "bqk,bkd->bqd"}> : () -> ()
    %cst_269 = arith.constant dense<0.000000e+00> : vector<2x8x8xf32>
    %357 = tpu.matmul %355, %356, %cst_269 {dimension_numbers = #tpu.dot_dimension_numbers<[2], [1], [1], [2], [0, 0, 0, 1, 1, 2], [0], [0]>} : vector<2x8x8xf32>, vector<2x8x8xf32>, vector<2x8x8xf32> -> vector<2x8x8xf32>
    "tpu.trace_stop"() : () -> ()
    %358 = vector.shape_cast %357 : vector<2x8x8xf32> to vector<16x8xf32>
    %359 = arith.truncf %358 : vector<16x8xf32> to vector<16x8xbf16>
    %c0_270 = arith.constant 0 : index
    %c2_271 = arith.constant 2 : index
    %c0_272 = arith.constant 0 : index
    %c0_273 = arith.constant 0 : index
    %360 = vector.load %arg12[%c0_270, %c2_271, %c0_272, %c0_273] : memref<1x4x8x32xbf16, #tpu.memory_space<vmem>>, vector<1x1x8x32xbf16>
    %361 = vector.shape_cast %360 : vector<1x1x8x32xbf16> to vector<8x32xbf16>
    %cst_274 = arith.constant dense<0.000000e+00> : vector<16x32xf32>
    %362 = tpu.matmul %359, %361, %cst_274 {dimension_numbers = #tpu.dot_dimension_numbers<[1], [0], [0], [1], [0, 0, 1, 1], [], []>} : vector<16x8xbf16>, vector<8x32xbf16>, vector<16x32xf32> -> vector<16x32xf32>
    %363 = arith.addf %318, %362 : vector<16x32xf32>
    %c0_275 = arith.constant 0 : index
    %c3_276 = arith.constant 3 : index
    %c0_277 = arith.constant 0 : index
    %c0_278 = arith.constant 0 : index
    %364 = vector.load %arg10[%c0_275, %c3_276, %c0_277, %c0_278] : memref<1x12x32x8xbf16, #tpu.memory_space<vmem>>, vector<1x1x32x8xbf16>
    %365 = vector.shape_cast %364 : vector<1x1x32x8xbf16> to vector<32x8xbf16>
    %cst_279 = arith.constant dense<0.000000e+00> : vector<16x8xf32>
    %366 = tpu.matmul %226, %365, %cst_279 {dimension_numbers = #tpu.dot_dimension_numbers<[1], [0], [0], [1], [0, 0, 1, 1], [], []>} : vector<16x32xbf16>, vector<32x8xbf16>, vector<16x8xf32> -> vector<16x8xf32>
    %c0_280 = arith.constant 0 : index
    %c3_281 = arith.constant 3 : index
    %c0_282 = arith.constant 0 : index
    %c0_283 = arith.constant 0 : index
    %367 = vector.load %arg11[%c0_280, %c3_281, %c0_282, %c0_283] : memref<1x12x1x8xf32, #tpu.memory_space<vmem>>, vector<1x1x1x8xf32>
    %368 = vector.shape_cast %367 : vector<1x1x1x8xf32> to vector<1x8xf32>
    %369 = vector.broadcast %368 : vector<1x8xf32> to vector<16x8xf32>
    %370 = arith.addf %366, %369 : vector<16x8xf32>
    %c0_284 = arith.constant 0 : index
    %c7_285 = arith.constant 7 : index
    %c0_286 = arith.constant 0 : index
    %c0_287 = arith.constant 0 : index
    %371 = vector.load %arg10[%c0_284, %c7_285, %c0_286, %c0_287] : memref<1x12x32x8xbf16, #tpu.memory_space<vmem>>, vector<1x1x32x8xbf16>
    %372 = vector.shape_cast %371 : vector<1x1x32x8xbf16> to vector<32x8xbf16>
    %cst_288 = arith.constant dense<0.000000e+00> : vector<16x8xf32>
    %373 = tpu.matmul %227, %372, %cst_288 {dimension_numbers = #tpu.dot_dimension_numbers<[1], [0], [0], [1], [0, 0, 1, 1], [], []>} : vector<16x32xbf16>, vector<32x8xbf16>, vector<16x8xf32> -> vector<16x8xf32>
    %c0_289 = arith.constant 0 : index
    %c7_290 = arith.constant 7 : index
    %c0_291 = arith.constant 0 : index
    %c0_292 = arith.constant 0 : index
    %374 = vector.load %arg11[%c0_289, %c7_290, %c0_291, %c0_292] : memref<1x12x1x8xf32, #tpu.memory_space<vmem>>, vector<1x1x1x8xf32>
    %375 = vector.shape_cast %374 : vector<1x1x1x8xf32> to vector<1x8xf32>
    %376 = vector.broadcast %375 : vector<1x8xf32> to vector<16x8xf32>
    %377 = arith.addf %373, %376 : vector<16x8xf32>
    %c0_293 = arith.constant 0 : index
    %c11_294 = arith.constant 11 : index
    %c0_295 = arith.constant 0 : index
    %c0_296 = arith.constant 0 : index
    %378 = vector.load %arg10[%c0_293, %c11_294, %c0_295, %c0_296] : memref<1x12x32x8xbf16, #tpu.memory_space<vmem>>, vector<1x1x32x8xbf16>
    %379 = vector.shape_cast %378 : vector<1x1x32x8xbf16> to vector<32x8xbf16>
    %cst_297 = arith.constant dense<0.000000e+00> : vector<16x8xf32>
    %380 = tpu.matmul %227, %379, %cst_297 {dimension_numbers = #tpu.dot_dimension_numbers<[1], [0], [0], [1], [0, 0, 1, 1], [], []>} : vector<16x32xbf16>, vector<32x8xbf16>, vector<16x8xf32> -> vector<16x8xf32>
    %c0_298 = arith.constant 0 : index
    %c11_299 = arith.constant 11 : index
    %c0_300 = arith.constant 0 : index
    %c0_301 = arith.constant 0 : index
    %381 = vector.load %arg11[%c0_298, %c11_299, %c0_300, %c0_301] : memref<1x12x1x8xf32, #tpu.memory_space<vmem>>, vector<1x1x1x8xf32>
    %382 = vector.shape_cast %381 : vector<1x1x1x8xf32> to vector<1x8xf32>
    %383 = vector.broadcast %382 : vector<1x8xf32> to vector<16x8xf32>
    %384 = arith.addf %380, %383 : vector<16x8xf32>
    %385 = vector.shape_cast %370 : vector<16x8xf32> to vector<2x8x8xf32>
    %386 = vector.shape_cast %377 : vector<16x8xf32> to vector<2x8x8xf32>
    "tpu.trace_start"() <{level = 10 : i32, message = "bqd,bkd->bqk"}> : () -> ()
    %cst_302 = arith.constant dense<0.000000e+00> : vector<2x8x8xf32>
    %387 = tpu.matmul %385, %386, %cst_302 {dimension_numbers = #tpu.dot_dimension_numbers<[2], [2], [1], [1], [0, 0, 0, 1, 1, 1], [0], [0]>} : vector<2x8x8xf32>, vector<2x8x8xf32>, vector<2x8x8xf32> -> vector<2x8x8xf32>
    "tpu.trace_stop"() : () -> ()
    %cst_303 = arith.constant 0.353553385 : f32
    %388 = vector.broadcast %cst_303 : f32 to vector<2x8x8xf32>
    %389 = arith.mulf %387, %388 : vector<2x8x8xf32>
    %390 = vector.broadcast %15 : vector<2x1x8xf32> to vector<2x8x8xf32>
    %391 = arith.addf %389, %390 : vector<2x8x8xf32>
    %cst_304 = arith.constant dense<0xFF800000> : vector<2x8xf32>
    %392 = vector.multi_reduction <maximumf>, %391, %cst_304 [2] : vector<2x8x8xf32> to vector<2x8xf32>
    %393 = vector.shape_cast %392 : vector<2x8xf32> to vector<2x8x1xf32>
    %394 = vector.broadcast %393 : vector<2x8x1xf32> to vector<2x8x8xf32>
    %395 = arith.subf %391, %394 : vector<2x8x8xf32>
    %396 = math.exp %395 : vector<2x8x8xf32>
    %cst_305 = arith.constant dense<0.000000e+00> : vector<2x8xf32>
    %397 = vector.multi_reduction <add>, %396, %cst_305 [2] : vector<2x8x8xf32> to vector<2x8xf32>
    %398 = vector.shape_cast %397 : vector<2x8xf32> to vector<2x8x1xf32>
    %399 = vector.broadcast %398 : vector<2x8x1xf32> to vector<2x8x8xf32>
    %400 = arith.divf %396, %399 : vector<2x8x8xf32>
    %401 = vector.shape_cast %384 : vector<16x8xf32> to vector<2x8x8xf32>
    "tpu.trace_start"() <{level = 10 : i32, message = "bqk,bkd->bqd"}> : () -> ()
    %cst_306 = arith.constant dense<0.000000e+00> : vector<2x8x8xf32>
    %402 = tpu.matmul %400, %401, %cst_306 {dimension_numbers = #tpu.dot_dimension_numbers<[2], [1], [1], [2], [0, 0, 0, 1, 1, 2], [0], [0]>} : vector<2x8x8xf32>, vector<2x8x8xf32>, vector<2x8x8xf32> -> vector<2x8x8xf32>
    "tpu.trace_stop"() : () -> ()
    %403 = vector.shape_cast %402 : vector<2x8x8xf32> to vector<16x8xf32>
    %404 = arith.truncf %403 : vector<16x8xf32> to vector<16x8xbf16>
    %c0_307 = arith.constant 0 : index
    %c3_308 = arith.constant 3 : index
    %c0_309 = arith.constant 0 : index
    %c0_310 = arith.constant 0 : index
    %405 = vector.load %arg12[%c0_307, %c3_308, %c0_309, %c0_310] : memref<1x4x8x32xbf16, #tpu.memory_space<vmem>>, vector<1x1x8x32xbf16>
    %406 = vector.shape_cast %405 : vector<1x1x8x32xbf16> to vector<8x32xbf16>
    %cst_311 = arith.constant dense<0.000000e+00> : vector<16x32xf32>
    %407 = tpu.matmul %404, %406, %cst_311 {dimension_numbers = #tpu.dot_dimension_numbers<[1], [0], [0], [1], [0, 0, 1, 1], [], []>} : vector<16x8xbf16>, vector<8x32xbf16>, vector<16x32xf32> -> vector<16x32xf32>
    %408 = arith.addf %363, %407 : vector<16x32xf32>
    %c0_312 = arith.constant 0 : index
    %c0_313 = arith.constant 0 : index
    %c0_314 = arith.constant 0 : index
    %409 = vector.load %arg13[%c0_312, %c0_313, %c0_314] : memref<1x1x32xf32, #tpu.memory_space<vmem>>, vector<1x1x32xf32>
    %410 = vector.shape_cast %409 : vector<1x1x32xf32> to vector<1x32xf32>
    %411 = vector.broadcast %410 : vector<1x32xf32> to vector<16x32xf32>
    %412 = arith.addf %408, %411 : vector<16x32xf32>
    %413 = arith.addf %225, %412 : vector<16x32xf32>
    %c0_315 = arith.constant 0 : index
    %c0_316 = arith.constant 0 : index
    %c0_317 = arith.constant 0 : index
    %414 = vector.load %arg16[%c0_315, %c0_316, %c0_317] : memref<1x1x32xf32, #tpu.memory_space<vmem>>, vector<1x1x32xf32>
    %415 = vector.shape_cast %414 : vector<1x1x32xf32> to vector<1x32xf32>
    %c0_318 = arith.constant 0 : index
    %c0_319 = arith.constant 0 : index
    %c0_320 = arith.constant 0 : index
    %416 = vector.load %arg17[%c0_318, %c0_319, %c0_320] : memref<1x1x32xf32, #tpu.memory_space<vmem>>, vector<1x1x32xf32>
    %417 = vector.shape_cast %416 : vector<1x1x32xf32> to vector<1x32xf32>
    %cst_321 = arith.constant dense<0.000000e+00> : vector<16xf32>
    %418 = vector.multi_reduction <add>, %413, %cst_321 [1] : vector<16x32xf32> to vector<16xf32>
    %419 = vector.shape_cast %418 : vector<16xf32> to vector<16x1xf32>
    %cst_322 = arith.constant 3.200000e+01 : f32
    %420 = vector.broadcast %cst_322 : f32 to vector<16x1xf32>
    %421 = arith.divf %419, %420 : vector<16x1xf32>
    %422 = vector.broadcast %421 : vector<16x1xf32> to vector<16x32xf32>
    %423 = arith.subf %413, %422 : vector<16x32xf32>
    %424 = arith.mulf %423, %423 : vector<16x32xf32>
    %cst_323 = arith.constant dense<0.000000e+00> : vector<16xf32>
    %425 = vector.multi_reduction <add>, %424, %cst_323 [1] : vector<16x32xf32> to vector<16xf32>
    %426 = vector.shape_cast %425 : vector<16xf32> to vector<16x1xf32>
    %cst_324 = arith.constant 3.200000e+01 : f32
    %427 = vector.broadcast %cst_324 : f32 to vector<16x1xf32>
    %428 = arith.divf %426, %427 : vector<16x1xf32>
    %429 = vector.broadcast %421 : vector<16x1xf32> to vector<16x32xf32>
    %430 = arith.subf %413, %429 : vector<16x32xf32>
    %cst_325 = arith.constant 9.99999974E-6 : f32
    %431 = vector.broadcast %cst_325 : f32 to vector<16x1xf32>
    %432 = arith.addf %428, %431 : vector<16x1xf32>
    %433 = math.rsqrt %432 : vector<16x1xf32>
    %434 = vector.broadcast %433 : vector<16x1xf32> to vector<16x32xf32>
    %435 = arith.mulf %430, %434 : vector<16x32xf32>
    %436 = vector.broadcast %415 : vector<1x32xf32> to vector<16x32xf32>
    %437 = arith.mulf %435, %436 : vector<16x32xf32>
    %438 = vector.broadcast %417 : vector<1x32xf32> to vector<16x32xf32>
    %439 = arith.addf %437, %438 : vector<16x32xf32>
    %c0_326 = arith.constant 0 : index
    %c0_327 = arith.constant 0 : index
    %c0_328 = arith.constant 0 : index
    %440 = vector.load %arg20[%c0_326, %c0_327, %c0_328] : memref<1x32x2048xbf16, #tpu.memory_space<vmem>>, vector<1x32x2048xbf16>
    %441 = vector.shape_cast %440 : vector<1x32x2048xbf16> to vector<32x2048xbf16>
    %c0_329 = arith.constant 0 : index
    %c0_330 = arith.constant 0 : index
    %c0_331 = arith.constant 0 : index
    %442 = vector.load %arg21[%c0_329, %c0_330, %c0_331] : memref<1x1x2048xf32, #tpu.memory_space<vmem>>, vector<1x1x2048xf32>
    %443 = vector.shape_cast %442 : vector<1x1x2048xf32> to vector<1x2048xf32>
    %c0_332 = arith.constant 0 : index
    %c0_333 = arith.constant 0 : index
    %c0_334 = arith.constant 0 : index
    %444 = vector.load %arg22[%c0_332, %c0_333, %c0_334] : memref<1x2048x32xbf16, #tpu.memory_space<vmem>>, vector<1x2048x32xbf16>
    %445 = vector.shape_cast %444 : vector<1x2048x32xbf16> to vector<2048x32xbf16>
    %c0_335 = arith.constant 0 : index
    %c0_336 = arith.constant 0 : index
    %c0_337 = arith.constant 0 : index
    %446 = vector.load %arg23[%c0_335, %c0_336, %c0_337] : memref<1x1x32xf32, #tpu.memory_space<vmem>>, vector<1x1x32xf32>
    %447 = vector.shape_cast %446 : vector<1x1x32xf32> to vector<1x32xf32>
    %448 = arith.truncf %439 : vector<16x32xf32> to vector<16x32xbf16>
    %cst_338 = arith.constant dense<0.000000e+00> : vector<16x2048xf32>
    %449 = tpu.matmul %448, %441, %cst_338 {dimension_numbers = #tpu.dot_dimension_numbers<[1], [0], [0], [1], [0, 0, 1, 1], [], []>} : vector<16x32xbf16>, vector<32x2048xbf16>, vector<16x2048xf32> -> vector<16x2048xf32>
    %450 = vector.broadcast %443 : vector<1x2048xf32> to vector<16x2048xf32>
    %451 = arith.addf %449, %450 : vector<16x2048xf32>
    %cst_339 = arith.constant 0.000000e+00 : f32
    %452 = vector.broadcast %cst_339 : f32 to vector<16x2048xf32>
    %453 = arith.maximumf %451, %452 : vector<16x2048xf32>
    %454 = arith.truncf %453 : vector<16x2048xf32> to vector<16x2048xbf16>
    %cst_340 = arith.constant dense<0.000000e+00> : vector<16x32xf32>
    %455 = tpu.matmul %454, %445, %cst_340 {dimension_numbers = #tpu.dot_dimension_numbers<[1], [0], [0], [1], [0, 0, 1, 1], [], []>} : vector<16x2048xbf16>, vector<2048x32xbf16>, vector<16x32xf32> -> vector<16x32xf32>
    %456 = vector.broadcast %447 : vector<1x32xf32> to vector<16x32xf32>
    %457 = arith.addf %455, %456 : vector<16x32xf32>
    %458 = arith.addf %439, %457 : vector<16x32xf32>
    %c0_341 = arith.constant 0 : index
    %c0_342 = arith.constant 0 : index
    %c0_343 = arith.constant 0 : index
    %459 = vector.load %arg18[%c0_341, %c0_342, %c0_343] : memref<1x1x32xf32, #tpu.memory_space<vmem>>, vector<1x1x32xf32>
    %460 = vector.shape_cast %459 : vector<1x1x32xf32> to vector<1x32xf32>
    %c0_344 = arith.constant 0 : index
    %c0_345 = arith.constant 0 : index
    %c0_346 = arith.constant 0 : index
    %461 = vector.load %arg19[%c0_344, %c0_345, %c0_346] : memref<1x1x32xf32, #tpu.memory_space<vmem>>, vector<1x1x32xf32>
    %462 = vector.shape_cast %461 : vector<1x1x32xf32> to vector<1x32xf32>
    %cst_347 = arith.constant dense<0.000000e+00> : vector<16xf32>
    %463 = vector.multi_reduction <add>, %458, %cst_347 [1] : vector<16x32xf32> to vector<16xf32>
    %464 = vector.shape_cast %463 : vector<16xf32> to vector<16x1xf32>
    %cst_348 = arith.constant 3.200000e+01 : f32
    %465 = vector.broadcast %cst_348 : f32 to vector<16x1xf32>
    %466 = arith.divf %464, %465 : vector<16x1xf32>
    %467 = vector.broadcast %466 : vector<16x1xf32> to vector<16x32xf32>
    %468 = arith.subf %458, %467 : vector<16x32xf32>
    %469 = arith.mulf %468, %468 : vector<16x32xf32>
    %cst_349 = arith.constant dense<0.000000e+00> : vector<16xf32>
    %470 = vector.multi_reduction <add>, %469, %cst_349 [1] : vector<16x32xf32> to vector<16xf32>
    %471 = vector.shape_cast %470 : vector<16xf32> to vector<16x1xf32>
    %cst_350 = arith.constant 3.200000e+01 : f32
    %472 = vector.broadcast %cst_350 : f32 to vector<16x1xf32>
    %473 = arith.divf %471, %472 : vector<16x1xf32>
    %474 = vector.broadcast %466 : vector<16x1xf32> to vector<16x32xf32>
    %475 = arith.subf %458, %474 : vector<16x32xf32>
    %cst_351 = arith.constant 9.99999974E-6 : f32
    %476 = vector.broadcast %cst_351 : f32 to vector<16x1xf32>
    %477 = arith.addf %473, %476 : vector<16x1xf32>
    %478 = math.rsqrt %477 : vector<16x1xf32>
    %479 = vector.broadcast %478 : vector<16x1xf32> to vector<16x32xf32>
    %480 = arith.mulf %475, %479 : vector<16x32xf32>
    %481 = vector.broadcast %460 : vector<1x32xf32> to vector<16x32xf32>
    %482 = arith.mulf %480, %481 : vector<16x32xf32>
    %483 = vector.broadcast %462 : vector<1x32xf32> to vector<16x32xf32>
    %484 = arith.addf %482, %483 : vector<16x32xf32>
    %485 = vector.shape_cast %484 : vector<16x32xf32> to vector<2x8x32xf32>
    %c0_352 = arith.constant 0 : index
    %c0_353 = arith.constant 0 : index
    %c0_354 = arith.constant 0 : index
    %486 = vector.load %arg24[%c0_352, %c0_353, %c0_354] : memref<2x8x32xf32, #tpu.memory_space<vmem>>, vector<2x8x32xf32>
    tpu.vector_store %arg24[%c0_352, %c0_353, %c0_354], %485 {strides = array<i32>} : memref<2x8x32xf32, #tpu.memory_space<vmem>>, vector<2x8x32xf32>,
    return
  }
  func.func @transform_0(%arg0: i32) -> (i32, i32, i32) {
    %c0_i32 = arith.constant 0 : i32
    %c0_i32_0 = arith.constant 0 : i32
    %c0_i32_1 = arith.constant 0 : i32
    %c0_i32_2 = arith.constant 0 : i32
    return %c0_i32, %c0_i32_0, %c0_i32_1 : i32, i32, i32
  }
  func.func @transform_1(%arg0: i32) -> (i32, i32, i32) {
    %c0_i32 = arith.constant 0 : i32
    %c0_i32_0 = arith.constant 0 : i32
    %c0_i32_1 = arith.constant 0 : i32
    %c0_i32_2 = arith.constant 0 : i32
    return %c0_i32, %c0_i32_0, %c0_i32_1 : i32, i32, i32
  }
  func.func @transform_2(%arg0: i32) -> (i32, i32) {
    %c0_i32 = arith.constant 0 : i32
    %c0_i32_0 = arith.constant 0 : i32
    %c0_i32_1 = arith.constant 0 : i32
    return %c0_i32, %c0_i32_0 : i32, i32
  }
  func.func @transform_3(%arg0: i32) -> (i32, i32) {
    %c0_i32 = arith.constant 0 : i32
    %c0_i32_0 = arith.constant 0 : i32
    %c0_i32_1 = arith.constant 0 : i32
    return %c0_i32, %c0_i32_0 : i32, i32
  }
  func.func @transform_4(%arg0: i32) -> (i32, i32) {
    %c0_i32 = arith.constant 0 : i32
    %c0_i32_0 = arith.constant 0 : i32
    %c0_i32_1 = arith.constant 0 : i32
    return %c0_i32, %c0_i32_0 : i32, i32
  }
  func.func @transform_5(%arg0: i32) -> (i32, i32, i32, i32) {
    %c0_i32 = arith.constant 0 : i32
    %c0_i32_0 = arith.constant 0 : i32
    %c0_i32_1 = arith.constant 0 : i32
    %c0_i32_2 = arith.constant 0 : i32
    return %arg0, %c0_i32, %c0_i32_0, %c0_i32_1 : i32, i32, i32, i32
  }
  func.func @transform_6(%arg0: i32) -> (i32, i32, i32, i32) {
    %c0_i32 = arith.constant 0 : i32
    %c0_i32_0 = arith.constant 0 : i32
    %c0_i32_1 = arith.constant 0 : i32
    %c0_i32_2 = arith.constant 0 : i32
    return %arg0, %c0_i32, %c0_i32_0, %c0_i32_1 : i32, i32, i32, i32
  }
  func.func @transform_7(%arg0: i32) -> (i32, i32, i32, i32) {
    %c0_i32 = arith.constant 0 : i32
    %c0_i32_0 = arith.constant 0 : i32
    %c0_i32_1 = arith.constant 0 : i32
    %c0_i32_2 = arith.constant 0 : i32
    return %arg0, %c0_i32, %c0_i32_0, %c0_i32_1 : i32, i32, i32, i32
  }
  func.func @transform_8(%arg0: i32) -> (i32, i32, i32) {
    %c0_i32 = arith.constant 0 : i32
    %c0_i32_0 = arith.constant 0 : i32
    %c0_i32_1 = arith.constant 0 : i32
    return %arg0, %c0_i32, %c0_i32_0 : i32, i32, i32
  }
  func.func @transform_9(%arg0: i32) -> (i32, i32, i32, i32) {
    %c0_i32 = arith.constant 0 : i32
    %c0_i32_0 = arith.constant 0 : i32
    %c0_i32_1 = arith.constant 0 : i32
    %c0_i32_2 = arith.constant 0 : i32
    return %arg0, %c0_i32, %c0_i32_0, %c0_i32_1 : i32, i32, i32, i32
  }
  func.func @transform_10(%arg0: i32) -> (i32, i32, i32, i32) {
    %c0_i32 = arith.constant 0 : i32
    %c0_i32_0 = arith.constant 0 : i32
    %c0_i32_1 = arith.constant 0 : i32
    %c0_i32_2 = arith.constant 0 : i32
    return %arg0, %c0_i32, %c0_i32_0, %c0_i32_1 : i32, i32, i32, i32
  }
  func.func @transform_11(%arg0: i32) -> (i32, i32, i32, i32) {
    %c0_i32 = arith.constant 0 : i32
    %c0_i32_0 = arith.constant 0 : i32
    %c0_i32_1 = arith.constant 0 : i32
    %c0_i32_2 = arith.constant 0 : i32
    return %arg0, %c0_i32, %c0_i32_0, %c0_i32_1 : i32, i32, i32, i32
  }
  func.func @transform_12(%arg0: i32) -> (i32, i32, i32) {
    %c0_i32 = arith.constant 0 : i32
    %c0_i32_0 = arith.constant 0 : i32
    %c0_i32_1 = arith.constant 0 : i32
    return %arg0, %c0_i32, %c0_i32_0 : i32, i32, i32
  }
  func.func @transform_13(%arg0: i32) -> (i32, i32, i32) {
    %c0_i32 = arith.constant 0 : i32
    %c0_i32_0 = arith.constant 0 : i32
    %c0_i32_1 = arith.constant 0 : i32
    return %arg0, %c0_i32, %c0_i32_0 : i32, i32, i32
  }
  func.func @transform_14(%arg0: i32) -> (i32, i32, i32) {
    %c0_i32 = arith.constant 0 : i32
    %c0_i32_0 = arith.constant 0 : i32
    %c0_i32_1 = arith.constant 0 : i32
    return %arg0, %c0_i32, %c0_i32_0 : i32, i32, i32
  }
  func.func @transform_15(%arg0: i32) -> (i32, i32, i32) {
    %c0_i32 = arith.constant 0 : i32
    %c0_i32_0 = arith.constant 0 : i32
    %c0_i32_1 = arith.constant 0 : i32
    return %arg0, %c0_i32, %c0_i32_0 : i32, i32, i32
  }
  func.func @transform_16(%arg0: i32) -> (i32, i32, i32) {
    %c0_i32 = arith.constant 0 : i32
    %c0_i32_0 = arith.constant 0 : i32
    %c0_i32_1 = arith.constant 0 : i32
    return %arg0, %c0_i32, %c0_i32_0 : i32, i32, i32
  }
  func.func @transform_17(%arg0: i32) -> (i32, i32, i32) {
    %c0_i32 = arith.constant 0 : i32
    %c0_i32_0 = arith.constant 0 : i32
    %c0_i32_1 = arith.constant 0 : i32
    return %arg0, %c0_i32, %c0_i32_0 : i32, i32, i32
  }
  func.func @transform_18(%arg0: i32) -> (i32, i32, i32) {
    %c0_i32 = arith.constant 0 : i32
    %c0_i32_0 = arith.constant 0 : i32
    %c0_i32_1 = arith.constant 0 : i32
    return %arg0, %c0_i32, %c0_i32_0 : i32, i32, i32
  }
  func.func @transform_19(%arg0: i32) -> (i32, i32, i32) {
    %c0_i32 = arith.constant 0 : i32
    %c0_i32_0 = arith.constant 0 : i32
    %c0_i32_1 = arith.constant 0 : i32
    return %arg0, %c0_i32, %c0_i32_0 : i32, i32, i32
  }
  func.func @transform_20(%arg0: i32) -> (i32, i32, i32) {
    %c0_i32 = arith.constant 0 : i32
    %c0_i32_0 = arith.constant 0 : i32
    %c0_i32_1 = arith.constant 0 : i32
    return %arg0, %c0_i32, %c0_i32_0 : i32, i32, i32
  }
  func.func @transform_21(%arg0: i32) -> (i32, i32, i32) {
    %c0_i32 = arith.constant 0 : i32
    %c0_i32_0 = arith.constant 0 : i32
    %c0_i32_1 = arith.constant 0 : i32
    return %arg0, %c0_i32, %c0_i32_0 : i32, i32, i32
  }
  func.func @transform_22(%arg0: i32) -> (i32, i32, i32) {
    %c0_i32 = arith.constant 0 : i32
    %c0_i32_0 = arith.constant 0 : i32
    %c0_i32_1 = arith.constant 0 : i32
    return %arg0, %c0_i32, %c0_i32_0 : i32, i32, i32
  }
  func.func @transform_23(%arg0: i32) -> (i32, i32, i32) {
    %c0_i32 = arith.constant 0 : i32
    %c0_i32_0 = arith.constant 0 : i32
    %c0_i32_1 = arith.constant 0 : i32
    %c0_i32_2 = arith.constant 0 : i32
    return %c0_i32, %c0_i32_0, %c0_i32_1 : i32, i32, i32
  }
}

</mosaic_0001>

<bundles_post_ra>
// kernel: residual_model_forward.5
= control target key start
LH: loop header
LB: loop body
LE: loop exit
PB: predicated region body
PF: predicated region fallthrough
CT: control target
= control target key end

     0   :  { %7 = vsyncpa [#allocation4], 0  ;;  %s7582_s0 = inlined_call_operand.vmem [shape: bf16[16,32], index: 0, kind: input, shape index: {}]   ;;  %s7583_s1 = inlined_call_operand.vmem [shape: bf16[32,50257], index: 1, kind: input, shape index: {}]   ;;  %s7584_s2 = inlined_call_operand.hbm [shape: f32[16,50257], index: 2, kind: output, shape index: {}]  }
   0x1   :  { %9 = vsyncpa [#allocation4 + $0x1], 0  ;;  %s6082_s9 = smov 0   ;;  %s6084_s10 = smov 0  }
   0x2   :  { %s6086_s11 = smov 0   ;;  %s6088_s12 = smov 0  }
   0x3 LB: > { %s6103_s13 = sadd.s32 4294967295, %s5996_s12   ;;  %s4221_s14 = sadd.s32 4294967294, %s5996_s12   ;;  %s5996_s12 = sphi %s6088_s12, %s7606_s12   ;;  %s5992_s11 = sphi %s6086_s11, %s7605_s11   ;;  %s5988_s10 = sphi %s6084_s10, %s7604_s10   ;;  %s5984_s9 = sphi %s6082_s9, %s7603_s9  }
   0x4   : > { %s6107_s15 = sadd.s32 1, %s5996_s12   ;;  %s43_s16 = sadd.s32 1, %s5992_s11 }
   0x5   : > { %s40_s17 = ssub.s32 %s5996_s12, %s6107_s15  ;;  %p50_p0 = scmp.ne.s32.totalorder %s5992_s11, %s5988_s10 }
   0x6   : > { %p41_p1 = scmp.eq.s32.totalorder %s40_s17, 0  ;;  %p51_p2 = scmp.eq.s32.totalorder %s5996_s12, 0 }
   0x7   : > { %p80_p3 = scmp.eq.s32.totalorder %s6103_s13, 3  ;;  %p85_p4 = scmp.ne.s32.totalorder %s5988_s10, %s5984_s9 }
   0x8   : > { %s6119_s18 = scalar_select %p41_p1, %s5992_s11, %s43_s16  }
   0x9   : > { %p52_p5 = por %p51_p2, %p50_p0  ;;  %p6121_p6 = por %p80_p3, %p50_p0 }
   0xa   : > { %p86_p7 = scmp.eq.s32.totalorder %s4221_s14, 3  ;;  %p4223_p9 = scmp.ge.s32.totalorder %s5996_s12, 4 }
   0xc   : > { %p6125_p8 = por %p86_p7, %p85_p4  ;;  %105 = sbr.rel (%p4223_p9) target bundleno = 176 (0xb0), region = 20 }
  0x11   : > { %108 = sbr.rel (!%p52_p5) target bundleno = 176 (0xb0), region = 24  ;;  %s110_s21 = sand.u32 (%p52_p5), 1, %s5992_s11  }
  0x12   : > { %s4225_s22 = sshll.u32 (%p52_p5), %s5996_s12, 7  ;;  %s4224_s23 = sshll.u32 (%p52_p5), %s110_s21, 11 }
  0x13   : > { %s114_s24 = ssub.s32 (%p52_p5), 393, %s4225_s22  ;;  %s5422_s25 = sshll.u32 (%p52_p5), %s5996_s12, 9 }
  0x14   : > { %p115_p10 = scmp.lt.s32.totalorder (%p52_p5), %s114_s24, 128  ;;  %s6136_s28 = scalar_lea.vmem (%p52_p5), %s7583_s1, %s5422_s25  }
  0x15   : > { %s6140_s3 = scalar_lea.vmem (%p52_p5), [#allocation2], %s4224_s23  }
  0x16   : > { %s7608_s24 = smov (!%p115_p10, %s114_s24), 128 }
  0x17   : > { %s4226_s29 = sshll.u32 %s7608_s24, 4  ;;  %s6138_s30 = sshll.u32 %s7608_s24, 2 }
  0x18   : > { %p4230_p11 = scmp.eq.s32.totalorder %s4226_s29, 0 }
  0x19   : > { %p125_p12 = scmp.lt.u32.totalorder (!%p4230_p11), %s6138_s30, 8 }
  0x1a   : > { %124 = sbr.rel (%p4230_p11) target bundleno = 176 (0xb0), region = 28 }
  0x1f   : > { %128 = sbr.rel (%p125_p12) target bundleno = 164 (0xa4), region = 32  ;;  %s6144_s4 = sand.u32 (!%p125_p12), 7, %s6138_s30  }
  0x20   : > { %p151_p13 = scmp.eq.s32.totalorder (!%p125_p12), %s6144_s4, 0  ;;  %p4231_p0 = scmp.ne.s32.totalorder (!%p125_p12), %s6144_s4, 0 }
  0x24   : > { %154 = sbr.rel (%p4231_p0) target bundleno = 96 (0x60), region = 47  ;;  %s155_s5 = sshrl.u32 (!%p4231_p0), %s6138_s30, 3 }
  0x25   : > { %s6151_s6 = sshrl.u32 (!%p4231_p0), %s155_s5, 3 }
  0x26   : > { %p4232_p1 = scmp.le.s32.totalorder (!%p4231_p0), %s6151_s6, 0 }
  0x29   : > { %4149 = sbr.rel (%p4232_p1) target bundleno = 79 (0x4f), region = 146  ;;  %s7587_s7 = smov (!%p4232_p1), %s6140_s3 }
  0x2a   : > { %s7588_s8 = smov (!%p4232_p1), %s6136_s28  ;;  %s6160_s14 = smov (!%p4232_p1), 0  }
  0x2b   : > { %s6162_s16 = smov (!%p4232_p1), 0  }
  0x2e LB: >> { %v166_v0 = vld [vmem:[%s6004_s8] sm:$0xff]  ;;  %v168_v1 = vld [vmem:[%s6004_s8 + $0x8] sm:$0xff]  ;;  %v170_v2 = vld [vmem:[%s6004_s8 + $0x10] sm:$0xff]  ;;  %s230_s17 = sadd.s32 1, %s6008_s14  ;;  %s160_s16 = sadd.s32 1, %s6012_s16   ;;  %s6012_s16 = sphi %s6162_s16, %s160_s16   ;;  %s6008_s14 = sphi %s6160_s14, %s7591_s14   ;;  %s6004_s8 = sphi %s7588_s8, %s7590_s8   ;;  %s6000_s7 = sphi %s7587_s7, %s7589_s7  }
  0x2f   : >> { %167 = vst [vmem:[%s6000_s7] sm:$0xff] %v166_v0  ;;  %v172_v3 = vld [vmem:[%s6004_s8 + $0x18] sm:$0xff]  ;;  %p231_p2 = scmp.ge.s32.totalorder %s230_s17, %s6151_s6  ;;  %v174_v4 = vld [vmem:[%s6004_s8 + $0x20] sm:$0xff]  ;;  %v176_v5 = vld [vmem:[%s6004_s8 + $0x28] sm:$0xff]  ;;  %p159_p3 = scmp.ge.s32.totalorder %s160_s16, %s6151_s6 }
  0x30   : >> { %169 = vst [vmem:[%s6000_s7 + $0x8] sm:$0xff] %v168_v1  ;;  %v178_v6 = vld [vmem:[%s6004_s8 + $0x30] sm:$0xff]  ;;  %v180_v7 = vld [vmem:[%s6004_s8 + $0x38] sm:$0xff]  ;;  %v182_v8 = vld [vmem:[%s6004_s8 + $0x624] sm:$0xff] }
  0x31   : >> { %171 = vst [vmem:[%s6000_s7 + $0x10] sm:$0xff] %v170_v2  ;;  %s7610_s17 = smov (%p231_p2, %s230_s17), 0  ;;  %v184_v9 = vld [vmem:[%s6004_s8 + $0x62c] sm:$0xff]  ;;  %v186_v10 = vld [vmem:[%s6004_s8 + $0x634] sm:$0xff]  ;;  %v188_v11 = vld [vmem:[%s6004_s8 + $0x63c] sm:$0xff] }
  0x32   : >> { %173 = vst [vmem:[%s6000_s7 + $0x18] sm:$0xff] %v172_v3  ;;  %s4233_s21 = sshll.u32 %s7610_s17, 6  ;;  %v190_v12 = vld [vmem:[%s6004_s8 + $0x644] sm:$0xff]  ;;  %v192_v13 = vld [vmem:[%s6004_s8 + $0x64c] sm:$0xff]  ;;  %v194_v14 = vld [vmem:[%s6004_s8 + $0x654] sm:$0xff]  ;;  %s7591_s14 = smov %s7610_s17 }
  0x33   : >> { %175 = vst [vmem:[%s6000_s7 + $0x20] sm:$0xff] %v174_v4  ;;  %s6194_s22 = scalar_lea.vmem %s6136_s28, %s4233_s21   ;;  %s6197_s23 = scalar_lea.vmem %s6140_s3, %s4233_s21 [#allocation2]   ;;  %v196_v15 = vld [vmem:[%s6004_s8 + $0x65c] sm:$0xff]  ;;  %v198_v16 = vld [vmem:[%s6004_s8 + $0xc48] sm:$0xff]  ;;  %v200_v17 = vld [vmem:[%s6004_s8 + $0xc50] sm:$0xff] }
  0x34   : >> { %177 = vst [vmem:[%s6000_s7 + $0x28] sm:$0xff] %v176_v5  ;;  %v202_v18 = vld [vmem:[%s6004_s8 + $0xc58] sm:$0xff]  ;;  %v204_v19 = vld [vmem:[%s6004_s8 + $0xc60] sm:$0xff]  ;;  %v206_v20 = vld [vmem:[%s6004_s8 + $0xc68] sm:$0xff] }
  0x35   : >> { %179 = vst [vmem:[%s6000_s7 + $0x30] sm:$0xff] %v178_v6  ;;  %v208_v21 = vld [vmem:[%s6004_s8 + $0xc70] sm:$0xff]  ;;  %v210_v22 = vld [vmem:[%s6004_s8 + $0xc78] sm:$0xff]  ;;  %v212_v23 = vld [vmem:[%s6004_s8 + $0xc80] sm:$0xff] }
  0x36   : >> { %181 = vst [vmem:[%s6000_s7 + $0x38] sm:$0xff] %v180_v7  ;;  %v214_v24 = vld [vmem:[%s6004_s8 + $0x126c] sm:$0xff]  ;;  %v216_v25 = vld [vmem:[%s6004_s8 + $0x1274] sm:$0xff]  ;;  %v218_v26 = vld [vmem:[%s6004_s8 + $0x127c] sm:$0xff] }
  0x37   : >> { %183 = vst [vmem:[%s6000_s7 + $0x200] sm:$0xff] %v182_v8  ;;  %v220_v27 = vld [vmem:[%s6004_s8 + $0x1284] sm:$0xff]  ;;  %v222_v28 = vld [vmem:[%s6004_s8 + $0x128c] sm:$0xff]  ;;  %v224_v29 = vld [vmem:[%s6004_s8 + $0x1294] sm:$0xff] }
  0x38   : >> { %185 = vst [vmem:[%s6000_s7 + $0x208] sm:$0xff] %v184_v9  ;;  %v226_v30 = vld [vmem:[%s6004_s8 + $0x129c] sm:$0xff]  ;;  %v228_v31 = vld [vmem:[%s6004_s8 + $0x12a4] sm:$0xff]  ;;  %s7590_s8 = smov %s6194_s22 }
  0x39   : >> { %187 = vst [vmem:[%s6000_s7 + $0x210] sm:$0xff] %v186_v10 }
  0x3a   : >> { %189 = vst [vmem:[%s6000_s7 + $0x218] sm:$0xff] %v188_v11 }
  0x3b   : >> { %191 = vst [vmem:[%s6000_s7 + $0x220] sm:$0xff] %v190_v12 }
  0x3c   : >> { %193 = vst [vmem:[%s6000_s7 + $0x228] sm:$0xff] %v192_v13 }
  0x3d   : >> { %195 = vst [vmem:[%s6000_s7 + $0x230] sm:$0xff] %v194_v14 }
  0x3e   : >> { %197 = vst [vmem:[%s6000_s7 + $0x238] sm:$0xff] %v196_v15 }
  0x3f   : >> { %199 = vst [vmem:[%s6000_s7 + $0x400] sm:$0xff] %v198_v16 }
  0x40   : >> { %201 = vst [vmem:[%s6000_s7 + $0x408] sm:$0xff] %v200_v17 }
  0x41   : >> { %203 = vst [vmem:[%s6000_s7 + $0x410] sm:$0xff] %v202_v18 }
  0x42   : >> { %205 = vst [vmem:[%s6000_s7 + $0x418] sm:$0xff] %v204_v19 }
  0x43   : >> { %207 = vst [vmem:[%s6000_s7 + $0x420] sm:$0xff] %v206_v20 }
  0x44   : >> { %209 = vst [vmem:[%s6000_s7 + $0x428] sm:$0xff] %v208_v21 }
  0x45   : >> { %211 = vst [vmem:[%s6000_s7 + $0x430] sm:$0xff] %v210_v22 }
  0x46   : >> { %213 = vst [vmem:[%s6000_s7 + $0x438] sm:$0xff] %v212_v23 }
  0x47   : >> { %215 = vst [vmem:[%s6000_s7 + $0x600] sm:$0xff] %v214_v24 }
  0x48   : >> { %217 = vst [vmem:[%s6000_s7 + $0x608] sm:$0xff] %v216_v25 }
  0x49   : >> { %219 = vst [vmem:[%s6000_s7 + $0x610] sm:$0xff] %v218_v26 }
  0x4a   : >> { %221 = vst [vmem:[%s6000_s7 + $0x618] sm:$0xff] %v220_v27  ;;  %162 = sbr.rel (!%p159_p3) target bundleno = 46 (0x2e), region = 152 }
  0x4b   : >> { %223 = vst [vmem:[%s6000_s7 + $0x620] sm:$0xff] %v222_v28 }
  0x4c   : >> { %225 = vst [vmem:[%s6000_s7 + $0x628] sm:$0xff] %v224_v29 }
  0x4d   : >> { %227 = vst [vmem:[%s6000_s7 + $0x630] sm:$0xff] %v226_v30 }
  0x4e   : >> { %229 = vst [vmem:[%s6000_s7 + $0x638] sm:$0xff] %v228_v31  ;;  %s7589_s7 = smov %s6197_s23 }
  0x4f PF: > { %s6263_s24 = sand.u32 7, %s155_s5   ;;  %s5423_s25 = sshll.u32 %s6151_s6, 6 }
  0x50   : > { %s6267_s26 = scalar_lea.vmem %s6136_s28, %s5423_s25   ;;  %s6270_s27 = scalar_lea.vmem %s6140_s3, %s5423_s25 [#allocation2]  }
  0x51   : > { %p4238_p4 = scmp.le.s32.totalorder %s6263_s24, 0 }
  0x52   : > { %s7592_s29 = smov (!%p4238_p4), %s6270_s27  ;;  %s7593_s7 = smov (!%p4238_p4), %s6267_s26 }
  0x53   : > { %4163 = sbr.rel (%p4238_p4) target bundleno = 96 (0x60), region = 157  ;;  %s6279_s8 = smov (!%p4238_p4), 0  }
  0x54   : > { %s6026_s14 = smov (!%p4238_p4), 0  }
  0x58 LB: >> { %v253_v32 = vld [vmem:[%s6020_s7] sm:$0xff]  ;;  %v257_v34 = vld [vmem:[%s6020_s7 + $0xc48] sm:$0xff]  ;;  %s261_s5 = sadd.s32 1, %s6024_s8  ;;  %s247_s14 = sadd.s32 1, %s6028_s14   ;;  %s6028_s14 = sphi %s6026_s14, %s247_s14   ;;  %s6024_s8 = sphi %s6279_s8, %s7594_s8   ;;  %s6020_s7 = sphi %s7593_s7, %s266_s7   ;;  %s6016_s29 = sphi %s7592_s29, %s267_s29  }
  0x59   : >> { %v255_v33 = vld [vmem:[%s6020_s7 + $0x624] sm:$0xff]  ;;  %254 = vst [vmem:[%s6016_s29] sm:$0xff] %v253_v32  ;;  %v259_v35 = vld [vmem:[%s6020_s7 + $0x126c] sm:$0xff]  ;;  %p262_p5 = scmp.ge.s32.totalorder %s261_s5, %s6263_s24  ;;  %p246_p7 = scmp.ge.s32.totalorder %s247_s14, %s6263_s24 }
  0x5a   : >> { %256 = vst [vmem:[%s6016_s29 + $0x200] sm:$0xff] %v255_v33 }
  0x5b   : >> { %258 = vst [vmem:[%s6016_s29 + $0x400] sm:$0xff] %v257_v34  ;;  %s7612_s5 = smov (%p262_p5, %s261_s5), 0  ;;  %249 = sbr.rel (!%p246_p7) target bundleno = 88 (0x58), region = 163 }
  0x5c   : >> { %260 = vst [vmem:[%s6016_s29 + $0x600] sm:$0xff] %v259_v35  ;;  %s4239_s6 = sshll.u32 %s7612_s5, 3  ;;  %s7594_s8 = smov %s7612_s5 }
  0x5d   : >> { %s266_s7 = scalar_lea.vmem %s6267_s26, %s4239_s6   ;;  %s267_s29 = scalar_lea.vmem %s6270_s27, %s4239_s6 [#allocation2]  }
  0x60 PF: > { %270 = sbr.rel (%p151_p13) target bundleno = 164 (0xa4), region = 65  ;;  %s272_s16 = ssub.s32 (!%p151_p13), %s6138_s30, %s6144_s4 }
  0x61   : > { %s276_s17 = sshrl.u32 (!%p151_p13), %s6138_s30, 3  ;;  %s6300_s21 = scalar_lea.vmem (!%p151_p13), %s6136_s28, %s272_s16 }
  0x62   : > { %s6303_s22 = scalar_lea.vmem (!%p151_p13), %s6140_s3, %s272_s16 [#allocation2]  ;;  %s6307_s23 = sshrl.u32 (!%p151_p13), %s276_s17, 3 }
  0x63   : > { %p4241_p9 = scmp.le.s32.totalorder (!%p151_p13), %s6307_s23, 0 }
  0x65   : > { %4177 = sbr.rel (%p4241_p9) target bundleno = 139 (0x8b), region = 168  ;;  %s7595_s24 = smov (!%p4241_p9), %s6140_s3 }
  0x66   : > { %s7596_s25 = smov (!%p4241_p9), %s6136_s28  ;;  %s6316_s26 = smov (!%p4241_p9), 0  }
  0x67   : > { %s6318_s27 = smov (!%p4241_p9), 0  }
  0x6a LB: >> { %v287_v36 = vld [vmem:[%s6036_s25] sm:$0xff]  ;;  %v289_v37 = vld [vmem:[%s6036_s25 + $0x8] sm:$0xff]  ;;  %v291_v38 = vld [vmem:[%s6036_s25 + $0x10] sm:$0xff]  ;;  %s351_s29 = sadd.s32 1, %s6040_s26  ;;  %s281_s27 = sadd.s32 1, %s6044_s27   ;;  %s6044_s27 = sphi %s6318_s27, %s281_s27   ;;  %s6040_s26 = sphi %s6316_s26, %s7599_s26   ;;  %s6036_s25 = sphi %s7596_s25, %s7598_s25   ;;  %s6032_s24 = sphi %s7595_s24, %s7597_s24  }
  0x6b   : >> { %288 = vst [vmem:[%s6032_s24] sm:$0xff] %v287_v36  ;;  %v293_v39 = vld [vmem:[%s6036_s25 + $0x18] sm:$0xff]  ;;  %p352_p10 = scmp.ge.s32.totalorder %s351_s29, %s6307_s23  ;;  %v295_v40 = vld [vmem:[%s6036_s25 + $0x20] sm:$0xff]  ;;  %v297_v41 = vld [vmem:[%s6036_s25 + $0x28] sm:$0xff]  ;;  %p280_p11 = scmp.ge.s32.totalorder %s281_s27, %s6307_s23 }
  0x6c   : >> { %290 = vst [vmem:[%s6032_s24 + $0x8] sm:$0xff] %v289_v37  ;;  %v299_v42 = vld [vmem:[%s6036_s25 + $0x30] sm:$0xff]  ;;  %v301_v43 = vld [vmem:[%s6036_s25 + $0x38] sm:$0xff]  ;;  %v303_v44 = vld [vmem:[%s6036_s25 + $0x624] sm:$0xff] }
  0x6d   : >> { %292 = vst [vmem:[%s6032_s24 + $0x10] sm:$0xff] %v291_v38  ;;  %s7614_s29 = smov (%p352_p10, %s351_s29), 0  ;;  %v305_v45 = vld [vmem:[%s6036_s25 + $0x62c] sm:$0xff]  ;;  %v307_v46 = vld [vmem:[%s6036_s25 + $0x634] sm:$0xff]  ;;  %v309_v47 = vld [vmem:[%s6036_s25 + $0x63c] sm:$0xff] }
  0x6e   : >> { %294 = vst [vmem:[%s6032_s24 + $0x18] sm:$0xff] %v293_v39  ;;  %s4242_s7 = sshll.u32 %s7614_s29, 6  ;;  %v311_v48 = vld [vmem:[%s6036_s25 + $0x644] sm:$0xff]  ;;  %v313_v49 = vld [vmem:[%s6036_s25 + $0x64c] sm:$0xff]  ;;  %v315_v50 = vld [vmem:[%s6036_s25 + $0x654] sm:$0xff]  ;;  %s7599_s26 = smov %s7614_s29 }
  0x6f   : >> { %296 = vst [vmem:[%s6032_s24 + $0x20] sm:$0xff] %v295_v40  ;;  %s6350_s8 = scalar_lea.vmem %s6136_s28, %s4242_s7   ;;  %s6353_s14 = scalar_lea.vmem %s6140_s3, %s4242_s7 [#allocation2]   ;;  %v317_v51 = vld [vmem:[%s6036_s25 + $0x65c] sm:$0xff]  ;;  %v319_v52 = vld [vmem:[%s6036_s25 + $0xc48] sm:$0xff]  ;;  %v321_v53 = vld [vmem:[%s6036_s25 + $0xc50] sm:$0xff] }
  0x70   : >> { %298 = vst [vmem:[%s6032_s24 + $0x28] sm:$0xff] %v297_v41  ;;  %v323_v54 = vld [vmem:[%s6036_s25 + $0xc58] sm:$0xff]  ;;  %v325_v55 = vld [vmem:[%s6036_s25 + $0xc60] sm:$0xff]  ;;  %v327_v56 = vld [vmem:[%s6036_s25 + $0xc68] sm:$0xff] }
  0x71   : >> { %300 = vst [vmem:[%s6032_s24 + $0x30] sm:$0xff] %v299_v42  ;;  %v329_v57 = vld [vmem:[%s6036_s25 + $0xc70] sm:$0xff]  ;;  %v331_v58 = vld [vmem:[%s6036_s25 + $0xc78] sm:$0xff]  ;;  %v333_v59 = vld [vmem:[%s6036_s25 + $0xc80] sm:$0xff] }
  0x72   : >> { %302 = vst [vmem:[%s6032_s24 + $0x38] sm:$0xff] %v301_v43  ;;  %v335_v60 = vld [vmem:[%s6036_s25 + $0x126c] sm:$0xff]  ;;  %v337_v61 = vld [vmem:[%s6036_s25 + $0x1274] sm:$0xff]  ;;  %v339_v62 = vld [vmem:[%s6036_s25 + $0x127c] sm:$0xff] }
  0x73   : >> { %304 = vst [vmem:[%s6032_s24 + $0x200] sm:$0xff] %v303_v44  ;;  %v341_v63 = vld [vmem:[%s6036_s25 + $0x1284] sm:$0xff]  ;;  %v343_v0 = vld [vmem:[%s6036_s25 + $0x128c] sm:$0xff]  ;;  %v345_v1 = vld [vmem:[%s6036_s25 + $0x1294] sm:$0xff] }
  0x74   : >> { %306 = vst [vmem:[%s6032_s24 + $0x208] sm:$0xff] %v305_v45  ;;  %v347_v2 = vld [vmem:[%s6036_s25 + $0x129c] sm:$0xff]  ;;  %v349_v3 = vld [vmem:[%s6036_s25 + $0x12a4] sm:$0xff]  ;;  %s7598_s25 = smov %s6350_s8 }
  0x75   : >> { %308 = vst [vmem:[%s6032_s24 + $0x210] sm:$0xff] %v307_v46 }
  0x76   : >> { %310 = vst [vmem:[%s6032_s24 + $0x218] sm:$0xff] %v309_v47 }
  0x77   : >> { %312 = vst [vmem:[%s6032_s24 + $0x220] sm:$0xff] %v311_v48 }
  0x78   : >> { %314 = vst [vmem:[%s6032_s24 + $0x228] sm:$0xff] %v313_v49 }
  0x79   : >> { %316 = vst [vmem:[%s6032_s24 + $0x230] sm:$0xff] %v315_v50 }
  0x7a   : >> { %318 = vst [vmem:[%s6032_s24 + $0x238] sm:$0xff] %v317_v51 }
  0x7b   : >> { %320 = vst [vmem:[%s6032_s24 + $0x400] sm:$0xff] %v319_v52 }
  0x7c   : >> { %322 = vst [vmem:[%s6032_s24 + $0x408] sm:$0xff] %v321_v53 }
  0x7d   : >> { %324 = vst [vmem:[%s6032_s24 + $0x410] sm:$0xff] %v323_v54 }
  0x7e   : >> { %326 = vst [vmem:[%s6032_s24 + $0x418] sm:$0xff] %v325_v55 }
  0x7f   : >> { %328 = vst [vmem:[%s6032_s24 + $0x420] sm:$0xff] %v327_v56 }
  0x80   : >> { %330 = vst [vmem:[%s6032_s24 + $0x428] sm:$0xff] %v329_v57 }
  0x81   : >> { %332 = vst [vmem:[%s6032_s24 + $0x430] sm:$0xff] %v331_v58 }
  0x82   : >> { %334 = vst [vmem:[%s6032_s24 + $0x438] sm:$0xff] %v333_v59 }
  0x83   : >> { %336 = vst [vmem:[%s6032_s24 + $0x600] sm:$0xff] %v335_v60 }
  0x84   : >> { %338 = vst [vmem:[%s6032_s24 + $0x608] sm:$0xff] %v337_v61 }
  0x85   : >> { %340 = vst [vmem:[%s6032_s24 + $0x610] sm:$0xff] %v339_v62 }
  0x86   : >> { %342 = vst [vmem:[%s6032_s24 + $0x618] sm:$0xff] %v341_v63  ;;  %283 = sbr.rel (!%p280_p11) target bundleno = 106 (0x6a), region = 174 }
  0x87   : >> { %344 = vst [vmem:[%s6032_s24 + $0x620] sm:$0xff] %v343_v0 }
  0x88   : >> { %346 = vst [vmem:[%s6032_s24 + $0x628] sm:$0xff] %v345_v1 }
  0x89   : >> { %348 = vst [vmem:[%s6032_s24 + $0x630] sm:$0xff] %v347_v2 }
  0x8a   : >> { %350 = vst [vmem:[%s6032_s24 + $0x638] sm:$0xff] %v349_v3  ;;  %s7597_s24 = smov %s6353_s14 }
  0x8b PF: > { %s6419_s5 = sand.u32 7, %s276_s17   ;;  %s5425_s6 = sshll.u32 %s6307_s23, 6 }
  0x8c   : > { %s6423_s16 = scalar_lea.vmem %s6136_s28, %s5425_s6   ;;  %s6426_s7 = scalar_lea.vmem %s6140_s3, %s5425_s6 [#allocation2]  }
  0x8d   : > { %p4247_p12 = scmp.le.s32.totalorder %s6419_s5, 0 }
  0x8e   : > { %s7600_s27 = smov (!%p4247_p12), %s6426_s7  ;;  %s7601_s24 = smov (!%p4247_p12), %s6423_s16 }
  0x8f   : > { %4191 = sbr.rel (%p4247_p12) target bundleno = 156 (0x9c), region = 179  ;;  %s6054_s25 = smov (!%p4247_p12), 0  }
  0x90   : > { %s6058_s26 = smov (!%p4247_p12), 0  }
  0x94 LB: >> { %v374_v4 = vld [vmem:[%s6052_s24] sm:$0xff]  ;;  %v378_v6 = vld [vmem:[%s6052_s24 + $0xc48] sm:$0xff]  ;;  %s382_s17 = sadd.s32 1, %s6056_s25  ;;  %s368_s26 = sadd.s32 1, %s6060_s26   ;;  %s6060_s26 = sphi %s6058_s26, %s368_s26   ;;  %s6056_s25 = sphi %s6054_s25, %s6055_s25   ;;  %s6052_s24 = sphi %s7601_s24, %s387_s24   ;;  %s6048_s27 = sphi %s7600_s27, %s388_s27  }
  0x95   : >> { %v376_v5 = vld [vmem:[%s6052_s24 + $0x624] sm:$0xff]  ;;  %375 = vst [vmem:[%s6048_s27] sm:$0xff] %v374_v4  ;;  %v380_v7 = vld [vmem:[%s6052_s24 + $0x126c] sm:$0xff]  ;;  %p383_p13 = scmp.ge.s32.totalorder %s382_s17, %s6419_s5  ;;  %p367_p0 = scmp.ge.s32.totalorder %s368_s26, %s6419_s5 }
  0x96   : >> { %377 = vst [vmem:[%s6048_s27 + $0x200] sm:$0xff] %v376_v5 }
  0x97   : >> { %379 = vst [vmem:[%s6048_s27 + $0x400] sm:$0xff] %v378_v6  ;;  %s7616_s17 = smov (%p383_p13, %s382_s17), 0  ;;  %370 = sbr.rel (!%p367_p0) target bundleno = 148 (0x94), region = 185 }
  0x98   : >> { %381 = vst [vmem:[%s6048_s27 + $0x600] sm:$0xff] %v380_v7  ;;  %s4248_s23 = sshll.u32 %s7616_s17, 3  ;;  %s6055_s25 = smov %s7616_s17  }
  0x99   : >> { %s387_s24 = scalar_lea.vmem %s6423_s16, %s4248_s23   ;;  %s388_s27 = scalar_lea.vmem %s6426_s7, %s4248_s23 [#allocation2]  }
  0x9c PF: > { %s6062_s29 = smov 1  }
  0x9d   : > { %s389_s8 = sshll.u32 %s6062_s29, %s6144_s4 }
  0x9e   : > { %s4250_s14 = sadd.s32 4294967295, %s389_s8 }
  0x9f   : > { %v399_v8 = vld [vmem:[%s6300_s21] sm:%s4250_s14]  ;;  %v403_v10 = vld [vmem:[%s6300_s21 + $0xc48] sm:%s4250_s14] }
  0xa0   : > { %v401_v9 = vld [vmem:[%s6300_s21 + $0x624] sm:%s4250_s14]  ;;  %400 = vst [vmem:[%s6303_s22] sm:%s4250_s14] %v399_v8 }
  0xa1   : > { %402 = vst [vmem:[%s6303_s22 + $0x200] sm:%s4250_s14] %v401_v9  ;;  %v405_v11 = vld [vmem:[%s6300_s21 + $0x126c] sm:%s4250_s14] }
  0xa2   : > { %404 = vst [vmem:[%s6303_s22 + $0x400] sm:%s4250_s14] %v403_v10 }
  0xa3   : > { %406 = vst [vmem:[%s6303_s22 + $0x600] sm:%s4250_s14] %v405_v11 }
  0xa4 PF: > { %p4251_p1 = scmp.ge.u32.totalorder %s6138_s30, 8 }
  0xa5   : > { %s6063_s5 = smov (!%p4251_p1), 1  }
  0xa6   : > { %131 = sbr.rel (%p4251_p1) target bundleno = 176 (0xb0), region = 36  ;;  %s132_s4 = sshll.u32 (!%p4251_p1), %s6063_s5, %s6138_s30 }
  0xa7   : > { %s4252_s6 = sadd.s32 (!%p4251_p1), 4294967295, %s132_s4 }
  0xab   : > { %v142_v12 = vld [vmem:[%s6136_s28] sm:%s4252_s6]  ;;  %v146_v14 = vld [vmem:[%s6136_s28 + $0xc48] sm:%s4252_s6] }
  0xac   : > { %v144_v13 = vld [vmem:[%s6136_s28 + $0x624] sm:%s4252_s6]  ;;  %143 = vst [vmem:[%s6140_s3] sm:%s4252_s6] %v142_v12 }
  0xad   : > { %145 = vst [vmem:[%s6140_s3 + $0x200] sm:%s4252_s6] %v144_v13  ;;  %v148_v15 = vld [vmem:[%s6136_s28 + $0x126c] sm:%s4252_s6] }
  0xae   : > { %147 = vst [vmem:[%s6140_s3 + $0x400] sm:%s4252_s6] %v146_v14 }
  0xaf   : > { %149 = vst [vmem:[%s6140_s3 + $0x600] sm:%s4252_s6] %v148_v15 }
  0xb0 PF: > { %p4253_p2 = scmp.ge.s32.totalorder %s5996_s12, 1  ;;  %p409_p3 = scmp.lt.s32.totalorder %s5996_s12, 5 }
  0xb2   : > { %p410_p4 = pnand %p4253_p2, %p409_p3 }
  0xb3   : > { %s416_s30 = sand.u32 (!%p410_p4), 1, %s5988_s10  }
  0xb4   : > { %413 = sbr.rel (%p410_p4) target bundleno = 867 (0x363), region = 90  ;;  %s6469_s21 = sshll.u32 (!%p410_p4), %s416_s30, 11 }
  0xb5   : > { %s6472_s28 = scalar_lea.vmem (!%p410_p4), [#allocation2], %s6469_s21  ;;  %s6712_s16 = scalar_lea.vmem (!%p410_p4), [#allocation3], %s6469_s21 }
  0xb6   : > { %s7518_s26 = scalar_lea.sflag (!%p410_p4), [#allocation4], %s416_s30 }
  0xb9   : > { %vm1991_vm0 = vcmask 261120   ;;  %v4774_v16 = vld [vmem:[%s6472_s28 + $0x400] sm:$0xf]  ;;  %v5556_v18 = vld [vmem:[%s6472_s28 + $0x404] sm:$0xf]  ;;  %s5413_s17 = sshll.u32 (%p6121_p6), %s6103_s13, 7 }
  0xba   : > { %v5620_v17 = vld [vmem:[%s6472_s28 + $0x5fc] sm:$0xf0]  ;;  %v4776_v20 = vld [vmem:[%s6472_s28 + $0x600] sm:$0xf0]  ;;  %v4782_v21 = vld [vmem:[%s6472_s28 + $0x408] sm:$0xf] }
  0xbb   : > { %v4775_v19 = vor.u32 %v5620_v17, %v4774_v16  ;;  %v5621_v22 = vld [vmem:[%s6472_s28 + $0x604] sm:$0xf0]  ;;  %v4779_v23 = vor.u32 %v5556_v18, %v4776_v20  ;;  %v5557_v25 = vld [vmem:[%s6472_s28 + $0x40c] sm:$0xf]  ;;  %v4262_v27 = vld [vmem:[%s6472_s28] sm:$0xf] }
  0xbc   : > { %v4783_v24 = vor.u32 %v5621_v22, %v4782_v21  ;;  %v4784_v26 = vld [vmem:[%s6472_s28 + $0x608] sm:$0xf0]  ;;  %v5492_v29 = vld [vmem:[%s6472_s28 + $0x1fc] sm:$0xf0]  ;;  %v5428_v30 = vld [vmem:[%s6472_s28 + $0x4] sm:$0xf] }
  0xbd   : > { %2001 = vmatpush.bf16.msra.mxu0 %v4775_v19  ;;  %v4787_v28 = vor.u32 %v5557_v25, %v4784_v26  ;;  %v4264_v31 = vld [vmem:[%s6472_s28 + $0x200] sm:$0xf0]  ;;  %2015 = vmatpush.bf16.msra.mxu1 %v4779_v23  ;;  %v4263_v32 = vor.u32 %v5492_v29, %v4262_v27  ;;  %v4270_v34 = vld [vmem:[%s6472_s28 + $0x8] sm:$0xf]  ;;  %v5429_v36 = vld [vmem:[%s6472_s28 + $0xc] sm:$0xf] }
  0xbe   : > { %2029 = vmatpush.bf16.msra.mxu2 %v4783_v24  ;;  %v4267_v33 = vor.u32 %v5428_v30, %v4264_v31  ;;  %v5493_v35 = vld [vmem:[%s6472_s28 + $0x204] sm:$0xf0]  ;;  %v6492_v37 = vld [vmem:[%s7582_s0] sm:$0xff]  ;;  %v4272_v39 = vld [vmem:[%s6472_s28 + $0x208] sm:$0xf0]  ;;  %s4052_s23 = ssub.s32 (%p6121_p6), 393, %s5413_s17 }
  0xbf   : > { %2043 = vmatpush.bf16.msra.mxu3 %v4787_v28  ;;  %v4271_v38 = vor.u32 %v5493_v35, %v4270_v34  ;;  %v4798_v40 = vld [vmem:[%s6472_s28 + $0x418] sm:$0xf]  ;;  %v4275_v42 = vor.u32 %v5429_v36, %v4272_v39  ;;  %v5559_v44 = vld [vmem:[%s6472_s28 + $0x41c] sm:$0xf]  ;;  %v4790_v46 = vld [vmem:[%s6472_s28 + $0x410] sm:$0xf] }
  0xc0   : > { %v5623_v41 = vld [vmem:[%s6472_s28 + $0x614] sm:$0xf0]  ;;  %v4800_v45 = vld [vmem:[%s6472_s28 + $0x618] sm:$0xf0]  ;;  %v5622_v48 = vld [vmem:[%s6472_s28 + $0x60c] sm:$0xf0] }
  0xc1   : > { %v4799_v43 = vor.u32 %v5623_v41, %v4798_v40  ;;  %2002 = vmatpush.bf16.msra.mxu0 %v4263_v32  ;;  %v4803_v47 = vor.u32 %v5559_v44, %v4800_v45  ;;  %v5558_v49 = vld [vmem:[%s6472_s28 + $0x414] sm:$0xf]  ;;  %2016 = vmatpush.bf16.msra.mxu1 %v4267_v33  ;;  %v4791_v51 = vor.u32 %v5622_v48, %v4790_v46  ;;  %v4286_v52 = vld [vmem:[%s6472_s28 + $0x18] sm:$0xf]  ;;  %v5431_v54 = vld [vmem:[%s6472_s28 + $0x1c] sm:$0xf] }
  0xc2   : > { %v4792_v50 = vld [vmem:[%s6472_s28 + $0x610] sm:$0xf0]  ;;  %2030 = vmatpush.bf16.msra.mxu2 %v4271_v38  ;;  %v5495_v53 = vld [vmem:[%s6472_s28 + $0x214] sm:$0xf0]  ;;  %v4288_v57 = vld [vmem:[%s6472_s28 + $0x218] sm:$0xf0] }
  0xc3   : > { %2044 = vmatpush.bf16.msra.mxu3 %v4275_v42  ;;  %v4795_v55 = vor.u32 %v5558_v49, %v4792_v50  ;;  %v4287_v56 = vor.u32 %v5495_v53, %v4286_v52  ;;  %v4278_v58 = vld [vmem:[%s6472_s28 + $0x10] sm:$0xf]  ;;  %v4291_v60 = vor.u32 %v5431_v54, %v4288_v57  ;;  %v5430_v61 = vld [vmem:[%s6472_s28 + $0x14] sm:$0xf]  ;;  %v4814_v63 = vld [vmem:[%s6472_s28 + $0x428] sm:$0xf] }
  0xc4   : > { %v5494_v59 = vld [vmem:[%s6472_s28 + $0x20c] sm:$0xf0]  ;;  %5284 = vmatmul.msk.bf16.vlgmr.msra.gmra.mxu0 %vm1991_vm0, %v6492_v37  ;;  %v4280_v62 = vld [vmem:[%s6472_s28 + $0x210] sm:$0xf0]  ;;  %5285 = vmatmul.msk.bf16.vlgmr.msra.gmra.mxu1 %vm1991_vm0, %v6492_v37  ;;  %v5625_v0 = vld [vmem:[%s6472_s28 + $0x624] sm:$0xf0] }
  0xc5   : > { %5286 = vmatmul.msk.bf16.vlgmr.msra.gmra.mxu2 %vm1991_vm0, %v6492_v37  ;;  %v5561_v1 = vld [vmem:[%s6472_s28 + $0x42c] sm:$0xf]  ;;  %2057 = vmatpush.bf16.msrb.mxu0 %v4791_v51  ;;  %v4279_v3 = vor.u32 %v5494_v59, %v4278_v58  ;;  %v4815_v4 = vor.u32 %v5625_v0, %v4814_v63  ;;  %v4806_v6 = vld [vmem:[%s6472_s28 + $0x420] sm:$0xf]  ;;  %v5560_v8 = vld [vmem:[%s6472_s28 + $0x424] sm:$0xf]  ;;  %v4283_v9 = vor.u32 %v5430_v61, %v4280_v62 }
  0xc6   : > { %2085 = vmatpush.bf16.msrb.mxu2 %v4799_v43  ;;  %v4816_v2 = vld [vmem:[%s6472_s28 + $0x628] sm:$0xf0]  ;;  %5287 = vmatmul.msk.bf16.vlgmr.msra.gmra.mxu3 %vm1991_vm0, %v6492_v37  ;;  %v5624_v7 = vld [vmem:[%s6472_s28 + $0x61c] sm:$0xf0]  ;;  %v4808_v11 = vld [vmem:[%s6472_s28 + $0x620] sm:$0xf0] }
  0xc7   : > { %2099 = vmatpush.bf16.msrb.mxu3 %v4803_v47  ;;  %v4819_v5 = vor.u32 %v5561_v1, %v4816_v2  ;;  %2071 = vmatpush.bf16.msrb.mxu1 %v4795_v55  ;;  %v4807_v10 = vor.u32 %v5624_v7, %v4806_v6  ;;  %v4302_v12 = vld [vmem:[%s6472_s28 + $0x28] sm:$0xf]  ;;  %v4811_v14 = vor.u32 %v5560_v8, %v4808_v11  ;;  %v5433_v16 = vld [vmem:[%s6472_s28 + $0x2c] sm:$0xf]  ;;  %v4294_v18 = vld [vmem:[%s6472_s28 + $0x20] sm:$0xf] }
  0xc8   : > { %v5497_v13 = vld [vmem:[%s6472_s28 + $0x224] sm:$0xf0]  ;;  %v4304_v17 = vld [vmem:[%s6472_s28 + $0x228] sm:$0xf0]  ;;  %v5496_v20 = vld [vmem:[%s6472_s28 + $0x21c] sm:$0xf0] }
  0xc9   : > { %v4303_v15 = vor.u32 %v5497_v13, %v4302_v12  ;;  %v4307_v19 = vor.u32 %v5433_v16, %v4304_v17  ;;  %v5432_v21 = vld [vmem:[%s6472_s28 + $0x24] sm:$0xf]  ;;  %2058 = vmatpush.bf16.msrb.mxu0 %v4279_v3  ;;  %v4295_v23 = vor.u32 %v5496_v20, %v4294_v18  ;;  %v4830_v25 = vld [vmem:[%s6472_s28 + $0x438] sm:$0xf]  ;;  %v5563_v27 = vld [vmem:[%s6472_s28 + $0x43c] sm:$0xf] }
  0xca   : > { %2086 = vmatpush.bf16.msrb.mxu2 %v4287_v56  ;;  %v4296_v22 = vld [vmem:[%s6472_s28 + $0x220] sm:$0xf0]  ;;  %v5627_v26 = vld [vmem:[%s6472_s28 + $0x634] sm:$0xf0]  ;;  %v4832_v28 = vld [vmem:[%s6472_s28 + $0x638] sm:$0xf0] }
  0xcb   : > { %2100 = vmatpush.bf16.msrb.mxu3 %v4291_v60  ;;  %2072 = vmatpush.bf16.msrb.mxu1 %v4283_v9  ;;  %v4299_v24 = vor.u32 %v5432_v21, %v4296_v22  ;;  %v4822_v29 = vld [vmem:[%s6472_s28 + $0x430] sm:$0xf]  ;;  %v5562_v31 = vld [vmem:[%s6472_s28 + $0x434] sm:$0xf]  ;;  %v4831_v33 = vor.u32 %v5627_v26, %v4830_v25  ;;  %v4835_v34 = vor.u32 %v5563_v27, %v4832_v28  ;;  %v4318_v36 = vld [vmem:[%s6472_s28 + $0x38] sm:$0xf] }
  0xcc   : > { %v5626_v30 = vld [vmem:[%s6472_s28 + $0x62c] sm:$0xf0]  ;;  %v4824_v32 = vld [vmem:[%s6472_s28 + $0x630] sm:$0xf0]  ;;  %v5499_v38 = vld [vmem:[%s6472_s28 + $0x234] sm:$0xf0] }
  0xcd   : > { %2113 = vmatpush.bf16.msra.mxu0 %v4807_v10  ;;  %v4823_v35 = vor.u32 %v5626_v30, %v4822_v29  ;;  %v5435_v39 = vld [vmem:[%s6472_s28 + $0x3c] sm:$0xf]  ;;  %v4827_v40 = vor.u32 %v5562_v31, %v4824_v32  ;;  %v4310_v42 = vld [vmem:[%s6472_s28 + $0x30] sm:$0xf]  ;;  %v5434_v44 = vld [vmem:[%s6472_s28 + $0x34] sm:$0xf]  ;;  %v4319_v46 = vor.u32 %v5499_v38, %v4318_v36 }
  0xce   : > { %2141 = vmatpush.bf16.msra.mxu2 %v4815_v4  ;;  %v4320_v41 = vld [vmem:[%s6472_s28 + $0x238] sm:$0xf0]  ;;  %v5498_v43 = vld [vmem:[%s6472_s28 + $0x22c] sm:$0xf0]  ;;  %v4312_v45 = vld [vmem:[%s6472_s28 + $0x230] sm:$0xf0] }
  0xcf   : > { %2155 = vmatpush.bf16.msra.mxu3 %v4819_v5  ;;  %2127 = vmatpush.bf16.msra.mxu1 %v4811_v14  ;;  %v4323_v47 = vor.u32 %v5435_v39, %v4320_v41  ;;  %v4311_v48 = vor.u32 %v5498_v43, %v4310_v42  ;;  %v4315_v49 = vor.u32 %v5434_v44, %v4312_v45  ;;  %v4846_v50 = vld [vmem:[%s6472_s28 + $0x448] sm:$0xf]  ;;  %v5565_v52 = vld [vmem:[%s6472_s28 + $0x44c] sm:$0xf]  ;;  %v4838_v54 = vld [vmem:[%s6472_s28 + $0x440] sm:$0xf] }
  0xd0   : > { %v5629_v51 = vld [vmem:[%s6472_s28 + $0x644] sm:$0xf0]  ;;  %v4848_v53 = vld [vmem:[%s6472_s28 + $0x648] sm:$0xf0]  ;;  %v5628_v55 = vld [vmem:[%s6472_s28 + $0x63c] sm:$0xf0] }
  0xd1   : > { %2114 = vmatpush.bf16.msra.mxu0 %v4295_v23  ;;  %v5564_v56 = vld [vmem:[%s6472_s28 + $0x444] sm:$0xf]  ;;  %v4847_v58 = vor.u32 %v5629_v51, %v4846_v50  ;;  %v4851_v59 = vor.u32 %v5565_v52, %v4848_v53  ;;  %v4839_v60 = vor.u32 %v5628_v55, %v4838_v54  ;;  %v4334_v61 = vld [vmem:[%s6472_s28 + $0x48] sm:$0xf]  ;;  %v5437_v63 = vld [vmem:[%s6472_s28 + $0x4c] sm:$0xf] }
  0xd2   : > { %2142 = vmatpush.bf16.msra.mxu2 %v4303_v15  ;;  %v4840_v57 = vld [vmem:[%s6472_s28 + $0x640] sm:$0xf0]  ;;  %v5501_v62 = vld [vmem:[%s6472_s28 + $0x244] sm:$0xf0]  ;;  %v4336_v1 = vld [vmem:[%s6472_s28 + $0x248] sm:$0xf0] }
  0xd3   : > { %2156 = vmatpush.bf16.msra.mxu3 %v4307_v19  ;;  %2128 = vmatpush.bf16.msra.mxu1 %v4299_v24  ;;  %v4843_v0 = vor.u32 %v5564_v56, %v4840_v57  ;;  %v4326_v2 = vld [vmem:[%s6472_s28 + $0x40] sm:$0xf]  ;;  %v5436_v4 = vld [vmem:[%s6472_s28 + $0x44] sm:$0xf]  ;;  %v4335_v6 = vor.u32 %v5501_v62, %v4334_v61  ;;  %v4339_v7 = vor.u32 %v5437_v63, %v4336_v1  ;;  %v4862_v10 = vld [vmem:[%s6472_s28 + $0x458] sm:$0xf] }
  0xd4   : > { %5288 = vmatmul.msk.bf16.vlgmr.msrb.gmra.mxu0 %vm1991_vm0, %v6492_v37  ;;  %5289 = vmatmul.msk.bf16.vlgmr.msrb.gmra.mxu1 %vm1991_vm0, %v6492_v37  ;;  %v5500_v3 = vld [vmem:[%s6472_s28 + $0x23c] sm:$0xf0]  ;;  %v4328_v5 = vld [vmem:[%s6472_s28 + $0x240] sm:$0xf0]  ;;  %v5631_v11 = vld [vmem:[%s6472_s28 + $0x654] sm:$0xf0] }
  0xd5   : > { %5290 = vmatmul.msk.bf16.vlgmr.msrb.gmra.mxu2 %vm1991_vm0, %v6492_v37  ;;  %2169 = vmatpush.bf16.msrb.mxu0 %v4823_v35  ;;  %v4327_v8 = vor.u32 %v5500_v3, %v4326_v2  ;;  %v4331_v9 = vor.u32 %v5436_v4, %v4328_v5  ;;  %v5567_v12 = vld [vmem:[%s6472_s28 + $0x45c] sm:$0xf]  ;;  %v4854_v14 = vld [vmem:[%s6472_s28 + $0x450] sm:$0xf]  ;;  %v5566_v16 = vld [vmem:[%s6472_s28 + $0x454] sm:$0xf]  ;;  %v4863_v18 = vor.u32 %v5631_v11, %v4862_v10 }
  0xd6   : > { %5291 = vmatmul.msk.bf16.vlgmr.msrb.gmra.mxu3 %vm1991_vm0, %v6492_v37  ;;  %2197 = vmatpush.bf16.msrb.mxu2 %v4831_v33  ;;  %v4864_v13 = vld [vmem:[%s6472_s28 + $0x658] sm:$0xf0]  ;;  %v5630_v15 = vld [vmem:[%s6472_s28 + $0x64c] sm:$0xf0]  ;;  %v4856_v17 = vld [vmem:[%s6472_s28 + $0x650] sm:$0xf0] }
  0xd7   : > { %2211 = vmatpush.bf16.msrb.mxu3 %v4835_v34  ;;  %2183 = vmatpush.bf16.msrb.mxu1 %v4827_v40  ;;  %v4867_v19 = vor.u32 %v5567_v12, %v4864_v13  ;;  %v4855_v20 = vor.u32 %v5630_v15, %v4854_v14  ;;  %v4350_v21 = vld [vmem:[%s6472_s28 + $0x58] sm:$0xf]  ;;  %v5439_v23 = vld [vmem:[%s6472_s28 + $0x5c] sm:$0xf]  ;;  %v4859_v24 = vor.u32 %v5566_v16, %v4856_v17  ;;  %v4342_v26 = vld [vmem:[%s6472_s28 + $0x50] sm:$0xf] }
  0xd8   : > { %v5503_v22 = vld [vmem:[%s6472_s28 + $0x254] sm:$0xf0]  ;;  %v4352_v25 = vld [vmem:[%s6472_s28 + $0x258] sm:$0xf0]  ;;  %v5502_v27 = vld [vmem:[%s6472_s28 + $0x24c] sm:$0xf0] }
  0xd9   : > { %2170 = vmatpush.bf16.msrb.mxu0 %v4311_v48  ;;  %v5438_v28 = vld [vmem:[%s6472_s28 + $0x54] sm:$0xf]  ;;  %v4351_v30 = vor.u32 %v5503_v22, %v4350_v21  ;;  %v4355_v31 = vor.u32 %v5439_v23, %v4352_v25  ;;  %v4343_v32 = vor.u32 %v5502_v27, %v4342_v26  ;;  %v4878_v34 = vld [vmem:[%s6472_s28 + $0x468] sm:$0xf]  ;;  %v5569_v36 = vld [vmem:[%s6472_s28 + $0x46c] sm:$0xf] }
  0xda   : > { %2198 = vmatpush.bf16.msrb.mxu2 %v4319_v46  ;;  %v4344_v29 = vld [vmem:[%s6472_s28 + $0x250] sm:$0xf0]  ;;  %v5633_v35 = vld [vmem:[%s6472_s28 + $0x664] sm:$0xf0]  ;;  %v4880_v38 = vld [vmem:[%s6472_s28 + $0x668] sm:$0xf0] }
  0xdb   : > { %2212 = vmatpush.bf16.msrb.mxu3 %v4323_v47  ;;  %2184 = vmatpush.bf16.msrb.mxu1 %v4315_v49  ;;  %v4347_v33 = vor.u32 %v5438_v28, %v4344_v29  ;;  %v4870_v39 = vld [vmem:[%s6472_s28 + $0x460] sm:$0xf]  ;;  %v5568_v41 = vld [vmem:[%s6472_s28 + $0x464] sm:$0xf]  ;;  %v4879_v43 = vor.u32 %v5633_v35, %v4878_v34  ;;  %v4883_v44 = vor.u32 %v5569_v36, %v4880_v38  ;;  %v4366_v46 = vld [vmem:[%s6472_s28 + $0x68] sm:$0xf] }
  0xdc   : > { %v5632_v40 = vld [vmem:[%s6472_s28 + $0x65c] sm:$0xf0]  ;;  %v4872_v42 = vld [vmem:[%s6472_s28 + $0x660] sm:$0xf0]  ;;  %v5505_v47 = vld [vmem:[%s6472_s28 + $0x264] sm:$0xf0] }
  0xdd   : > { %v4871_v45 = vor.u32 %v5632_v40, %v4870_v39  ;;  %v5441_v48 = vld [vmem:[%s6472_s28 + $0x6c] sm:$0xf]  ;;  %v4875_v49 = vor.u32 %v5568_v41, %v4872_v42  ;;  %v4358_v51 = vld [vmem:[%s6472_s28 + $0x60] sm:$0xf]  ;;  %v5440_v53 = vld [vmem:[%s6472_s28 + $0x64] sm:$0xf]  ;;  %v4367_v55 = vor.u32 %v5505_v47, %v4366_v46 }
  0xde   : > { %v4368_v50 = vld [vmem:[%s6472_s28 + $0x268] sm:$0xf0]  ;;  %v5504_v52 = vld [vmem:[%s6472_s28 + $0x25c] sm:$0xf0]  ;;  %v4360_v54 = vld [vmem:[%s6472_s28 + $0x260] sm:$0xf0] }
  0xdf   : > { %v4371_v56 = vor.u32 %v5441_v48, %v4368_v50  ;;  %v4359_v57 = vor.u32 %v5504_v52, %v4358_v51  ;;  %v5571_v61 = vld [vmem:[%s6472_s28 + $0x47c] sm:$0xf]  ;;  %v4886_v63 = vld [vmem:[%s6472_s28 + $0x470] sm:$0xf]  ;;  %v5570_v1 = vld [vmem:[%s6472_s28 + $0x474] sm:$0xf] }
  0xe0   : > { %v4896_v62 = vld [vmem:[%s6472_s28 + $0x678] sm:$0xf0]  ;;  %v4888_v2 = vld [vmem:[%s6472_s28 + $0x670] sm:$0xf0]  ;;  %v4374_v11 = vld [vmem:[%s6472_s28 + $0x70] sm:$0xf] }
  0xe1   : > { %v4899_v4 = vor.u32 %v5571_v61, %v4896_v62  ;;  %v4384_v10 = vld [vmem:[%s6472_s28 + $0x278] sm:$0xf0]  ;;  %v5506_v12 = vld [vmem:[%s6472_s28 + $0x26c] sm:$0xf0]  ;;  %v5442_v13 = vld [vmem:[%s6472_s28 + $0x74] sm:$0xf] }
  0xe2   : > { %v4376_v14 = vld [vmem:[%s6472_s28 + $0x270] sm:$0xf0]  ;;  %v4375_v17 = vor.u32 %v5506_v12, %v4374_v11  ;;  %v5573_v21 = vld [vmem:[%s6472_s28 + $0x48c] sm:$0xf]  ;;  %v4902_v23 = vld [vmem:[%s6472_s28 + $0x480] sm:$0xf] }
  0xe3   : > { %v4912_v22 = vld [vmem:[%s6472_s28 + $0x688] sm:$0xf0]  ;;  %v5572_v25 = vld [vmem:[%s6472_s28 + $0x484] sm:$0xf]  ;;  %v4390_v35 = vld [vmem:[%s6472_s28 + $0x80] sm:$0xf] }
  0xe4   : > { %5292 = vmatmul.msk.bf16.vlgmr.msra.gmra.mxu0 %vm1991_vm0, %v6492_v37  ;;  %5293 = vmatmul.msk.bf16.vlgmr.msra.gmra.mxu1 %vm1991_vm0, %v6492_v37  ;;  %v4904_v26 = vld [vmem:[%s6472_s28 + $0x680] sm:$0xf0]  ;;  %v4915_v28 = vor.u32 %v5573_v21, %v4912_v22  ;;  %v4400_v34 = vld [vmem:[%s6472_s28 + $0x288] sm:$0xf0]  ;;  %v5508_v36 = vld [vmem:[%s6472_s28 + $0x27c] sm:$0xf0] }
  0xe5   : > { %5294 = vmatmul.msk.bf16.vlgmr.msra.gmra.mxu2 %vm1991_vm0, %v6492_v37  ;;  %2225 = vmatpush.bf16.msra.mxu0 %v4839_v60  ;;  %v5635_v60 = vld [vmem:[%s6472_s28 + $0x674] sm:$0xf0]  ;;  %v5444_v38 = vld [vmem:[%s6472_s28 + $0x84] sm:$0xf]  ;;  %v4391_v42 = vor.u32 %v5508_v36, %v4390_v35  ;;  %v5575_v46 = vld [vmem:[%s6472_s28 + $0x49c] sm:$0xf] }
  0xe6   : > { %5295 = vmatmul.msk.bf16.vlgmr.msra.gmra.mxu3 %vm1991_vm0, %v6492_v37  ;;  %2253 = vmatpush.bf16.msra.mxu2 %v4847_v58  ;;  %v4363_v58 = vor.u32 %v5440_v53, %v4360_v54  ;;  %v4392_v39 = vld [vmem:[%s6472_s28 + $0x280] sm:$0xf0]  ;;  %v4928_v47 = vld [vmem:[%s6472_s28 + $0x698] sm:$0xf0]  ;;  %v4918_v48 = vld [vmem:[%s6472_s28 + $0x490] sm:$0xf] }
  0xe7   : > { %2267 = vmatpush.bf16.msra.mxu3 %v4851_v59  ;;  %2239 = vmatpush.bf16.msra.mxu1 %v4843_v0  ;;  %v4894_v59 = vld [vmem:[%s6472_s28 + $0x478] sm:$0xf]  ;;  %v5634_v0 = vld [vmem:[%s6472_s28 + $0x66c] sm:$0xf0]  ;;  %v5574_v50 = vld [vmem:[%s6472_s28 + $0x494] sm:$0xf]  ;;  %v4931_v53 = vor.u32 %v5575_v46, %v4928_v47 }
  0xe8   : > { %v4895_v3 = vor.u32 %v5635_v60, %v4894_v59  ;;  %v4887_v5 = vor.u32 %v5634_v0, %v4886_v63  ;;  %v4920_v51 = vld [vmem:[%s6472_s28 + $0x690] sm:$0xf0]  ;;  %v4416_v59 = vld [vmem:[%s6472_s28 + $0x298] sm:$0xf0]  ;;  %v4406_v60 = vld [vmem:[%s6472_s28 + $0x90] sm:$0xf] }
  0xe9   : > { %2226 = vmatpush.bf16.msra.mxu0 %v4327_v8  ;;  %v5443_v8 = vld [vmem:[%s6472_s28 + $0x7c] sm:$0xf]  ;;  %v5510_v61 = vld [vmem:[%s6472_s28 + $0x28c] sm:$0xf0]  ;;  %v5446_v62 = vld [vmem:[%s6472_s28 + $0x94] sm:$0xf] }
  0xea   : > { %2254 = vmatpush.bf16.msra.mxu2 %v4335_v6  ;;  %v4382_v6 = vld [vmem:[%s6472_s28 + $0x78] sm:$0xf]  ;;  %v4387_v16 = vor.u32 %v5443_v8, %v4384_v10  ;;  %v4408_v63 = vld [vmem:[%s6472_s28 + $0x290] sm:$0xf0]  ;;  %v4934_v8 = vld [vmem:[%s6472_s28 + $0x4a0] sm:$0xf] }
  0xeb   : > { %2268 = vmatpush.bf16.msra.mxu3 %v4339_v7  ;;  %2240 = vmatpush.bf16.msra.mxu1 %v4331_v9  ;;  %v5507_v7 = vld [vmem:[%s6472_s28 + $0x274] sm:$0xf0]  ;;  %v4891_v9 = vor.u32 %v5570_v1, %v4888_v2  ;;  %v4407_v2 = vor.u32 %v5510_v61, %v4406_v60  ;;  %v5576_v11 = vld [vmem:[%s6472_s28 + $0x4a4] sm:$0xf]  ;;  %v4432_v21 = vld [vmem:[%s6472_s28 + $0x2a8] sm:$0xf0] }
  0xec   : > { %v4383_v15 = vor.u32 %v5507_v7, %v4382_v6  ;;  %v5577_v6 = vld [vmem:[%s6472_s28 + $0x4ac] sm:$0xf]  ;;  %v4936_v12 = vld [vmem:[%s6472_s28 + $0x6a0] sm:$0xf0]  ;;  %v4422_v22 = vld [vmem:[%s6472_s28 + $0xa0] sm:$0xf] }
  0xed   : > { %v4944_v7 = vld [vmem:[%s6472_s28 + $0x6a8] sm:$0xf0]  ;;  %v5643_v35 = vld [vmem:[%s6472_s28 + $0x6b4] sm:$0xf0]  ;;  %v5579_v36 = vld [vmem:[%s6472_s28 + $0x4bc] sm:$0xf] }
  0xee   : > { %p4053_p5 = scmp.lt.s32.totalorder (%p6121_p6), %s4052_s23, 128 }
  0xf4   : > { %5296 = vmatmul.msk.bf16.vlgmr.msrb.gmra.mxu0 %vm1991_vm0, %v6492_v37  ;;  %5297 = vmatmul.msk.bf16.vlgmr.msrb.gmra.mxu1 %vm1991_vm0, %v6492_v37 }
  0xf5   : > { %5298 = vmatmul.msk.bf16.vlgmr.msrb.gmra.mxu2 %vm1991_vm0, %v6492_v37  ;;  %2281 = vmatpush.bf16.msrb.mxu0 %v4855_v20  ;;  %v5637_v20 = vld [vmem:[%s6472_s28 + $0x684] sm:$0xf0] }
  0xf6   : > { %5299 = vmatmul.msk.bf16.vlgmr.msrb.gmra.mxu3 %vm1991_vm0, %v6492_v37  ;;  %2309 = vmatpush.bf16.msrb.mxu2 %v4863_v18  ;;  %v4379_v18 = vor.u32 %v5442_v13, %v4376_v14 }
  0xf7   : > { %2323 = vmatpush.bf16.msrb.mxu3 %v4867_v19  ;;  %2295 = vmatpush.bf16.msrb.mxu1 %v4859_v24  ;;  %v4910_v19 = vld [vmem:[%s6472_s28 + $0x488] sm:$0xf]  ;;  %v5636_v24 = vld [vmem:[%s6472_s28 + $0x67c] sm:$0xf0] }
  0xf8   : > { %v4911_v27 = vor.u32 %v5637_v20, %v4910_v19  ;;  %v4903_v29 = vor.u32 %v5636_v24, %v4902_v23  ;;  %v5449_v19 = vld [vmem:[%s6472_s28 + $0xac] sm:$0xf]  ;;  %v4939_v20 = vor.u32 %v5576_v11, %v4936_v12  ;;  %v5512_v23 = vld [vmem:[%s6472_s28 + $0x29c] sm:$0xf0]  ;;  %v5448_v24 = vld [vmem:[%s6472_s28 + $0xa4] sm:$0xf] }
  0xf9   : > { %2282 = vmatpush.bf16.msrb.mxu0 %v4343_v32  ;;  %v5445_v32 = vld [vmem:[%s6472_s28 + $0x8c] sm:$0xf]  ;;  %v5580_v12 = vld [vmem:[%s6472_s28 + $0x4c4] sm:$0xf] }
  0xfa   : > { %2310 = vmatpush.bf16.msrb.mxu2 %v4351_v30  ;;  %v4398_v30 = vld [vmem:[%s6472_s28 + $0x88] sm:$0xf]  ;;  %v4403_v41 = vor.u32 %v5445_v32, %v4400_v34  ;;  %v4958_v34 = vld [vmem:[%s6472_s28 + $0x4b8] sm:$0xf] }
  0xfb   : > { %2324 = vmatpush.bf16.msrb.mxu3 %v4355_v31  ;;  %2296 = vmatpush.bf16.msrb.mxu1 %v4347_v33  ;;  %v5509_v31 = vld [vmem:[%s6472_s28 + $0x284] sm:$0xf0]  ;;  %v4907_v33 = vor.u32 %v5572_v25, %v4904_v26  ;;  %v4424_v25 = vld [vmem:[%s6472_s28 + $0x2a0] sm:$0xf0]  ;;  %v4959_v47 = vor.u32 %v5643_v35, %v4958_v34  ;;  %v4990_v35 = vld [vmem:[%s6472_s28 + $0x4d8] sm:$0xf] }
  0xfc   : > { %v4399_v40 = vor.u32 %v5509_v31, %v4398_v30  ;;  %v4427_v30 = vor.u32 %v5448_v24, %v4424_v25  ;;  %v5516_v24 = vld [vmem:[%s6472_s28 + $0x2bc] sm:$0xf0]  ;;  %v5452_v25 = vld [vmem:[%s6472_s28 + $0xc4] sm:$0xf] }
 0x104   : > { %5300 = vmatmul.msk.bf16.vlgmr.msra.gmra.mxu0 %vm1991_vm0, %v6492_v37  ;;  %5301 = vmatmul.msk.bf16.vlgmr.msra.gmra.mxu1 %vm1991_vm0, %v6492_v37 }
 0x105   : > { %5302 = vmatmul.msk.bf16.vlgmr.msra.gmra.mxu2 %vm1991_vm0, %v6492_v37  ;;  %2337 = vmatpush.bf16.msra.mxu0 %v4871_v45  ;;  %v5639_v45 = vld [vmem:[%s6472_s28 + $0x694] sm:$0xf0] }
 0x106   : > { %5303 = vmatmul.msk.bf16.vlgmr.msra.gmra.mxu3 %vm1991_vm0, %v6492_v37  ;;  %2365 = vmatpush.bf16.msra.mxu2 %v4879_v43  ;;  %v4395_v43 = vor.u32 %v5444_v38, %v4392_v39  ;;  %v4960_v39 = vld [vmem:[%s6472_s28 + $0x6b8] sm:$0xf0] }
 0x107   : > { %2379 = vmatpush.bf16.msra.mxu3 %v4883_v44  ;;  %2351 = vmatpush.bf16.msra.mxu1 %v4875_v49  ;;  %v4926_v44 = vld [vmem:[%s6472_s28 + $0x498] sm:$0xf]  ;;  %v5638_v49 = vld [vmem:[%s6472_s28 + $0x68c] sm:$0xf0] }
 0x108   : > { %v4927_v52 = vor.u32 %v5639_v45, %v4926_v44  ;;  %v4919_v54 = vor.u32 %v5638_v49, %v4918_v48  ;;  %v5578_v44 = vld [vmem:[%s6472_s28 + $0x4b4] sm:$0xf]  ;;  %v4446_v48 = vld [vmem:[%s6472_s28 + $0xb8] sm:$0xf] }
 0x109   : > { %2338 = vmatpush.bf16.msra.mxu0 %v4359_v57  ;;  %v5447_v57 = vld [vmem:[%s6472_s28 + $0x9c] sm:$0xf]  ;;  %v4952_v45 = vld [vmem:[%s6472_s28 + $0x6b0] sm:$0xf0]  ;;  %v5515_v49 = vld [vmem:[%s6472_s28 + $0x2b4] sm:$0xf0] }
 0x10a   : > { %2366 = vmatpush.bf16.msra.mxu2 %v4367_v55  ;;  %v4414_v55 = vld [vmem:[%s6472_s28 + $0x98] sm:$0xf]  ;;  %v4419_v1 = vor.u32 %v5447_v57, %v4416_v59  ;;  %v5450_v57 = vld [vmem:[%s6472_s28 + $0xb4] sm:$0xf]  ;;  %v4447_v59 = vor.u32 %v5515_v49, %v4446_v48 }
 0x10b   : > { %2380 = vmatpush.bf16.msra.mxu3 %v4371_v56  ;;  %2352 = vmatpush.bf16.msra.mxu1 %v4363_v58  ;;  %v5511_v56 = vld [vmem:[%s6472_s28 + $0x294] sm:$0xf0]  ;;  %v4923_v58 = vor.u32 %v5574_v50, %v4920_v51  ;;  %v4963_v50 = vor.u32 %v5579_v36, %v4960_v39 }
 0x10c   : > { %v4415_v0 = vor.u32 %v5511_v56, %v4414_v55  ;;  %v4438_v55 = vld [vmem:[%s6472_s28 + $0xb0] sm:$0xf]  ;;  %v5647_v36 = vld [vmem:[%s6472_s28 + $0x6d4] sm:$0xf0] }
 0x10d   : > { %v5514_v56 = vld [vmem:[%s6472_s28 + $0x2ac] sm:$0xf0]  ;;  %v4991_v48 = vor.u32 %v5647_v36, %v4990_v35  ;;  %v4478_v49 = vld [vmem:[%s6472_s28 + $0xd8] sm:$0xf] }
 0x10e   : > { %v4439_v61 = vor.u32 %v5514_v56, %v4438_v55  ;;  %v4470_v56 = vld [vmem:[%s6472_s28 + $0xd0] sm:$0xf]  ;;  %v5022_v36 = vld [vmem:[%s6472_s28 + $0x4f8] sm:$0xf] }
 0x114   : > { %5304 = vmatmul.msk.bf16.vlgmr.msrb.gmra.mxu0 %vm1991_vm0, %v6492_v37  ;;  %5305 = vmatmul.msk.bf16.vlgmr.msrb.gmra.mxu1 %vm1991_vm0, %v6492_v37 }
 0x115   : > { %5306 = vmatmul.msk.bf16.vlgmr.msrb.gmra.mxu2 %vm1991_vm0, %v6492_v37  ;;  %2393 = vmatpush.bf16.msrb.mxu0 %v4887_v5  ;;  %v5641_v5 = vld [vmem:[%s6472_s28 + $0x6a4] sm:$0xf0] }
 0x116   : > { %5307 = vmatmul.msk.bf16.vlgmr.msrb.gmra.mxu3 %vm1991_vm0, %v6492_v37  ;;  %2421 = vmatpush.bf16.msrb.mxu2 %v4895_v3  ;;  %v4411_v3 = vor.u32 %v5446_v62, %v4408_v63 }
 0x117   : > { %2435 = vmatpush.bf16.msrb.mxu3 %v4899_v4  ;;  %2407 = vmatpush.bf16.msrb.mxu1 %v4891_v9  ;;  %v4942_v4 = vld [vmem:[%s6472_s28 + $0x4a8] sm:$0xf]  ;;  %v5640_v9 = vld [vmem:[%s6472_s28 + $0x69c] sm:$0xf0] }
 0x118   : > { %v4943_v14 = vor.u32 %v5641_v5, %v4942_v4  ;;  %v5645_v4 = vld [vmem:[%s6472_s28 + $0x6c4] sm:$0xf0]  ;;  %v5581_v5 = vld [vmem:[%s6472_s28 + $0x4cc] sm:$0xf] }
 0x119   : > { %2394 = vmatpush.bf16.msrb.mxu0 %v4375_v17  ;;  %v4935_v17 = vor.u32 %v5640_v9, %v4934_v8  ;;  %v4966_v8 = vld [vmem:[%s6472_s28 + $0x4c0] sm:$0xf] }
 0x11a   : > { %2422 = vmatpush.bf16.msrb.mxu2 %v4383_v15  ;;  %v4430_v15 = vld [vmem:[%s6472_s28 + $0xa8] sm:$0xf]  ;;  %v5644_v9 = vld [vmem:[%s6472_s28 + $0x6bc] sm:$0xf0] }
 0x11b   : > { %2436 = vmatpush.bf16.msrb.mxu3 %v4387_v16  ;;  %2408 = vmatpush.bf16.msrb.mxu1 %v4379_v18  ;;  %v4947_v16 = vor.u32 %v5577_v6, %v4944_v7  ;;  %v5513_v18 = vld [vmem:[%s6472_s28 + $0x2a4] sm:$0xf0]  ;;  %v4976_v7 = vld [vmem:[%s6472_s28 + $0x6c8] sm:$0xf0] }
 0x11c   : > { %v4431_v26 = vor.u32 %v5513_v18, %v4430_v15  ;;  %v4979_v18 = vor.u32 %v5581_v5, %v4976_v7  ;;  %v5649_v5 = vld [vmem:[%s6472_s28 + $0x6e4] sm:$0xf0] }
 0x124   : > { %5308 = vmatmul.msk.bf16.vlgmr.msra.gmra.mxu0 %vm1991_vm0, %v6492_v37  ;;  %5309 = vmatmul.msk.bf16.vlgmr.msra.gmra.mxu1 %vm1991_vm0, %v6492_v37 }
 0x125   : > { %5310 = vmatmul.msk.bf16.vlgmr.msra.gmra.mxu2 %vm1991_vm0, %v6492_v37  ;;  %2449 = vmatpush.bf16.msra.mxu0 %v4903_v29 }
 0x126   : > { %5311 = vmatmul.msk.bf16.vlgmr.msra.gmra.mxu3 %vm1991_vm0, %v6492_v37  ;;  %2477 = vmatpush.bf16.msra.mxu2 %v4911_v27  ;;  %v4435_v27 = vor.u32 %v5449_v19, %v4432_v21  ;;  %v4967_v19 = vor.u32 %v5644_v9, %v4966_v8  ;;  %v4464_v21 = vld [vmem:[%s6472_s28 + $0x2c8] sm:$0xf0]  ;;  %v4998_v9 = vld [vmem:[%s6472_s28 + $0x4e0] sm:$0xf] }
 0x127   : > { %2491 = vmatpush.bf16.msra.mxu3 %v4915_v28  ;;  %2463 = vmatpush.bf16.msra.mxu1 %v4907_v33  ;;  %v4423_v28 = vor.u32 %v5512_v23, %v4422_v22  ;;  %v4454_v23 = vld [vmem:[%s6472_s28 + $0xc0] sm:$0xf]  ;;  %v5008_v8 = vld [vmem:[%s6472_s28 + $0x6e8] sm:$0xf0] }
 0x129   : > { %2450 = vmatpush.bf16.msra.mxu0 %v4391_v42 }
 0x12a   : > { %2478 = vmatpush.bf16.msra.mxu2 %v4399_v40  ;;  %v4950_v40 = vld [vmem:[%s6472_s28 + $0x4b0] sm:$0xf] }
 0x12b   : > { %2492 = vmatpush.bf16.msra.mxu3 %v4403_v41  ;;  %2464 = vmatpush.bf16.msra.mxu1 %v4395_v43  ;;  %v5642_v41 = vld [vmem:[%s6472_s28 + $0x6ac] sm:$0xf0] }
 0x12c   : > { %v4951_v51 = vor.u32 %v5642_v41, %v4950_v40  ;;  %v4992_v40 = vld [vmem:[%s6472_s28 + $0x6d8] sm:$0xf0]  ;;  %v4982_v41 = vld [vmem:[%s6472_s28 + $0x4d0] sm:$0xf] }
 0x134   : > { %5312 = vmatmul.msk.bf16.vlgmr.msrb.gmra.mxu0 %vm1991_vm0, %v6492_v37  ;;  %5313 = vmatmul.msk.bf16.vlgmr.msrb.gmra.mxu1 %vm1991_vm0, %v6492_v37 }
 0x135   : > { %5314 = vmatmul.msk.bf16.vlgmr.msrb.gmra.mxu2 %vm1991_vm0, %v6492_v37  ;;  %2505 = vmatpush.bf16.msrb.mxu0 %v4919_v54  ;;  %v4955_v54 = vor.u32 %v5578_v44, %v4952_v45  ;;  %v5582_v45 = vld [vmem:[%s6472_s28 + $0x4d4] sm:$0xf] }
 0x136   : > { %5315 = vmatmul.msk.bf16.vlgmr.msrb.gmra.mxu3 %vm1991_vm0, %v6492_v37  ;;  %2533 = vmatpush.bf16.msrb.mxu2 %v4927_v52  ;;  %v5451_v52 = vld [vmem:[%s6472_s28 + $0xbc] sm:$0xf] }
 0x137   : > { %2547 = vmatpush.bf16.msrb.mxu3 %v4931_v53  ;;  %2519 = vmatpush.bf16.msrb.mxu1 %v4923_v58  ;;  %v4448_v53 = vld [vmem:[%s6472_s28 + $0x2b8] sm:$0xf0]  ;;  %v4440_v58 = vld [vmem:[%s6472_s28 + $0x2b0] sm:$0xf0] }
 0x138   : > { %v4451_v60 = vor.u32 %v5451_v52, %v4448_v53  ;;  %v4443_v63 = vor.u32 %v5450_v57, %v4440_v58  ;;  %v5455_v53 = vld [vmem:[%s6472_s28 + $0xdc] sm:$0xf]  ;;  %v5518_v57 = vld [vmem:[%s6472_s28 + $0x2cc] sm:$0xf0]  ;;  %v5454_v58 = vld [vmem:[%s6472_s28 + $0xd4] sm:$0xf] }
 0x139   : > { %2506 = vmatpush.bf16.msrb.mxu0 %v4407_v2 }
 0x13a   : > { %2534 = vmatpush.bf16.msrb.mxu2 %v4415_v0 }
 0x13b   : > { %2548 = vmatpush.bf16.msrb.mxu3 %v4419_v1  ;;  %2520 = vmatpush.bf16.msrb.mxu1 %v4411_v3  ;;  %v4974_v3 = vld [vmem:[%s6472_s28 + $0x4c8] sm:$0xf] }
 0x13c   : > { %v4975_v15 = vor.u32 %v5645_v4, %v4974_v3  ;;  %v5006_v4 = vld [vmem:[%s6472_s28 + $0x4e8] sm:$0xf] }
 0x141   : > { %v2004_v10 = vpop.f32.mrf.mxu0  ;;  %v2018_v13 = vpop.f32.mrf.mxu1 }
 0x142   : > { %3787 = vst [vmem:[%s6712_s16] sm:$0xff] %v2004_v10 }
 0x143   : > { %3788 = vst [vmem:[%s6712_s16 + $0x8] sm:$0xff] %v2018_v13  ;;  %v4968_v13 = vld [vmem:[%s6472_s28 + $0x6c0] sm:$0xf0] }
 0x144   : > { %5316 = vmatmul.msk.bf16.vlgmr.msra.gmra.mxu0 %vm1991_vm0, %v6492_v37  ;;  %5317 = vmatmul.msk.bf16.vlgmr.msra.gmra.mxu1 %vm1991_vm0, %v6492_v37  ;;  %v4971_v22 = vor.u32 %v5580_v12, %v4968_v13  ;;  %v5584_v13 = vld [vmem:[%s6472_s28 + $0x4e4] sm:$0xf] }
 0x145   : > { %5318 = vmatmul.msk.bf16.vlgmr.msra.gmra.mxu2 %vm1991_vm0, %v6492_v37  ;;  %2561 = vmatpush.bf16.msra.mxu0 %v4935_v17  ;;  %v5517_v17 = vld [vmem:[%s6472_s28 + $0x2c4] sm:$0xf0] }
 0x146   : > { %5319 = vmatmul.msk.bf16.vlgmr.msra.gmra.mxu3 %vm1991_vm0, %v6492_v37  ;;  %2589 = vmatpush.bf16.msra.mxu2 %v4943_v14 }
 0x147   : > { %2603 = vmatpush.bf16.msra.mxu3 %v4947_v16  ;;  %2575 = vmatpush.bf16.msra.mxu1 %v4939_v20  ;;  %v4462_v16 = vld [vmem:[%s6472_s28 + $0xc8] sm:$0xf]  ;;  %v5453_v20 = vld [vmem:[%s6472_s28 + $0xcc] sm:$0xf] }
 0x148   : > { %v2032_v29 = vpop.f32.mrf.mxu2 }
 0x149   : > { %3789 = vst [vmem:[%s6712_s16 + $0x10] sm:$0xff] %v2032_v29  ;;  %v2046_v31 = vpop.f32.mrf.mxu3  ;;  %v2006_v32 = vpop.f32.mrf.mxu0  ;;  %2562 = vmatpush.bf16.msra.mxu0 %v4423_v28  ;;  %v4467_v28 = vor.u32 %v5453_v20, %v4464_v21  ;;  %v4455_v29 = vor.u32 %v5516_v24, %v4454_v23  ;;  %v5457_v21 = vld [vmem:[%s6472_s28 + $0xec] sm:$0xf]  ;;  %v4486_v24 = vld [vmem:[%s6472_s28 + $0xe0] sm:$0xf] }
 0x14a   : > { %3790 = vst [vmem:[%s6712_s16 + $0x18] sm:$0xff] %v2046_v31  ;;  %v2020_v33 = vpop.f32.mrf.mxu1  ;;  %2590 = vmatpush.bf16.msra.mxu2 %v4431_v26  ;;  %v4456_v26 = vld [vmem:[%s6472_s28 + $0x2c0] sm:$0xf0] }
 0x14b   : > { %3915 = vst [vmem:[%s6712_s16 + $0x400] sm:$0xff] %v2006_v32  ;;  %2604 = vmatpush.bf16.msra.mxu3 %v4435_v27  ;;  %2576 = vmatpush.bf16.msra.mxu1 %v4427_v30  ;;  %v4463_v27 = vor.u32 %v5517_v17, %v4462_v16  ;;  %v4459_v31 = vor.u32 %v5452_v25, %v4456_v26  ;;  %v4494_v17 = vld [vmem:[%s6472_s28 + $0xe8] sm:$0xf]  ;;  %v5520_v25 = vld [vmem:[%s6472_s28 + $0x2dc] sm:$0xf0] }
 0x14c   : > { %3916 = vst [vmem:[%s6712_s16 + $0x408] sm:$0xff] %v2020_v33  ;;  %v5007_v16 = vor.u32 %v5649_v5, %v5006_v4  ;;  %v5456_v26 = vld [vmem:[%s6472_s28 + $0xe4] sm:$0xf]  ;;  %v5038_v5 = vld [vmem:[%s6472_s28 + $0x508] sm:$0xf] }
 0x150   : > { %v2034_v38 = vpop.f32.mrf.mxu2 }
 0x151   : > { %3917 = vst [vmem:[%s6712_s16 + $0x410] sm:$0xff] %v2034_v38  ;;  %v2048_v42 = vpop.f32.mrf.mxu3  ;;  %v2060_v43 = vpop.f32.mrf.mxu0  ;;  %v5583_v38 = vld [vmem:[%s6472_s28 + $0x4dc] sm:$0xf] }
 0x152   : > { %3918 = vst [vmem:[%s6712_s16 + $0x418] sm:$0xff] %v2048_v42  ;;  %v2074_v46 = vpop.f32.mrf.mxu1  ;;  %v5646_v42 = vld [vmem:[%s6472_s28 + $0x6cc] sm:$0xf0] }
 0x153   : > { %3791 = vst [vmem:[%s6712_s16 + $0x20] sm:$0xff] %v2060_v43  ;;  %v4983_v52 = vor.u32 %v5646_v42, %v4982_v41  ;;  %v5024_v41 = vld [vmem:[%s6472_s28 + $0x6f8] sm:$0xf0]  ;;  %v5014_v42 = vld [vmem:[%s6472_s28 + $0x4f0] sm:$0xf] }
 0x154   : > { %3792 = vst [vmem:[%s6712_s16 + $0x28] sm:$0xff] %v2074_v46  ;;  %5320 = vmatmul.msk.bf16.vlgmr.msrb.gmra.mxu0 %vm1991_vm0, %v6492_v37  ;;  %5321 = vmatmul.msk.bf16.vlgmr.msrb.gmra.mxu1 %vm1991_vm0, %v6492_v37  ;;  %v4984_v46 = vld [vmem:[%s6472_s28 + $0x6d0] sm:$0xf0] }
 0x155   : > { %5322 = vmatmul.msk.bf16.vlgmr.msrb.gmra.mxu2 %vm1991_vm0, %v6492_v37  ;;  %2617 = vmatpush.bf16.msrb.mxu0 %v4951_v51  ;;  %v4995_v51 = vor.u32 %v5583_v38, %v4992_v40  ;;  %v4987_v55 = vor.u32 %v5582_v45, %v4984_v46  ;;  %v5651_v38 = vld [vmem:[%s6472_s28 + $0x6f4] sm:$0xf0]  ;;  %v5586_v46 = vld [vmem:[%s6472_s28 + $0x4f4] sm:$0xf] }
 0x156   : > { %5323 = vmatmul.msk.bf16.vlgmr.msrb.gmra.mxu3 %vm1991_vm0, %v6492_v37  ;;  %2645 = vmatpush.bf16.msrb.mxu2 %v4959_v47 }
 0x157   : > { %2659 = vmatpush.bf16.msrb.mxu3 %v4963_v50  ;;  %2631 = vmatpush.bf16.msrb.mxu1 %v4955_v54  ;;  %v5519_v50 = vld [vmem:[%s6472_s28 + $0x2d4] sm:$0xf0]  ;;  %v4480_v54 = vld [vmem:[%s6472_s28 + $0x2d8] sm:$0xf0] }
 0x158   : > { %v2088_v62 = vpop.f32.mrf.mxu2 }
 0x159   : > { %3793 = vst [vmem:[%s6712_s16 + $0x30] sm:$0xff] %v2088_v62  ;;  %v2102_v0 = vpop.f32.mrf.mxu3  ;;  %v2062_v1 = vpop.f32.mrf.mxu0  ;;  %2618 = vmatpush.bf16.msrb.mxu0 %v4439_v61  ;;  %v4479_v61 = vor.u32 %v5519_v50, %v4478_v49  ;;  %v4483_v62 = vor.u32 %v5455_v53, %v4480_v54  ;;  %v5023_v49 = vor.u32 %v5651_v38, %v5022_v36  ;;  %v4510_v50 = vld [vmem:[%s6472_s28 + $0xf8] sm:$0xf]  ;;  %v5459_v54 = vld [vmem:[%s6472_s28 + $0xfc] sm:$0xf] }
 0x15a   : > { %3794 = vst [vmem:[%s6712_s16 + $0x38] sm:$0xff] %v2102_v0  ;;  %v2076_v2 = vpop.f32.mrf.mxu1  ;;  %2646 = vmatpush.bf16.msrb.mxu2 %v4447_v59  ;;  %v4472_v59 = vld [vmem:[%s6472_s28 + $0x2d0] sm:$0xf0]  ;;  %v5054_v38 = vld [vmem:[%s6472_s28 + $0x518] sm:$0xf] }
 0x15b   : > { %3919 = vst [vmem:[%s6712_s16 + $0x420] sm:$0xff] %v2062_v1  ;;  %2660 = vmatpush.bf16.msrb.mxu3 %v4451_v60  ;;  %2632 = vmatpush.bf16.msrb.mxu1 %v4443_v63  ;;  %v6829_v60 = vld [vmem:[%s7582_s0] sm:$0xff]  ;;  %v4475_v0 = vor.u32 %v5454_v58, %v4472_v59  ;;  %v5522_v58 = vld [vmem:[%s6472_s28 + $0x2ec] sm:$0xf0]  ;;  %v5458_v59 = vld [vmem:[%s6472_s28 + $0xf4] sm:$0xf] }
 0x15c   : > { %3920 = vst [vmem:[%s6712_s16 + $0x428] sm:$0xff] %v2076_v2 }
 0x160   : > { %v2090_v6 = vpop.f32.mrf.mxu2 }
 0x161   : > { %3921 = vst [vmem:[%s6712_s16 + $0x430] sm:$0xff] %v2090_v6  ;;  %v2104_v10 = vpop.f32.mrf.mxu3  ;;  %v2116_v11 = vpop.f32.mrf.mxu0  ;;  %v5585_v6 = vld [vmem:[%s6472_s28 + $0x4ec] sm:$0xf] }
 0x162   : > { %3922 = vst [vmem:[%s6712_s16 + $0x438] sm:$0xff] %v2104_v10  ;;  %v2130_v14 = vpop.f32.mrf.mxu1  ;;  %v5648_v10 = vld [vmem:[%s6472_s28 + $0x6dc] sm:$0xf0] }
 0x163   : > { %3795 = vst [vmem:[%s6712_s16 + $0x40] sm:$0xff] %v2116_v11  ;;  %v4999_v20 = vor.u32 %v5648_v10, %v4998_v9  ;;  %v5040_v9 = vld [vmem:[%s6472_s28 + $0x708] sm:$0xf0]  ;;  %v5030_v10 = vld [vmem:[%s6472_s28 + $0x500] sm:$0xf] }
 0x164   : > { %3796 = vst [vmem:[%s6712_s16 + $0x48] sm:$0xff] %v2130_v14  ;;  %5324 = vmatmul.msk.bf16.vlgmr.msra.gmra.mxu0 %vm1991_vm0, %v6492_v37  ;;  %5325 = vmatmul.msk.bf16.vlgmr.msra.gmra.mxu1 %vm1991_vm0, %v6492_v37  ;;  %v5000_v14 = vld [vmem:[%s6472_s28 + $0x6e0] sm:$0xf0] }
 0x165   : > { %5326 = vmatmul.msk.bf16.vlgmr.msra.gmra.mxu2 %vm1991_vm0, %v6492_v37  ;;  %2673 = vmatpush.bf16.msra.mxu0 %v4967_v19  ;;  %v5011_v19 = vor.u32 %v5585_v6, %v5008_v8  ;;  %v5003_v23 = vor.u32 %v5584_v13, %v5000_v14  ;;  %v5653_v6 = vld [vmem:[%s6472_s28 + $0x704] sm:$0xf0]  ;;  %v5588_v14 = vld [vmem:[%s6472_s28 + $0x504] sm:$0xf] }
 0x166   : > { %5327 = vmatmul.msk.bf16.vlgmr.msra.gmra.mxu3 %vm1991_vm0, %v6492_v37  ;;  %2701 = vmatpush.bf16.msra.mxu2 %v4975_v15 }
 0x167   : > { %2715 = vmatpush.bf16.msra.mxu3 %v4979_v18  ;;  %2687 = vmatpush.bf16.msra.mxu1 %v4971_v22  ;;  %v5521_v18 = vld [vmem:[%s6472_s28 + $0x2e4] sm:$0xf0]  ;;  %v4496_v22 = vld [vmem:[%s6472_s28 + $0x2e8] sm:$0xf0] }
 0x168   : > { %v2144_v30 = vpop.f32.mrf.mxu2 }
 0x169   : > { %3797 = vst [vmem:[%s6712_s16 + $0x50] sm:$0xff] %v2144_v30  ;;  %v2158_v32 = vpop.f32.mrf.mxu3  ;;  %v2118_v33 = vpop.f32.mrf.mxu0  ;;  %2674 = vmatpush.bf16.msra.mxu0 %v4455_v29  ;;  %v4499_v29 = vor.u32 %v5457_v21, %v4496_v22  ;;  %v4487_v30 = vor.u32 %v5520_v25, %v4486_v24  ;;  %v5461_v22 = vld [vmem:[%s6472_s28 + $0x10c] sm:$0xf]  ;;  %v4518_v25 = vld [vmem:[%s6472_s28 + $0x100] sm:$0xf] }
 0x16a   : > { %3798 = vst [vmem:[%s6712_s16 + $0x58] sm:$0xff] %v2158_v32  ;;  %v2132_v34 = vpop.f32.mrf.mxu1  ;;  %2702 = vmatpush.bf16.msra.mxu2 %v4463_v27  ;;  %v4488_v27 = vld [vmem:[%s6472_s28 + $0x2e0] sm:$0xf0] }
 0x16b   : > { %3923 = vst [vmem:[%s6712_s16 + $0x440] sm:$0xff] %v2118_v33  ;;  %2716 = vmatpush.bf16.msra.mxu3 %v4467_v28  ;;  %2688 = vmatpush.bf16.msra.mxu1 %v4459_v31  ;;  %v4495_v28 = vor.u32 %v5521_v18, %v4494_v17  ;;  %v4491_v32 = vor.u32 %v5456_v26, %v4488_v27  ;;  %v4526_v18 = vld [vmem:[%s6472_s28 + $0x108] sm:$0xf]  ;;  %v5524_v26 = vld [vmem:[%s6472_s28 + $0x2fc] sm:$0xf0] }
 0x16c   : > { %3924 = vst [vmem:[%s6712_s16 + $0x448] sm:$0xff] %v2132_v34  ;;  %v5039_v17 = vor.u32 %v5653_v6, %v5038_v5  ;;  %v5460_v27 = vld [vmem:[%s6472_s28 + $0x104] sm:$0xf]  ;;  %v5070_v6 = vld [vmem:[%s6472_s28 + $0x528] sm:$0xf] }
 0x170   : > { %v2146_v39 = vpop.f32.mrf.mxu2 }
 0x171   : > { %3925 = vst [vmem:[%s6712_s16 + $0x450] sm:$0xff] %v2146_v39  ;;  %v2160_v43 = vpop.f32.mrf.mxu3  ;;  %v2172_v44 = vpop.f32.mrf.mxu0  ;;  %v5587_v39 = vld [vmem:[%s6472_s28 + $0x4fc] sm:$0xf] }
 0x172   : > { %3926 = vst [vmem:[%s6712_s16 + $0x458] sm:$0xff] %v2160_v43  ;;  %v2186_v47 = vpop.f32.mrf.mxu1  ;;  %v5650_v43 = vld [vmem:[%s6472_s28 + $0x6ec] sm:$0xf0] }
 0x173   : > { %3799 = vst [vmem:[%s6712_s16 + $0x60] sm:$0xff] %v2172_v44  ;;  %v5015_v53 = vor.u32 %v5650_v43, %v5014_v42  ;;  %v5056_v42 = vld [vmem:[%s6472_s28 + $0x718] sm:$0xf0]  ;;  %v5046_v43 = vld [vmem:[%s6472_s28 + $0x510] sm:$0xf] }
 0x174   : > { %3800 = vst [vmem:[%s6712_s16 + $0x68] sm:$0xff] %v2186_v47  ;;  %5328 = vmatmul.msk.bf16.vlgmr.msrb.gmra.mxu0 %vm1991_vm0, %v6492_v37  ;;  %5329 = vmatmul.msk.bf16.vlgmr.msrb.gmra.mxu1 %vm1991_vm0, %v6492_v37  ;;  %v5016_v47 = vld [vmem:[%s6472_s28 + $0x6f0] sm:$0xf0] }
 0x175   : > { %5330 = vmatmul.msk.bf16.vlgmr.msrb.gmra.mxu2 %vm1991_vm0, %v6492_v37  ;;  %2729 = vmatpush.bf16.msrb.mxu0 %v4983_v52  ;;  %v4471_v37 = vor.u32 %v5518_v57, %v4470_v56  ;;  %v5027_v52 = vor.u32 %v5587_v39, %v5024_v41  ;;  %v5019_v56 = vor.u32 %v5586_v46, %v5016_v47  ;;  %v4502_v57 = vld [vmem:[%s6472_s28 + $0xf0] sm:$0xf]  ;;  %v5655_v39 = vld [vmem:[%s6472_s28 + $0x714] sm:$0xf0]  ;;  %v5590_v47 = vld [vmem:[%s6472_s28 + $0x514] sm:$0xf] }
 0x176   : > { %5331 = vmatmul.msk.bf16.vlgmr.msrb.gmra.mxu3 %vm1991_vm0, %v6829_v60  ;;  %2757 = vmatpush.bf16.msrb.mxu2 %v4991_v48 }
 0x177   : > { %2771 = vmatpush.bf16.msrb.mxu3 %v4995_v51  ;;  %2743 = vmatpush.bf16.msrb.mxu1 %v4987_v55  ;;  %v5523_v51 = vld [vmem:[%s6472_s28 + $0x2f4] sm:$0xf0]  ;;  %v4512_v55 = vld [vmem:[%s6472_s28 + $0x2f8] sm:$0xf0] }
 0x178   : > { %v2200_v63 = vpop.f32.mrf.mxu2 }
 0x179   : > { %3801 = vst [vmem:[%s6712_s16 + $0x70] sm:$0xff] %v2200_v63  ;;  %v2214_v1 = vpop.f32.mrf.mxu3  ;;  %v2174_v2 = vpop.f32.mrf.mxu0  ;;  %2730 = vmatpush.bf16.msrb.mxu0 %v4471_v37  ;;  %v4515_v37 = vor.u32 %v5459_v54, %v4512_v55  ;;  %v4503_v63 = vor.u32 %v5522_v58, %v4502_v57  ;;  %v5463_v55 = vld [vmem:[%s6472_s28 + $0x11c] sm:$0xf]  ;;  %v4534_v58 = vld [vmem:[%s6472_s28 + $0x110] sm:$0xf] }
 0x17a   : > { %3802 = vst [vmem:[%s6712_s16 + $0x78] sm:$0xff] %v2214_v1  ;;  %v2188_v3 = vpop.f32.mrf.mxu1  ;;  %2758 = vmatpush.bf16.msrb.mxu2 %v4479_v61  ;;  %v4504_v61 = vld [vmem:[%s6472_s28 + $0x2f0] sm:$0xf0] }
 0x17b   : > { %3927 = vst [vmem:[%s6712_s16 + $0x460] sm:$0xff] %v2174_v2  ;;  %2772 = vmatpush.bf16.msrb.mxu3 %v4483_v62  ;;  %2744 = vmatpush.bf16.msrb.mxu1 %v4475_v0  ;;  %v4511_v62 = vor.u32 %v5523_v51, %v4510_v50  ;;  %v4507_v1 = vor.u32 %v5458_v59, %v4504_v61  ;;  %v4542_v51 = vld [vmem:[%s6472_s28 + $0x118] sm:$0xf]  ;;  %v5526_v59 = vld [vmem:[%s6472_s28 + $0x30c] sm:$0xf0] }
 0x17c   : > { %3928 = vst [vmem:[%s6712_s16 + $0x468] sm:$0xff] %v2188_v3  ;;  %v5055_v50 = vor.u32 %v5655_v39, %v5054_v38  ;;  %v5462_v61 = vld [vmem:[%s6472_s28 + $0x114] sm:$0xf]  ;;  %v5086_v39 = vld [vmem:[%s6472_s28 + $0x538] sm:$0xf] }
 0x180   : > { %v2202_v7 = vpop.f32.mrf.mxu2 }
 0x181   : > { %3929 = vst [vmem:[%s6712_s16 + $0x470] sm:$0xff] %v2202_v7  ;;  %v2216_v11 = vpop.f32.mrf.mxu3  ;;  %v2228_v12 = vpop.f32.mrf.mxu0  ;;  %v5589_v7 = vld [vmem:[%s6472_s28 + $0x50c] sm:$0xf] }
 0x182   : > { %3930 = vst [vmem:[%s6712_s16 + $0x478] sm:$0xff] %v2216_v11  ;;  %v2242_v15 = vpop.f32.mrf.mxu1  ;;  %v5652_v11 = vld [vmem:[%s6472_s28 + $0x6fc] sm:$0xf0] }
 0x183   : > { %3803 = vst [vmem:[%s6712_s16 + $0x80] sm:$0xff] %v2228_v12  ;;  %v5031_v21 = vor.u32 %v5652_v11, %v5030_v10  ;;  %v5072_v10 = vld [vmem:[%s6472_s28 + $0x728] sm:$0xf0]  ;;  %v5062_v11 = vld [vmem:[%s6472_s28 + $0x520] sm:$0xf] }
 0x184   : > { %3804 = vst [vmem:[%s6712_s16 + $0x88] sm:$0xff] %v2242_v15  ;;  %5332 = vmatmul.msk.bf16.vlgmr.msra.gmra.mxu0 %vm1991_vm0, %v6829_v60  ;;  %5333 = vmatmul.msk.bf16.vlgmr.msra.gmra.mxu1 %vm1991_vm0, %v6829_v60  ;;  %v5032_v15 = vld [vmem:[%s6472_s28 + $0x700] sm:$0xf0] }
 0x185   : > { %5334 = vmatmul.msk.bf16.vlgmr.msra.gmra.mxu2 %vm1991_vm0, %v6829_v60  ;;  %2785 = vmatpush.bf16.msra.mxu0 %v4999_v20  ;;  %v5043_v20 = vor.u32 %v5589_v7, %v5040_v9  ;;  %v5035_v24 = vor.u32 %v5588_v14, %v5032_v15  ;;  %v5657_v7 = vld [vmem:[%s6472_s28 + $0x724] sm:$0xf0]  ;;  %v5592_v15 = vld [vmem:[%s6472_s28 + $0x524] sm:$0xf] }
 0x186   : > { %5335 = vmatmul.msk.bf16.vlgmr.msra.gmra.mxu3 %vm1991_vm0, %v6829_v60  ;;  %2813 = vmatpush.bf16.msra.mxu2 %v5007_v16 }
 0x187   : > { %2827 = vmatpush.bf16.msra.mxu3 %v5011_v19  ;;  %2799 = vmatpush.bf16.msra.mxu1 %v5003_v23  ;;  %v5525_v19 = vld [vmem:[%s6472_s28 + $0x304] sm:$0xf0]  ;;  %v4528_v23 = vld [vmem:[%s6472_s28 + $0x308] sm:$0xf0] }
 0x188   : > { %v2256_v31 = vpop.f32.mrf.mxu2 }
 0x189   : > { %3805 = vst [vmem:[%s6712_s16 + $0x90] sm:$0xff] %v2256_v31  ;;  %v2270_v33 = vpop.f32.mrf.mxu3  ;;  %v2230_v34 = vpop.f32.mrf.mxu0  ;;  %2786 = vmatpush.bf16.msra.mxu0 %v4487_v30  ;;  %v4531_v30 = vor.u32 %v5461_v22, %v4528_v23  ;;  %v4519_v31 = vor.u32 %v5524_v26, %v4518_v25  ;;  %v5465_v23 = vld [vmem:[%s6472_s28 + $0x12c] sm:$0xf]  ;;  %v4550_v26 = vld [vmem:[%s6472_s28 + $0x120] sm:$0xf] }
 0x18a   : > { %3806 = vst [vmem:[%s6712_s16 + $0x98] sm:$0xff] %v2270_v33  ;;  %v2244_v35 = vpop.f32.mrf.mxu1  ;;  %2814 = vmatpush.bf16.msra.mxu2 %v4495_v28  ;;  %v4520_v28 = vld [vmem:[%s6472_s28 + $0x300] sm:$0xf0] }
 0x18b   : > { %3931 = vst [vmem:[%s6712_s16 + $0x480] sm:$0xff] %v2230_v34  ;;  %2828 = vmatpush.bf16.msra.mxu3 %v4499_v29  ;;  %2800 = vmatpush.bf16.msra.mxu1 %v4491_v32  ;;  %v4527_v29 = vor.u32 %v5525_v19, %v4526_v18  ;;  %v4523_v33 = vor.u32 %v5460_v27, %v4520_v28  ;;  %v4558_v19 = vld [vmem:[%s6472_s28 + $0x128] sm:$0xf]  ;;  %v5528_v27 = vld [vmem:[%s6472_s28 + $0x31c] sm:$0xf0] }
 0x18c   : > { %3932 = vst [vmem:[%s6712_s16 + $0x488] sm:$0xff] %v2244_v35  ;;  %v5071_v18 = vor.u32 %v5657_v7, %v5070_v6  ;;  %v5464_v28 = vld [vmem:[%s6472_s28 + $0x124] sm:$0xf]  ;;  %v5102_v7 = vld [vmem:[%s6472_s28 + $0x548] sm:$0xf] }
 0x190   : > { %v2258_v40 = vpop.f32.mrf.mxu2 }
 0x191   : > { %3933 = vst [vmem:[%s6712_s16 + $0x490] sm:$0xff] %v2258_v40  ;;  %v2272_v44 = vpop.f32.mrf.mxu3  ;;  %v2284_v45 = vpop.f32.mrf.mxu0  ;;  %v5591_v40 = vld [vmem:[%s6472_s28 + $0x51c] sm:$0xf] }
 0x192   : > { %3934 = vst [vmem:[%s6712_s16 + $0x498] sm:$0xff] %v2272_v44  ;;  %v2298_v48 = vpop.f32.mrf.mxu1  ;;  %v5654_v44 = vld [vmem:[%s6472_s28 + $0x70c] sm:$0xf0] }
 0x193   : > { %3807 = vst [vmem:[%s6712_s16 + $0xa0] sm:$0xff] %v2284_v45  ;;  %v5047_v54 = vor.u32 %v5654_v44, %v5046_v43  ;;  %v5088_v43 = vld [vmem:[%s6472_s28 + $0x738] sm:$0xf0]  ;;  %v5078_v44 = vld [vmem:[%s6472_s28 + $0x530] sm:$0xf] }
 0x194   : > { %3808 = vst [vmem:[%s6712_s16 + $0xa8] sm:$0xff] %v2298_v48  ;;  %5336 = vmatmul.msk.bf16.vlgmr.msrb.gmra.mxu0 %vm1991_vm0, %v6829_v60  ;;  %5337 = vmatmul.msk.bf16.vlgmr.msrb.gmra.mxu1 %vm1991_vm0, %v6829_v60  ;;  %v5048_v48 = vld [vmem:[%s6472_s28 + $0x710] sm:$0xf0] }
 0x195   : > { %5338 = vmatmul.msk.bf16.vlgmr.msrb.gmra.mxu2 %vm1991_vm0, %v6829_v60  ;;  %2841 = vmatpush.bf16.msrb.mxu0 %v5015_v53  ;;  %v5059_v53 = vor.u32 %v5591_v40, %v5056_v42  ;;  %v5051_v57 = vor.u32 %v5590_v47, %v5048_v48  ;;  %v5659_v40 = vld [vmem:[%s6472_s28 + $0x734] sm:$0xf0]  ;;  %v5594_v48 = vld [vmem:[%s6472_s28 + $0x534] sm:$0xf] }
 0x196   : > { %5339 = vmatmul.msk.bf16.vlgmr.msrb.gmra.mxu3 %vm1991_vm0, %v6829_v60  ;;  %2869 = vmatpush.bf16.msrb.mxu2 %v5023_v49 }
 0x197   : > { %2883 = vmatpush.bf16.msrb.mxu3 %v5027_v52  ;;  %2855 = vmatpush.bf16.msrb.mxu1 %v5019_v56  ;;  %v5527_v52 = vld [vmem:[%s6472_s28 + $0x314] sm:$0xf0]  ;;  %v4544_v56 = vld [vmem:[%s6472_s28 + $0x318] sm:$0xf0] }
 0x198   : > { %v2312_v0 = vpop.f32.mrf.mxu2 }
 0x199   : > { %3809 = vst [vmem:[%s6712_s16 + $0xb0] sm:$0xff] %v2312_v0  ;;  %v2326_v2 = vpop.f32.mrf.mxu3  ;;  %v2286_v3 = vpop.f32.mrf.mxu0  ;;  %2842 = vmatpush.bf16.msrb.mxu0 %v4503_v63  ;;  %v4547_v63 = vor.u32 %v5463_v55, %v4544_v56  ;;  %v4535_v0 = vor.u32 %v5526_v59, %v4534_v58  ;;  %v5467_v56 = vld [vmem:[%s6472_s28 + $0x13c] sm:$0xf]  ;;  %v4566_v59 = vld [vmem:[%s6472_s28 + $0x130] sm:$0xf] }
 0x19a   : > { %3810 = vst [vmem:[%s6712_s16 + $0xb8] sm:$0xff] %v2326_v2  ;;  %v2300_v4 = vpop.f32.mrf.mxu1  ;;  %2870 = vmatpush.bf16.msrb.mxu2 %v4511_v62  ;;  %v4536_v62 = vld [vmem:[%s6472_s28 + $0x310] sm:$0xf0] }
 0x19b   : > { %3935 = vst [vmem:[%s6712_s16 + $0x4a0] sm:$0xff] %v2286_v3  ;;  %2884 = vmatpush.bf16.msrb.mxu3 %v4515_v37  ;;  %2856 = vmatpush.bf16.msrb.mxu1 %v4507_v1  ;;  %v4543_v37 = vor.u32 %v5527_v52, %v4542_v51  ;;  %v4539_v2 = vor.u32 %v5462_v61, %v4536_v62  ;;  %v4574_v52 = vld [vmem:[%s6472_s28 + $0x138] sm:$0xf]  ;;  %v5530_v61 = vld [vmem:[%s6472_s28 + $0x32c] sm:$0xf0] }
 0x19c   : > { %3936 = vst [vmem:[%s6712_s16 + $0x4a8] sm:$0xff] %v2300_v4  ;;  %v5087_v51 = vor.u32 %v5659_v40, %v5086_v39  ;;  %v5466_v62 = vld [vmem:[%s6472_s28 + $0x134] sm:$0xf]  ;;  %v5118_v40 = vld [vmem:[%s6472_s28 + $0x558] sm:$0xf] }
 0x1a0   : > { %v2314_v8 = vpop.f32.mrf.mxu2 }
 0x1a1   : > { %3937 = vst [vmem:[%s6712_s16 + $0x4b0] sm:$0xff] %v2314_v8  ;;  %v2328_v12 = vpop.f32.mrf.mxu3  ;;  %v2340_v13 = vpop.f32.mrf.mxu0  ;;  %v5593_v8 = vld [vmem:[%s6472_s28 + $0x52c] sm:$0xf] }
 0x1a2   : > { %3938 = vst [vmem:[%s6712_s16 + $0x4b8] sm:$0xff] %v2328_v12  ;;  %v2354_v16 = vpop.f32.mrf.mxu1  ;;  %v5656_v12 = vld [vmem:[%s6472_s28 + $0x71c] sm:$0xf0] }
 0x1a3   : > { %3811 = vst [vmem:[%s6712_s16 + $0xc0] sm:$0xff] %v2340_v13  ;;  %v5063_v22 = vor.u32 %v5656_v12, %v5062_v11  ;;  %v5104_v11 = vld [vmem:[%s6472_s28 + $0x748] sm:$0xf0]  ;;  %v5094_v12 = vld [vmem:[%s6472_s28 + $0x540] sm:$0xf] }
 0x1a4   : > { %3812 = vst [vmem:[%s6712_s16 + $0xc8] sm:$0xff] %v2354_v16  ;;  %5340 = vmatmul.msk.bf16.vlgmr.msra.gmra.mxu0 %vm1991_vm0, %v6829_v60  ;;  %5341 = vmatmul.msk.bf16.vlgmr.msra.gmra.mxu1 %vm1991_vm0, %v6829_v60  ;;  %v5064_v16 = vld [vmem:[%s6472_s28 + $0x720] sm:$0xf0] }
 0x1a5   : > { %5342 = vmatmul.msk.bf16.vlgmr.msra.gmra.mxu2 %vm1991_vm0, %v6829_v60  ;;  %2897 = vmatpush.bf16.msra.mxu0 %v5031_v21  ;;  %v5075_v21 = vor.u32 %v5593_v8, %v5072_v10  ;;  %v5067_v25 = vor.u32 %v5592_v15, %v5064_v16  ;;  %v5661_v8 = vld [vmem:[%s6472_s28 + $0x744] sm:$0xf0]  ;;  %v5596_v16 = vld [vmem:[%s6472_s28 + $0x544] sm:$0xf] }
 0x1a6   : > { %5343 = vmatmul.msk.bf16.vlgmr.msra.gmra.mxu3 %vm1991_vm0, %v6829_v60  ;;  %2925 = vmatpush.bf16.msra.mxu2 %v5039_v17 }
 0x1a7   : > { %2939 = vmatpush.bf16.msra.mxu3 %v5043_v20  ;;  %2911 = vmatpush.bf16.msra.mxu1 %v5035_v24  ;;  %v5529_v20 = vld [vmem:[%s6472_s28 + $0x324] sm:$0xf0]  ;;  %v4560_v24 = vld [vmem:[%s6472_s28 + $0x328] sm:$0xf0] }
 0x1a8   : > { %v2368_v32 = vpop.f32.mrf.mxu2 }
 0x1a9   : > { %3813 = vst [vmem:[%s6712_s16 + $0xd0] sm:$0xff] %v2368_v32  ;;  %v2382_v34 = vpop.f32.mrf.mxu3  ;;  %v2342_v35 = vpop.f32.mrf.mxu0  ;;  %2898 = vmatpush.bf16.msra.mxu0 %v4519_v31  ;;  %v4563_v31 = vor.u32 %v5465_v23, %v4560_v24  ;;  %v4551_v32 = vor.u32 %v5528_v27, %v4550_v26  ;;  %v5469_v24 = vld [vmem:[%s6472_s28 + $0x14c] sm:$0xf]  ;;  %v4582_v27 = vld [vmem:[%s6472_s28 + $0x140] sm:$0xf] }
 0x1aa   : > { %3814 = vst [vmem:[%s6712_s16 + $0xd8] sm:$0xff] %v2382_v34  ;;  %v2356_v36 = vpop.f32.mrf.mxu1  ;;  %2926 = vmatpush.bf16.msra.mxu2 %v4527_v29  ;;  %v4552_v29 = vld [vmem:[%s6472_s28 + $0x320] sm:$0xf0] }
 0x1ab   : > { %3939 = vst [vmem:[%s6712_s16 + $0x4c0] sm:$0xff] %v2342_v35  ;;  %2940 = vmatpush.bf16.msra.mxu3 %v4531_v30  ;;  %2912 = vmatpush.bf16.msra.mxu1 %v4523_v33  ;;  %v4559_v30 = vor.u32 %v5529_v20, %v4558_v19  ;;  %v4555_v34 = vor.u32 %v5464_v28, %v4552_v29  ;;  %v4590_v20 = vld [vmem:[%s6472_s28 + $0x148] sm:$0xf]  ;;  %v5532_v28 = vld [vmem:[%s6472_s28 + $0x33c] sm:$0xf0] }
 0x1ac   : > { %3940 = vst [vmem:[%s6712_s16 + $0x4c8] sm:$0xff] %v2356_v36  ;;  %v5103_v19 = vor.u32 %v5661_v8, %v5102_v7  ;;  %v5468_v29 = vld [vmem:[%s6472_s28 + $0x144] sm:$0xf]  ;;  %v5134_v8 = vld [vmem:[%s6472_s28 + $0x568] sm:$0xf] }
 0x1b0   : > { %v2370_v41 = vpop.f32.mrf.mxu2 }
 0x1b1   : > { %3941 = vst [vmem:[%s6712_s16 + $0x4d0] sm:$0xff] %v2370_v41  ;;  %v2384_v45 = vpop.f32.mrf.mxu3  ;;  %v2396_v46 = vpop.f32.mrf.mxu0  ;;  %v5595_v41 = vld [vmem:[%s6472_s28 + $0x53c] sm:$0xf] }
 0x1b2   : > { %3942 = vst [vmem:[%s6712_s16 + $0x4d8] sm:$0xff] %v2384_v45  ;;  %v2410_v49 = vpop.f32.mrf.mxu1  ;;  %v5658_v45 = vld [vmem:[%s6472_s28 + $0x72c] sm:$0xf0] }
 0x1b3   : > { %3815 = vst [vmem:[%s6712_s16 + $0xe0] sm:$0xff] %v2396_v46  ;;  %v5079_v55 = vor.u32 %v5658_v45, %v5078_v44  ;;  %v5120_v44 = vld [vmem:[%s6472_s28 + $0x758] sm:$0xf0]  ;;  %v5110_v45 = vld [vmem:[%s6472_s28 + $0x550] sm:$0xf] }
 0x1b4   : > { %3816 = vst [vmem:[%s6712_s16 + $0xe8] sm:$0xff] %v2410_v49  ;;  %5344 = vmatmul.msk.bf16.vlgmr.msrb.gmra.mxu0 %vm1991_vm0, %v6829_v60  ;;  %5345 = vmatmul.msk.bf16.vlgmr.msrb.gmra.mxu1 %vm1991_vm0, %v6829_v60  ;;  %v5080_v49 = vld [vmem:[%s6472_s28 + $0x730] sm:$0xf0] }
 0x1b5   : > { %5346 = vmatmul.msk.bf16.vlgmr.msrb.gmra.mxu2 %vm1991_vm0, %v6829_v60  ;;  %2953 = vmatpush.bf16.msrb.mxu0 %v5047_v54  ;;  %v5091_v54 = vor.u32 %v5595_v41, %v5088_v43  ;;  %v5083_v58 = vor.u32 %v5594_v48, %v5080_v49  ;;  %v5663_v41 = vld [vmem:[%s6472_s28 + $0x754] sm:$0xf0]  ;;  %v5598_v49 = vld [vmem:[%s6472_s28 + $0x554] sm:$0xf] }
 0x1b6   : > { %5347 = vmatmul.msk.bf16.vlgmr.msrb.gmra.mxu3 %vm1991_vm0, %v6829_v60  ;;  %2981 = vmatpush.bf16.msrb.mxu2 %v5055_v50 }
 0x1b7   : > { %2995 = vmatpush.bf16.msrb.mxu3 %v5059_v53  ;;  %2967 = vmatpush.bf16.msrb.mxu1 %v5051_v57  ;;  %v5531_v53 = vld [vmem:[%s6472_s28 + $0x334] sm:$0xf0]  ;;  %v4576_v57 = vld [vmem:[%s6472_s28 + $0x338] sm:$0xf0] }
 0x1b8   : > { %v2424_v1 = vpop.f32.mrf.mxu2 }
 0x1b9   : > { %3817 = vst [vmem:[%s6712_s16 + $0xf0] sm:$0xff] %v2424_v1  ;;  %v2438_v3 = vpop.f32.mrf.mxu3  ;;  %v2398_v4 = vpop.f32.mrf.mxu0  ;;  %2954 = vmatpush.bf16.msrb.mxu0 %v4535_v0  ;;  %v4579_v0 = vor.u32 %v5467_v56, %v4576_v57  ;;  %v4567_v1 = vor.u32 %v5530_v61, %v4566_v59  ;;  %v5471_v57 = vld [vmem:[%s6472_s28 + $0x15c] sm:$0xf]  ;;  %v4598_v61 = vld [vmem:[%s6472_s28 + $0x150] sm:$0xf] }
 0x1ba   : > { %3818 = vst [vmem:[%s6712_s16 + $0xf8] sm:$0xff] %v2438_v3  ;;  %v2412_v5 = vpop.f32.mrf.mxu1  ;;  %2982 = vmatpush.bf16.msrb.mxu2 %v4543_v37  ;;  %v4568_v37 = vld [vmem:[%s6472_s28 + $0x330] sm:$0xf0] }
 0x1bb   : > { %3943 = vst [vmem:[%s6712_s16 + $0x4e0] sm:$0xff] %v2398_v4  ;;  %2996 = vmatpush.bf16.msrb.mxu3 %v4547_v63  ;;  %2968 = vmatpush.bf16.msrb.mxu1 %v4539_v2  ;;  %v4575_v63 = vor.u32 %v5531_v53, %v4574_v52  ;;  %v4571_v3 = vor.u32 %v5466_v62, %v4568_v37  ;;  %v4606_v53 = vld [vmem:[%s6472_s28 + $0x158] sm:$0xf]  ;;  %v5534_v62 = vld [vmem:[%s6472_s28 + $0x34c] sm:$0xf0] }
 0x1bc   : > { %3944 = vst [vmem:[%s6712_s16 + $0x4e8] sm:$0xff] %v2412_v5  ;;  %v5119_v52 = vor.u32 %v5663_v41, %v5118_v40  ;;  %v5470_v37 = vld [vmem:[%s6472_s28 + $0x154] sm:$0xf]  ;;  %v5150_v40 = vld [vmem:[%s6472_s28 + $0x578] sm:$0xf] }
 0x1bd   : > { %v5667_v41 = vld [vmem:[%s6472_s28 + $0x774] sm:$0xf0] }
 0x1c0   : > { %v2426_v9 = vpop.f32.mrf.mxu2 }
 0x1c1   : > { %3945 = vst [vmem:[%s6712_s16 + $0x4f0] sm:$0xff] %v2426_v9  ;;  %v2440_v13 = vpop.f32.mrf.mxu3  ;;  %v2452_v14 = vpop.f32.mrf.mxu0  ;;  %v5597_v9 = vld [vmem:[%s6472_s28 + $0x54c] sm:$0xf] }
 0x1c2   : > { %3946 = vst [vmem:[%s6712_s16 + $0x4f8] sm:$0xff] %v2440_v13  ;;  %v2466_v17 = vpop.f32.mrf.mxu1  ;;  %v5660_v13 = vld [vmem:[%s6472_s28 + $0x73c] sm:$0xf0] }
 0x1c3   : > { %3819 = vst [vmem:[%s6712_s16 + $0x100] sm:$0xff] %v2452_v14  ;;  %v5095_v23 = vor.u32 %v5660_v13, %v5094_v12  ;;  %v5136_v12 = vld [vmem:[%s6472_s28 + $0x768] sm:$0xf0]  ;;  %v5126_v13 = vld [vmem:[%s6472_s28 + $0x560] sm:$0xf] }
 0x1c4   : > { %3820 = vst [vmem:[%s6712_s16 + $0x108] sm:$0xff] %v2466_v17  ;;  %5348 = vmatmul.msk.bf16.vlgmr.msra.gmra.mxu0 %vm1991_vm0, %v6829_v60  ;;  %5349 = vmatmul.msk.bf16.vlgmr.msra.gmra.mxu1 %vm1991_vm0, %v6829_v60  ;;  %v5096_v17 = vld [vmem:[%s6472_s28 + $0x740] sm:$0xf0] }
 0x1c5   : > { %5350 = vmatmul.msk.bf16.vlgmr.msra.gmra.mxu2 %vm1991_vm0, %v6829_v60  ;;  %3009 = vmatpush.bf16.msra.mxu0 %v5063_v22  ;;  %v5107_v22 = vor.u32 %v5597_v9, %v5104_v11  ;;  %v5099_v26 = vor.u32 %v5596_v16, %v5096_v17  ;;  %v5665_v9 = vld [vmem:[%s6472_s28 + $0x764] sm:$0xf0]  ;;  %v5600_v17 = vld [vmem:[%s6472_s28 + $0x564] sm:$0xf] }
 0x1c6   : > { %5351 = vmatmul.msk.bf16.vlgmr.msra.gmra.mxu3 %vm1991_vm0, %v6829_v60  ;;  %3037 = vmatpush.bf16.msra.mxu2 %v5071_v18 }
 0x1c7   : > { %3051 = vmatpush.bf16.msra.mxu3 %v5075_v21  ;;  %3023 = vmatpush.bf16.msra.mxu1 %v5067_v25  ;;  %v5533_v21 = vld [vmem:[%s6472_s28 + $0x344] sm:$0xf0]  ;;  %v4592_v25 = vld [vmem:[%s6472_s28 + $0x348] sm:$0xf0] }
 0x1c8   : > { %v2480_v33 = vpop.f32.mrf.mxu2 }
 0x1c9   : > { %3821 = vst [vmem:[%s6712_s16 + $0x110] sm:$0xff] %v2480_v33  ;;  %v2494_v35 = vpop.f32.mrf.mxu3  ;;  %v2454_v36 = vpop.f32.mrf.mxu0  ;;  %3010 = vmatpush.bf16.msra.mxu0 %v4551_v32  ;;  %v4595_v32 = vor.u32 %v5469_v24, %v4592_v25  ;;  %v4583_v33 = vor.u32 %v5532_v28, %v4582_v27  ;;  %v5473_v25 = vld [vmem:[%s6472_s28 + $0x16c] sm:$0xf]  ;;  %v4614_v28 = vld [vmem:[%s6472_s28 + $0x160] sm:$0xf] }
 0x1ca   : > { %3822 = vst [vmem:[%s6712_s16 + $0x118] sm:$0xff] %v2494_v35  ;;  %v2468_v38 = vpop.f32.mrf.mxu1  ;;  %3038 = vmatpush.bf16.msra.mxu2 %v4559_v30  ;;  %v4584_v30 = vld [vmem:[%s6472_s28 + $0x340] sm:$0xf0] }
 0x1cb   : > { %3947 = vst [vmem:[%s6712_s16 + $0x500] sm:$0xff] %v2454_v36  ;;  %3052 = vmatpush.bf16.msra.mxu3 %v4563_v31  ;;  %3024 = vmatpush.bf16.msra.mxu1 %v4555_v34  ;;  %v4591_v31 = vor.u32 %v5533_v21, %v4590_v20  ;;  %v4587_v35 = vor.u32 %v5468_v29, %v4584_v30  ;;  %v4622_v21 = vld [vmem:[%s6472_s28 + $0x168] sm:$0xf]  ;;  %v5536_v29 = vld [vmem:[%s6472_s28 + $0x35c] sm:$0xf0] }
 0x1cc   : > { %3948 = vst [vmem:[%s6712_s16 + $0x508] sm:$0xff] %v2468_v38  ;;  %v5135_v20 = vor.u32 %v5665_v9, %v5134_v8  ;;  %v5472_v30 = vld [vmem:[%s6472_s28 + $0x164] sm:$0xf]  ;;  %v5166_v9 = vld [vmem:[%s6472_s28 + $0x588] sm:$0xf] }
 0x1d0   : > { %v2482_v42 = vpop.f32.mrf.mxu2 }
 0x1d1   : > { %3949 = vst [vmem:[%s6712_s16 + $0x510] sm:$0xff] %v2482_v42  ;;  %v2496_v46 = vpop.f32.mrf.mxu3  ;;  %v2508_v47 = vpop.f32.mrf.mxu0  ;;  %v5599_v42 = vld [vmem:[%s6472_s28 + $0x55c] sm:$0xf] }
 0x1d2   : > { %3950 = vst [vmem:[%s6712_s16 + $0x518] sm:$0xff] %v2496_v46  ;;  %v2522_v50 = vpop.f32.mrf.mxu1  ;;  %v5662_v46 = vld [vmem:[%s6472_s28 + $0x74c] sm:$0xf0] }
 0x1d3   : > { %3823 = vst [vmem:[%s6712_s16 + $0x120] sm:$0xff] %v2508_v47  ;;  %v5111_v56 = vor.u32 %v5662_v46, %v5110_v45  ;;  %v5142_v45 = vld [vmem:[%s6472_s28 + $0x570] sm:$0xf] }
 0x1d4   : > { %3824 = vst [vmem:[%s6712_s16 + $0x128] sm:$0xff] %v2522_v50  ;;  %5352 = vmatmul.msk.bf16.vlgmr.msrb.gmra.mxu0 %vm1991_vm0, %v6829_v60  ;;  %5353 = vmatmul.msk.bf16.vlgmr.msrb.gmra.mxu1 %vm1991_vm0, %v6829_v60  ;;  %v5112_v50 = vld [vmem:[%s6472_s28 + $0x750] sm:$0xf0]  ;;  %v5666_v46 = vld [vmem:[%s6472_s28 + $0x76c] sm:$0xf0] }
 0x1d5   : > { %5354 = vmatmul.msk.bf16.vlgmr.msrb.gmra.mxu2 %vm1991_vm0, %v6829_v60  ;;  %3065 = vmatpush.bf16.msrb.mxu0 %v5079_v55  ;;  %v5123_v55 = vor.u32 %v5599_v42, %v5120_v44  ;;  %v5115_v59 = vor.u32 %v5598_v49, %v5112_v50  ;;  %v5603_v42 = vld [vmem:[%s6472_s28 + $0x57c] sm:$0xf]  ;;  %v5602_v49 = vld [vmem:[%s6472_s28 + $0x574] sm:$0xf] }
 0x1d6   : > { %5355 = vmatmul.msk.bf16.vlgmr.msrb.gmra.mxu3 %vm1991_vm0, %v6829_v60  ;;  %3093 = vmatpush.bf16.msrb.mxu2 %v5087_v51  ;;  %v5152_v44 = vld [vmem:[%s6472_s28 + $0x778] sm:$0xf0]  ;;  %v5144_v50 = vld [vmem:[%s6472_s28 + $0x770] sm:$0xf0] }
 0x1d7   : > { %3107 = vmatpush.bf16.msrb.mxu3 %v5091_v54  ;;  %3079 = vmatpush.bf16.msrb.mxu1 %v5083_v58  ;;  %v5535_v54 = vld [vmem:[%s6472_s28 + $0x354] sm:$0xf0]  ;;  %v4608_v58 = vld [vmem:[%s6472_s28 + $0x358] sm:$0xf0] }
 0x1d8   : > { %v2536_v2 = vpop.f32.mrf.mxu2 }
 0x1d9   : > { %3825 = vst [vmem:[%s6712_s16 + $0x130] sm:$0xff] %v2536_v2  ;;  %v2550_v4 = vpop.f32.mrf.mxu3  ;;  %v2510_v5 = vpop.f32.mrf.mxu0  ;;  %3066 = vmatpush.bf16.msrb.mxu0 %v4567_v1  ;;  %v4611_v1 = vor.u32 %v5471_v57, %v4608_v58  ;;  %v4599_v2 = vor.u32 %v5534_v62, %v4598_v61  ;;  %v5475_v57 = vld [vmem:[%s6472_s28 + $0x17c] sm:$0xf]  ;;  %v5147_v61 = vor.u32 %v5602_v49, %v5144_v50  ;;  %v4630_v62 = vld [vmem:[%s6472_s28 + $0x170] sm:$0xf] }
 0x1da   : > { %3826 = vst [vmem:[%s6712_s16 + $0x138] sm:$0xff] %v2550_v4  ;;  %v2524_v6 = vpop.f32.mrf.mxu1  ;;  %3094 = vmatpush.bf16.msrb.mxu2 %v4575_v63  ;;  %v4600_v63 = vld [vmem:[%s6472_s28 + $0x350] sm:$0xf0]  ;;  %v4640_v58 = vld [vmem:[%s6472_s28 + $0x378] sm:$0xf0] }
 0x1db   : > { %3951 = vst [vmem:[%s6712_s16 + $0x520] sm:$0xff] %v2510_v5  ;;  %3108 = vmatpush.bf16.msrb.mxu3 %v4579_v0  ;;  %3080 = vmatpush.bf16.msrb.mxu1 %v4571_v3  ;;  %v4607_v0 = vor.u32 %v5535_v54, %v4606_v53  ;;  %v4603_v4 = vor.u32 %v5470_v37, %v4600_v63  ;;  %v4638_v53 = vld [vmem:[%s6472_s28 + $0x178] sm:$0xf]  ;;  %v5538_v37 = vld [vmem:[%s6472_s28 + $0x36c] sm:$0xf0] }
 0x1dc   : > { %3952 = vst [vmem:[%s6712_s16 + $0x528] sm:$0xff] %v2524_v6  ;;  %v5539_v54 = vld [vmem:[%s6472_s28 + $0x374] sm:$0xf0]  ;;  %v5474_v63 = vld [vmem:[%s6472_s28 + $0x174] sm:$0xf] }
 0x1dd   : > { %v5606_v50 = vld [vmem:[%s6472_s28 + $0x594] sm:$0xf] }
 0x1e0   : > { %v2538_v10 = vpop.f32.mrf.mxu2 }
 0x1e1   : > { %3953 = vst [vmem:[%s6712_s16 + $0x530] sm:$0xff] %v2538_v10  ;;  %v2552_v14 = vpop.f32.mrf.mxu3  ;;  %v2564_v15 = vpop.f32.mrf.mxu0  ;;  %v5601_v10 = vld [vmem:[%s6472_s28 + $0x56c] sm:$0xf] }
 0x1e2   : > { %3954 = vst [vmem:[%s6712_s16 + $0x538] sm:$0xff] %v2552_v14  ;;  %v2578_v18 = vpop.f32.mrf.mxu1  ;;  %v5664_v14 = vld [vmem:[%s6472_s28 + $0x75c] sm:$0xf0] }
 0x1e3   : > { %3827 = vst [vmem:[%s6712_s16 + $0x140] sm:$0xff] %v2564_v15  ;;  %v5127_v24 = vor.u32 %v5664_v14, %v5126_v13  ;;  %v5168_v13 = vld [vmem:[%s6472_s28 + $0x788] sm:$0xf0]  ;;  %v5158_v14 = vld [vmem:[%s6472_s28 + $0x580] sm:$0xf] }
 0x1e4   : > { %3828 = vst [vmem:[%s6712_s16 + $0x148] sm:$0xff] %v2578_v18  ;;  %5356 = vmatmul.msk.bf16.vlgmr.msra.gmra.mxu0 %vm1991_vm0, %v6829_v60  ;;  %5357 = vmatmul.msk.bf16.vlgmr.msra.gmra.mxu1 %vm1991_vm0, %v6829_v60  ;;  %v5128_v18 = vld [vmem:[%s6472_s28 + $0x760] sm:$0xf0] }
 0x1e5   : > { %5358 = vmatmul.msk.bf16.vlgmr.msra.gmra.mxu2 %vm1991_vm0, %v6829_v60  ;;  %3121 = vmatpush.bf16.msra.mxu0 %v5095_v23  ;;  %v5139_v23 = vor.u32 %v5601_v10, %v5136_v12  ;;  %v5131_v27 = vor.u32 %v5600_v17, %v5128_v18  ;;  %v5669_v10 = vld [vmem:[%s6472_s28 + $0x784] sm:$0xf0]  ;;  %v5604_v18 = vld [vmem:[%s6472_s28 + $0x584] sm:$0xf] }
 0x1e6   : > { %5359 = vmatmul.msk.bf16.vlgmr.msra.gmra.mxu3 %vm1991_vm0, %v6829_v60  ;;  %3149 = vmatpush.bf16.msra.mxu2 %v5103_v19 }
 0x1e7   : > { %3163 = vmatpush.bf16.msra.mxu3 %v5107_v22  ;;  %3135 = vmatpush.bf16.msra.mxu1 %v5099_v26  ;;  %v5537_v22 = vld [vmem:[%s6472_s28 + $0x364] sm:$0xf0]  ;;  %v4624_v26 = vld [vmem:[%s6472_s28 + $0x368] sm:$0xf0] }
 0x1e8   : > { %v2592_v34 = vpop.f32.mrf.mxu2 }
 0x1e9   : > { %3829 = vst [vmem:[%s6712_s16 + $0x150] sm:$0xff] %v2592_v34  ;;  %v2606_v36 = vpop.f32.mrf.mxu3  ;;  %v2566_v38 = vpop.f32.mrf.mxu0  ;;  %3122 = vmatpush.bf16.msra.mxu0 %v4583_v33  ;;  %v4627_v33 = vor.u32 %v5473_v25, %v4624_v26  ;;  %v4615_v34 = vor.u32 %v5536_v29, %v4614_v28  ;;  %v5477_v26 = vld [vmem:[%s6472_s28 + $0x18c] sm:$0xf]  ;;  %v4646_v29 = vld [vmem:[%s6472_s28 + $0x180] sm:$0xf] }
 0x1ea   : > { %3830 = vst [vmem:[%s6712_s16 + $0x158] sm:$0xff] %v2606_v36  ;;  %v2580_v39 = vpop.f32.mrf.mxu1  ;;  %3150 = vmatpush.bf16.msra.mxu2 %v4591_v31  ;;  %v4616_v31 = vld [vmem:[%s6472_s28 + $0x360] sm:$0xf0] }
 0x1eb   : > { %3955 = vst [vmem:[%s6712_s16 + $0x540] sm:$0xff] %v2566_v38  ;;  %3164 = vmatpush.bf16.msra.mxu3 %v4595_v32  ;;  %3136 = vmatpush.bf16.msra.mxu1 %v4587_v35  ;;  %v4623_v32 = vor.u32 %v5537_v22, %v4622_v21  ;;  %v4619_v36 = vor.u32 %v5472_v30, %v4616_v31  ;;  %v4654_v22 = vld [vmem:[%s6472_s28 + $0x188] sm:$0xf]  ;;  %v5540_v30 = vld [vmem:[%s6472_s28 + $0x37c] sm:$0xf0] }
 0x1ec   : > { %3956 = vst [vmem:[%s6712_s16 + $0x548] sm:$0xff] %v2580_v39  ;;  %v5167_v21 = vor.u32 %v5669_v10, %v5166_v9  ;;  %v5476_v31 = vld [vmem:[%s6472_s28 + $0x184] sm:$0xf]  ;;  %v5198_v10 = vld [vmem:[%s6472_s28 + $0x5a8] sm:$0xf] }
 0x1f0   : > { %v2594_v43 = vpop.f32.mrf.mxu2 }
 0x1f1   : > { %3957 = vst [vmem:[%s6712_s16 + $0x550] sm:$0xff] %v2594_v43  ;;  %v2608_v47 = vpop.f32.mrf.mxu3  ;;  %v2620_v48 = vpop.f32.mrf.mxu0 }
 0x1f2   : > { %3958 = vst [vmem:[%s6712_s16 + $0x558] sm:$0xff] %v2608_v47  ;;  %v2634_v51 = vpop.f32.mrf.mxu1 }
 0x1f3   : > { %3831 = vst [vmem:[%s6712_s16 + $0x160] sm:$0xff] %v2620_v48 }
 0x1f4   : > { %3832 = vst [vmem:[%s6712_s16 + $0x168] sm:$0xff] %v2634_v51  ;;  %5360 = vmatmul.msk.bf16.vlgmr.msrb.gmra.mxu0 %vm1991_vm0, %v6829_v60  ;;  %5361 = vmatmul.msk.bf16.vlgmr.msrb.gmra.mxu1 %vm1991_vm0, %v6829_v60 }
 0x1f5   : > { %5362 = vmatmul.msk.bf16.vlgmr.msrb.gmra.mxu2 %vm1991_vm0, %v6829_v60  ;;  %3177 = vmatpush.bf16.msrb.mxu0 %v5111_v56  ;;  %v5143_v56 = vor.u32 %v5666_v46, %v5142_v45  ;;  %v5184_v45 = vld [vmem:[%s6472_s28 + $0x798] sm:$0xf0]  ;;  %v5174_v46 = vld [vmem:[%s6472_s28 + $0x590] sm:$0xf] }
 0x1f6   : > { %5363 = vmatmul.msk.bf16.vlgmr.msrb.gmra.mxu3 %vm1991_vm0, %v6829_v60  ;;  %3205 = vmatpush.bf16.msrb.mxu2 %v5119_v52  ;;  %v5151_v52 = vor.u32 %v5667_v41, %v5150_v40  ;;  %v5182_v41 = vld [vmem:[%s6472_s28 + $0x598] sm:$0xf] }
 0x1f7   : > { %3219 = vmatpush.bf16.msrb.mxu3 %v5123_v55  ;;  %3191 = vmatpush.bf16.msrb.mxu1 %v5115_v59  ;;  %v5155_v55 = vor.u32 %v5603_v42, %v5152_v44  ;;  %v7144_v59 = vld [vmem:[%s7582_s0] sm:$0xff]  ;;  %v5671_v42 = vld [vmem:[%s6472_s28 + $0x794] sm:$0xf0] }
 0x1f8   : > { %v2648_v3 = vpop.f32.mrf.mxu2 }
 0x1f9   : > { %3833 = vst [vmem:[%s6712_s16 + $0x170] sm:$0xff] %v2648_v3  ;;  %v2662_v5 = vpop.f32.mrf.mxu3  ;;  %v2622_v6 = vpop.f32.mrf.mxu0  ;;  %3178 = vmatpush.bf16.msrb.mxu0 %v4599_v2  ;;  %v4643_v2 = vor.u32 %v5475_v57, %v4640_v58  ;;  %v4631_v3 = vor.u32 %v5538_v37, %v4630_v62  ;;  %v5479_v58 = vld [vmem:[%s6472_s28 + $0x19c] sm:$0xf]  ;;  %v4662_v37 = vld [vmem:[%s6472_s28 + $0x190] sm:$0xf] }
 0x1fa   : > { %3834 = vst [vmem:[%s6712_s16 + $0x178] sm:$0xff] %v2662_v5  ;;  %v2636_v7 = vpop.f32.mrf.mxu1  ;;  %3206 = vmatpush.bf16.msrb.mxu2 %v4607_v0  ;;  %v4632_v0 = vld [vmem:[%s6472_s28 + $0x370] sm:$0xf0] }
 0x1fb   : > { %3959 = vst [vmem:[%s6712_s16 + $0x560] sm:$0xff] %v2622_v6  ;;  %3220 = vmatpush.bf16.msrb.mxu3 %v4611_v1  ;;  %3192 = vmatpush.bf16.msrb.mxu1 %v4603_v4  ;;  %v4639_v1 = vor.u32 %v5539_v54, %v4638_v53  ;;  %v4635_v5 = vor.u32 %v5474_v63, %v4632_v0  ;;  %v4670_v54 = vld [vmem:[%s6472_s28 + $0x198] sm:$0xf]  ;;  %v5542_v63 = vld [vmem:[%s6472_s28 + $0x38c] sm:$0xf0] }
 0x1fc   : > { %3960 = vst [vmem:[%s6712_s16 + $0x568] sm:$0xff] %v2636_v7  ;;  %v5183_v53 = vor.u32 %v5671_v42, %v5182_v41  ;;  %v5478_v0 = vld [vmem:[%s6472_s28 + $0x194] sm:$0xf]  ;;  %v5214_v42 = vld [vmem:[%s6472_s28 + $0x5b8] sm:$0xf] }
 0x200   : > { %v2650_v11 = vpop.f32.mrf.mxu2 }
 0x201   : > { %3961 = vst [vmem:[%s6712_s16 + $0x570] sm:$0xff] %v2650_v11  ;;  %v2664_v15 = vpop.f32.mrf.mxu3  ;;  %v2676_v16 = vpop.f32.mrf.mxu0  ;;  %v5605_v11 = vld [vmem:[%s6472_s28 + $0x58c] sm:$0xf] }
 0x202   : > { %3962 = vst [vmem:[%s6712_s16 + $0x578] sm:$0xff] %v2664_v15  ;;  %v2690_v19 = vpop.f32.mrf.mxu1  ;;  %v5668_v15 = vld [vmem:[%s6472_s28 + $0x77c] sm:$0xf0] }
 0x203   : > { %3835 = vst [vmem:[%s6712_s16 + $0x180] sm:$0xff] %v2676_v16  ;;  %v5159_v25 = vor.u32 %v5668_v15, %v5158_v14  ;;  %v5200_v14 = vld [vmem:[%s6472_s28 + $0x7a8] sm:$0xf0]  ;;  %v5190_v15 = vld [vmem:[%s6472_s28 + $0x5a0] sm:$0xf] }
 0x204   : > { %3836 = vst [vmem:[%s6712_s16 + $0x188] sm:$0xff] %v2690_v19  ;;  %5364 = vmatmul.msk.bf16.vlgmr.msra.gmra.mxu0 %vm1991_vm0, %v6829_v60  ;;  %5365 = vmatmul.msk.bf16.vlgmr.msra.gmra.mxu1 %vm1991_vm0, %v6829_v60  ;;  %v5160_v19 = vld [vmem:[%s6472_s28 + $0x780] sm:$0xf0] }
 0x205   : > { %5366 = vmatmul.msk.bf16.vlgmr.msra.gmra.mxu2 %vm1991_vm0, %v6829_v60  ;;  %3233 = vmatpush.bf16.msra.mxu0 %v5127_v24  ;;  %v5171_v24 = vor.u32 %v5605_v11, %v5168_v13  ;;  %v5163_v28 = vor.u32 %v5604_v18, %v5160_v19  ;;  %v5673_v11 = vld [vmem:[%s6472_s28 + $0x7a4] sm:$0xf0]  ;;  %v5608_v19 = vld [vmem:[%s6472_s28 + $0x5a4] sm:$0xf] }
 0x206   : > { %5367 = vmatmul.msk.bf16.vlgmr.msra.gmra.mxu3 %vm1991_vm0, %v6829_v60  ;;  %3261 = vmatpush.bf16.msra.mxu2 %v5135_v20 }
 0x207   : > { %3275 = vmatpush.bf16.msra.mxu3 %v5139_v23  ;;  %3247 = vmatpush.bf16.msra.mxu1 %v5131_v27  ;;  %v5541_v23 = vld [vmem:[%s6472_s28 + $0x384] sm:$0xf0]  ;;  %v4656_v27 = vld [vmem:[%s6472_s28 + $0x388] sm:$0xf0] }
 0x208   : > { %v2704_v35 = vpop.f32.mrf.mxu2 }
 0x209   : > { %3837 = vst [vmem:[%s6712_s16 + $0x190] sm:$0xff] %v2704_v35  ;;  %v2718_v38 = vpop.f32.mrf.mxu3  ;;  %v2678_v60 = vpop.f32.mrf.mxu0  ;;  %3234 = vmatpush.bf16.msra.mxu0 %v4615_v34  ;;  %v4659_v34 = vor.u32 %v5477_v26, %v4656_v27  ;;  %v4647_v35 = vor.u32 %v5540_v30, %v4646_v29  ;;  %v5481_v27 = vld [vmem:[%s6472_s28 + $0x1ac] sm:$0xf]  ;;  %v4678_v30 = vld [vmem:[%s6472_s28 + $0x1a0] sm:$0xf] }
 0x20a   : > { %3838 = vst [vmem:[%s6712_s16 + $0x198] sm:$0xff] %v2718_v38  ;;  %v2692_v39 = vpop.f32.mrf.mxu1  ;;  %3262 = vmatpush.bf16.msra.mxu2 %v4623_v32  ;;  %v4648_v32 = vld [vmem:[%s6472_s28 + $0x380] sm:$0xf0] }
 0x20b   : > { %3963 = vst [vmem:[%s6712_s16 + $0x580] sm:$0xff] %v2678_v60  ;;  %3276 = vmatpush.bf16.msra.mxu3 %v4627_v33  ;;  %3248 = vmatpush.bf16.msra.mxu1 %v4619_v36  ;;  %v4655_v33 = vor.u32 %v5541_v23, %v4654_v22  ;;  %v4651_v38 = vor.u32 %v5476_v31, %v4648_v32  ;;  %v4686_v23 = vld [vmem:[%s6472_s28 + $0x1a8] sm:$0xf]  ;;  %v5544_v31 = vld [vmem:[%s6472_s28 + $0x39c] sm:$0xf0] }
 0x20c   : > { %3964 = vst [vmem:[%s6712_s16 + $0x588] sm:$0xff] %v2692_v39  ;;  %v5199_v22 = vor.u32 %v5673_v11, %v5198_v10  ;;  %v5480_v32 = vld [vmem:[%s6472_s28 + $0x1a4] sm:$0xf]  ;;  %v5230_v11 = vld [vmem:[%s6472_s28 + $0x5c8] sm:$0xf] }
 0x210   : > { %v2706_v43 = vpop.f32.mrf.mxu2 }
 0x211   : > { %3965 = vst [vmem:[%s6712_s16 + $0x590] sm:$0xff] %v2706_v43  ;;  %v2720_v47 = vpop.f32.mrf.mxu3  ;;  %v2732_v48 = vpop.f32.mrf.mxu0  ;;  %v5607_v43 = vld [vmem:[%s6472_s28 + $0x59c] sm:$0xf] }
 0x212   : > { %3966 = vst [vmem:[%s6712_s16 + $0x598] sm:$0xff] %v2720_v47  ;;  %v2746_v51 = vpop.f32.mrf.mxu1  ;;  %v5670_v47 = vld [vmem:[%s6472_s28 + $0x78c] sm:$0xf0] }
 0x213   : > { %3839 = vst [vmem:[%s6712_s16 + $0x1a0] sm:$0xff] %v2732_v48  ;;  %v5175_v57 = vor.u32 %v5670_v47, %v5174_v46  ;;  %v5216_v46 = vld [vmem:[%s6472_s28 + $0x7b8] sm:$0xf0]  ;;  %v5206_v47 = vld [vmem:[%s6472_s28 + $0x5b0] sm:$0xf] }
 0x214   : > { %3840 = vst [vmem:[%s6712_s16 + $0x1a8] sm:$0xff] %v2746_v51  ;;  %5368 = vmatmul.msk.bf16.vlgmr.msrb.gmra.mxu0 %vm1991_vm0, %v7144_v59  ;;  %5369 = vmatmul.msk.bf16.vlgmr.msrb.gmra.mxu1 %vm1991_vm0, %v7144_v59  ;;  %v5176_v51 = vld [vmem:[%s6472_s28 + $0x790] sm:$0xf0] }
 0x215   : > { %5370 = vmatmul.msk.bf16.vlgmr.msrb.gmra.mxu2 %vm1991_vm0, %v7144_v59  ;;  %3289 = vmatpush.bf16.msrb.mxu0 %v5143_v56  ;;  %v5187_v56 = vor.u32 %v5607_v43, %v5184_v45  ;;  %v5179_v62 = vor.u32 %v5606_v50, %v5176_v51  ;;  %v5675_v43 = vld [vmem:[%s6472_s28 + $0x7b4] sm:$0xf0]  ;;  %v5610_v51 = vld [vmem:[%s6472_s28 + $0x5b4] sm:$0xf] }
 0x216   : > { %5371 = vmatmul.msk.bf16.vlgmr.msrb.gmra.mxu3 %vm1991_vm0, %v7144_v59  ;;  %3317 = vmatpush.bf16.msrb.mxu2 %v5151_v52 }
 0x217   : > { %3331 = vmatpush.bf16.msrb.mxu3 %v5155_v55  ;;  %3303 = vmatpush.bf16.msrb.mxu1 %v5147_v61  ;;  %v5543_v55 = vld [vmem:[%s6472_s28 + $0x394] sm:$0xf0]  ;;  %v4672_v61 = vld [vmem:[%s6472_s28 + $0x398] sm:$0xf0] }
 0x218   : > { %v2760_v4 = vpop.f32.mrf.mxu2 }
 0x219   : > { %3841 = vst [vmem:[%s6712_s16 + $0x1b0] sm:$0xff] %v2760_v4  ;;  %v2774_v6 = vpop.f32.mrf.mxu3  ;;  %v2734_v7 = vpop.f32.mrf.mxu0  ;;  %3290 = vmatpush.bf16.msrb.mxu0 %v4631_v3  ;;  %v4675_v3 = vor.u32 %v5479_v58, %v4672_v61  ;;  %v4663_v4 = vor.u32 %v5542_v63, %v4662_v37  ;;  %v5483_v61 = vld [vmem:[%s6472_s28 + $0x1bc] sm:$0xf]  ;;  %v4694_v63 = vld [vmem:[%s6472_s28 + $0x1b0] sm:$0xf] }
 0x21a   : > { %3842 = vst [vmem:[%s6712_s16 + $0x1b8] sm:$0xff] %v2774_v6  ;;  %v2748_v8 = vpop.f32.mrf.mxu1  ;;  %3318 = vmatpush.bf16.msrb.mxu2 %v4639_v1  ;;  %v4664_v1 = vld [vmem:[%s6472_s28 + $0x390] sm:$0xf0] }
 0x21b   : > { %3967 = vst [vmem:[%s6712_s16 + $0x5a0] sm:$0xff] %v2734_v7  ;;  %3332 = vmatpush.bf16.msrb.mxu3 %v4643_v2  ;;  %3304 = vmatpush.bf16.msrb.mxu1 %v4635_v5  ;;  %v4671_v2 = vor.u32 %v5543_v55, %v4670_v54  ;;  %v4667_v6 = vor.u32 %v5478_v0, %v4664_v1  ;;  %v4702_v55 = vld [vmem:[%s6472_s28 + $0x1b8] sm:$0xf]  ;;  %v5546_v0 = vld [vmem:[%s6472_s28 + $0x3ac] sm:$0xf0] }
 0x21c   : > { %3968 = vst [vmem:[%s6712_s16 + $0x5a8] sm:$0xff] %v2748_v8  ;;  %v5215_v54 = vor.u32 %v5675_v43, %v5214_v42  ;;  %v5482_v1 = vld [vmem:[%s6472_s28 + $0x1b4] sm:$0xf]  ;;  %v5246_v43 = vld [vmem:[%s6472_s28 + $0x5d8] sm:$0xf] }
 0x220   : > { %v2762_v12 = vpop.f32.mrf.mxu2 }
 0x221   : > { %3969 = vst [vmem:[%s6712_s16 + $0x5b0] sm:$0xff] %v2762_v12  ;;  %v2776_v16 = vpop.f32.mrf.mxu3  ;;  %v2788_v17 = vpop.f32.mrf.mxu0  ;;  %v5609_v12 = vld [vmem:[%s6472_s28 + $0x5ac] sm:$0xf] }
 0x222   : > { %3970 = vst [vmem:[%s6712_s16 + $0x5b8] sm:$0xff] %v2776_v16  ;;  %v2802_v20 = vpop.f32.mrf.mxu1  ;;  %v5672_v16 = vld [vmem:[%s6472_s28 + $0x79c] sm:$0xf0] }
 0x223   : > { %3843 = vst [vmem:[%s6712_s16 + $0x1c0] sm:$0xff] %v2788_v17  ;;  %v5191_v26 = vor.u32 %v5672_v16, %v5190_v15  ;;  %v5232_v15 = vld [vmem:[%s6472_s28 + $0x7c8] sm:$0xf0]  ;;  %v5222_v16 = vld [vmem:[%s6472_s28 + $0x5c0] sm:$0xf] }
 0x224   : > { %3844 = vst [vmem:[%s6712_s16 + $0x1c8] sm:$0xff] %v2802_v20  ;;  %5372 = vmatmul.msk.bf16.vlgmr.msra.gmra.mxu0 %vm1991_vm0, %v7144_v59  ;;  %5373 = vmatmul.msk.bf16.vlgmr.msra.gmra.mxu1 %vm1991_vm0, %v7144_v59  ;;  %v5192_v20 = vld [vmem:[%s6472_s28 + $0x7a0] sm:$0xf0] }
 0x225   : > { %5374 = vmatmul.msk.bf16.vlgmr.msra.gmra.mxu2 %vm1991_vm0, %v7144_v59  ;;  %3345 = vmatpush.bf16.msra.mxu0 %v5159_v25  ;;  %v5203_v25 = vor.u32 %v5609_v12, %v5200_v14  ;;  %v5195_v29 = vor.u32 %v5608_v19, %v5192_v20  ;;  %v5677_v12 = vld [vmem:[%s6472_s28 + $0x7c4] sm:$0xf0]  ;;  %v5612_v20 = vld [vmem:[%s6472_s28 + $0x5c4] sm:$0xf] }
 0x226   : > { %5375 = vmatmul.msk.bf16.vlgmr.msra.gmra.mxu3 %vm1991_vm0, %v7144_v59  ;;  %3373 = vmatpush.bf16.msra.mxu2 %v5167_v21 }
 0x227   : > { %3387 = vmatpush.bf16.msra.mxu3 %v5171_v24  ;;  %3359 = vmatpush.bf16.msra.mxu1 %v5163_v28  ;;  %v5545_v24 = vld [vmem:[%s6472_s28 + $0x3a4] sm:$0xf0]  ;;  %v4688_v28 = vld [vmem:[%s6472_s28 + $0x3a8] sm:$0xf0] }
 0x228   : > { %v2816_v36 = vpop.f32.mrf.mxu2 }
 0x229   : > { %3845 = vst [vmem:[%s6712_s16 + $0x1d0] sm:$0xff] %v2816_v36  ;;  %v2830_v60 = vpop.f32.mrf.mxu3  ;;  %v2790_v39 = vpop.f32.mrf.mxu0  ;;  %3346 = vmatpush.bf16.msra.mxu0 %v4647_v35  ;;  %v4691_v35 = vor.u32 %v5481_v27, %v4688_v28  ;;  %v4679_v36 = vor.u32 %v5544_v31, %v4678_v30  ;;  %v5485_v28 = vld [vmem:[%s6472_s28 + $0x1cc] sm:$0xf]  ;;  %v4710_v31 = vld [vmem:[%s6472_s28 + $0x1c0] sm:$0xf] }
 0x22a   : > { %3846 = vst [vmem:[%s6712_s16 + $0x1d8] sm:$0xff] %v2830_v60  ;;  %v2804_v40 = vpop.f32.mrf.mxu1  ;;  %3374 = vmatpush.bf16.msra.mxu2 %v4655_v33  ;;  %v4680_v33 = vld [vmem:[%s6472_s28 + $0x3a0] sm:$0xf0] }
 0x22b   : > { %3971 = vst [vmem:[%s6712_s16 + $0x5c0] sm:$0xff] %v2790_v39  ;;  %3388 = vmatpush.bf16.msra.mxu3 %v4659_v34  ;;  %3360 = vmatpush.bf16.msra.mxu1 %v4651_v38  ;;  %v4687_v34 = vor.u32 %v5545_v24, %v4686_v23  ;;  %v4683_v60 = vor.u32 %v5480_v32, %v4680_v33  ;;  %v4718_v24 = vld [vmem:[%s6472_s28 + $0x1c8] sm:$0xf]  ;;  %v5548_v32 = vld [vmem:[%s6472_s28 + $0x3bc] sm:$0xf0] }
 0x22c   : > { %3972 = vst [vmem:[%s6712_s16 + $0x5c8] sm:$0xff] %v2804_v40  ;;  %v5231_v23 = vor.u32 %v5677_v12, %v5230_v11  ;;  %v5484_v33 = vld [vmem:[%s6472_s28 + $0x1c4] sm:$0xf]  ;;  %v5262_v12 = vld [vmem:[%s6472_s28 + $0x5e8] sm:$0xf] }
 0x230   : > { %v2818_v44 = vpop.f32.mrf.mxu2 }
 0x231   : > { %3973 = vst [vmem:[%s6712_s16 + $0x5d0] sm:$0xff] %v2818_v44  ;;  %v2832_v48 = vpop.f32.mrf.mxu3  ;;  %v2844_v49 = vpop.f32.mrf.mxu0  ;;  %v5611_v44 = vld [vmem:[%s6472_s28 + $0x5bc] sm:$0xf] }
 0x232   : > { %3974 = vst [vmem:[%s6712_s16 + $0x5d8] sm:$0xff] %v2832_v48  ;;  %v2858_v52 = vpop.f32.mrf.mxu1  ;;  %v5674_v48 = vld [vmem:[%s6472_s28 + $0x7ac] sm:$0xf0] }
 0x233   : > { %3847 = vst [vmem:[%s6712_s16 + $0x1e0] sm:$0xff] %v2844_v49  ;;  %v5207_v58 = vor.u32 %v5674_v48, %v5206_v47  ;;  %v5248_v47 = vld [vmem:[%s6472_s28 + $0x7d8] sm:$0xf0]  ;;  %v5238_v48 = vld [vmem:[%s6472_s28 + $0x5d0] sm:$0xf] }
 0x234   : > { %3848 = vst [vmem:[%s6712_s16 + $0x1e8] sm:$0xff] %v2858_v52  ;;  %5376 = vmatmul.msk.bf16.vlgmr.msrb.gmra.mxu0 %vm1991_vm0, %v7144_v59  ;;  %5377 = vmatmul.msk.bf16.vlgmr.msrb.gmra.mxu1 %vm1991_vm0, %v7144_v59  ;;  %v5208_v52 = vld [vmem:[%s6472_s28 + $0x7b0] sm:$0xf0] }
 0x235   : > { %5378 = vmatmul.msk.bf16.vlgmr.msrb.gmra.mxu2 %vm1991_vm0, %v7144_v59  ;;  %3401 = vmatpush.bf16.msrb.mxu0 %v5175_v57  ;;  %v5219_v57 = vor.u32 %v5611_v44, %v5216_v46  ;;  %v5211_v37 = vor.u32 %v5610_v51, %v5208_v52  ;;  %v5679_v44 = vld [vmem:[%s6472_s28 + $0x7d4] sm:$0xf0]  ;;  %v5614_v52 = vld [vmem:[%s6472_s28 + $0x5d4] sm:$0xf] }
 0x236   : > { %5379 = vmatmul.msk.bf16.vlgmr.msrb.gmra.mxu3 %vm1991_vm0, %v7144_v59  ;;  %3429 = vmatpush.bf16.msrb.mxu2 %v5183_v53 }
 0x237   : > { %3443 = vmatpush.bf16.msrb.mxu3 %v5187_v56  ;;  %3415 = vmatpush.bf16.msrb.mxu1 %v5179_v62  ;;  %v5547_v56 = vld [vmem:[%s6472_s28 + $0x3b4] sm:$0xf0]  ;;  %v4704_v62 = vld [vmem:[%s6472_s28 + $0x3b8] sm:$0xf0] }
 0x238   : > { %v2872_v5 = vpop.f32.mrf.mxu2 }
 0x239   : > { %3849 = vst [vmem:[%s6712_s16 + $0x1f0] sm:$0xff] %v2872_v5  ;;  %v2886_v7 = vpop.f32.mrf.mxu3  ;;  %v2846_v8 = vpop.f32.mrf.mxu0  ;;  %3402 = vmatpush.bf16.msrb.mxu0 %v4663_v4  ;;  %v4707_v4 = vor.u32 %v5483_v61, %v4704_v62  ;;  %v4695_v5 = vor.u32 %v5546_v0, %v4694_v63  ;;  %v5487_v62 = vld [vmem:[%s6472_s28 + $0x1dc] sm:$0xf]  ;;  %v4726_v0 = vld [vmem:[%s6472_s28 + $0x1d0] sm:$0xf] }
 0x23a   : > { %3850 = vst [vmem:[%s6712_s16 + $0x1f8] sm:$0xff] %v2886_v7  ;;  %v2860_v9 = vpop.f32.mrf.mxu1  ;;  %3430 = vmatpush.bf16.msrb.mxu2 %v4671_v2  ;;  %v4696_v2 = vld [vmem:[%s6472_s28 + $0x3b0] sm:$0xf0] }
 0x23b   : > { %3975 = vst [vmem:[%s6712_s16 + $0x5e0] sm:$0xff] %v2846_v8  ;;  %3444 = vmatpush.bf16.msrb.mxu3 %v4675_v3  ;;  %3416 = vmatpush.bf16.msrb.mxu1 %v4667_v6  ;;  %v4703_v3 = vor.u32 %v5547_v56, %v4702_v55  ;;  %v4699_v7 = vor.u32 %v5482_v1, %v4696_v2  ;;  %v4734_v56 = vld [vmem:[%s6472_s28 + $0x1d8] sm:$0xf]  ;;  %v5550_v1 = vld [vmem:[%s6472_s28 + $0x3cc] sm:$0xf0] }
 0x23c   : > { %3976 = vst [vmem:[%s6712_s16 + $0x5e8] sm:$0xff] %v2860_v9  ;;  %v5247_v55 = vor.u32 %v5679_v44, %v5246_v43  ;;  %v5486_v2 = vld [vmem:[%s6472_s28 + $0x1d4] sm:$0xf]  ;;  %v5278_v44 = vld [vmem:[%s6472_s28 + $0x5f8] sm:$0xf] }
 0x240   : > { %v2874_v13 = vpop.f32.mrf.mxu2 }
 0x241   : > { %3977 = vst [vmem:[%s6712_s16 + $0x5f0] sm:$0xff] %v2874_v13  ;;  %v2888_v17 = vpop.f32.mrf.mxu3  ;;  %v2900_v18 = vpop.f32.mrf.mxu0  ;;  %v5613_v13 = vld [vmem:[%s6472_s28 + $0x5cc] sm:$0xf] }
 0x242   : > { %3978 = vst [vmem:[%s6712_s16 + $0x5f8] sm:$0xff] %v2888_v17  ;;  %v2914_v21 = vpop.f32.mrf.mxu1  ;;  %v5676_v17 = vld [vmem:[%s6472_s28 + $0x7bc] sm:$0xf0] }
 0x243   : > { %3851 = vst [vmem:[%s6712_s16 + $0x200] sm:$0xff] %v2900_v18  ;;  %v5223_v27 = vor.u32 %v5676_v17, %v5222_v16  ;;  %v5264_v16 = vld [vmem:[%s6472_s28 + $0x7e8] sm:$0xf0]  ;;  %v5254_v17 = vld [vmem:[%s6472_s28 + $0x5e0] sm:$0xf] }
 0x244   : > { %3852 = vst [vmem:[%s6712_s16 + $0x208] sm:$0xff] %v2914_v21  ;;  %5380 = vmatmul.msk.bf16.vlgmr.msra.gmra.mxu0 %vm1991_vm0, %v7144_v59  ;;  %5381 = vmatmul.msk.bf16.vlgmr.msra.gmra.mxu1 %vm1991_vm0, %v7144_v59  ;;  %v5224_v21 = vld [vmem:[%s6472_s28 + $0x7c0] sm:$0xf0] }
 0x245   : > { %5382 = vmatmul.msk.bf16.vlgmr.msra.gmra.mxu2 %vm1991_vm0, %v7144_v59  ;;  %3457 = vmatpush.bf16.msra.mxu0 %v5191_v26  ;;  %v5235_v26 = vor.u32 %v5613_v13, %v5232_v15  ;;  %v5227_v30 = vor.u32 %v5612_v20, %v5224_v21  ;;  %v5681_v13 = vld [vmem:[%s6472_s28 + $0x7e4] sm:$0xf0]  ;;  %v5616_v21 = vld [vmem:[%s6472_s28 + $0x5e4] sm:$0xf] }
 0x246   : > { %5383 = vmatmul.msk.bf16.vlgmr.msra.gmra.mxu3 %vm1991_vm0, %v7144_v59  ;;  %3485 = vmatpush.bf16.msra.mxu2 %v5199_v22 }
 0x247   : > { %3499 = vmatpush.bf16.msra.mxu3 %v5203_v25  ;;  %3471 = vmatpush.bf16.msra.mxu1 %v5195_v29  ;;  %v5549_v25 = vld [vmem:[%s6472_s28 + $0x3c4] sm:$0xf0]  ;;  %v4720_v29 = vld [vmem:[%s6472_s28 + $0x3c8] sm:$0xf0] }
 0x248   : > { %v2928_v38 = vpop.f32.mrf.mxu2 }
 0x249   : > { %3853 = vst [vmem:[%s6712_s16 + $0x210] sm:$0xff] %v2928_v38  ;;  %v2942_v39 = vpop.f32.mrf.mxu3  ;;  %v2902_v40 = vpop.f32.mrf.mxu0  ;;  %3458 = vmatpush.bf16.msra.mxu0 %v4679_v36  ;;  %v4723_v36 = vor.u32 %v5485_v28, %v4720_v29  ;;  %v4711_v38 = vor.u32 %v5548_v32, %v4710_v31  ;;  %v5489_v29 = vld [vmem:[%s6472_s28 + $0x1ec] sm:$0xf]  ;;  %v4742_v32 = vld [vmem:[%s6472_s28 + $0x1e0] sm:$0xf] }
 0x24a   : > { %3854 = vst [vmem:[%s6712_s16 + $0x218] sm:$0xff] %v2942_v39  ;;  %v2916_v41 = vpop.f32.mrf.mxu1  ;;  %3486 = vmatpush.bf16.msra.mxu2 %v4687_v34  ;;  %v4712_v34 = vld [vmem:[%s6472_s28 + $0x3c0] sm:$0xf0] }
 0x24b   : > { %3979 = vst [vmem:[%s6712_s16 + $0x600] sm:$0xff] %v2902_v40  ;;  %3500 = vmatpush.bf16.msra.mxu3 %v4691_v35  ;;  %3472 = vmatpush.bf16.msra.mxu1 %v4683_v60  ;;  %v4719_v35 = vor.u32 %v5549_v25, %v4718_v24  ;;  %v4715_v39 = vor.u32 %v5484_v33, %v4712_v34  ;;  %v4750_v25 = vld [vmem:[%s6472_s28 + $0x1e8] sm:$0xf]  ;;  %v5552_v33 = vld [vmem:[%s6472_s28 + $0x3dc] sm:$0xf0] }
 0x24c   : > { %3980 = vst [vmem:[%s6712_s16 + $0x608] sm:$0xff] %v2916_v41  ;;  %v5263_v24 = vor.u32 %v5681_v13, %v5262_v12  ;;  %v5488_v34 = vld [vmem:[%s6472_s28 + $0x1e4] sm:$0xf] }
 0x250   : > { %v2930_v45 = vpop.f32.mrf.mxu2 }
 0x251   : > { %3981 = vst [vmem:[%s6712_s16 + $0x610] sm:$0xff] %v2930_v45  ;;  %v2944_v49 = vpop.f32.mrf.mxu3  ;;  %v2956_v50 = vpop.f32.mrf.mxu0  ;;  %v5615_v45 = vld [vmem:[%s6472_s28 + $0x5dc] sm:$0xf] }
 0x252   : > { %3982 = vst [vmem:[%s6712_s16 + $0x618] sm:$0xff] %v2944_v49  ;;  %v2970_v53 = vpop.f32.mrf.mxu1  ;;  %v5678_v49 = vld [vmem:[%s6472_s28 + $0x7cc] sm:$0xf0] }
 0x253   : > { %3855 = vst [vmem:[%s6712_s16 + $0x220] sm:$0xff] %v2956_v50  ;;  %v5239_v61 = vor.u32 %v5678_v49, %v5238_v48  ;;  %v5280_v48 = vld [vmem:[%s6472_s28 + $0x7f8] sm:$0xf0]  ;;  %v5270_v49 = vld [vmem:[%s6472_s28 + $0x5f0] sm:$0xf] }
 0x254   : > { %3856 = vst [vmem:[%s6712_s16 + $0x228] sm:$0xff] %v2970_v53  ;;  %5384 = vmatmul.msk.bf16.vlgmr.msrb.gmra.mxu0 %vm1991_vm0, %v7144_v59  ;;  %5385 = vmatmul.msk.bf16.vlgmr.msrb.gmra.mxu1 %vm1991_vm0, %v7144_v59  ;;  %v5240_v53 = vld [vmem:[%s6472_s28 + $0x7d0] sm:$0xf0] }
 0x255   : > { %5386 = vmatmul.msk.bf16.vlgmr.msrb.gmra.mxu2 %vm1991_vm0, %v7144_v59  ;;  %3513 = vmatpush.bf16.msrb.mxu0 %v5207_v58  ;;  %v5251_v58 = vor.u32 %v5615_v45, %v5248_v47  ;;  %v5243_v63 = vor.u32 %v5614_v52, %v5240_v53  ;;  %v5683_v45 = vld [vmem:[%s6472_s28 + $0x7f4] sm:$0xf0]  ;;  %v5618_v53 = vld [vmem:[%s6472_s28 + $0x5f4] sm:$0xf] }
 0x256   : > { %5387 = vmatmul.msk.bf16.vlgmr.msrb.gmra.mxu3 %vm1991_vm0, %v7144_v59  ;;  %3541 = vmatpush.bf16.msrb.mxu2 %v5215_v54 }
 0x257   : > { %3555 = vmatpush.bf16.msrb.mxu3 %v5219_v57  ;;  %3527 = vmatpush.bf16.msrb.mxu1 %v5211_v37  ;;  %v5551_v57 = vld [vmem:[%s6472_s28 + $0x3d4] sm:$0xf0]  ;;  %v4736_v37 = vld [vmem:[%s6472_s28 + $0x3d8] sm:$0xf0] }
 0x258   : > { %v2984_v6 = vpop.f32.mrf.mxu2 }
 0x259   : > { %3857 = vst [vmem:[%s6712_s16 + $0x230] sm:$0xff] %v2984_v6  ;;  %v2998_v8 = vpop.f32.mrf.mxu3  ;;  %v2958_v9 = vpop.f32.mrf.mxu0  ;;  %3514 = vmatpush.bf16.msrb.mxu0 %v4695_v5  ;;  %v4739_v5 = vor.u32 %v5487_v62, %v4736_v37  ;;  %v4727_v6 = vor.u32 %v5550_v1, %v4726_v0  ;;  %v5491_v37 = vld [vmem:[%s6472_s28 + $0x1fc] sm:$0xf]  ;;  %v4758_v1 = vld [vmem:[%s6472_s28 + $0x1f0] sm:$0xf] }
 0x25a   : > { %3858 = vst [vmem:[%s6712_s16 + $0x238] sm:$0xff] %v2998_v8  ;;  %v2972_v10 = vpop.f32.mrf.mxu1  ;;  %3542 = vmatpush.bf16.msrb.mxu2 %v4703_v3  ;;  %v4728_v3 = vld [vmem:[%s6472_s28 + $0x3d0] sm:$0xf0] }
 0x25b   : > { %3983 = vst [vmem:[%s6712_s16 + $0x620] sm:$0xff] %v2958_v9  ;;  %3556 = vmatpush.bf16.msrb.mxu3 %v4707_v4  ;;  %3528 = vmatpush.bf16.msrb.mxu1 %v4699_v7  ;;  %v4735_v4 = vor.u32 %v5551_v57, %v4734_v56  ;;  %v4731_v8 = vor.u32 %v5486_v2, %v4728_v3  ;;  %v4766_v57 = vld [vmem:[%s6472_s28 + $0x1f8] sm:$0xf]  ;;  %v5554_v2 = vld [vmem:[%s6472_s28 + $0x3ec] sm:$0xf0] }
 0x25c   : > { %3984 = vst [vmem:[%s6712_s16 + $0x628] sm:$0xff] %v2972_v10  ;;  %v5279_v56 = vor.u32 %v5683_v45, %v5278_v44  ;;  %v5490_v3 = vld [vmem:[%s6472_s28 + $0x1f4] sm:$0xf] }
 0x260   : > { %v2986_v14 = vpop.f32.mrf.mxu2 }
 0x261   : > { %3985 = vst [vmem:[%s6712_s16 + $0x630] sm:$0xff] %v2986_v14  ;;  %v3000_v18 = vpop.f32.mrf.mxu3  ;;  %v3012_v19 = vpop.f32.mrf.mxu0  ;;  %v5617_v14 = vld [vmem:[%s6472_s28 + $0x5ec] sm:$0xf] }
 0x262   : > { %3986 = vst [vmem:[%s6712_s16 + $0x638] sm:$0xff] %v3000_v18  ;;  %v3026_v22 = vpop.f32.mrf.mxu1  ;;  %v5680_v18 = vld [vmem:[%s6472_s28 + $0x7dc] sm:$0xf0] }
 0x263   : > { %3859 = vst [vmem:[%s6712_s16 + $0x240] sm:$0xff] %v3012_v19  ;;  %v5255_v28 = vor.u32 %v5680_v18, %v5254_v17 }
 0x264   : > { %3860 = vst [vmem:[%s6712_s16 + $0x248] sm:$0xff] %v3026_v22  ;;  %5388 = vmatmul.msk.bf16.vlgmr.msra.gmra.mxu0 %vm1991_vm0, %v7144_v59  ;;  %5389 = vmatmul.msk.bf16.vlgmr.msra.gmra.mxu1 %vm1991_vm0, %v7144_v59  ;;  %v5256_v22 = vld [vmem:[%s6472_s28 + $0x7e0] sm:$0xf0] }
 0x265   : > { %5390 = vmatmul.msk.bf16.vlgmr.msra.gmra.mxu2 %vm1991_vm0, %v7144_v59  ;;  %3569 = vmatpush.bf16.msra.mxu0 %v5223_v27  ;;  %v5267_v27 = vor.u32 %v5617_v14, %v5264_v16  ;;  %v5259_v31 = vor.u32 %v5616_v21, %v5256_v22 }
 0x266   : > { %5391 = vmatmul.msk.bf16.vlgmr.msra.gmra.mxu3 %vm1991_vm0, %v7144_v59  ;;  %3597 = vmatpush.bf16.msra.mxu2 %v5231_v23 }
 0x267   : > { %3611 = vmatpush.bf16.msra.mxu3 %v5235_v26  ;;  %3583 = vmatpush.bf16.msra.mxu1 %v5227_v30  ;;  %v5553_v26 = vld [vmem:[%s6472_s28 + $0x3e4] sm:$0xf0]  ;;  %v4752_v30 = vld [vmem:[%s6472_s28 + $0x3e8] sm:$0xf0] }
 0x268   : > { %v3040_v60 = vpop.f32.mrf.mxu2 }
 0x269   : > { %3861 = vst [vmem:[%s6712_s16 + $0x250] sm:$0xff] %v3040_v60  ;;  %v3054_v40 = vpop.f32.mrf.mxu3  ;;  %v3014_v41 = vpop.f32.mrf.mxu0  ;;  %3570 = vmatpush.bf16.msra.mxu0 %v4711_v38  ;;  %v4755_v38 = vor.u32 %v5489_v29, %v4752_v30  ;;  %v4743_v60 = vor.u32 %v5552_v33, %v4742_v32 }
 0x26a   : > { %3862 = vst [vmem:[%s6712_s16 + $0x258] sm:$0xff] %v3054_v40  ;;  %v3028_v42 = vpop.f32.mrf.mxu1  ;;  %3598 = vmatpush.bf16.msra.mxu2 %v4719_v35  ;;  %v4744_v35 = vld [vmem:[%s6472_s28 + $0x3e0] sm:$0xf0] }
 0x26b   : > { %3987 = vst [vmem:[%s6712_s16 + $0x640] sm:$0xff] %v3014_v41  ;;  %3612 = vmatpush.bf16.msra.mxu3 %v4723_v36  ;;  %3584 = vmatpush.bf16.msra.mxu1 %v4715_v39  ;;  %v4751_v36 = vor.u32 %v5553_v26, %v4750_v25  ;;  %v4747_v40 = vor.u32 %v5488_v34, %v4744_v35 }
 0x26c   : > { %3988 = vst [vmem:[%s6712_s16 + $0x648] sm:$0xff] %v3028_v42 }
 0x270   : > { %v3042_v46 = vpop.f32.mrf.mxu2 }
 0x271   : > { %3989 = vst [vmem:[%s6712_s16 + $0x650] sm:$0xff] %v3042_v46  ;;  %v3056_v50 = vpop.f32.mrf.mxu3  ;;  %v3068_v51 = vpop.f32.mrf.mxu0  ;;  %v5619_v46 = vld [vmem:[%s6472_s28 + $0x5fc] sm:$0xf] }
 0x272   : > { %3990 = vst [vmem:[%s6712_s16 + $0x658] sm:$0xff] %v3056_v50  ;;  %v3082_v54 = vpop.f32.mrf.mxu1  ;;  %v5682_v50 = vld [vmem:[%s6472_s28 + $0x7ec] sm:$0xf0] }
 0x273   : > { %3863 = vst [vmem:[%s6712_s16 + $0x260] sm:$0xff] %v3068_v51  ;;  %v5271_v62 = vor.u32 %v5682_v50, %v5270_v49 }
 0x274   : > { %3864 = vst [vmem:[%s6712_s16 + $0x268] sm:$0xff] %v3082_v54  ;;  %5392 = vmatmul.msk.bf16.vlgmr.msrb.gmra.mxu0 %vm1991_vm0, %v7144_v59  ;;  %5393 = vmatmul.msk.bf16.vlgmr.msrb.gmra.mxu1 %vm1991_vm0, %v7144_v59  ;;  %v5272_v54 = vld [vmem:[%s6472_s28 + $0x7f0] sm:$0xf0] }
 0x275   : > { %5394 = vmatmul.msk.bf16.vlgmr.msrb.gmra.mxu2 %vm1991_vm0, %v7144_v59  ;;  %3625 = vmatpush.bf16.msrb.mxu0 %v5239_v61  ;;  %v5283_v61 = vor.u32 %v5619_v46, %v5280_v48  ;;  %v5275_v0 = vor.u32 %v5618_v53, %v5272_v54 }
 0x276   : > { %5395 = vmatmul.msk.bf16.vlgmr.msrb.gmra.mxu3 %vm1991_vm0, %v7144_v59  ;;  %3653 = vmatpush.bf16.msrb.mxu2 %v5247_v55 }
 0x277   : > { %3667 = vmatpush.bf16.msrb.mxu3 %v5251_v58  ;;  %3639 = vmatpush.bf16.msrb.mxu1 %v5243_v63  ;;  %v5555_v58 = vld [vmem:[%s6472_s28 + $0x3f4] sm:$0xf0]  ;;  %v4768_v63 = vld [vmem:[%s6472_s28 + $0x3f8] sm:$0xf0] }
 0x278   : > { %v3096_v7 = vpop.f32.mrf.mxu2 }
 0x279   : > { %3865 = vst [vmem:[%s6712_s16 + $0x270] sm:$0xff] %v3096_v7  ;;  %v3110_v9 = vpop.f32.mrf.mxu3  ;;  %v3070_v10 = vpop.f32.mrf.mxu0  ;;  %3626 = vmatpush.bf16.msrb.mxu0 %v4727_v6  ;;  %v4771_v6 = vor.u32 %v5491_v37, %v4768_v63  ;;  %v4759_v7 = vor.u32 %v5554_v2, %v4758_v1 }
 0x27a   : > { %3866 = vst [vmem:[%s6712_s16 + $0x278] sm:$0xff] %v3110_v9  ;;  %v3084_v11 = vpop.f32.mrf.mxu1  ;;  %3654 = vmatpush.bf16.msrb.mxu2 %v4735_v4  ;;  %v4760_v4 = vld [vmem:[%s6472_s28 + $0x3f0] sm:$0xf0] }
 0x27b   : > { %3991 = vst [vmem:[%s6712_s16 + $0x660] sm:$0xff] %v3070_v10  ;;  %3668 = vmatpush.bf16.msrb.mxu3 %v4739_v5  ;;  %3640 = vmatpush.bf16.msrb.mxu1 %v4731_v8  ;;  %v4767_v5 = vor.u32 %v5555_v58, %v4766_v57  ;;  %v4763_v9 = vor.u32 %v5490_v3, %v4760_v4 }
 0x27c   : > { %3992 = vst [vmem:[%s6712_s16 + $0x668] sm:$0xff] %v3084_v11 }
 0x280   : > { %v3098_v15 = vpop.f32.mrf.mxu2 }
 0x281   : > { %3993 = vst [vmem:[%s6712_s16 + $0x670] sm:$0xff] %v3098_v15  ;;  %v3112_v19 = vpop.f32.mrf.mxu3  ;;  %v3124_v20 = vpop.f32.mrf.mxu0 }
 0x282   : > { %3994 = vst [vmem:[%s6712_s16 + $0x678] sm:$0xff] %v3112_v19  ;;  %v3138_v23 = vpop.f32.mrf.mxu1 }
 0x283   : > { %3867 = vst [vmem:[%s6712_s16 + $0x280] sm:$0xff] %v3124_v20 }
 0x284   : > { %3868 = vst [vmem:[%s6712_s16 + $0x288] sm:$0xff] %v3138_v23  ;;  %5396 = vmatmul.msk.bf16.vlgmr.msra.gmra.mxu0 %vm1991_vm0, %v7144_v59  ;;  %5397 = vmatmul.msk.bf16.vlgmr.msra.gmra.mxu1 %vm1991_vm0, %v7144_v59 }
 0x285   : > { %5398 = vmatmul.msk.bf16.vlgmr.msra.gmra.mxu2 %vm1991_vm0, %v7144_v59  ;;  %3681 = vmatpush.bf16.msra.mxu0 %v5255_v28 }
 0x286   : > { %5399 = vmatmul.msk.bf16.vlgmr.msra.gmra.mxu3 %vm1991_vm0, %v7144_v59  ;;  %3709 = vmatpush.bf16.msra.mxu2 %v5263_v24 }
 0x287   : > { %3723 = vmatpush.bf16.msra.mxu3 %v5267_v27  ;;  %3695 = vmatpush.bf16.msra.mxu1 %v5259_v31 }
 0x288   : > { %v3152_v39 = vpop.f32.mrf.mxu2 }
 0x289   : > { %3869 = vst [vmem:[%s6712_s16 + $0x290] sm:$0xff] %v3152_v39  ;;  %v3166_v41 = vpop.f32.mrf.mxu3  ;;  %v3126_v42 = vpop.f32.mrf.mxu0  ;;  %3682 = vmatpush.bf16.msra.mxu0 %v4743_v60 }
 0x28a   : > { %3870 = vst [vmem:[%s6712_s16 + $0x298] sm:$0xff] %v3166_v41  ;;  %v3140_v43 = vpop.f32.mrf.mxu1  ;;  %3710 = vmatpush.bf16.msra.mxu2 %v4751_v36 }
 0x28b   : > { %3995 = vst [vmem:[%s6712_s16 + $0x680] sm:$0xff] %v3126_v42  ;;  %3724 = vmatpush.bf16.msra.mxu3 %v4755_v38  ;;  %3696 = vmatpush.bf16.msra.mxu1 %v4747_v40 }
 0x28c   : > { %3996 = vst [vmem:[%s6712_s16 + $0x688] sm:$0xff] %v3140_v43 }
 0x290   : > { %v3154_v47 = vpop.f32.mrf.mxu2 }
 0x291   : > { %3997 = vst [vmem:[%s6712_s16 + $0x690] sm:$0xff] %v3154_v47  ;;  %v3168_v51 = vpop.f32.mrf.mxu3  ;;  %v3180_v52 = vpop.f32.mrf.mxu0 }
 0x292   : > { %3998 = vst [vmem:[%s6712_s16 + $0x698] sm:$0xff] %v3168_v51  ;;  %v3194_v55 = vpop.f32.mrf.mxu1 }
 0x293   : > { %3871 = vst [vmem:[%s6712_s16 + $0x2a0] sm:$0xff] %v3180_v52 }
 0x294   : > { %3872 = vst [vmem:[%s6712_s16 + $0x2a8] sm:$0xff] %v3194_v55  ;;  %5400 = vmatmul.msk.bf16.vlgmr.msrb.gmra.mxu0 %vm1991_vm0, %v7144_v59  ;;  %5401 = vmatmul.msk.bf16.vlgmr.msrb.gmra.mxu1 %vm1991_vm0, %v7144_v59 }
 0x295   : > { %5402 = vmatmul.msk.bf16.vlgmr.msrb.gmra.mxu2 %vm1991_vm0, %v7144_v59  ;;  %3737 = vmatpush.bf16.msrb.mxu0 %v5271_v62 }
 0x296   : > { %5403 = vmatmul.msk.bf16.vlgmr.msrb.gmra.mxu3 %vm1991_vm0, %v7144_v59  ;;  %3765 = vmatpush.bf16.msrb.mxu2 %v5279_v56 }
 0x297   : > { %3779 = vmatpush.bf16.msrb.mxu3 %v5283_v61  ;;  %3751 = vmatpush.bf16.msrb.mxu1 %v5275_v0 }
 0x298   : > { %v3208_v8 = vpop.f32.mrf.mxu2 }
 0x299   : > { %3873 = vst [vmem:[%s6712_s16 + $0x2b0] sm:$0xff] %v3208_v8  ;;  %v3222_v10 = vpop.f32.mrf.mxu3  ;;  %v3182_v11 = vpop.f32.mrf.mxu0  ;;  %3738 = vmatpush.bf16.msrb.mxu0 %v4759_v7 }
 0x29a   : > { %3874 = vst [vmem:[%s6712_s16 + $0x2b8] sm:$0xff] %v3222_v10  ;;  %v3196_v12 = vpop.f32.mrf.mxu1  ;;  %3766 = vmatpush.bf16.msrb.mxu2 %v4767_v5 }
 0x29b   : > { %3999 = vst [vmem:[%s6712_s16 + $0x6a0] sm:$0xff] %v3182_v11  ;;  %3780 = vmatpush.bf16.msrb.mxu3 %v4771_v6  ;;  %3752 = vmatpush.bf16.msrb.mxu1 %v4763_v9 }
 0x29c   : > { %4000 = vst [vmem:[%s6712_s16 + $0x6a8] sm:$0xff] %v3196_v12 }
 0x2a0   : > { %v3210_v13 = vpop.f32.mrf.mxu2 }
 0x2a1   : > { %4001 = vst [vmem:[%s6712_s16 + $0x6b0] sm:$0xff] %v3210_v13  ;;  %v3224_v14 = vpop.f32.mrf.mxu3  ;;  %v3236_v15 = vpop.f32.mrf.mxu0 }
 0x2a2   : > { %4002 = vst [vmem:[%s6712_s16 + $0x6b8] sm:$0xff] %v3224_v14  ;;  %v3250_v16 = vpop.f32.mrf.mxu1 }
 0x2a3   : > { %3875 = vst [vmem:[%s6712_s16 + $0x2c0] sm:$0xff] %v3236_v15 }
 0x2a4   : > { %3876 = vst [vmem:[%s6712_s16 + $0x2c8] sm:$0xff] %v3250_v16  ;;  %5404 = vmatmul.msk.bf16.vlgmr.msra.gmra.mxu0 %vm1991_vm0, %v7144_v59  ;;  %5405 = vmatmul.msk.bf16.vlgmr.msra.gmra.mxu1 %vm1991_vm0, %v7144_v59 }
 0x2a5   : > { %5406 = vmatmul.msk.bf16.vlgmr.msra.gmra.mxu2 %vm1991_vm0, %v7144_v59 }
 0x2a6   : > { %5407 = vmatmul.msk.bf16.vlgmr.msra.gmra.mxu3 %vm1991_vm0, %v7144_v59 }
 0x2a8   : > { %v3264_v17 = vpop.f32.mrf.mxu2 }
 0x2a9   : > { %3877 = vst [vmem:[%s6712_s16 + $0x2d0] sm:$0xff] %v3264_v17  ;;  %v3278_v18 = vpop.f32.mrf.mxu3  ;;  %v3238_v19 = vpop.f32.mrf.mxu0 }
 0x2aa   : > { %3878 = vst [vmem:[%s6712_s16 + $0x2d8] sm:$0xff] %v3278_v18  ;;  %v3252_v20 = vpop.f32.mrf.mxu1 }
 0x2ab   : > { %4003 = vst [vmem:[%s6712_s16 + $0x6c0] sm:$0xff] %v3238_v19 }
 0x2ac   : > { %4004 = vst [vmem:[%s6712_s16 + $0x6c8] sm:$0xff] %v3252_v20 }
 0x2b0   : > { %v3266_v21 = vpop.f32.mrf.mxu2 }
 0x2b1   : > { %4005 = vst [vmem:[%s6712_s16 + $0x6d0] sm:$0xff] %v3266_v21  ;;  %v3280_v22 = vpop.f32.mrf.mxu3  ;;  %v3292_v23 = vpop.f32.mrf.mxu0 }
 0x2b2   : > { %4006 = vst [vmem:[%s6712_s16 + $0x6d8] sm:$0xff] %v3280_v22  ;;  %v3306_v24 = vpop.f32.mrf.mxu1 }
 0x2b3   : > { %3879 = vst [vmem:[%s6712_s16 + $0x2e0] sm:$0xff] %v3292_v23 }
 0x2b4   : > { %3880 = vst [vmem:[%s6712_s16 + $0x2e8] sm:$0xff] %v3306_v24  ;;  %5408 = vmatmul.msk.bf16.vlgmr.msrb.gmra.mxu0 %vm1991_vm0, %v7144_v59  ;;  %5409 = vmatmul.msk.bf16.vlgmr.msrb.gmra.mxu1 %vm1991_vm0, %v7144_v59 }
 0x2b5   : > { %5410 = vmatmul.msk.bf16.vlgmr.msrb.gmra.mxu2 %vm1991_vm0, %v7144_v59 }
 0x2b6   : > { %5411 = vmatmul.msk.bf16.vlgmr.msrb.gmra.mxu3 %vm1991_vm0, %v7144_v59 }
 0x2b8   : > { %v3320_v25 = vpop.f32.mrf.mxu2 }
 0x2b9   : > { %3881 = vst [vmem:[%s6712_s16 + $0x2f0] sm:$0xff] %v3320_v25  ;;  %v3334_v26 = vpop.f32.mrf.mxu3  ;;  %v3294_v27 = vpop.f32.mrf.mxu0 }
 0x2ba   : > { %3882 = vst [vmem:[%s6712_s16 + $0x2f8] sm:$0xff] %v3334_v26  ;;  %v3308_v28 = vpop.f32.mrf.mxu1 }
 0x2bb   : > { %4007 = vst [vmem:[%s6712_s16 + $0x6e0] sm:$0xff] %v3294_v27 }
 0x2bc   : > { %4008 = vst [vmem:[%s6712_s16 + $0x6e8] sm:$0xff] %v3308_v28 }
 0x2c0   : > { %v3322_v29 = vpop.f32.mrf.mxu2 }
 0x2c1   : > { %4009 = vst [vmem:[%s6712_s16 + $0x6f0] sm:$0xff] %v3322_v29  ;;  %v3336_v30 = vpop.f32.mrf.mxu3  ;;  %v3348_v31 = vpop.f32.mrf.mxu0 }
 0x2c2   : > { %4010 = vst [vmem:[%s6712_s16 + $0x6f8] sm:$0xff] %v3336_v30  ;;  %v3362_v59 = vpop.f32.mrf.mxu1 }
 0x2c3   : > { %3883 = vst [vmem:[%s6712_s16 + $0x300] sm:$0xff] %v3348_v31 }
 0x2c4   : > { %3884 = vst [vmem:[%s6712_s16 + $0x308] sm:$0xff] %v3362_v59 }
 0x2c8   : > { %v3376_v32 = vpop.f32.mrf.mxu2 }
 0x2c9   : > { %3885 = vst [vmem:[%s6712_s16 + $0x310] sm:$0xff] %v3376_v32  ;;  %v3390_v33 = vpop.f32.mrf.mxu3  ;;  %v3350_v34 = vpop.f32.mrf.mxu0 }
 0x2ca   : > { %3886 = vst [vmem:[%s6712_s16 + $0x318] sm:$0xff] %v3390_v33  ;;  %v3364_v35 = vpop.f32.mrf.mxu1 }
 0x2cb   : > { %4011 = vst [vmem:[%s6712_s16 + $0x700] sm:$0xff] %v3350_v34 }
 0x2cc   : > { %4012 = vst [vmem:[%s6712_s16 + $0x708] sm:$0xff] %v3364_v35 }
 0x2d0   : > { %v3378_v36 = vpop.f32.mrf.mxu2 }
 0x2d1   : > { %4013 = vst [vmem:[%s6712_s16 + $0x710] sm:$0xff] %v3378_v36  ;;  %v3392_v38 = vpop.f32.mrf.mxu3  ;;  %v3404_v60 = vpop.f32.mrf.mxu0 }
 0x2d2   : > { %4014 = vst [vmem:[%s6712_s16 + $0x718] sm:$0xff] %v3392_v38  ;;  %v3418_v39 = vpop.f32.mrf.mxu1 }
 0x2d3   : > { %3887 = vst [vmem:[%s6712_s16 + $0x320] sm:$0xff] %v3404_v60 }
 0x2d4   : > { %3888 = vst [vmem:[%s6712_s16 + $0x328] sm:$0xff] %v3418_v39 }
 0x2d8   : > { %v3432_v40 = vpop.f32.mrf.mxu2 }
 0x2d9   : > { %3889 = vst [vmem:[%s6712_s16 + $0x330] sm:$0xff] %v3432_v40  ;;  %v3446_v41 = vpop.f32.mrf.mxu3  ;;  %v3406_v42 = vpop.f32.mrf.mxu0 }
 0x2da   : > { %3890 = vst [vmem:[%s6712_s16 + $0x338] sm:$0xff] %v3446_v41  ;;  %v3420_v43 = vpop.f32.mrf.mxu1 }
 0x2db   : > { %4015 = vst [vmem:[%s6712_s16 + $0x720] sm:$0xff] %v3406_v42 }
 0x2dc   : > { %4016 = vst [vmem:[%s6712_s16 + $0x728] sm:$0xff] %v3420_v43 }
 0x2e0   : > { %v3434_v44 = vpop.f32.mrf.mxu2 }
 0x2e1   : > { %4017 = vst [vmem:[%s6712_s16 + $0x730] sm:$0xff] %v3434_v44  ;;  %v3448_v45 = vpop.f32.mrf.mxu3  ;;  %v3460_v46 = vpop.f32.mrf.mxu0 }
 0x2e2   : > { %4018 = vst [vmem:[%s6712_s16 + $0x738] sm:$0xff] %v3448_v45  ;;  %v3474_v47 = vpop.f32.mrf.mxu1 }
 0x2e3   : > { %3891 = vst [vmem:[%s6712_s16 + $0x340] sm:$0xff] %v3460_v46 }
 0x2e4   : > { %3892 = vst [vmem:[%s6712_s16 + $0x348] sm:$0xff] %v3474_v47 }
 0x2e8   : > { %v3488_v48 = vpop.f32.mrf.mxu2 }
 0x2e9   : > { %3893 = vst [vmem:[%s6712_s16 + $0x350] sm:$0xff] %v3488_v48  ;;  %v3502_v49 = vpop.f32.mrf.mxu3  ;;  %v3462_v50 = vpop.f32.mrf.mxu0 }
 0x2ea   : > { %3894 = vst [vmem:[%s6712_s16 + $0x358] sm:$0xff] %v3502_v49  ;;  %v3476_v51 = vpop.f32.mrf.mxu1 }
 0x2eb   : > { %4019 = vst [vmem:[%s6712_s16 + $0x740] sm:$0xff] %v3462_v50 }
 0x2ec   : > { %4020 = vst [vmem:[%s6712_s16 + $0x748] sm:$0xff] %v3476_v51 }
 0x2f0   : > { %v3490_v52 = vpop.f32.mrf.mxu2 }
 0x2f1   : > { %4021 = vst [vmem:[%s6712_s16 + $0x750] sm:$0xff] %v3490_v52  ;;  %v3504_v53 = vpop.f32.mrf.mxu3  ;;  %v3516_v54 = vpop.f32.mrf.mxu0 }
 0x2f2   : > { %4022 = vst [vmem:[%s6712_s16 + $0x758] sm:$0xff] %v3504_v53  ;;  %v3530_v55 = vpop.f32.mrf.mxu1 }
 0x2f3   : > { %3895 = vst [vmem:[%s6712_s16 + $0x360] sm:$0xff] %v3516_v54 }
 0x2f4   : > { %3896 = vst [vmem:[%s6712_s16 + $0x368] sm:$0xff] %v3530_v55 }
 0x2f8   : > { %v3544_v56 = vpop.f32.mrf.mxu2 }
 0x2f9   : > { %3897 = vst [vmem:[%s6712_s16 + $0x370] sm:$0xff] %v3544_v56  ;;  %v3558_v57 = vpop.f32.mrf.mxu3  ;;  %v3518_v58 = vpop.f32.mrf.mxu0 }
 0x2fa   : > { %3898 = vst [vmem:[%s6712_s16 + $0x378] sm:$0xff] %v3558_v57  ;;  %v3532_v61 = vpop.f32.mrf.mxu1 }
 0x2fb   : > { %4023 = vst [vmem:[%s6712_s16 + $0x760] sm:$0xff] %v3518_v58 }
 0x2fc   : > { %4024 = vst [vmem:[%s6712_s16 + $0x768] sm:$0xff] %v3532_v61 }
 0x300   : > { %v3546_v62 = vpop.f32.mrf.mxu2 }
 0x301   : > { %4025 = vst [vmem:[%s6712_s16 + $0x770] sm:$0xff] %v3546_v62  ;;  %v3560_v37 = vpop.f32.mrf.mxu3  ;;  %v3572_v63 = vpop.f32.mrf.mxu0 }
 0x302   : > { %4026 = vst [vmem:[%s6712_s16 + $0x778] sm:$0xff] %v3560_v37  ;;  %v3586_v0 = vpop.f32.mrf.mxu1 }
 0x303   : > { %3899 = vst [vmem:[%s6712_s16 + $0x380] sm:$0xff] %v3572_v63 }
 0x304   : > { %3900 = vst [vmem:[%s6712_s16 + $0x388] sm:$0xff] %v3586_v0 }
 0x308   : > { %v3600_v1 = vpop.f32.mrf.mxu2 }
 0x309   : > { %3901 = vst [vmem:[%s6712_s16 + $0x390] sm:$0xff] %v3600_v1  ;;  %v3614_v2 = vpop.f32.mrf.mxu3  ;;  %v3574_v3 = vpop.f32.mrf.mxu0 }
 0x30a   : > { %3902 = vst [vmem:[%s6712_s16 + $0x398] sm:$0xff] %v3614_v2  ;;  %v3588_v4 = vpop.f32.mrf.mxu1 }
 0x30b   : > { %4027 = vst [vmem:[%s6712_s16 + $0x780] sm:$0xff] %v3574_v3 }
 0x30c   : > { %4028 = vst [vmem:[%s6712_s16 + $0x788] sm:$0xff] %v3588_v4 }
 0x310   : > { %v3602_v5 = vpop.f32.mrf.mxu2 }
 0x311   : > { %4029 = vst [vmem:[%s6712_s16 + $0x790] sm:$0xff] %v3602_v5  ;;  %v3616_v6 = vpop.f32.mrf.mxu3  ;;  %v3628_v7 = vpop.f32.mrf.mxu0 }
 0x312   : > { %4030 = vst [vmem:[%s6712_s16 + $0x798] sm:$0xff] %v3616_v6  ;;  %v3642_v8 = vpop.f32.mrf.mxu1 }
 0x313   : > { %3903 = vst [vmem:[%s6712_s16 + $0x3a0] sm:$0xff] %v3628_v7 }
 0x314   : > { %3904 = vst [vmem:[%s6712_s16 + $0x3a8] sm:$0xff] %v3642_v8 }
 0x318   : > { %v3656_v9 = vpop.f32.mrf.mxu2 }
 0x319   : > { %3905 = vst [vmem:[%s6712_s16 + $0x3b0] sm:$0xff] %v3656_v9  ;;  %v3670_v10 = vpop.f32.mrf.mxu3  ;;  %v3630_v11 = vpop.f32.mrf.mxu0 }
 0x31a   : > { %3906 = vst [vmem:[%s6712_s16 + $0x3b8] sm:$0xff] %v3670_v10  ;;  %v3644_v12 = vpop.f32.mrf.mxu1 }
 0x31b   : > { %4031 = vst [vmem:[%s6712_s16 + $0x7a0] sm:$0xff] %v3630_v11 }
 0x31c   : > { %4032 = vst [vmem:[%s6712_s16 + $0x7a8] sm:$0xff] %v3644_v12 }
 0x320   : > { %v3658_v13 = vpop.f32.mrf.mxu2 }
 0x321   : > { %4033 = vst [vmem:[%s6712_s16 + $0x7b0] sm:$0xff] %v3658_v13  ;;  %v3672_v14 = vpop.f32.mrf.mxu3  ;;  %v3684_v15 = vpop.f32.mrf.mxu0 }
 0x322   : > { %4034 = vst [vmem:[%s6712_s16 + $0x7b8] sm:$0xff] %v3672_v14  ;;  %v3698_v16 = vpop.f32.mrf.mxu1 }
 0x323   : > { %3907 = vst [vmem:[%s6712_s16 + $0x3c0] sm:$0xff] %v3684_v15 }
 0x324   : > { %3908 = vst [vmem:[%s6712_s16 + $0x3c8] sm:$0xff] %v3698_v16 }
 0x328   : > { %v3712_v17 = vpop.f32.mrf.mxu2 }
 0x329   : > { %3909 = vst [vmem:[%s6712_s16 + $0x3d0] sm:$0xff] %v3712_v17  ;;  %v3726_v18 = vpop.f32.mrf.mxu3  ;;  %v3686_v19 = vpop.f32.mrf.mxu0 }
 0x32a   : > { %3910 = vst [vmem:[%s6712_s16 + $0x3d8] sm:$0xff] %v3726_v18  ;;  %v3700_v20 = vpop.f32.mrf.mxu1 }
 0x32b   : > { %4035 = vst [vmem:[%s6712_s16 + $0x7c0] sm:$0xff] %v3686_v19 }
 0x32c   : > { %4036 = vst [vmem:[%s6712_s16 + $0x7c8] sm:$0xff] %v3700_v20 }
 0x330   : > { %v3714_v21 = vpop.f32.mrf.mxu2 }
 0x331   : > { %4037 = vst [vmem:[%s6712_s16 + $0x7d0] sm:$0xff] %v3714_v21  ;;  %v3728_v22 = vpop.f32.mrf.mxu3  ;;  %v3740_v23 = vpop.f32.mrf.mxu0 }
 0x332   : > { %4038 = vst [vmem:[%s6712_s16 + $0x7d8] sm:$0xff] %v3728_v22  ;;  %v3754_v24 = vpop.f32.mrf.mxu1 }
 0x333   : > { %3911 = vst [vmem:[%s6712_s16 + $0x3e0] sm:$0xff] %v3740_v23 }
 0x334   : > { %3912 = vst [vmem:[%s6712_s16 + $0x3e8] sm:$0xff] %v3754_v24 }
 0x338   : > { %v3768_v25 = vpop.f32.mrf.mxu2 }
 0x339   : > { %3913 = vst [vmem:[%s6712_s16 + $0x3f0] sm:$0xff] %v3768_v25  ;;  %v3782_v26 = vpop.f32.mrf.mxu3  ;;  %v3742_v27 = vpop.f32.mrf.mxu0 }
 0x33a   : > { %3914 = vst [vmem:[%s6712_s16 + $0x3f8] sm:$0xff] %v3782_v26  ;;  %v3756_v28 = vpop.f32.mrf.mxu1 }
 0x33b   : > { %4039 = vst [vmem:[%s6712_s16 + $0x7e0] sm:$0xff] %v3742_v27 }
 0x33c   : > { %4040 = vst [vmem:[%s6712_s16 + $0x7e8] sm:$0xff] %v3756_v28 }
 0x33e   : > { %4050 = sbr.rel (!%p6121_p6) target bundleno = 867 (0x363), region = 98 }
 0x340   : > { %v3770_v29 = vpop.f32.mrf.mxu2 }
 0x341   : > { %4041 = vst [vmem:[%s6712_s16 + $0x7f0] sm:$0xff] %v3770_v29  ;;  %v3784_v30 = vpop.f32.mrf.mxu3 }
 0x342   : > { %4042 = vst [vmem:[%s6712_s16 + $0x7f8] sm:$0xff] %v3784_v30 }
 0x343   : > { %s7618_s23 = smov (!%p4053_p5, %s4052_s23), 128 }
 0x344   : > { %s5414_s29 = sshll.u32 %s7618_s23, 4 }
 0x345   : > { %s4056_s8 = ssub.s32 2048, %s5414_s29 }
 0x346   : > { %s4057_s14 = sshll.u32 %s4056_s8, 4 }
 0x347   : > { %4058 = vsyncadd %s7518_s26, %s4057_s14  ;;  %p7527_p7 = scmp.ne.s32.totalorder %s5414_s29, 0  ;;  %s5684_s5 = sshll.u32 %s6103_s13, 10 }
 0x348   : > { %s4061_s30 = scalar_lea.hbm %s7584_s2, %s5684_s5  ;;  %s5417_s21 = sshll.u32 %s7618_s23, 3 }
 0x349   : > { %s4064_s28 = sshll.u32 %s6712_s16, 4  ;;  %s4066_s3 = sshll.u32 %s4061_s30, 4  ;;  %s7537_s28 = int_to_ptr.vmem [resolvable:$true] %s4064_s28  ;;  %s7539_s3 = int_to_ptr.hbm [resolvable:$true] %s4066_s3 }
 0x34a   : > { %s5686_s22 = sshll.u32 %s7618_s23, 8  ;;  %s5859_s7 = sshra.s32 %s7537_s28, 4  ;;  %s5860_s7 = int_to_ptr.vmem [resolvable:$true] %s5859_s7 }
 0x34b   : > { %s5861_s27 = sshrl.u32 %s5686_s22, 4  ;;  %s6064_s13 = smov [#allocation3]  }
 0x34c   : > { %s5866_s24 = scalar_lea.vmem %s5860_s7, %s5861_s27  ;;  %s5870_s25 = scalar_lea.vmem %s6064_s13, 4096 }
 0x34d   : > { %p5867_p6 = scmp.ne.s32.totalorder %s5860_s7, %s5866_s24  ;;  %p5872_p11 = scmp.lt.s32.totalorder %s5870_s25, %s5866_s24 }
 0x34f   : > { %p5868_p9 = pnand %p5867_p6, %p7527_p7 }
 0x351   : > { %p5869_p10 = pneg %p5868_p9 }
 0x353   : > { %p5874_p12 = pnand %p5872_p11, %p5869_p10 }
 0x355   : > { %5877 = shalt.err (!%p5874_p12)
}
 0x356   : > { %s5878_s16 = sshra.s32 %s7539_s3, 4  ;;  %s5889_s14 = scalar_lea.hbm %s7584_s2, 6288  ;;  %s5879_s16 = int_to_ptr.hbm [resolvable:$true] %s5878_s16 }
 0x357   : > { %s5885_s17 = scalar_lea.hbm %s5879_s16, %s5861_s27  ;;  %p5890_p2 = scmp.lt.s32.totalorder %s5879_s16, %s7584_s2 }
 0x358   : > { %p5886_p13 = scmp.ne.s32.totalorder %s5879_s16, %s5885_s17  ;;  %p5891_p3 = scmp.lt.s32.totalorder %s5889_s14, %s5885_s17 }
 0x35a   : > { %p5887_p0 = pnand %p5886_p13, %p7527_p7  ;;  %p5892_p4 = por %p5891_p3, %p5890_p2 }
 0x35c   : > { %p5888_p1 = pneg %p5887_p0 }
 0x35e   : > { %p5893_p5 = pnand %p5892_p4, %p5888_p1 }
 0x360   : > { %5896 = shalt.err (!%p5893_p5)
}
 0x361   : > { %s6065_s6 = smov 16384   ;;  %s6066_s30 = smov 50304  }
 0x362   : > { %4072 = dma.vmem_to_hbm [thread:$0]  (%p7527_p7), %s7537_s28, %s5686_s22, %s7539_s3, %s7518_s26, %s6065_s6, %s6066_s30, %s5417_s21  }
 0x363 PF: > { %p5692_p6 = scmp.ge.s32.totalorder %s5996_s12, 2  ;;  %s4081_s7 = sand.u32 1, %s5984_s9  }
 0x364   : > { %s4082_s27 = scalar_lea.sflag [#allocation4], %s4081_s7 }
 0x365   : > { %p5689_p9 = pnand %p5692_p6, %p6125_p8 }
 0x367   : > { %p5690_p10 = pneg %p5689_p9 }
 0x369   : > { %5979 = dma.done.wait (%p5690_p10), %s4082_s27, 32768  }
 0x36a   : > { %5981 = vsyncadd (%p5690_p10), %s4082_s27, 4294934528  ;;  %p12_p11 = scmp.ge.s32.totalorder %s6107_s15, 6   ;;  %s7603_s9 = smov %s5988_s10 }
 0x36b   : > { %s7604_s10 = smov %s5992_s11  ;;  %s7605_s11 = smov %s6119_s18 }
 0x36c   : > { %s7606_s12 = smov %s6107_s15  ;;  %14 = sbr.rel (!%p12_p11) target bundleno = 3 (0x3), region = 196 }
 0x371   :  { %4088 = vsyncpa [#allocation4], 1 }
 0x372   :  { %4090 = vsyncpa [#allocation4 + $0x1], 1 }

// kernel: residual_model_forward.3
= control target key start
LH: loop header
LB: loop body
LE: loop exit
PB: predicated region body
PF: predicated region fallthrough
CT: control target
= control target key end

     0   :  { %s5788_s0 = inlined_call_operand.vmem [shape: f32[2,8,32], index: 0, kind: input, shape index: {}]   ;;  %s5789_s1 = inlined_call_operand.vmem [shape: f32[2,8], index: 1, kind: input, shape index: {}]   ;;  %s5790_s2 = inlined_call_operand.vmem [shape: bf16[2,12,32,8], index: 2, kind: input, shape index: {}]   ;;  %s5791_s3 = inlined_call_operand.vmem [shape: f32[2,12,1,8], index: 3, kind: input, shape index: {}]   ;;  %s5792_s4 = inlined_call_operand.vmem [shape: bf16[2,4,8,32], index: 4, kind: input, shape index: {}]   ;;  %s5793_s5 = inlined_call_operand.vmem [shape: f32[2,1,32], index: 5, kind: input, shape index: {}]   ;;  %s5794_s6 = inlined_call_operand.vmem [shape: f32[2,1,32], index: 6, kind: input, shape index: {}]   ;;  %s5795_s7 = inlined_call_operand.vmem [shape: f32[2,1,32], index: 7, kind: input, shape index: {}]   ;;  %s5796_s8 = inlined_call_operand.hbm [shape: bf16[2,32,2048], index: 8, kind: input, shape index: {}]   ;;  %s5797_s9 = inlined_call_operand.vmem [shape: f32[2,1,2048], index: 9, kind: input, shape index: {}]   ;;  %s5798_s10 = inlined_call_operand.vmem [shape: bf16[2,2048,32], index: 10, kind: input, shape index: {}]   ;;  %s5799_s11 = inlined_call_operand.vmem [shape: f32[2,1,32], index: 11, kind: input, shape index: {}]   ;;  %s5800_s12 = inlined_call_operand.vmem [shape: f32[2,1,32], index: 12, kind: input, shape index: {}]   ;;  %s5801_s13 = inlined_call_operand.vmem [shape: f32[2,1,32], index: 13, kind: input, shape index: {}]   ;;  %s5802_s14 = inlined_call_operand.vmem [shape: f32[2,8,32], index: 14, kind: output, shape index: {}]  }
   0x1   :  { %5811 = sst [smem:[#allocation11_spill]] %s5789_s1 }
   0x2   :  { %5812 = sst [smem:[#allocation12_spill]] %s5790_s2 }
   0x3   :  { %5813 = sst [smem:[#allocation13_spill]] %s5792_s4 }
   0x4   :  { %5814 = sst [smem:[#allocation14_spill]] %s5796_s8 }
   0x5   :  { %5815 = sst [smem:[#allocation15_spill]] %s5802_s14 }
   0x6   :  { %19 = vsyncpa [#allocation3], 0 }
   0x7   :  { %21 = vsyncpa [#allocation3 + $0x1], 0  ;;  %s5146_s29 = smov 0   ;;  %s5148_s30 = smov 0  }
   0x8   :  { %s5150_s15 = smov 0   ;;  %s5152_s16 = smov 0  }
   0x9 LB: > { %5816 = sst [smem:[#allocation5_spill]] %s5058_s30  ;;  %s5165_s17 = sadd.s32 4294967295, %s5066_s16   ;;  %s5066_s16 = sphi %s5152_s16, %s5835_s16   ;;  %s5062_s15 = sphi %s5150_s15, %s5838_s15   ;;  %s5058_s30 = sphi %s5148_s30, %s5837_s30   ;;  %s5054_s29 = sphi %s5146_s29, %s5836_s29  }
   0xa   : > { %5817 = sst [smem:[#allocation6_spill]] %s5062_s15  ;;  %s5168_s18 = sadd.s32 1, %s5066_s16  }
   0xb   : > { %5818 = sst [smem:[#allocation7_spill]] %s5168_s18  ;;  %s229_s19 = ssub.s32 %s5066_s16, %s5168_s18 }
   0xc   : > { %s232_s20 = sadd.s32 1, %s5062_s15  ;;  %p230_p0 = scmp.eq.s32.totalorder %s229_s19, 0 }
   0xd   : > { %p239_p1 = scmp.ne.s32.totalorder %s5062_s15, %s5058_s30  ;;  %p240_p2 = scmp.eq.s32.totalorder %s5066_s16, 0 }
   0xe   : > { %p245_p3 = scmp.ne.s32.totalorder %s5058_s30, %s5054_s29  ;;  %p246_p5 = scmp.eq.s32.totalorder %s5165_s17, 0 }
   0xf   : > { %s5178_s21 = scalar_select %p230_p0, %s5062_s15, %s232_s20  }
  0x10   : > { %p5180_p4 = por %p240_p2, %p239_p1  ;;  %p4906_p6 = scmp.lt.s32.totalorder %s5066_s16, 2 }
  0x11   : > { %5819 = sst [smem:[#allocation8_spill]] %s5178_s21  ;;  %p5186_p7 = por %p246_p5, %p245_p3 }
  0x12   : > { %s467_s24 = sand.u32 1, %s5062_s15   ;;  %s4711_s26 = sshll.u32 %s5066_s16, 8 }
  0x13   : > { %s3847_s25 = sshll.u32 %s467_s24, 8  ;;  %s5822_s8 = sld [smem:[#allocation14_spill]] }
  0x14   : > { %s471_s19 = scalar_lea.vmem [#allocation2], %s3847_s25  ;;  %p5197_p8 = pnand %p4906_p6, %p5180_p4 }
  0x15   : > { %s479_s20 = sshll.u32 %s471_s19, 4  ;;  %p3850_p9 = scmp.ge.s32.totalorder %s5066_s16, 1  ;;  %s480_s20 = int_to_ptr.vmem [resolvable:$true] %s479_s20 }
  0x16   : > { %s468_s1 = scalar_lea.sflag [#allocation3], %s467_s24  ;;  %p5006_p11 = pneg %p5197_p8 }
  0x19   : > { %s476_s29 = scalar_lea.hbm %s5822_s8, %s4711_s26  ;;  %s5009_s27 = scalar_lea.hbm %s5822_s8, 512 }
  0x1a   : > { %s477_s21 = sshll.u32 %s476_s29, 4  ;;  %s478_s21 = int_to_ptr.hbm [resolvable:$true] %s477_s21 }
  0x1b   : > { %s5002_s15 = sshra.s32 %s478_s21, 4  ;;  %s5003_s15 = int_to_ptr.hbm [resolvable:$true] %s5002_s15 }
  0x1c   : > { %s5004_s14 = scalar_lea.hbm %s5003_s15, 256  ;;  %p5010_p0 = scmp.lt.s32.totalorder %s5003_s15, %s5822_s8 }
  0x1d   : > { %p5005_p10 = scmp.ne.s32.totalorder %s5003_s15, %s5004_s14  ;;  %p5011_p1 = scmp.lt.s32.totalorder %s5009_s27, %s5004_s14 }
  0x1f   : > { %p5007_p12 = pnand %p5006_p11, %p5005_p10  ;;  %p5012_p2 = por %p5011_p1, %p5010_p0 }
  0x21   : > { %p5008_p13 = pneg %p5007_p12 }
  0x23   : > { %p5013_p3 = pnand %p5012_p2, %p5008_p13 }
  0x25   : > { %5016 = shalt.err (!%p5013_p3)
}
  0x26   : > { %s5068_s24 = smov 1024   ;;  %s5069_s29 = smov 64  }
  0x27   : > { %4905 = dma.hbm_to_vmem [thread:$0]  (!%p5197_p8), %s478_s21, 4096, %s480_s20, %s468_s1, %s5068_s24, %s5068_s24, %s5069_s29  }
  0x28   : > { %p520_p4 = scmp.lt.s32.totalorder %s5066_s16, 3 }
  0x2a   : > { %p521_p5 = pnand %p3850_p9, %p520_p4 }
  0x2c   : > { %524 = sbr.rel (%p521_p5) target bundleno = 3290 (0xcda), region = 76 }
  0x31   : > { %s526_s19 = sand.u32 1, %s5058_s30  }
  0x32   : > { %s3851_s25 = sshll.u32 %s526_s19, 8  ;;  %s527_s15 = scalar_lea.sflag [#allocation3], %s526_s19 }
  0x33   : > { %s5216_s14 = scalar_lea.vmem [#allocation2], %s3851_s25 }
  0x34   : > { %5824 = sst [smem:[#allocation9_spill]] %s5216_s14 }
  0x35   : > { %5049 = dma.done.wait (%p5186_p7), %s527_s15, 4096  }
  0x36   : > { %5051 = vsyncadd (%p5186_p7), %s527_s15, 4294963200  ;;  %p612_p6 = scmp.lt.s32.totalorder %s5165_s17, 1  ;;  %s5825_s4 = sld [smem:[#allocation13_spill]] }
  0x37   : > { %s5827_s2 = sld [smem:[#allocation12_spill]]  ;;  %p3858_p7 = scmp.ne.s32.totalorder %s5165_s17, 0 }
  0x38   : > { %s5224_s1 = scalar_select %p612_p6, %s5165_s17, 1 }
  0x39   : > { %s5828_s15 = sld [smem:[#allocation15_spill]] (!%p3858_p7) }
  0x3a   : > { %s4898_s16 = smul.u32 192, %s5224_s1  ;;  %s4712_s18 = sshll.u32 %s5224_s1, 4 }
  0x3b   : > { %s4899_s21 = smul.u32 12, %s5224_s1  ;;  %s631_s23 = scalar_lea.vmem %s5794_s6, %s5224_s1 }
  0x3c   : > { %s5232_s26 = scalar_lea.vmem %s5825_s4, %s4712_s18  ;;  %s5259_s22 = scalar_lea.vmem %s5797_s9, %s4712_s18 }
  0x3d   : > { %5826 = sst [smem:[#allocation10_spill]] %s5232_s26  ;;  %s5237_s28 = scalar_lea.vmem %s5827_s2, %s4898_s16 }
  0x3e   : > { %s5246_s8 = scalar_lea.vmem %s5791_s3, %s4899_s21  ;;  %s4713_s24 = sshll.u32 %s5224_s1, 10 }
  0x3f   : > { %s646_s25 = scalar_lea.vmem %s5799_s11, %s5224_s1  ;;  %s5269_s2 = scalar_lea.vmem %s5798_s10, %s4713_s24 }
  0x40   : > { %s649_s4 = scalar_lea.vmem %s5800_s12, %s5224_s1  ;;  %s652_s27 = scalar_lea.vmem %s5801_s13, %s5224_s1 }
  0x41   : > { %657 = sbr.rel (%p3858_p7) target bundleno = 73 (0x49), region = 84 }
  0x46   : > { %v658_v0 = vld [vmem:[%s5788_s0] sm:$0xff]  ;;  %vm660_vm0 = vcmask 261120   ;;  %v659_v1 = vld [vmem:[%s5788_s0 + $0x8] sm:$0xff] }
  0x47   : > { %661 = vst.msk [vmem:[%s5828_s15] sm:$0xff] %vm660_vm0, %v658_v0 }
  0x48   : > { %662 = vst.msk [vmem:[%s5828_s15 + $0x8] sm:$0xff] %vm660_vm0, %v659_v1 }
  0x49 PF: > { %v4715_v2 = vld [vmem:[%s5237_s28 + $0x8] sm:$0xff]  ;;  %v4714_v4 = vld [vmem:[%s5237_s28] sm:$0xff]  ;;  %s5829_s20 = sld [smem:[#allocation15_spill]]  ;;  %vm689_vm1 = vcmask 261120   ;;  %vm779_vm2 = vcmask 64512   ;;  %v4723_v33 = vld [vmem:[%s5237_s28 + $0x58] sm:$0xff]  ;;  %s5832_s15 = scalar_lea.vmem %s5793_s5, %s5224_s1 }
  0x4a   : > { %v4717_v3 = vld [vmem:[%s5237_s28 + $0x48] sm:$0xff]  ;;  %v4716_v5 = vld [vmem:[%s5237_s28 + $0x40] sm:$0xff]  ;;  %699 = vmatpush.bf16.msra.mxu0 %v4715_v2  ;;  %s5830_s24 = sld [smem:[#allocation11_spill]]  ;;  %v4722_v34 = vld [vmem:[%s5237_s28 + $0x50] sm:$0xff]  ;;  %vm1200_vm11 = vcmask 1043456   ;;  %s5834_s16 = scalar_lea.vmem %s5795_s7, %s5224_s1 }
  0x4b   : > { %735 = vmatpush.bf16.msra.mxu1 %v4717_v3  ;;  %v4943_v9 = vld [vmem:[%s5246_s8 + $0x4] ss:$0 sm:$0xff]  ;;  %v4942_v10 = vld [vmem:[%s5246_s8] ss:$0 sm:$0xff]  ;;  %v4719_v19 = vld [vmem:[%s5237_s28 + $0x88] sm:$0xff]  ;;  %s5831_s21 = sld [smem:[#allocation10_spill]] }
  0x4c   : > { %771 = vmatpush.bf16.msra.mxu2 %v4719_v19  ;;  %v4718_v20 = vld [vmem:[%s5237_s28 + $0x80] sm:$0xff]  ;;  %v4721_v35 = vld [vmem:[%s5237_s28 + $0x18] sm:$0xff]  ;;  %v4720_v36 = vld [vmem:[%s5237_s28 + $0x10] sm:$0xff]  ;;  %s5833_s30 = sld [smem:[#allocation9_spill]] }
  0x4d   : > { %v4944_v48 = vld [vmem:[%s5246_s8 + $0x8] ss:$0 sm:$0xff]  ;;  %v4945_v52 = vld [vmem:[%s5246_s8 + $0x5] ss:$0 sm:$0xff] }
  0x4e   : > { %700 = vmatpush.bf16.msra.mxu0 %v4714_v4 }
  0x4f   : > { %v5299_v6 = vld [vmem:[%s5829_s20] sm:$0xff]  ;;  %v5304_v7 = vld [vmem:[%s5829_s20 + $0x8] sm:$0xff]  ;;  %736 = vmatpush.bf16.msra.mxu1 %v4716_v5 }
  0x50   : > { %v5308_v8 = vpack.c.bf16 %v5304_v7, %v5299_v6  ;;  %772 = vmatpush.bf16.msra.mxu2 %v4718_v20  ;;  %v665_v21 = vld [vmem:[%s5830_s24] sm:$0x3] }
  0x51   : > { %v5327_v22 = vperm.slane %v665_v21, 0  ;;  %v667_v26 = vrot.slane %v665_v21, 1  ;;  %v4946_v20 = vld [vmem:[%s5246_s8 + $0x1] ss:$0 sm:$0xff] }
  0x52   : > { %3867 = vmatmul.msk.bf16.vlgmr.msra.gmra.mxu0 %vm689_vm1, %v5308_v8  ;;  %3881 = vmatmul.msk.bf16.vlgmr.msra.gmra.mxu1 %vm689_vm1, %v5308_v8 }
  0x53   : > { %3895 = vmatmul.msk.bf16.vlgmr.msra.gmra.mxu2 %vm689_vm1, %v5308_v8  ;;  %v5331_v28 = vperm.slane %v667_v26, 0  ;;  %964 = vmatpush.bf16.msrb.mxu1 %v4721_v35  ;;  %v935_v26 = vld [vmem:[%s5831_s21] sm:$0xf] }
  0x54   : > { %1000 = vmatpush.bf16.msrb.mxu2 %v4723_v33 }
  0x57   : > { %965 = vmatpush.bf16.msrb.mxu1 %v4720_v36 }
  0x58   : > { %1001 = vmatpush.bf16.msrb.mxu2 %v4722_v34 }
  0x62   : > { %3915 = vmatmul.msk.bf16.vlgmr.msrb.gmra.mxu1 %vm689_vm1, %v5308_v8 }
  0x63   : > { %3929 = vmatmul.msk.bf16.vlgmr.msrb.gmra.mxu2 %vm689_vm1, %v5308_v8 }
  0xcf   : > { %v702_v11 = vpop.f32.mrf.mxu0  ;;  %v738_v12 = vpop.f32.mrf.mxu1 }
  0xd0   : > { %v739_v13 = vadd.f32 %v4943_v9, %v738_v12  ;;  %v703_v14 = vadd.f32 %v4942_v10, %v702_v11 }
  0xd2   : > { %3896 = vmatpush.xpose.msk.msra.mxu3 %vm779_vm2, %v739_v13 }
  0xd5   : > { %3897 = vmatmul.msk.f32.vlgmr.msra.gmra.mxu3 %vm779_vm2, %v703_v14 }
  0xd6   : > { %v774_v47 = vpop.f32.mrf.mxu2 }
  0xd7   : > { %v740_v15 = vpop.f32.mrf.mxu1  ;;  %v704_v16 = vpop.f32.mrf.mxu0  ;;  %v775_v50 = vadd.f32 %v4944_v48, %v774_v47 }
  0xd8   : > { %v741_v17 = vadd.f32 %v4943_v9, %v740_v15  ;;  %v705_v18 = vadd.f32 %v4942_v10, %v704_v16 }
  0xda   : > { %3898 = vmatpush.xpose.msk.msrb.mxu3 %vm779_vm2, %v741_v17 }
  0xdd   : > { %3899 = vmatmul.msk.f32.vlgmr.msrb.gmra.mxu3 %vm779_vm2, %v705_v18 }
  0xde   : > { %v776_v49 = vpop.f32.mrf.mxu2  ;;  %906 = vmatpush.msra.mxu3 %v775_v50 }
  0xdf   : > { %v777_v51 = vadd.f32 %v4944_v48, %v776_v49  ;;  %v967_v21 = vpop.f32.mrf.mxu1 }
  0xe1   : > { %929 = vmatpush.msrb.mxu0 %v777_v51 }
  0xe6   : > { %v1003_v53 = vpop.f32.mrf.mxu2 }
  0xe7   : > { %v1004_v54 = vadd.f32 %v4945_v52, %v1003_v53  ;;  %v4947_v53 = vld [vmem:[%s5246_s8 + $0x9] ss:$0 sm:$0xff] }
  0xe9   : > { %3944 = vmatpush.xpose.msk.msra.mxu0 %vm779_vm2, %v1004_v54 }
  0xee   : > { %v1005_v14 = vpop.f32.mrf.mxu2 }
  0xef   : > { %v1006_v18 = vadd.f32 %v4945_v52, %v1005_v14 }
 0x158   : > { %v803_v23 = vpop.f32.mrf.mxu3 }
 0x159   : > { %v832_v24 = vmul.f32 0.35355338, %v803_v23  ;;  %v968_v23 = vadd.f32 %v4946_v20, %v967_v21 }
 0x15b   : > { %v838_v25 = vadd.f32 %v5327_v22, %v832_v24  ;;  %v969_v24 = vpop.f32.mrf.mxu1 }
 0x15d   : > { %v840_v27 = vsel %vm779_vm2, %v838_v25, -inf }
 0x15e   : > { %841 = vmax.xlane.f32.xlu1 %v840_v27  ;;  %v1222_v27 = vsel %vm1200_vm11, %v935_v26, 0 }
 0x160   : > { %v829_v29 = vpop.f32.mrf.mxu3 }
 0x161   : > { %v833_v30 = vmul.f32 0.35355338, %v829_v29  ;;  %v4725_v29 = vld [vmem:[%s5237_s28 + $0x98] sm:$0xff] }
 0x162   : > { %1036 = vmatpush.bf16.msrb.mxu3 %v4725_v29 }
 0x163   : > { %v839_v31 = vadd.f32 %v5331_v28, %v833_v30 }
 0x165   : > { %v843_v32 = vsel %vm779_vm2, %v839_v31, -inf }
 0x166   : > { %844 = vmax.xlane.f32.xlu0 %v843_v32 }
 0x1d1   : > { %v842_v37 = vpop.xlane.xlu1 %841 }
 0x1d2   : > { %v846_v38 = vsub.f32 %v838_v25, %v842_v37  ;;  %v970_v25 = vadd.f32 %v4946_v20, %v969_v24 }
 0x1d4   : > { %v848_v39 = vmul.f32 1.442695, %v846_v38 }
 0x1d6   : > { %4960 = vpow2.f32 %v848_v39 }
 0x1d9   : > { %v845_v40 = vpop.xlane.xlu0 %844 }
 0x1da   : > { %v847_v41 = vsub.f32 %v839_v31, %v845_v40 }
 0x1dc   : > { %v4961_v42 = vpop.eup %4960  ;;  %v850_v43 = vmul.f32 1.442695, %v847_v41  ;;  %v4724_v41 = vld [vmem:[%s5237_s28 + $0x90] sm:$0xff] }
 0x1dd   : > { %v852_v44 = vsel %vm779_vm2, %v4961_v42, 0.0  ;;  %1037 = vmatpush.bf16.msrb.mxu3 %v4724_v41 }
 0x1de   : > { %4962 = vpow2.f32 %v850_v43  ;;  %853 = vadd.xlane.f32.xlu1 %v852_v44 }
 0x1e4   : > { %v4963_v45 = vpop.eup %4962 }
 0x1e5   : > { %v855_v46 = vsel %vm779_vm2, %v4963_v45, 0.0 }
 0x1e6   : > { %856 = vadd.xlane.f32.xlu0 %v855_v46 }
 0x251   : > { %v854_v55 = vpop.xlane.xlu1 %853 }
 0x252   : > { %4964 = vrcp.f32 %v854_v55  ;;  %v869_v60 = vand.u32 2147483648, %v854_v55  ;;  %v867_v62 = vand.u32 2147483647, %v854_v55  ;;  %vm863_vm4 = vweird.f32 %v854_v55 }
 0x254   : > { %v870_v1 = vor.u32 1.1754944e-38, %v869_v60  ;;  %vm868_vm6 = vcmp.eq.f32.partialorder %v867_v62, 8.507059e+37 }
 0x258   : > { %v4965_v56 = vpop.eup %4964 }
 0x259   : > { %v859_v57 = vmul.f32 %v4965_v56, %v854_v55  ;;  %v857_v58 = vpop.xlane.xlu0 %856  ;;  %vm864_vm3 = vweird.f32 %v4965_v56 }
 0x25a   : > { %4966 = vrcp.f32 %v857_v58  ;;  %vm865_vm5 = vmor %vm863_vm4, %vm864_vm3  ;;  %v884_v10 = vand.u32 2147483648, %v857_v58  ;;  %v882_v12 = vand.u32 2147483647, %v857_v58  ;;  %vm878_vm8 = vweird.f32 %v857_v58 }
 0x25b   : > { %v860_v59 = vsub.f32 1.0, %v859_v57  ;;  %v4727_v57 = vld [vmem:[%s5237_s28 + $0x28] sm:$0xff] }
 0x25c   : > { %v885_v15 = vor.u32 1.1754944e-38, %v884_v10  ;;  %vm883_vm10 = vcmp.eq.f32.partialorder %v882_v12, 8.507059e+37  ;;  %1266 = vmatpush.bf16.msra.mxu1 %v4727_v57  ;;  %v4729_v12 = vld [vmem:[%s5237_s28 + $0x68] sm:$0xff] }
 0x25d   : > { %v861_v61 = vmul.f32 %v4965_v56, %v860_v59 }
 0x25f   : > { %v862_v63 = vadd.f32 %v4965_v56, %v861_v61 }
 0x260   : > { %v4967_v0 = vpop.eup %4966 }
 0x261   : > { %v866_v2 = vsel %vm865_vm5, %v4965_v56, %v862_v63  ;;  %v874_v3 = vmul.f32 %v4967_v0, %v857_v58  ;;  %vm879_vm7 = vweird.f32 %v4967_v0  ;;  %v4726_v58 = vld [vmem:[%s5237_s28 + $0x20] sm:$0xff] }
 0x262   : > { %v871_v4 = vsel %vm868_vm6, %v870_v1, %v866_v2  ;;  %vm880_vm9 = vmor %vm878_vm8, %vm879_vm7  ;;  %1267 = vmatpush.bf16.msra.mxu1 %v4726_v58 }
 0x263   : > { %v875_v5 = vsub.f32 1.0, %v874_v3  ;;  %v872_v9 = vmul.f32 %v4961_v42, %v871_v4 }
 0x265   : > { %v876_v11 = vmul.f32 %v4967_v0, %v875_v5  ;;  %3900 = vmatmul.msk.f32.vlgmr.msra.gmra.mxu3 %vm779_vm2, %v872_v9  ;;  %3966 = vmatmul.msk.bf16.vlgmr.msra.gmra.mxu1 %vm689_vm1, %v5308_v8 }
 0x267   : > { %v877_v13 = vadd.f32 %v4967_v0, %v876_v11 }
 0x269   : > { %v881_v16 = vsel %vm880_vm9, %v4967_v0, %v877_v13 }
 0x26a   : > { %v886_v17 = vsel %vm883_vm10, %v885_v15, %v881_v16 }
 0x26b   : > { %v887_v19 = vmul.f32 %v4963_v45, %v886_v17 }
 0x26d   : > { %3901 = vmatmul.msk.f32.vlgmr.msrb.gmra.mxu0 %vm779_vm2, %v887_v19  ;;  %3943 = vmatmul.msk.bf16.vlgmr.msrb.gmra.mxu3 %vm689_vm1, %v5308_v8 }
 0x26e   : > { %3946 = vmatpush.xpose.msk.msrb.mxu0 %vm779_vm2, %v1006_v18  ;;  %v4728_v18 = vld [vmem:[%s5237_s28 + $0x60] sm:$0xff] }
 0x275   : > { %3945 = vmatmul.msk.f32.vlgmr.msra.gmra.mxu0 %vm779_vm2, %v968_v23 }
 0x276   : > { %1231 = vmatpush.bf16.msra.mxu0 %v1222_v27 }
 0x27d   : > { %3947 = vmatmul.msk.f32.vlgmr.msrb.gmra.mxu0 %vm779_vm2, %v970_v25  ;;  %v3950_v25 = vld [vmem:[%s5831_s21 + $0x4] sm:$0xf] }
 0x27e   : > { %v1202_v26 = vsel %vm1200_vm11, %v3950_v25, 0 }
 0x27f   : > { %1211 = vmatpush.bf16.msra.mxu3 %v1202_v26 }
 0x2e8   : > { %v908_v30 = vpop.f32.mrf.mxu3 }
 0x2ea   : > { %v931_v31 = vpop.f32.mrf.mxu0 }
 0x2eb   : > { %v934_v32 = vpack.c.bf16 %v931_v31, %v908_v30  ;;  %v4949_v31 = vld [vmem:[%s5246_s8 + $0x6] ss:$0 sm:$0xff] }
 0x2ed   : > { %3952 = vmatmul.msk.bf16.vlgmr.msra.gmra.mxu0 %vm779_vm2, %v934_v32  ;;  %v4948_v32 = vld [vmem:[%s5246_s8 + $0x2] ss:$0 sm:$0xff] }
 0x2f0   : > { %v1039_v52 = vpop.f32.mrf.mxu3 }
 0x2f1   : > { %v1040_v54 = vadd.f32 %v4947_v53, %v1039_v52  ;;  %v4730_v52 = vld [vmem:[%s5237_s28 + $0xa0] sm:$0xff] }
 0x2f2   : > { %v1067_v33 = vpop.f32.mrf.mxu0 }
 0x2f3   : > { %v1096_v34 = vmul.f32 0.35355338, %v1067_v33  ;;  %1166 = vmatpush.msra.mxu2 %v1040_v54  ;;  %v1269_v33 = vpop.f32.mrf.mxu1 }
 0x2f5   : > { %v1098_v35 = vadd.f32 %v1096_v34, %v5327_v22 }
 0x2f7   : > { %v1100_v36 = vsel %vm779_vm2, %v1098_v35, -inf }
 0x2f8   : > { %1101 = vmax.xlane.f32.xlu2 %v1100_v36  ;;  %v1041_v55 = vpop.f32.mrf.mxu3  ;;  %v1270_v36 = vadd.f32 %v4948_v32, %v1269_v33 }
 0x2f9   : > { %v1042_v56 = vadd.f32 %v4947_v53, %v1041_v55 }
 0x2fa   : > { %v1093_v37 = vpop.f32.mrf.mxu0 }
 0x2fb   : > { %v1097_v38 = vmul.f32 0.35355338, %v1093_v37  ;;  %1189 = vmatpush.msrb.mxu2 %v1042_v56 }
 0x2fd   : > { %v1099_v39 = vadd.f32 %v1097_v38, %v5331_v28  ;;  %v1271_v38 = vpop.f32.mrf.mxu1 }
 0x2ff   : > { %v1103_v40 = vsel %vm779_vm2, %v1099_v39, -inf }
 0x300   : > { %1104 = vmax.xlane.f32.xlu2 %v1103_v40  ;;  %v1272_v40 = vadd.f32 %v4948_v32, %v1271_v38 }
 0x36a   : > { %v5387_v41 = vpop.f32.mrf.mxu0 }
 0x36b   : > { %v1102_v42 = vpop.xlane.xlu2 %1101 }
 0x36c   : > { %v1106_v43 = vsub.f32 %v1098_v35, %v1102_v42  ;;  %v4731_v42 = vld [vmem:[%s5237_s28 + $0xa8] sm:$0xff] }
 0x36d   : > { %1338 = vmatpush.bf16.msrb.mxu3 %v4731_v42  ;;  %v4001_v42 = vld [vmem:[%s5831_s21 + $0x8] sm:$0xf] }
 0x36e   : > { %v1108_v44 = vmul.f32 1.442695, %v1106_v43 }
 0x370   : > { %4968 = vpow2.f32 %v1108_v44 }
 0x371   : > { %1339 = vmatpush.bf16.msrb.mxu3 %v4730_v52  ;;  %v4952_v52 = vld [vmem:[%s5246_s8 + $0x3] ss:$0 sm:$0xff] }
 0x372   : > { %v5390_v43 = vpop.f32.mrf.mxu0 }
 0x373   : > { %v1105_v45 = vpop.xlane.xlu2 %1104 }
 0x374   : > { %v1107_v46 = vsub.f32 %v1099_v39, %v1105_v45 }
 0x376   : > { %v4969_v47 = vpop.eup %4968  ;;  %v1110_v48 = vmul.f32 1.442695, %v1107_v46 }
 0x377   : > { %v1112_v49 = vsel %vm779_vm2, %v4969_v47, 0.0 }
 0x378   : > { %4970 = vpow2.f32 %v1110_v48  ;;  %1113 = vadd.xlane.f32.xlu0 %v1112_v49 }
 0x37e   : > { %v4971_v50 = vpop.eup %4970 }
 0x37f   : > { %v1115_v51 = vsel %vm779_vm2, %v4971_v50, 0.0 }
 0x380   : > { %1116 = vadd.xlane.f32.xlu1 %v1115_v51 }
 0x3eb   : > { %v1114_v59 = vpop.xlane.xlu0 %1113 }
 0x3ec   : > { %4972 = vrcp.f32 %v1114_v59  ;;  %v1129_v0 = vand.u32 2147483648, %v1114_v59  ;;  %v1127_v2 = vand.u32 2147483647, %v1114_v59  ;;  %vm1123_vm13 = vweird.f32 %v1114_v59 }
 0x3ee   : > { %v1130_v5 = vor.u32 1.1754944e-38, %v1129_v0  ;;  %vm1128_vm15 = vcmp.eq.f32.partialorder %v1127_v2, 8.507059e+37  ;;  %v4735_v2 = vld [vmem:[%s5237_s28 + $0x78] sm:$0xff] }
 0x3f2   : > { %v4973_v60 = vpop.eup %4972 }
 0x3f3   : > { %v1119_v61 = vmul.f32 %v4973_v60, %v1114_v59  ;;  %v1117_v62 = vpop.xlane.xlu1 %1116  ;;  %vm1124_vm12 = vweird.f32 %v4973_v60 }
 0x3f4   : > { %4974 = vrcp.f32 %v1117_v62  ;;  %vm1125_vm14 = vmor %vm1123_vm13, %vm1124_vm12  ;;  %v1144_v15 = vand.u32 2147483648, %v1117_v62  ;;  %v1142_v17 = vand.u32 2147483647, %v1117_v62  ;;  %vm1138_vm3 = vweird.f32 %v1117_v62 }
 0x3f5   : > { %v1120_v63 = vsub.f32 1.0, %v1119_v61 }
 0x3f6   : > { %v1145_v20 = vor.u32 1.1754944e-38, %v1144_v15  ;;  %vm1143_vm5 = vcmp.eq.f32.partialorder %v1142_v17, 8.507059e+37 }
 0x3f7   : > { %v1121_v1 = vmul.f32 %v4973_v60, %v1120_v63 }
 0x3f9   : > { %v1122_v3 = vadd.f32 %v4973_v60, %v1121_v1 }
 0x3fa   : > { %v4975_v4 = vpop.eup %4974 }
 0x3fb   : > { %v1126_v9 = vsel %vm1125_vm14, %v4973_v60, %v1122_v3  ;;  %v1134_v10 = vmul.f32 %v4975_v4, %v1117_v62  ;;  %vm1139_vm0 = vweird.f32 %v4975_v4  ;;  %v4734_v3 = vld [vmem:[%s5237_s28 + $0x70] sm:$0xff] }
 0x3fc   : > { %v1131_v11 = vsel %vm1128_vm15, %v1130_v5, %v1126_v9  ;;  %vm1140_vm4 = vmor %vm1138_vm3, %vm1139_vm0 }
 0x3fd   : > { %v1135_v13 = vsub.f32 1.0, %v1134_v10  ;;  %v1132_v14 = vmul.f32 %v4969_v47, %v1131_v11  ;;  %v4733_v11 = vld [vmem:[%s5237_s28 + $0x38] sm:$0xff] }
 0x3ff   : > { %v1136_v16 = vmul.f32 %v4975_v4, %v1135_v13  ;;  %3948 = vmatmul.msk.f32.vlgmr.msra.gmra.mxu2 %vm779_vm2, %v1132_v14 }
 0x400   : > { %1302 = vmatpush.bf16.msra.mxu2 %v4729_v12  ;;  %v4732_v12 = vld [vmem:[%s5237_s28 + $0x30] sm:$0xff] }
 0x401   : > { %v1137_v19 = vadd.f32 %v4975_v4, %v1136_v16 }
 0x403   : > { %v1141_v21 = vsel %vm1140_vm4, %v4975_v4, %v1137_v19  ;;  %v4950_v4 = vld [vmem:[%s5246_s8 + $0xa] ss:$0 sm:$0xff] }
 0x404   : > { %v1146_v23 = vsel %vm1143_vm5, %v1145_v20, %v1141_v21  ;;  %1303 = vmatpush.bf16.msra.mxu2 %v4728_v18 }
 0x405   : > { %v1147_v24 = vmul.f32 %v4971_v50, %v1146_v23 }
 0x407   : > { %3949 = vmatmul.msk.f32.vlgmr.msrb.gmra.mxu2 %vm779_vm2, %v1147_v24 }
 0x40f   : > { %3980 = vmatmul.msk.bf16.vlgmr.msra.gmra.mxu2 %vm689_vm1, %v5308_v8 }
 0x482   : > { %v1168_v27 = vpop.f32.mrf.mxu2 }
 0x48a   : > { %v1191_v29 = vpop.f32.mrf.mxu2 }
 0x48b   : > { %v1194_v30 = vpack.c.bf16 %v1191_v29, %v1168_v27 }
 0x48d   : > { %3951 = vmatmul.msk.bf16.vlgmr.msra.gmra.mxu3 %vm779_vm2, %v1194_v30 }
 0x48e   : > { %1585 = vmatpush.bf16.msra.mxu3 %v4735_v2 }
 0x492   : > { %v1305_v34 = vpop.f32.mrf.mxu2  ;;  %1586 = vmatpush.bf16.msra.mxu3 %v4734_v3 }
 0x493   : > { %v1306_v35 = vadd.f32 %v4949_v31, %v1305_v34 }
 0x495   : > { %3995 = vmatpush.xpose.msk.msrb.mxu0 %vm779_vm2, %v1306_v35 }
 0x498   : > { %3996 = vmatmul.msk.f32.vlgmr.msrb.gmra.mxu0 %vm779_vm2, %v1270_v36 }
 0x49a   : > { %v1307_v37 = vpop.f32.mrf.mxu2 }
 0x49b   : > { %v1308_v39 = vadd.f32 %v4949_v31, %v1307_v37 }
 0x49d   : > { %3997 = vmatpush.xpose.msk.msrb.mxu1 %vm779_vm2, %v1308_v39  ;;  %3994 = vmatmul.msk.bf16.vlgmr.msrb.gmra.mxu3 %vm689_vm1, %v5308_v8  ;;  %v4951_v39 = vld [vmem:[%s5246_s8 + $0x7] ss:$0 sm:$0xff] }
 0x4a0   : > { %3998 = vmatmul.msk.f32.vlgmr.msrb.gmra.mxu1 %vm779_vm2, %v1272_v40 }
 0x4ad   : > { %4030 = vmatmul.msk.bf16.vlgmr.msra.gmra.mxu3 %vm689_vm1, %v5308_v8 }
 0x510   : > { %v5401_v63 = vpop.f32.mrf.mxu3 }
 0x515   : > { %v1369_v44 = vpop.f32.mrf.mxu0 }
 0x516   : > { %v1398_v45 = vmul.f32 0.35355338, %v1369_v44 }
 0x518   : > { %v1400_v46 = vadd.f32 %v1398_v45, %v5327_v22  ;;  %v5403_v0 = vpop.f32.mrf.mxu3  ;;  %v1503_v45 = vsel %vm1200_vm11, %v4001_v42, 0 }
 0x519   : > { %1512 = vmatpush.bf16.msra.mxu1 %v1503_v45 }
 0x51a   : > { %v1402_v47 = vsel %vm779_vm2, %v1400_v46, -inf }
 0x51b   : > { %1403 = vmax.xlane.f32.xlu2 %v1402_v47 }
 0x51d   : > { %v1395_v48 = vpop.f32.mrf.mxu1 }
 0x51e   : > { %v1399_v49 = vmul.f32 0.35355338, %v1395_v48 }
 0x520   : > { %v1401_v50 = vadd.f32 %v1399_v49, %v5331_v28  ;;  %v1341_v1 = vpop.f32.mrf.mxu3 }
 0x521   : > { %v1342_v9 = vadd.f32 %v4950_v4, %v1341_v1 }
 0x522   : > { %v1405_v51 = vsel %vm779_vm2, %v1401_v50, -inf }
 0x523   : > { %1406 = vmax.xlane.f32.xlu0 %v1405_v51  ;;  %1468 = vmatpush.msrb.mxu2 %v1342_v9 }
 0x525   : > { %1549 = vmatpush.bf16.msra.mxu2 %v4733_v11 }
 0x528   : > { %v1343_v5 = vpop.f32.mrf.mxu3 }
 0x529   : > { %v1344_v10 = vadd.f32 %v4950_v4, %v1343_v5  ;;  %1550 = vmatpush.bf16.msra.mxu2 %v4732_v12 }
 0x52b   : > { %1491 = vmatpush.msra.mxu0 %v1344_v10  ;;  %v4736_v10 = vld [vmem:[%s5237_s28 + $0xb0] sm:$0xff] }
 0x530   : > { %v1588_v40 = vpop.f32.mrf.mxu3 }
 0x531   : > { %v1589_v44 = vadd.f32 %v4951_v39, %v1588_v40 }
 0x533   : > { %4045 = vmatpush.xpose.msk.msrb.mxu1 %vm779_vm2, %v1589_v44 }
 0x58e   : > { %v1404_v53 = vpop.xlane.xlu2 %1403 }
 0x58f   : > { %v1408_v54 = vsub.f32 %v1400_v46, %v1404_v53  ;;  %v1590_v46 = vpop.f32.mrf.mxu3 }
 0x590   : > { %v1591_v47 = vadd.f32 %v4951_v39, %v1590_v46 }
 0x591   : > { %v1410_v55 = vmul.f32 1.442695, %v1408_v54 }
 0x593   : > { %4976 = vpow2.f32 %v1410_v55 }
 0x596   : > { %v1407_v56 = vpop.xlane.xlu0 %1406 }
 0x597   : > { %v1409_v57 = vsub.f32 %v1401_v50, %v1407_v56  ;;  %v4737_v56 = vld [vmem:[%s5237_s28 + $0xb8] sm:$0xff] }
 0x598   : > { %1621 = vmatpush.bf16.msrb.mxu0 %v4737_v56 }
 0x599   : > { %v4977_v58 = vpop.eup %4976  ;;  %v1412_v59 = vmul.f32 1.442695, %v1409_v57  ;;  %v1234_v57 = vadd.f32 %v5387_v41, %v5401_v63 }
 0x59a   : > { %v1414_v60 = vsel %vm779_vm2, %v4977_v58, 0.0 }
 0x59b   : > { %4978 = vpow2.f32 %v1412_v59  ;;  %1415 = vadd.xlane.f32.xlu1 %v1414_v60  ;;  %v1236_v60 = vadd.f32 %v5390_v43, %v5403_v0 }
 0x59c   : > { %1622 = vmatpush.bf16.msrb.mxu0 %v4736_v10 }
 0x5a1   : > { %v4979_v61 = vpop.eup %4978 }
 0x5a2   : > { %v1417_v62 = vsel %vm779_vm2, %v4979_v61, 0.0 }
 0x5a3   : > { %1418 = vadd.xlane.f32.xlu2 %v1417_v62 }
 0x60e   : > { %v1416_v13 = vpop.xlane.xlu1 %1415 }
 0x60f   : > { %4980 = vrcp.f32 %v1416_v13  ;;  %v1431_v18 = vand.u32 2147483648, %v1416_v13  ;;  %v1429_v20 = vand.u32 2147483647, %v1416_v13  ;;  %vm1425_vm7 = vweird.f32 %v1416_v13 }
 0x611   : > { %v1432_v24 = vor.u32 1.1754944e-38, %v1431_v18  ;;  %vm1430_vm9 = vcmp.eq.f32.partialorder %v1429_v20, 8.507059e+37  ;;  %v4953_v18 = vld [vmem:[%s5246_s8 + $0xb] ss:$0 sm:$0xff] }
 0x615   : > { %v4981_v14 = vpop.eup %4980 }
 0x616   : > { %v1421_v15 = vmul.f32 %v4981_v14, %v1416_v13  ;;  %v1419_v16 = vpop.xlane.xlu2 %1418  ;;  %vm1426_vm6 = vweird.f32 %v4981_v14 }
 0x617   : > { %4982 = vrcp.f32 %v1419_v16  ;;  %vm1427_vm8 = vmor %vm1425_vm7, %vm1426_vm6  ;;  %v1446_v31 = vand.u32 2147483648, %v1419_v16  ;;  %v1444_v33 = vand.u32 2147483647, %v1419_v16  ;;  %vm1440_vm12 = vweird.f32 %v1419_v16 }
 0x618   : > { %v1422_v17 = vsub.f32 1.0, %v1421_v15 }
 0x619   : > { %v1447_v35 = vor.u32 1.1754944e-38, %v1446_v31  ;;  %vm1445_vm14 = vcmp.eq.f32.partialorder %v1444_v33, 8.507059e+37 }
 0x61a   : > { %v1423_v19 = vmul.f32 %v4981_v14, %v1422_v17 }
 0x61c   : > { %v1424_v21 = vadd.f32 %v4981_v14, %v1423_v19 }
 0x61d   : > { %v4983_v23 = vpop.eup %4982 }
 0x61e   : > { %v1428_v25 = vsel %vm1427_vm8, %v4981_v14, %v1424_v21  ;;  %v1436_v26 = vmul.f32 %v4983_v23, %v1419_v16  ;;  %vm1441_vm10 = vweird.f32 %v4983_v23 }
 0x61f   : > { %v1433_v27 = vsel %vm1430_vm9, %v1432_v24, %v1428_v25  ;;  %vm1442_vm13 = vmor %vm1440_vm12, %vm1441_vm10 }
 0x620   : > { %v1437_v29 = vsub.f32 1.0, %v1436_v26  ;;  %v1434_v30 = vmul.f32 %v4977_v58, %v1433_v27 }
 0x622   : > { %v1438_v32 = vmul.f32 %v4983_v23, %v1437_v29  ;;  %3999 = vmatmul.msk.f32.vlgmr.msrb.gmra.mxu2 %vm779_vm2, %v1434_v30 }
 0x623   : > { %4047 = vmatpush.xpose.msk.msrb.mxu2 %vm779_vm2, %v1591_v47 }
 0x624   : > { %v1439_v34 = vadd.f32 %v4983_v23, %v1438_v32 }
 0x626   : > { %v1443_v36 = vsel %vm1442_vm13, %v4983_v23, %v1439_v34 }
 0x627   : > { %v1448_v37 = vsel %vm1445_vm14, %v1447_v35, %v1443_v36 }
 0x628   : > { %v1449_v38 = vmul.f32 %v4979_v61, %v1448_v37 }
 0x62a   : > { %4000 = vmatmul.msk.f32.vlgmr.msra.gmra.mxu0 %vm779_vm2, %v1449_v38  ;;  %4016 = vmatmul.msk.bf16.vlgmr.msra.gmra.mxu2 %vm689_vm1, %v5308_v8 }
 0x632   : > { %4044 = vmatmul.msk.bf16.vlgmr.msrb.gmra.mxu0 %vm689_vm1, %v5308_v8 }
 0x6a5   : > { %v1470_v48 = vpop.f32.mrf.mxu2 }
 0x6a7   : > { %v1493_v49 = vpop.f32.mrf.mxu0 }
 0x6a8   : > { %v1496_v50 = vpack.c.bf16 %v1493_v49, %v1470_v48  ;;  %v4051_v49 = vld [vmem:[%s5831_s21 + $0xc] sm:$0xf] }
 0x6aa   : > { %4002 = vmatmul.msk.bf16.vlgmr.msra.gmra.mxu1 %vm779_vm2, %v1496_v50  ;;  %v1786_v50 = vsel %vm1200_vm11, %v4051_v49, 0 }
 0x6ab   : > { %1795 = vmatpush.bf16.msra.mxu1 %v1786_v50 }
 0x6ad   : > { %v1552_v51 = vpop.f32.mrf.mxu2 }
 0x6ae   : > { %v1553_v55 = vadd.f32 %v4952_v52, %v1552_v51 }
 0x6af   : > { %v1624_v17 = vpop.f32.mrf.mxu0 }
 0x6b0   : > { %v1625_v19 = vadd.f32 %v4953_v18, %v1624_v17  ;;  %v4754_v17 = vld [vmem:[%s5833_s30 + $0x84] sm:$0xf] }
 0x6b2   : > { %1751 = vmatpush.msrb.mxu3 %v1625_v19  ;;  %v4127_v19 = vld [vmem:[%s5833_s30 + $0x88] sm:$0xf] }
 0x6b5   : > { %v1554_v53 = vpop.f32.mrf.mxu2 }
 0x6b6   : > { %v1555_v54 = vadd.f32 %v4952_v52, %v1554_v53 }
 0x6b7   : > { %v1626_v8 = vpop.f32.mrf.mxu0 }
 0x6b8   : > { %4048 = vmatmul.msk.f32.vlgmr.msrb.gmra.mxu2 %vm779_vm2, %v1555_v54  ;;  %v1627_v20 = vadd.f32 %v4953_v18, %v1626_v8  ;;  %v4954_v54 = vld [vmem:[%s5832_s15] ss:$0 sm:$0xff]  ;;  %v4121_v8 = vld [vmem:[%s5833_s30 + $0xc0] sm:$0xf0] }
 0x6ba   : > { %4046 = vmatmul.msk.f32.vlgmr.msrb.gmra.mxu1 %vm779_vm2, %v1553_v55  ;;  %1774 = vmatpush.msra.mxu0 %v1627_v20  ;;  %v4763_v20 = vld [vmem:[%s5833_s30 + $0xc4] sm:$0xf0] }
 0x727   : > { %v1514_v58 = vpop.f32.mrf.mxu1 }
 0x728   : > { %v5428_v59 = vadd.f32 %v1514_v58, %v1234_v57 }
 0x72f   : > { %v1516_v61 = vpop.f32.mrf.mxu1 }
 0x730   : > { %v5432_v62 = vadd.f32 %v1516_v61, %v1236_v60 }
 0x737   : > { %v1652_v1 = vpop.f32.mrf.mxu1 }
 0x738   : > { %v1681_v2 = vmul.f32 0.35355338, %v1652_v1 }
 0x73a   : > { %v1683_v3 = vadd.f32 %v1681_v2, %v5327_v22 }
 0x73b   : > { %v1678_v4 = vpop.f32.mrf.mxu2 }
 0x73c   : > { %v1682_v5 = vmul.f32 0.35355338, %v1678_v4  ;;  %v1685_v9 = vsel %vm779_vm2, %v1683_v3, -inf }
 0x73d   : > { %1686 = vmax.xlane.f32.xlu0 %v1685_v9 }
 0x73e   : > { %v1684_v41 = vadd.f32 %v1682_v5, %v5331_v28  ;;  %v5070_v5 = vmov 32.0  }
 0x740   : > { %v1688_v63 = vsel %vm779_vm2, %v1684_v41, -inf }
 0x741   : > { %1689 = vmax.xlane.f32.xlu1 %v1688_v63 }
 0x7b0   : > { %v1687_v43 = vpop.xlane.xlu0 %1686 }
 0x7b1   : > { %v1691_v0 = vsub.f32 %v1683_v3, %v1687_v43 }
 0x7b3   : > { %v1693_v11 = vmul.f32 1.442695, %v1691_v0 }
 0x7b4   : > { %v1690_v22 = vpop.xlane.xlu1 %1689 }
 0x7b5   : > { %4984 = vpow2.f32 %v1693_v11  ;;  %v1692_v12 = vsub.f32 %v1684_v41, %v1690_v22 }
 0x7b7   : > { %v1695_v13 = vmul.f32 1.442695, %v1692_v12 }
 0x7b9   : > { %4986 = vpow2.f32 %v1695_v13 }
 0x7bb   : > { %v4985_v14 = vpop.eup %4984 }
 0x7bc   : > { %v1697_v28 = vsel %vm779_vm2, %v4985_v14, 0.0 }
 0x7bd   : > { %1698 = vadd.xlane.f32.xlu2 %v1697_v28 }
 0x7bf   : > { %v4987_v15 = vpop.eup %4986 }
 0x7c0   : > { %v1700_v16 = vsel %vm779_vm2, %v4987_v15, 0.0 }
 0x7c1   : > { %1701 = vadd.xlane.f32.xlu0 %v1700_v16  ;;  %v4762_v16 = vld [vmem:[%s5833_s30 + $0xbc] sm:$0xf0] }
 0x830   : > { %v1699_v21 = vpop.xlane.xlu2 %1698 }
 0x831   : > { %4988 = vrcp.f32 %v1699_v21  ;;  %v1712_v29 = vand.u32 2147483647, %v1699_v21  ;;  %v1714_v30 = vand.u32 2147483648, %v1699_v21  ;;  %vm1708_vm0 = vweird.f32 %v1699_v21 }
 0x833   : > { %vm1713_vm4 = vcmp.eq.f32.partialorder %v1712_v29, 8.507059e+37  ;;  %v1715_v35 = vor.u32 1.1754944e-38, %v1714_v30  ;;  %v4055_v30 = vld [vmem:[%s5833_s30] sm:$0xf] }
 0x834   : > { %v1702_v23 = vpop.xlane.xlu0 %1701 }
 0x835   : > { %4990 = vrcp.f32 %v1702_v23  ;;  %v1729_v36 = vand.u32 2147483648, %v1702_v23  ;;  %v1727_v39 = vand.u32 2147483647, %v1702_v23  ;;  %vm1723_vm6 = vweird.f32 %v1702_v23 }
 0x836   : > { %4992 = vrcp.f32 %v5070_v5 }
 0x837   : > { %v4989_v24 = vpop.eup %4988  ;;  %v1730_v45 = vor.u32 1.1754944e-38, %v1729_v36  ;;  %vm1728_vm8 = vcmp.eq.f32.partialorder %v1727_v39, 8.507059e+37  ;;  %v4747_v36 = vld [vmem:[%s5833_s30 + $0x44] sm:$0xf0] }
 0x838   : > { %v1704_v25 = vmul.f32 %v4989_v24, %v1699_v21  ;;  %vm1709_vm15 = vweird.f32 %v4989_v24  ;;  %v4124_v21 = vor.u32 %v4754_v17, %v4121_v8 }
 0x839   : > { %vm1710_vm3 = vmor %vm1708_vm0, %vm1709_vm15 }
 0x83a   : > { %v1705_v26 = vsub.f32 1.0, %v1704_v25  ;;  %v4129_v25 = vld [vmem:[%s5833_s30 + $0xc8] sm:$0xf0]  ;;  %2384 = vmatpush.bf16.msra.mxu3 %v4124_v21 }
 0x83b   : > { %v4991_v27 = vpop.eup %4990 }
 0x83c   : > { %v1706_v31 = vmul.f32 %v4989_v24, %v1705_v26  ;;  %v1719_v32 = vmul.f32 %v4991_v27, %v1702_v23  ;;  %vm1724_vm5 = vweird.f32 %v4991_v27  ;;  %v4993_v9 = vpop.eup %4992  ;;  %v4128_v23 = vor.u32 %v4763_v20, %v4127_v19  ;;  %v4955_v19 = vld [vmem:[%s631_s23] ss:$0 sm:$0xff] }
 0x83d   : > { %vm1725_vm7 = vmor %vm1723_vm6, %vm1724_vm5  ;;  %v1821_v41 = vmul.f32 32.0, %v4993_v9 }
 0x83e   : > { %v1707_v33 = vadd.f32 %v4989_v24, %v1706_v31  ;;  %v1720_v34 = vsub.f32 1.0, %v1719_v32  ;;  %2398 = vmatpush.bf16.msrb.mxu0 %v4128_v23  ;;  %v4746_v31 = vld [vmem:[%s5833_s30 + $0x3c] sm:$0xf0]  ;;  %v4738_v32 = vld [vmem:[%s5833_s30 + $0x4] sm:$0xf] }
 0x840   : > { %v1711_v37 = vsel %vm1710_vm3, %v4989_v24, %v1707_v33  ;;  %v1721_v38 = vmul.f32 %v4991_v27, %v1720_v34  ;;  %v4755_v24 = vld [vmem:[%s5833_s30 + $0x8c] sm:$0xf]  ;;  %v4056_v33 = vor.u32 %v4746_v31, %v4055_v30  ;;  %v4057_v34 = vld [vmem:[%s5833_s30 + $0x40] sm:$0xf0] }
 0x841   : > { %v1716_v40 = vsel %vm1713_vm4, %v1715_v35, %v1711_v37  ;;  %v4063_v35 = vld [vmem:[%s5833_s30 + $0x8] sm:$0xf]  ;;  %v4758_v30 = vld [vmem:[%s5833_s30 + $0xa4] sm:$0xf] }
 0x842   : > { %v1722_v42 = vadd.f32 %v4991_v27, %v1721_v38  ;;  %v1717_v44 = vmul.f32 %v4985_v14, %v1716_v40  ;;  %v4060_v38 = vor.u32 %v4738_v32, %v4057_v34  ;;  %v4064_v39 = vor.u32 %v4747_v36, %v4063_v35  ;;  %v4739_v40 = vld [vmem:[%s5833_s30 + $0xc] sm:$0xf]  ;;  %v4153_v31 = vld [vmem:[%s5833_s30 + $0xe0] sm:$0xf0]  ;;  %v4159_v32 = vld [vmem:[%s5833_s30 + $0xa8] sm:$0xf] }
 0x843   : > { %v4767_v35 = vld [vmem:[%s5833_s30 + $0xe4] sm:$0xf0]  ;;  %v4759_v36 = vld [vmem:[%s5833_s30 + $0xac] sm:$0xf] }
 0x844   : > { %v1726_v46 = vsel %vm1725_vm7, %v4991_v27, %v1722_v42  ;;  %4049 = vmatmul.msk.f32.vlgmr.msrb.gmra.mxu3 %vm779_vm2, %v1717_v44  ;;  %v4132_v27 = vor.u32 %v4755_v24, %v4129_v25  ;;  %v4065_v42 = vld [vmem:[%s5833_s30 + $0x48] sm:$0xf0]  ;;  %2399 = vmatpush.bf16.msrb.mxu0 %v4064_v39  ;;  %v4956_v24 = vld [vmem:[%s5834_s16] ss:$0 sm:$0xff]  ;;  %v4156_v39 = vor.u32 %v4758_v30, %v4153_v31 }
 0x845   : > { %v1731_v47 = vsel %vm1728_vm8, %v1730_v45, %v1726_v46  ;;  %v4068_v44 = vor.u32 %v4739_v40, %v4065_v42  ;;  %2385 = vmatpush.bf16.msra.mxu3 %v4060_v38  ;;  %v4135_v46 = vld [vmem:[%s5833_s30 + $0x90] sm:$0xf]  ;;  %v4087_v40 = vld [vmem:[%s5833_s30 + $0x20] sm:$0xf] }
 0x846   : > { %v1732_v48 = vmul.f32 %v4987_v15, %v1731_v47  ;;  %v4119_v15 = vld [vmem:[%s5833_s30 + $0x80] sm:$0xf]  ;;  %2412 = vmatpush.bf16.msrb.mxu1 %v4132_v27  ;;  %v4764_v47 = vld [vmem:[%s5833_s30 + $0xcc] sm:$0xf0] }
 0x847   : > { %v4120_v18 = vor.u32 %v4762_v16, %v4119_v15  ;;  %v4136_v50 = vor.u32 %v4764_v47, %v4135_v46  ;;  %v4750_v42 = vld [vmem:[%s5833_s30 + $0x5c] sm:$0xf0]  ;;  %v4742_v46 = vld [vmem:[%s5833_s30 + $0x24] sm:$0xf] }
 0x848   : > { %4050 = vmatmul.msk.f32.vlgmr.msra.gmra.mxu0 %vm779_vm2, %v1732_v48  ;;  %v4756_v48 = vld [vmem:[%s5833_s30 + $0x94] sm:$0xf]  ;;  %v4089_v47 = vld [vmem:[%s5833_s30 + $0x60] sm:$0xf0] }
 0x849   : > { %2370 = vmatpush.bf16.msra.mxu2 %v4120_v18  ;;  %v4774_v30 = vld [vmem:[%s5269_s2 + $0x20] sm:$0xff] }
 0x84a   : > { %2413 = vmatpush.bf16.msrb.mxu1 %v4068_v44  ;;  %v4160_v44 = vor.u32 %v4767_v35, %v4159_v32  ;;  %v4782_v31 = vld [vmem:[%s5269_s2 + $0x60] sm:$0xff]  ;;  %v4789_v32 = vld [vmem:[%s5269_s2 + $0x98] sm:$0xff] }
 0x84b   : > { %v4797_v35 = vld [vmem:[%s5269_s2 + $0xd8] sm:$0xff] }
 0x84d   : > { %2371 = vmatpush.bf16.msra.mxu2 %v4056_v33 }
 0x851   : > { %2426 = vmatpush.bf16.msrb.mxu2 %v4136_v50  ;;  %v4743_v50 = vld [vmem:[%s5833_s30 + $0x2c] sm:$0xf] }
 0x8c5   : > { %v1776_v51 = vpop.f32.mrf.mxu0 }
 0x8c7   : > { %v1753_v52 = vpop.f32.mrf.mxu3 }
 0x8c8   : > { %v1779_v53 = vpack.c.bf16 %v1776_v51, %v1753_v52  ;;  %v4137_v51 = vld [vmem:[%s5833_s30 + $0xd0] sm:$0xf0]  ;;  %v4143_v52 = vld [vmem:[%s5833_s30 + $0x98] sm:$0xf] }
 0x8ca   : > { %4052 = vmatmul.msk.bf16.vlgmr.msra.gmra.mxu1 %vm779_vm2, %v1779_v53  ;;  %vm1825_vm2 = vweird.f32 %v4993_v9  ;;  %v4765_v53 = vld [vmem:[%s5833_s30 + $0xd4] sm:$0xf0] }
 0x947   : > { %v1797_v55 = vpop.f32.mrf.mxu1 }
 0x948   : > { %v1802_v56 = vadd.f32 %v1797_v55, %v5428_v59  ;;  %v1822_v59 = vsub.f32 1.0, %v1821_v41  ;;  %v4144_v55 = vor.u32 %v4765_v53, %v4143_v52  ;;  %v4079_v41 = vld [vmem:[%s5833_s30 + $0x18] sm:$0xf]  ;;  %v4088_v52 = vor.u32 %v4750_v42, %v4087_v40  ;;  %v4772_v40 = vld [vmem:[%s5269_s2 + $0x10] sm:$0xff] }
 0x949   : > { %v4092_v53 = vor.u32 %v4742_v46, %v4089_v47  ;;  %v4780_v42 = vld [vmem:[%s5269_s2 + $0x50] sm:$0xff]  ;;  %v4779_v46 = vld [vmem:[%s5269_s2 + $0x48] sm:$0xff]  ;;  %v4786_v47 = vld [vmem:[%s5269_s2 + $0x80] sm:$0xff] }
 0x94a   : > { %v1808_v57 = vadd.f32 %v4954_v54, %v1802_v56  ;;  %v1823_v63 = vmul.f32 %v4993_v9, %v1822_v59  ;;  %v4757_v56 = vld [vmem:[%s5833_s30 + $0x9c] sm:$0xf]  ;;  %2454 = vmatpush.bf16.msra.mxu0 %v4144_v55  ;;  %v4749_v59 = vld [vmem:[%s5833_s30 + $0x54] sm:$0xf0] }
 0x94c   : > { %v1810_v58 = vadd.f32 %v1808_v57, %v5299_v6  ;;  %v1824_v6 = vadd.f32 %v4993_v9, %v1823_v63  ;;  %v4145_v57 = vld [vmem:[%s5833_s30 + $0xd8] sm:$0xf0] }
 0x94e   : > { %v1814_v60 = vsel %vm689_vm1, %v1810_v58, 0.0  ;;  %v5460_v10 = vsel %vm1825_vm2, %v4993_v9, %v1824_v6  ;;  %v4073_v9 = vld [vmem:[%s5833_s30 + $0x50] sm:$0xf0]  ;;  %v4080_v6 = vor.u32 %v4749_v59, %v4079_v41  ;;  %v4752_v41 = vld [vmem:[%s5833_s30 + $0x6c] sm:$0xf0] }
 0x94f   : > { %v1799_v61 = vpop.f32.mrf.mxu1  ;;  %1815 = vadd.xlane.f32.xlu1 %v1814_v60 }
 0x950   : > { %v1803_v1 = vadd.f32 %v1799_v61, %v5432_v62  ;;  %2455 = vmatpush.bf16.msra.mxu0 %v4080_v6  ;;  %v4744_v6 = vld [vmem:[%s5833_s30 + $0x34] sm:$0xf] }
 0x952   : > { %v1809_v2 = vadd.f32 %v4954_v54, %v1803_v1  ;;  %v4140_v54 = vor.u32 %v4756_v48, %v4137_v51  ;;  %v4148_v1 = vor.u32 %v4757_v56, %v4145_v57  ;;  %v4095_v48 = vld [vmem:[%s5833_s30 + $0x28] sm:$0xf]  ;;  %v4097_v51 = vld [vmem:[%s5833_s30 + $0x68] sm:$0xf0]  ;;  %v4167_v56 = vld [vmem:[%s5833_s30 + $0xb0] sm:$0xf] }
 0x953   : > { %v4100_v55 = vor.u32 %v4743_v50, %v4097_v51  ;;  %v4768_v57 = vld [vmem:[%s5833_s30 + $0xec] sm:$0xf0]  ;;  %v4833_v50 = vld [vmem:[%s5269_s2 + $0x1f8] sm:$0xff]  ;;  %v4770_v51 = vld [vmem:[%s5269_s2] sm:$0xff] }
 0x954   : > { %v1811_v3 = vadd.f32 %v1809_v2, %v5304_v7  ;;  %v4748_v2 = vld [vmem:[%s5833_s30 + $0x4c] sm:$0xf0]  ;;  %2440 = vmatpush.bf16.msrb.mxu3 %v4140_v54  ;;  %2468 = vmatpush.bf16.msra.mxu1 %v4148_v1  ;;  %v4769_v1 = vld [vmem:[%s5833_s30 + $0xf4] sm:$0xf0] }
 0x956   : > { %v1817_v4 = vsel %vm689_vm1, %v1811_v3, 0.0 }
 0x957   : > { %1818 = vadd.xlane.f32.xlu2 %v1817_v4 }
 0x9c2   : > { %v1816_v62 = vpop.xlane.xlu1 %1815 }
 0x9c3   : > { %v1827_v7 = vmul.f32 %v5460_v10, %v1816_v62  ;;  %v4741_v62 = vld [vmem:[%s5833_s30 + $0x1c] sm:$0xf] }
 0x9c5   : > { %v5463_v43 = vsub.f32 %v1810_v58, %v1827_v7  ;;  %v4071_v58 = vld [vmem:[%s5833_s30 + $0x10] sm:$0xf]  ;;  %v4081_v7 = vld [vmem:[%s5833_s30 + $0x58] sm:$0xf0] }
 0x9c6   : > { %v4072_v5 = vor.u32 %v4748_v2, %v4071_v58  ;;  %v4760_v58 = vld [vmem:[%s5833_s30 + $0xb4] sm:$0xf]  ;;  %v4761_v2 = vld [vmem:[%s5833_s30 + $0xbc] sm:$0xf] }
 0x9c7   : > { %v1831_v0 = vmul.f32 %v5463_v43, %v5463_v43 }
 0x9c8   : > { %2427 = vmatpush.bf16.msrb.mxu2 %v4072_v5 }
 0x9c9   : > { %v1833_v11 = vsel %vm689_vm1, %v1831_v0, 0.0 }
 0x9ca   : > { %v1819_v22 = vpop.xlane.xlu2 %1818  ;;  %1834 = vadd.xlane.f32.xlu0 %v1833_v11  ;;  %v4084_v11 = vor.u32 %v4741_v62, %v4081_v7  ;;  %v4105_v62 = vld [vmem:[%s5833_s30 + $0x70] sm:$0xf0]  ;;  %v4111_v7 = vld [vmem:[%s5833_s30 + $0x38] sm:$0xf] }
 0x9cb   : > { %v1828_v12 = vmul.f32 %v5460_v10, %v1819_v22 }
 0x9cc   : > { %2469 = vmatpush.bf16.msra.mxu1 %v4084_v11  ;;  %v4745_v11 = vld [vmem:[%s5833_s30 + $0x3c] sm:$0xf] }
 0x9cd   : > { %v5469_v13 = vsub.f32 %v1811_v3, %v1828_v12  ;;  %v4740_v3 = vld [vmem:[%s5833_s30 + $0x14] sm:$0xf] }
 0x9ce   : > { %v4076_v63 = vor.u32 %v4740_v3, %v4073_v9  ;;  %v4177_v3 = vld [vmem:[%s5833_s30 + $0xf8] sm:$0xf0]  ;;  %v4103_v9 = vld [vmem:[%s5833_s30 + $0x30] sm:$0xf] }
 0x9cf   : > { %v1832_v14 = vmul.f32 %v5469_v13, %v5469_v13 }
 0x9d0   : > { %2441 = vmatpush.bf16.msrb.mxu3 %v4076_v63  ;;  %v4180_v63 = vor.u32 %v4761_v2, %v4177_v3  ;;  %v4830_v2 = vld [vmem:[%s5269_s2 + $0x1e0] sm:$0xff]  ;;  %v4807_v3 = vld [vmem:[%s5269_s2 + $0x128] sm:$0xff] }
 0x9d1   : > { %v1836_v28 = vsel %vm689_vm1, %v1832_v14, 0.0 }
 0x9d2   : > { %1837 = vadd.xlane.f32.xlu1 %v1836_v28 }
 0xa3d   : > { %v1835_v26 = vpop.xlane.xlu0 %1834 }
 0xa3e   : > { %v1839_v29 = vmul.f32 %v1835_v26, %v5460_v10 }
 0xa40   : > { %v1841_v37 = vadd.f32 1e-05, %v1839_v29  ;;  %v4151_v29 = vld [vmem:[%s5833_s30 + $0xa0] sm:$0xf] }
 0xa42   : > { %4994 = vrsqrt.f32 %v1841_v37  ;;  %vm1849_vm9 = vweird.f32 %v1841_v37 }
 0xa45   : > { %v1838_v45 = vpop.xlane.xlu1 %1837 }
 0xa46   : > { %v1840_v49 = vmul.f32 %v1838_v45, %v5460_v10 }
 0xa48   : > { %v4995_v60 = vpop.eup %4994  ;;  %v1842_v61 = vadd.f32 1e-05, %v1840_v49  ;;  %v4751_v49 = vld [vmem:[%s5833_s30 + $0x64] sm:$0xf0] }
 0xa49   : > { %v1844_v4 = vmul.f32 %v4995_v60, %v1841_v37  ;;  %vm1850_vm11 = vweird.f32 %v4995_v60  ;;  %v4096_v54 = vor.u32 %v4751_v49, %v4095_v48  ;;  %v4794_v48 = vld [vmem:[%s5269_s2 + $0xc0] sm:$0xff]  ;;  %v4825_v49 = vld [vmem:[%s5269_s2 + $0x1b8] sm:$0xff] }
 0xa4a   : > { %4996 = vrsqrt.f32 %v1842_v61  ;;  %vm1851_vm10 = vmor %vm1849_vm9, %vm1850_vm11  ;;  %vm1859_vm13 = vweird.f32 %v1842_v61 }
 0xa4b   : > { %v1845_v0 = vmul.f32 %v4995_v60, %v1844_v4  ;;  %v4168_v4 = vor.u32 %v4768_v57, %v4167_v56  ;;  %v4832_v56 = vld [vmem:[%s5269_s2 + $0x1f0] sm:$0xff] }
 0xa4c   : > { %v4808_v57 = vld [vmem:[%s5269_s2 + $0x130] sm:$0xff] }
 0xa4d   : > { %v1846_v22 = vmul.f32 0.5, %v1845_v0  ;;  %v4753_v0 = vld [vmem:[%s5833_s30 + $0x74] sm:$0xf0] }
 0xa4f   : > { %v1847_v12 = vsub.f32 1.5, %v1846_v22  ;;  %v4113_v22 = vld [vmem:[%s5833_s30 + $0x78] sm:$0xf0] }
 0xa50   : > { %v4997_v14 = vpop.eup %4996 }
 0xa51   : > { %v1848_v28 = vmul.f32 %v4995_v60, %v1847_v12  ;;  %v1854_v15 = vmul.f32 %v4997_v14, %v1842_v61  ;;  %vm1860_vm12 = vweird.f32 %v4997_v14  ;;  %v4175_v61 = vld [vmem:[%s5833_s30 + $0xb8] sm:$0xf]  ;;  %v4104_v12 = vor.u32 %v4752_v41, %v4103_v9  ;;  %v4806_v41 = vld [vmem:[%s5269_s2 + $0x120] sm:$0xff] }
 0xa52   : > { %vm1861_vm14 = vmor %vm1859_vm13, %vm1860_vm12  ;;  %v4176_v59 = vor.u32 %v4769_v1, %v4175_v61  ;;  %v4831_v61 = vld [vmem:[%s5269_s2 + $0x1e8] sm:$0xff]  ;;  %v4822_v1 = vld [vmem:[%s5269_s2 + $0x1a0] sm:$0xff] }
 0xa53   : > { %v1855_v16 = vmul.f32 %v4997_v14, %v1854_v15  ;;  %v1852_v17 = vsel %vm1851_vm10, %v4995_v60, %v1848_v28  ;;  %v4169_v60 = vld [vmem:[%s5833_s30 + $0xf0] sm:$0xf0]  ;;  %v4112_v28 = vor.u32 %v4753_v0, %v4111_v7  ;;  %v4116_v15 = vor.u32 %v4745_v11, %v4113_v22  ;;  %v4829_v9 = vld [vmem:[%s5269_s2 + $0x1d8] sm:$0xff]  ;;  %v4819_v0 = vld [vmem:[%s5269_s2 + $0x188] sm:$0xff] }
 0xa54   : > { %v1863_v20 = vmul.f32 %v1852_v17, %v5463_v43  ;;  %v4766_v43 = vld [vmem:[%s5833_s30 + $0xdc] sm:$0xf0]  ;;  %v4172_v5 = vor.u32 %v4760_v58, %v4169_v60  ;;  %v4801_v17 = vld [vmem:[%s5269_s2 + $0xf8] sm:$0xff]  ;;  %v4816_v58 = vld [vmem:[%s5269_s2 + $0x170] sm:$0xff] }
 0xa55   : > { %v1856_v18 = vmul.f32 0.5, %v1855_v16  ;;  %v4152_v38 = vor.u32 %v4766_v43, %v4151_v29  ;;  %v4793_v16 = vld [vmem:[%s5269_s2 + $0xb8] sm:$0xff]  ;;  %v4790_v29 = vld [vmem:[%s5269_s2 + $0xa0] sm:$0xff]  ;;  %v4823_v60 = vld [vmem:[%s5269_s2 + $0x1a8] sm:$0xff] }
 0xa56   : > { %v1868_v25 = vmul.f32 %v4955_v19, %v1863_v20  ;;  %v4800_v20 = vld [vmem:[%s5269_s2 + $0xf0] sm:$0xff]  ;;  %v4798_v43 = vld [vmem:[%s5269_s2 + $0xe0] sm:$0xff]  ;;  %v4813_v7 = vld [vmem:[%s5269_s2 + $0x158] sm:$0xff] }
 0xa57   : > { %v1857_v8 = vsub.f32 1.5, %v1856_v18  ;;  %v4777_v18 = vld [vmem:[%s5269_s2 + $0x38] sm:$0xff]  ;;  %v4827_v11 = vld [vmem:[%s5269_s2 + $0x1c8] sm:$0xff]  ;;  %v4804_v22 = vld [vmem:[%s5269_s2 + $0x110] sm:$0xff] }
 0xa58   : > { %v5525_v33 = vadd.f32 %v4956_v24, %v1868_v25  ;;  %v4799_v25 = vld [vmem:[%s5269_s2 + $0xe8] sm:$0xff] }
 0xa59   : > { %v1858_v21 = vmul.f32 %v4997_v14, %v1857_v8  ;;  %v4785_v8 = vld [vmem:[%s5269_s2 + $0x78] sm:$0xff] }
 0xa5b   : > { %v1862_v23 = vsel %vm1861_vm14, %v4997_v14, %v1858_v21  ;;  %v4108_v14 = vor.u32 %v4744_v6, %v4105_v62  ;;  %v4776_v21 = vld [vmem:[%s5269_s2 + $0x30] sm:$0xff]  ;;  %v4805_v62 = vld [vmem:[%s5269_s2 + $0x118] sm:$0xff] }
 0xa5c   : > { %v1864_v26 = vmul.f32 %v1862_v23, %v5469_v13  ;;  %v4161_v13 = vld [vmem:[%s5833_s30 + $0xe8] sm:$0xf0]  ;;  %v4784_v23 = vld [vmem:[%s5269_s2 + $0x70] sm:$0xff] }
 0xa5d   : > { %v4164_v45 = vor.u32 %v4759_v36, %v4161_v13  ;;  %v4773_v36 = vld [vmem:[%s5269_s2 + $0x18] sm:$0xff]  ;;  %v4828_v6 = vld [vmem:[%s5269_s2 + $0x1d0] sm:$0xff] }
 0xa5e   : > { %v1869_v27 = vmul.f32 %v4955_v19, %v1864_v26  ;;  %v4792_v19 = vld [vmem:[%s5269_s2 + $0xb0] sm:$0xff]  ;;  %v4775_v26 = vld [vmem:[%s5269_s2 + $0x28] sm:$0xff]  ;;  %v4781_v13 = vld [vmem:[%s5269_s2 + $0x58] sm:$0xff] }
 0xa60   : > { %v5527_v34 = vadd.f32 %v4956_v24, %v1869_v27  ;;  %v4791_v24 = vld [vmem:[%s5269_s2 + $0xa8] sm:$0xff] }
 0xa61   : > { %v4783_v27 = vld [vmem:[%s5269_s2 + $0x68] sm:$0xff] }
 0xa62   : > { %v5534_v37 = vpack.c.bf16 %v5527_v34, %v5525_v33 }
 0xa64   : > { %4181 = vmatmul.msk.bf16.vlgmr.msra.gmra.mxu2 %vm689_vm1, %v5534_v37  ;;  %4182 = vmatmul.msk.bf16.vlgmr.msra.gmra.mxu3 %vm689_vm1, %v5534_v37 }
 0xa65   : > { %4183 = vmatmul.msk.bf16.vlgmr.msrb.gmra.mxu0 %vm689_vm1, %v5534_v37  ;;  %4184 = vmatmul.msk.bf16.vlgmr.msrb.gmra.mxu1 %vm689_vm1, %v5534_v37 }
 0xa66   : > { %2482 = vmatpush.bf16.msra.mxu2 %v4152_v38  ;;  %2496 = vmatpush.bf16.msra.mxu3 %v4156_v39  ;;  %v4788_v38 = vld [vmem:[%s5269_s2 + $0x90] sm:$0xff] }
 0xa67   : > { %2510 = vmatpush.bf16.msrb.mxu0 %v4160_v44  ;;  %2524 = vmatpush.bf16.msrb.mxu1 %v4164_v45  ;;  %v4796_v39 = vld [vmem:[%s5269_s2 + $0xd0] sm:$0xff]  ;;  %v4787_v44 = vld [vmem:[%s5269_s2 + $0x88] sm:$0xff] }
 0xa68   : > { %v4771_v45 = vld [vmem:[%s5269_s2 + $0x8] sm:$0xff] }
 0xa6a   : > { %2483 = vmatpush.bf16.msra.mxu2 %v4088_v52  ;;  %2497 = vmatpush.bf16.msra.mxu3 %v4092_v53  ;;  %v4778_v52 = vld [vmem:[%s5269_s2 + $0x40] sm:$0xff]  ;;  %v4809_v53 = vld [vmem:[%s5269_s2 + $0x138] sm:$0xff] }
 0xa6b   : > { %2511 = vmatpush.bf16.msrb.mxu0 %v4096_v54  ;;  %2525 = vmatpush.bf16.msrb.mxu1 %v4100_v55  ;;  %v4817_v54 = vld [vmem:[%s5269_s2 + $0x178] sm:$0xff]  ;;  %v4824_v55 = vld [vmem:[%s5269_s2 + $0x1b0] sm:$0xff] }
 0xa74   : > { %4185 = vmatmul.msk.bf16.vlgmr.msrb.gmra.mxu2 %vm689_vm1, %v5534_v37  ;;  %4186 = vmatmul.msk.bf16.vlgmr.msrb.gmra.mxu3 %vm689_vm1, %v5534_v37 }
 0xa75   : > { %4187 = vmatmul.msk.bf16.vlgmr.msra.gmra.mxu0 %vm689_vm1, %v5534_v37  ;;  %4188 = vmatmul.msk.bf16.vlgmr.msra.gmra.mxu1 %vm689_vm1, %v5534_v37 }
 0xa76   : > { %2538 = vmatpush.bf16.msrb.mxu2 %v4168_v4  ;;  %2552 = vmatpush.bf16.msrb.mxu3 %v4172_v5  ;;  %v4815_v4 = vld [vmem:[%s5269_s2 + $0x168] sm:$0xff]  ;;  %v4821_v5 = vld [vmem:[%s5269_s2 + $0x198] sm:$0xff] }
 0xa77   : > { %2566 = vmatpush.bf16.msra.mxu0 %v4176_v59  ;;  %2580 = vmatpush.bf16.msra.mxu1 %v4180_v63  ;;  %v4814_v59 = vld [vmem:[%s5269_s2 + $0x160] sm:$0xff]  ;;  %v4820_v63 = vld [vmem:[%s5269_s2 + $0x190] sm:$0xff] }
 0xa7a   : > { %2539 = vmatpush.bf16.msrb.mxu2 %v4104_v12  ;;  %2553 = vmatpush.bf16.msrb.mxu3 %v4108_v14  ;;  %v4812_v12 = vld [vmem:[%s5269_s2 + $0x150] sm:$0xff]  ;;  %v4818_v14 = vld [vmem:[%s5269_s2 + $0x180] sm:$0xff] }
 0xa7b   : > { %2567 = vmatpush.bf16.msra.mxu0 %v4112_v28  ;;  %2581 = vmatpush.bf16.msra.mxu1 %v4116_v15  ;;  %v4826_v28 = vld [vmem:[%s5269_s2 + $0x1c0] sm:$0xff]  ;;  %v4803_v15 = vld [vmem:[%s5269_s2 + $0x108] sm:$0xff] }
 0xa84   : > { %4189 = vmatmul.msk.bf16.vlgmr.msra.gmra.mxu2 %vm689_vm1, %v5534_v37  ;;  %4190 = vmatmul.msk.bf16.vlgmr.msra.gmra.mxu3 %vm689_vm1, %v5534_v37 }
 0xa85   : > { %4191 = vmatmul.msk.bf16.vlgmr.msrb.gmra.mxu0 %vm689_vm1, %v5534_v37  ;;  %4192 = vmatmul.msk.bf16.vlgmr.msrb.gmra.mxu1 %vm689_vm1, %v5534_v37 }
 0xa86   : > { %3435 = vmatpush.bf16.msrb.mxu0 %v4793_v16  ;;  %3449 = vmatpush.bf16.msrb.mxu1 %v4801_v17  ;;  %v4811_v16 = vld [vmem:[%s5269_s2 + $0x148] sm:$0xff]  ;;  %v4802_v17 = vld [vmem:[%s5269_s2 + $0x100] sm:$0xff] }
 0xa87   : > { %3407 = vmatpush.bf16.msra.mxu2 %v4777_v18  ;;  %3421 = vmatpush.bf16.msra.mxu3 %v4785_v8  ;;  %v4810_v18 = vld [vmem:[%s5269_s2 + $0x140] sm:$0xff] }
 0xa88   : > { %v5657_v8 = vld [vmem:[%s5259_s22] sm:$0xff] }
 0xa8a   : > { %3436 = vmatpush.bf16.msrb.mxu0 %v4792_v19  ;;  %3450 = vmatpush.bf16.msrb.mxu1 %v4800_v20 }
 0xa8b   : > { %3408 = vmatpush.bf16.msra.mxu2 %v4776_v21  ;;  %3422 = vmatpush.bf16.msra.mxu3 %v4784_v23  ;;  %v2171_v21 = vperm.slane %v5657_v8, 2  ;;  %v2172_v23 = vperm.slane %v5657_v8, 3 }
 0xa8e   : > { %3437 = vmatpush.bf16.msrb.mxu0 %v4791_v24  ;;  %3451 = vmatpush.bf16.msrb.mxu1 %v4799_v25 }
 0xa8f   : > { %3409 = vmatpush.bf16.msra.mxu2 %v4775_v26  ;;  %3423 = vmatpush.bf16.msra.mxu3 %v4783_v27 }
 0xa92   : > { %3438 = vmatpush.bf16.msrb.mxu0 %v4790_v29  ;;  %3452 = vmatpush.bf16.msrb.mxu1 %v4798_v43  ;;  %v2169_v29 = vperm.slane %v5657_v8, 0  ;;  %v2170_v43 = vperm.slane %v5657_v8, 1 }
 0xa93   : > { %3410 = vmatpush.bf16.msra.mxu2 %v4774_v30  ;;  %3424 = vmatpush.bf16.msra.mxu3 %v4782_v31 }
 0xa94   : > { %4193 = vmatmul.msk.bf16.vlgmr.msrb.gmra.mxu2 %vm689_vm1, %v5534_v37  ;;  %4194 = vmatmul.msk.bf16.vlgmr.msrb.gmra.mxu3 %vm689_vm1, %v5534_v37 }
 0xa95   : > { %4195 = vmatmul.msk.bf16.vlgmr.msra.gmra.mxu0 %vm689_vm1, %v5534_v37  ;;  %4196 = vmatmul.msk.bf16.vlgmr.msra.gmra.mxu1 %vm689_vm1, %v5534_v37  ;;  %v4795_v37 = vld [vmem:[%s5269_s2 + $0xc8] sm:$0xff] }
 0xa96   : > { %3439 = vmatpush.bf16.msrb.mxu0 %v4789_v32  ;;  %3453 = vmatpush.bf16.msrb.mxu1 %v4797_v35 }
 0xa97   : > { %3411 = vmatpush.bf16.msra.mxu2 %v4773_v36  ;;  %3425 = vmatpush.bf16.msra.mxu3 %v4781_v13 }
 0xa9a   : > { %3440 = vmatpush.bf16.msrb.mxu0 %v4788_v38  ;;  %3454 = vmatpush.bf16.msrb.mxu1 %v4796_v39 }
 0xa9b   : > { %3412 = vmatpush.bf16.msra.mxu2 %v4772_v40  ;;  %3426 = vmatpush.bf16.msra.mxu3 %v4780_v42 }
 0xa9e   : > { %3441 = vmatpush.bf16.msrb.mxu0 %v4787_v44  ;;  %3455 = vmatpush.bf16.msrb.mxu1 %v4795_v37  ;;  %v4857_v44 = vld [vmem:[%s5269_s2 + $0x2b8] sm:$0xff] }
 0xa9f   : > { %3413 = vmatpush.bf16.msra.mxu2 %v4771_v45  ;;  %3427 = vmatpush.bf16.msra.mxu3 %v4779_v46  ;;  %v4865_v37 = vld [vmem:[%s5269_s2 + $0x2f8] sm:$0xff] }
 0xaa2   : > { %3442 = vmatpush.bf16.msrb.mxu0 %v4786_v47  ;;  %3456 = vmatpush.bf16.msrb.mxu1 %v4794_v48 }
 0xaa3   : > { %3414 = vmatpush.bf16.msra.mxu2 %v4770_v51  ;;  %3428 = vmatpush.bf16.msra.mxu3 %v4778_v52 }
 0xaa6   : > { %3491 = vmatpush.bf16.msra.mxu0 %v4825_v49  ;;  %3505 = vmatpush.bf16.msra.mxu1 %v4833_v50 }
 0xaa7   : > { %3463 = vmatpush.bf16.msrb.mxu2 %v4809_v53  ;;  %3477 = vmatpush.bf16.msrb.mxu3 %v4817_v54 }
 0xaaa   : > { %3492 = vmatpush.bf16.msra.mxu0 %v4824_v55  ;;  %3506 = vmatpush.bf16.msra.mxu1 %v4832_v56 }
 0xaab   : > { %3464 = vmatpush.bf16.msrb.mxu2 %v4808_v57  ;;  %3478 = vmatpush.bf16.msrb.mxu3 %v4816_v58  ;;  %v4856_v57 = vld [vmem:[%s5269_s2 + $0x2b0] sm:$0xff] }
 0xaac   : > { %v4864_v58 = vld [vmem:[%s5269_s2 + $0x2f0] sm:$0xff] }
 0xaae   : > { %3493 = vmatpush.bf16.msra.mxu0 %v4823_v60  ;;  %3507 = vmatpush.bf16.msra.mxu1 %v4831_v61 }
 0xaaf   : > { %3465 = vmatpush.bf16.msrb.mxu2 %v4807_v3  ;;  %3479 = vmatpush.bf16.msrb.mxu3 %v4815_v4  ;;  %v2175_v3 = vperm.slane %v5657_v8, 6  ;;  %v2176_v4 = vperm.slane %v5657_v8, 7 }
 0xab2   : > { %3494 = vmatpush.bf16.msra.mxu0 %v4822_v1  ;;  %3508 = vmatpush.bf16.msra.mxu1 %v4830_v2  ;;  %v4841_v1 = vld [vmem:[%s5269_s2 + $0x238] sm:$0xff] }
 0xab3   : > { %3466 = vmatpush.bf16.msrb.mxu2 %v4806_v41  ;;  %3480 = vmatpush.bf16.msrb.mxu3 %v4814_v59  ;;  %v4849_v2 = vld [vmem:[%s5269_s2 + $0x278] sm:$0xff] }
 0xab6   : > { %3495 = vmatpush.bf16.msra.mxu0 %v4821_v5  ;;  %3509 = vmatpush.bf16.msra.mxu1 %v4829_v9  ;;  %v4855_v5 = vld [vmem:[%s5269_s2 + $0x2a8] sm:$0xff] }
 0xab7   : > { %3467 = vmatpush.bf16.msrb.mxu2 %v4805_v62  ;;  %3481 = vmatpush.bf16.msrb.mxu3 %v4813_v7  ;;  %v4863_v9 = vld [vmem:[%s5269_s2 + $0x2e8] sm:$0xff] }
 0xaba   : > { %3496 = vmatpush.bf16.msra.mxu0 %v4820_v63  ;;  %3510 = vmatpush.bf16.msra.mxu1 %v4828_v6  ;;  %v4840_v63 = vld [vmem:[%s5269_s2 + $0x230] sm:$0xff] }
 0xabb   : > { %3468 = vmatpush.bf16.msrb.mxu2 %v4804_v22  ;;  %3482 = vmatpush.bf16.msrb.mxu3 %v4812_v12  ;;  %v4848_v6 = vld [vmem:[%s5269_s2 + $0x270] sm:$0xff] }
 0xabe   : > { %3497 = vmatpush.bf16.msra.mxu0 %v4819_v0  ;;  %3511 = vmatpush.bf16.msra.mxu1 %v4827_v11  ;;  %v2173_v0 = vperm.slane %v5657_v8, 4  ;;  %v2174_v11 = vperm.slane %v5657_v8, 5 }
 0xabf   : > { %3469 = vmatpush.bf16.msrb.mxu2 %v4803_v15  ;;  %3483 = vmatpush.bf16.msrb.mxu3 %v4811_v16 }
 0xac2   : > { %3498 = vmatpush.bf16.msra.mxu0 %v4818_v14  ;;  %3512 = vmatpush.bf16.msra.mxu1 %v4826_v28  ;;  %v4854_v14 = vld [vmem:[%s5269_s2 + $0x2a0] sm:$0xff] }
 0xac3   : > { %3470 = vmatpush.bf16.msrb.mxu2 %v4802_v17  ;;  %3484 = vmatpush.bf16.msrb.mxu3 %v4810_v18  ;;  %v4862_v28 = vld [vmem:[%s5269_s2 + $0x2e0] sm:$0xff]  ;;  %v4839_v17 = vld [vmem:[%s5269_s2 + $0x228] sm:$0xff] }
 0xac4   : > { %v4847_v18 = vld [vmem:[%s5269_s2 + $0x268] sm:$0xff] }
 0xae2   : > { %v2401_v19 = vpop.f32.mrf.mxu0  ;;  %v2415_v20 = vpop.f32.mrf.mxu1 }
 0xae3   : > { %v2402_v26 = vadd.f32 %v2401_v19, %v2171_v21  ;;  %v2416_v27 = vadd.f32 %v2415_v20, %v2172_v23 }
 0xae5   : > { %v2590_v36 = vmax.f32 %v2402_v26, 0.0  ;;  %v2591_v13 = vmax.f32 %v2416_v27, 0.0  ;;  %v4861_v26 = vld [vmem:[%s5269_s2 + $0x2d8] sm:$0xff] }
 0xae7   : > { %v2373_v24 = vpop.f32.mrf.mxu2  ;;  %v2387_v25 = vpop.f32.mrf.mxu3 }
 0xae8   : > { %v2374_v40 = vadd.f32 %v2373_v24, %v2169_v29  ;;  %v2388_v42 = vadd.f32 %v2387_v25, %v2170_v43  ;;  %v4853_v25 = vld [vmem:[%s5269_s2 + $0x298] sm:$0xff] }
 0xaea   : > { %v2403_v30 = vpop.f32.mrf.mxu0  ;;  %v2417_v31 = vpop.f32.mrf.mxu1  ;;  %v2588_v51 = vmax.f32 %v2374_v40, 0.0  ;;  %v2589_v52 = vmax.f32 %v2388_v42, 0.0 }
 0xaeb   : > { %v2404_v32 = vadd.f32 %v2403_v30, %v2171_v21  ;;  %v2418_v35 = vadd.f32 %v2417_v31, %v2172_v23 }
 0xaed   : > { %v2606_v38 = vmax.f32 %v2404_v32, 0.0  ;;  %v2607_v39 = vmax.f32 %v2418_v35, 0.0  ;;  %v4838_v35 = vld [vmem:[%s5269_s2 + $0x220] sm:$0xff] }
 0xaef   : > { %v2622_v45 = vpack.c.bf16 %v2606_v38, %v2590_v36  ;;  %v2623_v46 = vpack.c.bf16 %v2607_v39, %v2591_v13  ;;  %v2375_v47 = vpop.f32.mrf.mxu2  ;;  %v2389_v48 = vpop.f32.mrf.mxu3  ;;  %v4846_v36 = vld [vmem:[%s5269_s2 + $0x260] sm:$0xff]  ;;  %v5686_v13 = vld [vmem:[%s5259_s22 + $0x8] sm:$0xff] }
 0xaf0   : > { %v2376_v49 = vadd.f32 %v2375_v47, %v2169_v29  ;;  %v2390_v50 = vadd.f32 %v2389_v48, %v2170_v43 }
 0xaf1   : > { %3443 = vmatmul.bf16.vlgmr.msrb.gmra.mxu0 %v2622_v45  ;;  %3457 = vmatmul.bf16.vlgmr.msrb.gmra.mxu1 %v2623_v46  ;;  %v4852_v45 = vld [vmem:[%s5269_s2 + $0x290] sm:$0xff] }
 0xaf2   : > { %v2604_v53 = vmax.f32 %v2376_v49, 0.0  ;;  %v2605_v54 = vmax.f32 %v2390_v50, 0.0  ;;  %3547 = vmatpush.bf16.msrb.mxu0 %v4857_v44  ;;  %3561 = vmatpush.bf16.msrb.mxu1 %v4865_v37  ;;  %v2457_v55 = vpop.f32.mrf.mxu0  ;;  %v2471_v56 = vpop.f32.mrf.mxu1  ;;  %v4860_v46 = vld [vmem:[%s5269_s2 + $0x2d0] sm:$0xff]  ;;  %v4837_v49 = vld [vmem:[%s5269_s2 + $0x218] sm:$0xff] }
 0xaf3   : > { %v2458_v62 = vadd.f32 %v2457_v55, %v2175_v3  ;;  %v2472_v7 = vadd.f32 %v2471_v56, %v2176_v4  ;;  %v4845_v50 = vld [vmem:[%s5269_s2 + $0x258] sm:$0xff] }
 0xaf4   : > { %v2620_v60 = vpack.c.bf16 %v2604_v53, %v2588_v51  ;;  %v2621_v61 = vpack.c.bf16 %v2605_v54, %v2589_v52  ;;  %v2179_v51 = vperm.slane %v5686_v13, 2  ;;  %v2180_v52 = vperm.slane %v5686_v13, 3  ;;  %v4851_v53 = vld [vmem:[%s5269_s2 + $0x288] sm:$0xff] }
 0xaf5   : > { %v2594_v19 = vmax.f32 %v2458_v62, 0.0  ;;  %v2595_v20 = vmax.f32 %v2472_v7, 0.0  ;;  %v4859_v54 = vld [vmem:[%s5269_s2 + $0x2c8] sm:$0xff] }
 0xaf6   : > { %3548 = vmatpush.bf16.msrb.mxu0 %v4856_v57  ;;  %3562 = vmatpush.bf16.msrb.mxu1 %v4864_v58  ;;  %v4836_v57 = vld [vmem:[%s5269_s2 + $0x210] sm:$0xff]  ;;  %v4835_v62 = vld [vmem:[%s5269_s2 + $0x208] sm:$0xff] }
 0xaf7   : > { %3415 = vmatmul.bf16.vlgmr.msra.gmra.mxu2 %v2620_v60  ;;  %3429 = vmatmul.bf16.vlgmr.msra.gmra.mxu3 %v2621_v61  ;;  %v2429_v41 = vpop.f32.mrf.mxu2  ;;  %v2443_v59 = vpop.f32.mrf.mxu3  ;;  %v4844_v58 = vld [vmem:[%s5269_s2 + $0x250] sm:$0xff]  ;;  %v4843_v7 = vld [vmem:[%s5269_s2 + $0x248] sm:$0xff] }
 0xaf8   : > { %3519 = vmatpush.bf16.msra.mxu2 %v4841_v1  ;;  %3533 = vmatpush.bf16.msra.mxu3 %v4849_v2  ;;  %v2430_v8 = vadd.f32 %v2429_v41, %v2173_v0  ;;  %v2444_v24 = vadd.f32 %v2443_v59, %v2174_v11  ;;  %v2177_v1 = vperm.slane %v5686_v13, 0  ;;  %v2178_v2 = vperm.slane %v5686_v13, 1 }
 0xafa   : > { %3549 = vmatpush.bf16.msrb.mxu0 %v4855_v5  ;;  %3563 = vmatpush.bf16.msrb.mxu1 %v4863_v9  ;;  %v2459_v22 = vpop.f32.mrf.mxu0  ;;  %v2473_v12 = vpop.f32.mrf.mxu1  ;;  %v2592_v38 = vmax.f32 %v2430_v8, 0.0  ;;  %v2593_v39 = vmax.f32 %v2444_v24, 0.0  ;;  %v4850_v5 = vld [vmem:[%s5269_s2 + $0x280] sm:$0xff] }
 0xafb   : > { %v2460_v15 = vadd.f32 %v2459_v22, %v2175_v3  ;;  %v2474_v16 = vadd.f32 %v2473_v12, %v2176_v4  ;;  %v4858_v9 = vld [vmem:[%s5269_s2 + $0x2c0] sm:$0xff] }
 0xafc   : > { %3520 = vmatpush.bf16.msra.mxu2 %v4840_v63  ;;  %3534 = vmatpush.bf16.msra.mxu3 %v4848_v6  ;;  %v4889_v63 = vld [vmem:[%s5269_s2 + $0x3b8] sm:$0xff]  ;;  %v4834_v8 = vld [vmem:[%s5269_s2 + $0x200] sm:$0xff] }
 0xafd   : > { %v2610_v21 = vmax.f32 %v2460_v15, 0.0  ;;  %v2611_v23 = vmax.f32 %v2474_v16, 0.0  ;;  %v4897_v6 = vld [vmem:[%s5269_s2 + $0x3f8] sm:$0xff]  ;;  %v4842_v24 = vld [vmem:[%s5269_s2 + $0x240] sm:$0xff] }
 0xafe   : > { %3550 = vmatpush.bf16.msrb.mxu0 %v4854_v14  ;;  %3564 = vmatpush.bf16.msrb.mxu1 %v4862_v28 }
 0xaff   : > { %v2626_v27 = vpack.c.bf16 %v2610_v21, %v2594_v19  ;;  %v2627_v29 = vpack.c.bf16 %v2611_v23, %v2595_v20  ;;  %v2431_v43 = vpop.f32.mrf.mxu2  ;;  %v2445_v30 = vpop.f32.mrf.mxu3  ;;  %v4888_v19 = vld [vmem:[%s5269_s2 + $0x3b0] sm:$0xff] }
 0xb00   : > { %3521 = vmatpush.bf16.msra.mxu2 %v4839_v17  ;;  %3535 = vmatpush.bf16.msra.mxu3 %v4847_v18  ;;  %v2432_v31 = vadd.f32 %v2431_v43, %v2173_v0  ;;  %v2446_v32 = vadd.f32 %v2445_v30, %v2174_v11  ;;  %v4896_v20 = vld [vmem:[%s5269_s2 + $0x3f0] sm:$0xff] }
 0xb01   : > { %3499 = vmatmul.bf16.vlgmr.msra.gmra.mxu0 %v2626_v27  ;;  %3513 = vmatmul.bf16.vlgmr.msra.gmra.mxu1 %v2627_v29 }
 0xb02   : > { %v2608_v40 = vmax.f32 %v2432_v31, 0.0  ;;  %v2609_v42 = vmax.f32 %v2446_v32, 0.0  ;;  %3551 = vmatpush.bf16.msrb.mxu0 %v4853_v25  ;;  %3565 = vmatpush.bf16.msrb.mxu1 %v4861_v26  ;;  %v2513_v44 = vpop.f32.mrf.mxu0  ;;  %v2527_v37 = vpop.f32.mrf.mxu1  ;;  %v4873_v25 = vld [vmem:[%s5269_s2 + $0x338] sm:$0xff]  ;;  %v4887_v31 = vld [vmem:[%s5269_s2 + $0x3a8] sm:$0xff] }
 0xb03   : > { %v2514_v60 = vadd.f32 %v2513_v44, %v2179_v51  ;;  %v2528_v61 = vadd.f32 %v2527_v37, %v2180_v52  ;;  %v4881_v26 = vld [vmem:[%s5269_s2 + $0x378] sm:$0xff]  ;;  %v4895_v32 = vld [vmem:[%s5269_s2 + $0x3e8] sm:$0xff]  ;;  %v4886_v44 = vld [vmem:[%s5269_s2 + $0x3a0] sm:$0xff] }
 0xb04   : > { %v2624_v47 = vpack.c.bf16 %v2608_v40, %v2592_v38  ;;  %v2625_v48 = vpack.c.bf16 %v2609_v42, %v2593_v39  ;;  %3522 = vmatpush.bf16.msra.mxu2 %v4838_v35  ;;  %3536 = vmatpush.bf16.msra.mxu3 %v4846_v36  ;;  %v4872_v38 = vld [vmem:[%s5269_s2 + $0x330] sm:$0xff]  ;;  %v4894_v37 = vld [vmem:[%s5269_s2 + $0x3e0] sm:$0xff] }
 0xb05   : > { %v2598_v0 = vmax.f32 %v2514_v60, 0.0  ;;  %v2599_v11 = vmax.f32 %v2528_v61, 0.0  ;;  %v4880_v39 = vld [vmem:[%s5269_s2 + $0x370] sm:$0xff]  ;;  %v2183_v60 = vperm.slane %v5686_v13, 6  ;;  %v2184_v61 = vperm.slane %v5686_v13, 7 }
 0xb06   : > { %3552 = vmatpush.bf16.msrb.mxu0 %v4852_v45  ;;  %3566 = vmatpush.bf16.msrb.mxu1 %v4860_v46  ;;  %v4871_v45 = vld [vmem:[%s5269_s2 + $0x328] sm:$0xff] }
 0xb07   : > { %3471 = vmatmul.bf16.vlgmr.msrb.gmra.mxu2 %v2624_v47  ;;  %3485 = vmatmul.bf16.vlgmr.msrb.gmra.mxu3 %v2625_v48  ;;  %v2485_v55 = vpop.f32.mrf.mxu2  ;;  %v2499_v56 = vpop.f32.mrf.mxu3  ;;  %v4879_v46 = vld [vmem:[%s5269_s2 + $0x368] sm:$0xff]  ;;  %v4885_v47 = vld [vmem:[%s5269_s2 + $0x398] sm:$0xff] }
 0xb08   : > { %3523 = vmatpush.bf16.msra.mxu2 %v4837_v49  ;;  %3537 = vmatpush.bf16.msra.mxu3 %v4845_v50  ;;  %v2486_v14 = vadd.f32 %v2485_v55, %v2177_v1  ;;  %v2500_v28 = vadd.f32 %v2499_v56, %v2178_v2  ;;  %v4893_v48 = vld [vmem:[%s5269_s2 + $0x3d8] sm:$0xff] }
 0xb0a   : > { %3553 = vmatpush.bf16.msrb.mxu0 %v4851_v53  ;;  %3567 = vmatpush.bf16.msrb.mxu1 %v4859_v54  ;;  %v2515_v3 = vpop.f32.mrf.mxu0  ;;  %v2529_v4 = vpop.f32.mrf.mxu1  ;;  %v2596_v27 = vmax.f32 %v2486_v14, 0.0  ;;  %v2597_v29 = vmax.f32 %v2500_v28, 0.0  ;;  %v4884_v53 = vld [vmem:[%s5269_s2 + $0x390] sm:$0xff]  ;;  %v4867_v14 = vld [vmem:[%s5269_s2 + $0x308] sm:$0xff] }
 0xb0b   : > { %v2516_v41 = vadd.f32 %v2515_v3, %v2179_v51  ;;  %v2530_v59 = vadd.f32 %v2529_v4, %v2180_v52  ;;  %v4870_v51 = vld [vmem:[%s5269_s2 + $0x320] sm:$0xff]  ;;  %v4892_v54 = vld [vmem:[%s5269_s2 + $0x3d0] sm:$0xff]  ;;  %v4875_v28 = vld [vmem:[%s5269_s2 + $0x348] sm:$0xff] }
 0xb0c   : > { %3524 = vmatpush.bf16.msra.mxu2 %v4836_v57  ;;  %3538 = vmatpush.bf16.msra.mxu3 %v4844_v58  ;;  %v4878_v52 = vld [vmem:[%s5269_s2 + $0x360] sm:$0xff]  ;;  %v4869_v57 = vld [vmem:[%s5269_s2 + $0x318] sm:$0xff] }
 0xb0d   : > { %v2614_v22 = vmax.f32 %v2516_v41, 0.0  ;;  %v2615_v12 = vmax.f32 %v2530_v59, 0.0  ;;  %v4877_v58 = vld [vmem:[%s5269_s2 + $0x358] sm:$0xff] }
 0xb0e   : > { %3554 = vmatpush.bf16.msrb.mxu0 %v4850_v5  ;;  %3568 = vmatpush.bf16.msrb.mxu1 %v4858_v9  ;;  %v4868_v5 = vld [vmem:[%s5269_s2 + $0x310] sm:$0xff] }
 0xb0f   : > { %v2630_v15 = vpack.c.bf16 %v2614_v22, %v2598_v0  ;;  %v2631_v16 = vpack.c.bf16 %v2615_v12, %v2599_v11  ;;  %v2487_v17 = vpop.f32.mrf.mxu2  ;;  %v2501_v18 = vpop.f32.mrf.mxu3  ;;  %v4876_v9 = vld [vmem:[%s5269_s2 + $0x350] sm:$0xff]  ;;  %v2181_v0 = vperm.slane %v5686_v13, 4  ;;  %v2182_v11 = vperm.slane %v5686_v13, 5  ;;  %v4866_v13 = vld [vmem:[%s5269_s2 + $0x300] sm:$0xff] }
 0xb10   : > { %3525 = vmatpush.bf16.msra.mxu2 %v4835_v62  ;;  %3539 = vmatpush.bf16.msra.mxu3 %v4843_v7  ;;  %v2488_v21 = vadd.f32 %v2487_v17, %v2177_v1  ;;  %v2502_v23 = vadd.f32 %v2501_v18, %v2178_v2  ;;  %v4883_v1 = vld [vmem:[%s5269_s2 + $0x388] sm:$0xff]  ;;  %v4882_v62 = vld [vmem:[%s5269_s2 + $0x380] sm:$0xff] }
 0xb11   : > { %3555 = vmatmul.bf16.vlgmr.msrb.gmra.mxu0 %v2630_v15  ;;  %3569 = vmatmul.bf16.vlgmr.msrb.gmra.mxu1 %v2631_v16  ;;  %v4891_v2 = vld [vmem:[%s5269_s2 + $0x3c8] sm:$0xff]  ;;  %v4890_v7 = vld [vmem:[%s5269_s2 + $0x3c0] sm:$0xff] }
 0xb12   : > { %3603 = vmatpush.bf16.msra.mxu0 %v4889_v63  ;;  %3617 = vmatpush.bf16.msra.mxu1 %v4897_v6  ;;  %v2612_v43 = vmax.f32 %v2488_v21, 0.0  ;;  %v2613_v30 = vmax.f32 %v2502_v23, 0.0  ;;  %v2569_v40 = vpop.f32.mrf.mxu0  ;;  %v2583_v42 = vpop.f32.mrf.mxu1 }
 0xb13   : > { %v2570_v41 = vadd.f32 %v2569_v40, %v2183_v60  ;;  %v2584_v59 = vadd.f32 %v2583_v42, %v2184_v61  ;;  %v4957_v40 = vld [vmem:[%s646_s25] ss:$0 sm:$0xff] }
 0xb14   : > { %v2628_v35 = vpack.c.bf16 %v2612_v43, %v2596_v27  ;;  %v2629_v36 = vpack.c.bf16 %v2613_v30, %v2597_v29  ;;  %3526 = vmatpush.bf16.msra.mxu2 %v4834_v8  ;;  %3540 = vmatpush.bf16.msra.mxu3 %v4842_v24  ;;  %v4874_v8 = vld [vmem:[%s5269_s2 + $0x340] sm:$0xff] }
 0xb15   : > { %v2602_v15 = vmax.f32 %v2570_v41, 0.0  ;;  %v2603_v16 = vmax.f32 %v2584_v59, 0.0 }
 0xb16   : > { %3604 = vmatpush.bf16.msra.mxu0 %v4888_v19  ;;  %3618 = vmatpush.bf16.msra.mxu1 %v4896_v20 }
 0xb17   : > { %3527 = vmatmul.bf16.vlgmr.msra.gmra.mxu2 %v2628_v35  ;;  %3541 = vmatmul.bf16.vlgmr.msra.gmra.mxu3 %v2629_v36  ;;  %v2541_v49 = vpop.f32.mrf.mxu2  ;;  %v2555_v50 = vpop.f32.mrf.mxu3 }
 0xb18   : > { %3575 = vmatpush.bf16.msrb.mxu2 %v4873_v25  ;;  %3589 = vmatpush.bf16.msrb.mxu3 %v4881_v26  ;;  %v2542_v19 = vadd.f32 %v2541_v49, %v2181_v0  ;;  %v2556_v20 = vadd.f32 %v2555_v50, %v2182_v11 }
 0xb1a   : > { %3605 = vmatpush.bf16.msra.mxu0 %v4887_v31  ;;  %3619 = vmatpush.bf16.msra.mxu1 %v4895_v32  ;;  %v2571_v55 = vpop.f32.mrf.mxu0  ;;  %v2585_v56 = vpop.f32.mrf.mxu1  ;;  %v2600_v26 = vmax.f32 %v2542_v19, 0.0  ;;  %v2601_v27 = vmax.f32 %v2556_v20, 0.0 }
 0xb1b   : > { %v2572_v3 = vadd.f32 %v2571_v55, %v2183_v60  ;;  %v2586_v4 = vadd.f32 %v2585_v56, %v2184_v61 }
 0xb1c   : > { %3576 = vmatpush.bf16.msrb.mxu2 %v4872_v38  ;;  %3590 = vmatpush.bf16.msrb.mxu3 %v4880_v39 }
 0xb1d   : > { %v2618_v22 = vmax.f32 %v2572_v3, 0.0  ;;  %v2619_v12 = vmax.f32 %v2586_v4, 0.0 }
 0xb1e   : > { %3606 = vmatpush.bf16.msra.mxu0 %v4886_v44  ;;  %3620 = vmatpush.bf16.msra.mxu1 %v4894_v37 }
 0xb1f   : > { %v2543_v63 = vpop.f32.mrf.mxu2  ;;  %v2557_v6 = vpop.f32.mrf.mxu3  ;;  %v2634_v21 = vpack.c.bf16 %v2618_v22, %v2602_v15  ;;  %v2635_v23 = vpack.c.bf16 %v2619_v12, %v2603_v16 }
 0xb20   : > { %3577 = vmatpush.bf16.msrb.mxu2 %v4871_v45  ;;  %3591 = vmatpush.bf16.msrb.mxu3 %v4879_v46  ;;  %v2544_v17 = vadd.f32 %v2543_v63, %v2181_v0  ;;  %v2558_v18 = vadd.f32 %v2557_v6, %v2182_v11 }
 0xb22   : > { %3607 = vmatpush.bf16.msra.mxu0 %v4885_v47  ;;  %3621 = vmatpush.bf16.msra.mxu1 %v4893_v48  ;;  %v2616_v24 = vmax.f32 %v2544_v17, 0.0  ;;  %v2617_v25 = vmax.f32 %v2558_v18, 0.0 }
 0xb24   : > { %3578 = vmatpush.bf16.msrb.mxu2 %v4870_v51  ;;  %3592 = vmatpush.bf16.msrb.mxu3 %v4878_v52  ;;  %v2632_v29 = vpack.c.bf16 %v2616_v24, %v2600_v26  ;;  %v2633_v43 = vpack.c.bf16 %v2617_v25, %v2601_v27 }
 0xb26   : > { %3608 = vmatpush.bf16.msra.mxu0 %v4884_v53  ;;  %3622 = vmatpush.bf16.msra.mxu1 %v4892_v54 }
 0xb28   : > { %3579 = vmatpush.bf16.msrb.mxu2 %v4869_v57  ;;  %3593 = vmatpush.bf16.msrb.mxu3 %v4877_v58 }
 0xb2a   : > { %3609 = vmatpush.bf16.msra.mxu0 %v4883_v1  ;;  %3623 = vmatpush.bf16.msra.mxu1 %v4891_v2 }
 0xb2c   : > { %3580 = vmatpush.bf16.msrb.mxu2 %v4868_v5  ;;  %3594 = vmatpush.bf16.msrb.mxu3 %v4876_v9 }
 0xb2e   : > { %3610 = vmatpush.bf16.msra.mxu0 %v4882_v62  ;;  %3624 = vmatpush.bf16.msra.mxu1 %v4890_v7 }
 0xb30   : > { %3581 = vmatpush.bf16.msrb.mxu2 %v4867_v14  ;;  %3595 = vmatpush.bf16.msrb.mxu3 %v4875_v28 }
 0xb31   : > { %3611 = vmatmul.bf16.vlgmr.msra.gmra.mxu0 %v2634_v21  ;;  %3625 = vmatmul.bf16.vlgmr.msra.gmra.mxu1 %v2635_v23 }
 0xb34   : > { %3582 = vmatpush.bf16.msrb.mxu2 %v4866_v13  ;;  %3596 = vmatpush.bf16.msrb.mxu3 %v4874_v8 }
 0xb37   : > { %3583 = vmatmul.bf16.vlgmr.msrb.gmra.mxu2 %v2632_v29  ;;  %3597 = vmatmul.bf16.vlgmr.msrb.gmra.mxu3 %v2633_v43 }
 0xb6e   : > { %v3444_v32 = vpop.f32.mrf.mxu0  ;;  %v3458_v35 = vpop.f32.mrf.mxu1 }
 0xb76   : > { %v3446_v39 = vpop.f32.mrf.mxu0  ;;  %v3460_v42 = vpop.f32.mrf.mxu1 }
 0xb7a   : > { %v3416_v30 = vpop.f32.mrf.mxu2  ;;  %v3430_v31 = vpop.f32.mrf.mxu3 }
 0xb7b   : > { %v3417_v44 = vadd.f32 %v4957_v40, %v3416_v30 }
 0xb7d   : > { %v3431_v46 = vadd.f32 %v3430_v31, %v3417_v44 }
 0xb7e   : > { %v3500_v47 = vpop.f32.mrf.mxu0  ;;  %v3514_v48 = vpop.f32.mrf.mxu1 }
 0xb7f   : > { %v3445_v49 = vadd.f32 %v3444_v32, %v3431_v46 }
 0xb81   : > { %v3459_v52 = vadd.f32 %v3458_v35, %v3445_v49 }
 0xb82   : > { %v3418_v36 = vpop.f32.mrf.mxu2  ;;  %v3432_v38 = vpop.f32.mrf.mxu3 }
 0xb83   : > { %v3419_v50 = vadd.f32 %v4957_v40, %v3418_v36 }
 0xb85   : > { %v3433_v51 = vadd.f32 %v3432_v38, %v3419_v50 }
 0xb86   : > { %v3502_v56 = vpop.f32.mrf.mxu0  ;;  %v3516_v58 = vpop.f32.mrf.mxu1 }
 0xb87   : > { %v3447_v57 = vadd.f32 %v3446_v39, %v3433_v51 }
 0xb89   : > { %v3461_v61 = vadd.f32 %v3460_v42, %v3447_v57 }
 0xb8a   : > { %v3472_v37 = vpop.f32.mrf.mxu2  ;;  %v3486_v45 = vpop.f32.mrf.mxu3 }
 0xb8b   : > { %v3473_v55 = vadd.f32 %v3472_v37, %v3459_v52 }
 0xb8d   : > { %v3487_v60 = vadd.f32 %v3486_v45, %v3473_v55 }
 0xb8e   : > { %v3556_v5 = vpop.f32.mrf.mxu0  ;;  %v3570_v59 = vpop.f32.mrf.mxu1 }
 0xb8f   : > { %v3501_v1 = vadd.f32 %v3500_v47, %v3487_v60 }
 0xb91   : > { %v3515_v41 = vadd.f32 %v3514_v48, %v3501_v1 }
 0xb92   : > { %v3474_v53 = vpop.f32.mrf.mxu2  ;;  %v3488_v54 = vpop.f32.mrf.mxu3 }
 0xb93   : > { %v3475_v2 = vadd.f32 %v3474_v53, %v3461_v61 }
 0xb95   : > { %v3489_v9 = vadd.f32 %v3488_v54, %v3475_v2 }
 0xb96   : > { %v3558_v22 = vpop.f32.mrf.mxu0  ;;  %v3572_v28 = vpop.f32.mrf.mxu1 }
 0xb97   : > { %v3503_v6 = vadd.f32 %v3502_v56, %v3489_v9  ;;  %v4959_v9 = vld [vmem:[%s652_s27] ss:$0 sm:$0xff] }
 0xb99   : > { %v3517_v11 = vadd.f32 %v3516_v58, %v3503_v6 }
 0xb9a   : > { %v3528_v3 = vpop.f32.mrf.mxu2  ;;  %v3542_v4 = vpop.f32.mrf.mxu3 }
 0xb9b   : > { %v3529_v63 = vadd.f32 %v3528_v3, %v3515_v41 }
 0xb9d   : > { %v3543_v62 = vadd.f32 %v3542_v4, %v3529_v63  ;;  %v4958_v4 = vld [vmem:[%s649_s4] ss:$0 sm:$0xff] }
 0xb9f   : > { %v3557_v12 = vadd.f32 %v3556_v5, %v3543_v62 }
 0xba1   : > { %v3571_v16 = vadd.f32 %v3570_v59, %v3557_v12 }
 0xba2   : > { %v3530_v7 = vpop.f32.mrf.mxu2  ;;  %v3544_v0 = vpop.f32.mrf.mxu3 }
 0xba3   : > { %v3531_v14 = vadd.f32 %v3530_v7, %v3517_v11 }
 0xba5   : > { %v3545_v15 = vadd.f32 %v3544_v0, %v3531_v14 }
 0xba7   : > { %v3559_v21 = vadd.f32 %v3558_v22, %v3545_v15 }
 0xba9   : > { %v3573_v24 = vadd.f32 %v3572_v28, %v3559_v21 }
 0xbae   : > { %v3612_v20 = vpop.f32.mrf.mxu0  ;;  %v3626_v13 = vpop.f32.mrf.mxu1 }
 0xbb6   : > { %v3614_v32 = vpop.f32.mrf.mxu0  ;;  %v3628_v36 = vpop.f32.mrf.mxu1 }
 0xbba   : > { %v3584_v17 = vpop.f32.mrf.mxu2  ;;  %v3598_v18 = vpop.f32.mrf.mxu3 }
 0xbbb   : > { %v3585_v19 = vadd.f32 %v3584_v17, %v3571_v16 }
 0xbbd   : > { %v3599_v23 = vadd.f32 %v3598_v18, %v3585_v19 }
 0xbbf   : > { %v3613_v8 = vadd.f32 %v3612_v20, %v3599_v23 }
 0xbc1   : > { %v3627_v25 = vadd.f32 %v3626_v13, %v3613_v8 }
 0xbc2   : > { %v3586_v26 = vpop.f32.mrf.mxu2  ;;  %v3600_v43 = vpop.f32.mrf.mxu3 }
 0xbc3   : > { %v3587_v27 = vadd.f32 %v3586_v26, %v3573_v24  ;;  %v3631_v29 = vadd.f32 %v3627_v25, %v5525_v33 }
 0xbc5   : > { %v3601_v30 = vadd.f32 %v3600_v43, %v3587_v27  ;;  %v3635_v31 = vsel %vm689_vm1, %v3631_v29, 0.0 }
 0xbc6   : > { %3636 = vadd.xlane.f32.xlu2 %v3635_v31 }
 0xbc7   : > { %v3615_v35 = vadd.f32 %v3614_v32, %v3601_v30 }
 0xbc9   : > { %v3629_v38 = vadd.f32 %v3628_v36, %v3615_v35 }
 0xbcb   : > { %v3632_v39 = vadd.f32 %v3629_v38, %v5527_v34 }
 0xbcd   : > { %v3638_v40 = vsel %vm689_vm1, %v3632_v39, 0.0 }
 0xbce   : > { %3639 = vadd.xlane.f32.xlu0 %v3638_v40 }
 0xc39   : > { %v3637_v42 = vpop.xlane.xlu2 %3636 }
 0xc3a   : > { %v3641_v44 = vmul.f32 %v3637_v42, %v5460_v10 }
 0xc3c   : > { %v3643_v37 = vsub.f32 %v3631_v29, %v3641_v44 }
 0xc3e   : > { %v3645_v45 = vmul.f32 %v3643_v37, %v3643_v37 }
 0xc40   : > { %v3647_v33 = vsel %vm689_vm1, %v3645_v45, 0.0 }
 0xc41   : > { %v3640_v46 = vpop.xlane.xlu0 %3639  ;;  %3648 = vadd.xlane.f32.xlu1 %v3647_v33 }
 0xc42   : > { %v3642_v47 = vmul.f32 %v3640_v46, %v5460_v10 }
 0xc44   : > { %v3644_v48 = vsub.f32 %v3632_v39, %v3642_v47 }
 0xc46   : > { %v3646_v49 = vmul.f32 %v3644_v48, %v3644_v48 }
 0xc48   : > { %v3650_v50 = vsel %vm689_vm1, %v3646_v49, 0.0 }
 0xc49   : > { %3651 = vadd.xlane.f32.xlu2 %v3650_v50 }
 0xcb4   : > { %v3649_v34 = vpop.xlane.xlu1 %3648 }
 0xcb5   : > { %v3653_v51 = vmul.f32 %v3649_v34, %v5460_v10 }
 0xcb7   : > { %v3655_v52 = vadd.f32 1e-05, %v3653_v51 }
 0xcb9   : > { %4998 = vrsqrt.f32 %v3655_v52  ;;  %vm3663_vm0 = vweird.f32 %v3655_v52 }
 0xcbc   : > { %v3652_v53 = vpop.xlane.xlu2 %3651 }
 0xcbd   : > { %v3654_v54 = vmul.f32 %v3652_v53, %v5460_v10 }
 0xcbf   : > { %v4999_v55 = vpop.eup %4998  ;;  %v3656_v56 = vadd.f32 1e-05, %v3654_v54 }
 0xcc0   : > { %v3658_v57 = vmul.f32 %v4999_v55, %v3655_v52  ;;  %vm3664_vm15 = vweird.f32 %v4999_v55 }
 0xcc1   : > { %5000 = vrsqrt.f32 %v3656_v56  ;;  %vm3665_vm3 = vmor %vm3663_vm0, %vm3664_vm15  ;;  %vm3673_vm5 = vweird.f32 %v3656_v56 }
 0xcc2   : > { %v3659_v58 = vmul.f32 %v4999_v55, %v3658_v57 }
 0xcc4   : > { %v3660_v60 = vmul.f32 0.5, %v3659_v58 }
 0xcc6   : > { %v3661_v61 = vsub.f32 1.5, %v3660_v60 }
 0xcc7   : > { %v5001_v1 = vpop.eup %5000 }
 0xcc8   : > { %v3662_v2 = vmul.f32 %v4999_v55, %v3661_v61  ;;  %v3668_v3 = vmul.f32 %v5001_v1, %v3656_v56  ;;  %vm3674_vm4 = vweird.f32 %v5001_v1 }
 0xcc9   : > { %vm3675_vm6 = vmor %vm3673_vm5, %vm3674_vm4 }
 0xcca   : > { %v3666_v10 = vsel %vm3665_vm3, %v4999_v55, %v3662_v2  ;;  %v3669_v5 = vmul.f32 %v5001_v1, %v3668_v3 }
 0xccb   : > { %v3677_v41 = vmul.f32 %v3666_v10, %v3643_v37 }
 0xccc   : > { %v3670_v59 = vmul.f32 0.5, %v3669_v5 }
 0xccd   : > { %v3682_v63 = vmul.f32 %v4958_v4, %v3677_v41 }
 0xcce   : > { %v3671_v6 = vsub.f32 1.5, %v3670_v59 }
 0xccf   : > { %v3687_v62 = vadd.f32 %v4959_v9, %v3682_v63 }
 0xcd0   : > { %v3672_v7 = vmul.f32 %v5001_v1, %v3671_v6 }
 0xcd1   : > { %3689 = vst.msk [vmem:[%s5829_s20] sm:$0xff] %vm689_vm1, %v3687_v62 }
 0xcd2   : > { %v3676_v0 = vsel %vm3675_vm6, %v5001_v1, %v3672_v7 }
 0xcd3   : > { %v3678_v11 = vmul.f32 %v3676_v0, %v3644_v48 }
 0xcd5   : > { %v3683_v22 = vmul.f32 %v4958_v4, %v3678_v11 }
 0xcd7   : > { %v3688_v12 = vadd.f32 %v4959_v9, %v3683_v22 }
 0xcd9   : > { %3690 = vst.msk [vmem:[%s5829_s20 + $0x8] sm:$0xff] %vm689_vm1, %v3688_v12 }
 0xcda PF: > { %s5835_s16 = sld [smem:[#allocation7_spill]] }
 0xcdb   : > { %s5836_s29 = sld [smem:[#allocation5_spill]] }
 0xcdc   : > { %s5837_s30 = sld [smem:[#allocation6_spill]] }
 0xcdd   : > { %s5838_s15 = sld [smem:[#allocation8_spill]] }
 0xce0   : > { %p24_p8 = scmp.ge.s32.totalorder %s5835_s16, 4  }
 0xce2   :  { %26 = sbr.rel (!%p24_p8) target bundleno = 9 (0x9), region = 174 }
 0xce7   :  { %3702 = vsyncpa [#allocation3], 1 }
 0xce8   :  { %3704 = vsyncpa [#allocation3 + $0x1], 1 }

// kernel: residual_model_forward.4
= control target key start
LH: loop header
LB: loop body
LE: loop exit
PB: predicated region body
PF: predicated region fallthrough
CT: control target
= control target key end

     0   :  { %s7936_s0 = inlined_call_operand.vmem [shape: f32[2,8,32], index: 0, kind: input, shape index: {}]   ;;  %s7937_s1 = inlined_call_operand.vmem [shape: f32[2,8,32], index: 1, kind: input, shape index: {}]   ;;  %s7938_s2 = inlined_call_operand.vmem [shape: f32[2,8], index: 2, kind: input, shape index: {}]   ;;  %s7939_s3 = inlined_call_operand.vmem [shape: f32[2,8], index: 3, kind: input, shape index: {}]   ;;  %s7940_s4 = inlined_call_operand.vmem [shape: f32[8,8], index: 4, kind: input, shape index: {}]   ;;  %s7941_s5 = inlined_call_operand.vmem [shape: bf16[2,12,32,8], index: 5, kind: input, shape index: {}]   ;;  %s7942_s6 = inlined_call_operand.vmem [shape: f32[2,12,1,8], index: 6, kind: input, shape index: {}]   ;;  %s7943_s7 = inlined_call_operand.vmem [shape: bf16[2,4,8,32], index: 7, kind: input, shape index: {}]   ;;  %s7944_s8 = inlined_call_operand.vmem [shape: f32[2,1,32], index: 8, kind: input, shape index: {}]   ;;  %s7945_s9 = inlined_call_operand.vmem [shape: bf16[2,12,32,8], index: 9, kind: input, shape index: {}]   ;;  %s7946_s10 = inlined_call_operand.vmem [shape: f32[2,12,1,8], index: 10, kind: input, shape index: {}]   ;;  %s7947_s11 = inlined_call_operand.vmem [shape: bf16[2,4,8,32], index: 11, kind: input, shape index: {}]   ;;  %s7948_s12 = inlined_call_operand.vmem [shape: f32[2,1,32], index: 12, kind: input, shape index: {}]   ;;  %s7949_s13 = inlined_call_operand.vmem [shape: f32[2,1,32], index: 13, kind: input, shape index: {}]   ;;  %s7950_s14 = inlined_call_operand.vmem [shape: f32[2,1,32], index: 14, kind: input, shape index: {}]   ;;  %s7951_s15 = inlined_call_operand.vmem [shape: f32[2,1,32], index: 15, kind: input, shape index: {}]   ;;  %s7952_s16 = inlined_call_operand.vmem [shape: f32[2,1,32], index: 16, kind: input, shape index: {}]   ;;  %s7953_s17 = inlined_call_operand.vmem [shape: f32[2,1,32], index: 17, kind: input, shape index: {}]   ;;  %s7954_s18 = inlined_call_operand.vmem [shape: f32[2,1,32], index: 18, kind: input, shape index: {}]   ;;  %s7955_s19 = inlined_call_operand.hbm [shape: bf16[2,32,2048], index: 19, kind: input, shape index: {}]   ;;  %s7956_s20 = inlined_call_operand.vmem [shape: f32[2,1,2048], index: 20, kind: input, shape index: {}]   ;;  %s7957_s21 = inlined_call_operand.vmem [shape: bf16[2,2048,32], index: 21, kind: input, shape index: {}]   ;;  %s7958_s22 = inlined_call_operand.vmem [shape: f32[2,1,32], index: 22, kind: input, shape index: {}]   ;;  %s7959_s23 = inlined_call_operand.vmem [shape: f32[2,8,32], index: 23, kind: output, shape index: {}]  }
   0x1   :  { %7972 = sst [smem:[#allocation13_spill]] %s7936_s0 }
   0x2   :  { %7973 = sst [smem:[#allocation14_spill]] %s7937_s1 }
   0x3   :  { %7974 = sst [smem:[#allocation15_spill]] %s7938_s2 }
   0x4   :  { %7975 = sst [smem:[#allocation16_spill]] %s7939_s3 }
   0x5   :  { %7976 = sst [smem:[#allocation17_spill]] %s7940_s4 }
   0x6   :  { %7977 = sst [smem:[#allocation18_spill]] %s7941_s5 }
   0x7   :  { %7978 = sst [smem:[#allocation19_spill]] %s7942_s6 }
   0x8   :  { %7979 = sst [smem:[#allocation20_spill]] %s7943_s7 }
   0x9   :  { %7980 = sst [smem:[#allocation21_spill]] %s7945_s9 }
   0xa   :  { %7981 = sst [smem:[#allocation22_spill]] %s7946_s10 }
   0xb   :  { %7982 = sst [smem:[#allocation23_spill]] %s7947_s11 }
   0xc   :  { %7983 = sst [smem:[#allocation24_spill]] %s7951_s15 }
   0xd   :  { %7984 = sst [smem:[#allocation25_spill]] %s7952_s16 }
   0xe   :  { %7985 = sst [smem:[#allocation26_spill]] %s7955_s19 }
   0xf   :  { %7986 = sst [smem:[#allocation27_spill]] %s7956_s20 }
  0x10   :  { %7987 = sst [smem:[#allocation28_spill]] %s7957_s21 }
  0x11   :  { %7988 = sst [smem:[#allocation29_spill]] %s7958_s22 }
  0x12   :  { %7989 = sst [smem:[#allocation30_spill]] %s7959_s23 }
  0x13   :  { %28 = vsyncpa [#allocation3], 0 }
  0x14   :  { %30 = vsyncpa [#allocation3 + $0x1], 0  ;;  %s7078_s4 = smov 0   ;;  %s7080_s30 = smov 0  }
  0x15   :  { %s7082_s24 = smov 0   ;;  %s7084_s25 = smov 0  }
  0x16 LB: > { %7990 = sst [smem:[#allocation5_spill]] %s6945_s30  ;;  %s7097_s5 = sadd.s32 4294967295, %s6953_s25   ;;  %s6953_s25 = sphi %s7084_s25, %s8033_s25   ;;  %s6949_s24 = sphi %s7082_s24, %s8036_s24   ;;  %s6945_s30 = sphi %s7080_s30, %s8035_s30   ;;  %s6941_s4 = sphi %s7078_s4, %s8034_s4  }
  0x17   : > { %7991 = sst [smem:[#allocation6_spill]] %s6949_s24  ;;  %s7100_s1 = sadd.s32 1, %s6953_s25  }
  0x18   : > { %7992 = sst [smem:[#allocation7_spill]] %s7097_s5  ;;  %s509_s26 = ssub.s32 %s6953_s25, %s7100_s1 }
  0x19   : > { %7993 = sst [smem:[#allocation8_spill]] %s7100_s1  ;;  %s512_s2 = sadd.s32 1, %s6949_s24 }
  0x1a   : > { %p510_p0 = scmp.eq.s32.totalorder %s509_s26, 0  ;;  %p519_p1 = scmp.ne.s32.totalorder %s6949_s24, %s6945_s30 }
  0x1b   : > { %p520_p2 = scmp.eq.s32.totalorder %s6953_s25, 0  ;;  %p525_p3 = scmp.ne.s32.totalorder %s6945_s30, %s6941_s4 }
  0x1c   : > { %s7110_s6 = scalar_select %p510_p0, %s6949_s24, %s512_s2  }
  0x1d   : > { %p7112_p4 = por %p520_p2, %p519_p1  ;;  %p526_p5 = scmp.eq.s32.totalorder %s7097_s5, 0 }
  0x1e   : > { %7994 = sst [smem:[#allocation9_spill]] %s7110_s6  ;;  %p6742_p6 = scmp.lt.s32.totalorder %s6953_s25, 2 }
  0x1f   : > { %p7118_p7 = por %p526_p5, %p525_p3  ;;  %s757_s28 = sand.u32 1, %s6949_s24  }
  0x20   : > { %s5461_s29 = sshll.u32 %s757_s28, 8  ;;  %s6522_s3 = sshll.u32 %s6953_s25, 8 }
  0x21   : > { %s7997_s19 = sld [smem:[#allocation26_spill]]  ;;  %s761_s2 = scalar_lea.vmem [#allocation2], %s5461_s29 }
  0x22   : > { %s769_s6 = sshll.u32 %s761_s2, 4  ;;  %p7129_p8 = pnand %p6742_p6, %p7112_p4  ;;  %s770_s6 = int_to_ptr.vmem [resolvable:$true] %s769_s6 }
  0x23   : > { %p5464_p9 = scmp.ge.s32.totalorder %s6953_s25, 1  ;;  %s758_s21 = scalar_lea.sflag [#allocation3], %s757_s28 }
  0x24   : > { %p6893_p11 = pneg %p7129_p8 }
  0x27   : > { %s766_s4 = scalar_lea.hbm %s7997_s19, %s6522_s3  ;;  %s6896_s0 = scalar_lea.hbm %s7997_s19, 512 }
  0x28   : > { %s767_s1 = sshll.u32 %s766_s4, 4  ;;  %s768_s1 = int_to_ptr.hbm [resolvable:$true] %s767_s1 }
  0x29   : > { %s6889_s24 = sshra.s32 %s768_s1, 4  ;;  %s6890_s24 = int_to_ptr.hbm [resolvable:$true] %s6889_s24 }
  0x2a   : > { %s6891_s22 = scalar_lea.hbm %s6890_s24, 256  ;;  %p6897_p0 = scmp.lt.s32.totalorder %s6890_s24, %s7997_s19 }
  0x2b   : > { %p6892_p10 = scmp.ne.s32.totalorder %s6890_s24, %s6891_s22  ;;  %p6898_p1 = scmp.lt.s32.totalorder %s6896_s0, %s6891_s22 }
  0x2d   : > { %p6894_p12 = pnand %p6893_p11, %p6892_p10  ;;  %p6899_p2 = por %p6898_p1, %p6897_p0 }
  0x2f   : > { %p6895_p13 = pneg %p6894_p12 }
  0x31   : > { %p6900_p3 = pnand %p6899_p2, %p6895_p13 }
  0x33   : > { %6903 = shalt.err (!%p6900_p3)
}
  0x34   : > { %s6955_s28 = smov 1024   ;;  %s6956_s4 = smov 64  }
  0x35   : > { %6741 = dma.hbm_to_vmem [thread:$0]  (!%p7129_p8), %s768_s1, 4096, %s770_s6, %s758_s21, %s6955_s28, %s6955_s28, %s6956_s4  }
  0x36   : > { %p798_p4 = scmp.lt.s32.totalorder %s6953_s25, 3 }
  0x38   : > { %p799_p5 = pnand %p5464_p9, %p798_p4 }
  0x3a   : > { %802 = sbr.rel (%p799_p5) target bundleno = 5896 (0x1708), region = 112 }
  0x3f   : > { %s804_s2 = sand.u32 1, %s6945_s30  }
  0x40   : > { %s5465_s29 = sshll.u32 %s804_s2, 8  ;;  %s805_s24 = scalar_lea.sflag [#allocation3], %s804_s2 }
  0x41   : > { %s7148_s22 = scalar_lea.vmem [#allocation2], %s5465_s29 }
  0x42   : > { %7999 = sst [smem:[#allocation10_spill]] %s7148_s22 }
  0x43   : > { %6936 = dma.done.wait (%p7118_p7), %s805_s24, 4096  }
  0x44   : > { %6938 = vsyncadd (%p7118_p7), %s805_s24, 4294963200  ;;  %p931_p6 = scmp.lt.s32.totalorder %s7097_s5, 1  ;;  %s8000_s3 = sld [smem:[#allocation20_spill]] }
  0x45   : > { %s8002_s28 = sld [smem:[#allocation18_spill]] }
  0x46   : > { %s7156_s21 = scalar_select %p931_p6, %s7097_s5, 1 }
  0x47   : > { %s8003_s22 = sld [smem:[#allocation19_spill]] }
  0x48   : > { %s6734_s23 = smul.u32 192, %s7156_s21  ;;  %s6523_s25 = sshll.u32 %s7156_s21, 4 }
  0x49   : > { %s6735_s1 = smul.u32 12, %s7156_s21  ;;  %s8004_s9 = sld [smem:[#allocation21_spill]] }
  0x4a   : > { %s7164_s0 = scalar_lea.vmem %s8000_s3, %s6523_s25  ;;  %s8005_s10 = sld [smem:[#allocation22_spill]] }
  0x4b   : > { %8001 = sst [smem:[#allocation11_spill]] %s7164_s0  ;;  %s7169_s4 = scalar_lea.vmem %s8002_s28, %s6734_s23 }
  0x4c   : > { %s8006_s11 = sld [smem:[#allocation23_spill]]  ;;  %s979_s24 = scalar_lea.vmem %s7953_s17, %s7156_s21 }
  0x4d   : > { %s7178_s5 = scalar_lea.vmem %s8003_s22, %s6735_s1  ;;  %s982_s30 = scalar_lea.vmem %s7954_s18, %s7156_s21 }
  0x4e   : > { %s8011_s3 = sld [smem:[#allocation29_spill]] }
  0x4f   : > { %s7183_s7 = scalar_lea.vmem %s8004_s9, %s6734_s23  ;;  %s8010_s23 = sld [smem:[#allocation27_spill]] }
  0x50   : > { %s7188_s27 = scalar_lea.vmem %s8005_s10, %s6735_s1  ;;  %s6525_s9 = sshll.u32 %s7156_s21, 10 }
  0x51   : > { %s8012_s28 = sld [smem:[#allocation28_spill]] }
  0x52   : > { %s7193_s2 = scalar_lea.vmem %s8006_s11, %s6523_s25  ;;  %s8013_s11 = sld [smem:[#allocation7_spill]] }
  0x53   : > { %8007 = sst [smem:[#allocation12_spill]] %s7193_s2 }
  0x54   : > { %s994_s15 = scalar_lea.vmem %s8011_s3, %s7156_s21 }
  0x55   : > { %s7226_s6 = scalar_lea.vmem %s8010_s23, %s6523_s25 }
  0x57   : > { %s7236_s16 = scalar_lea.vmem %s8012_s28, %s6525_s9 }
  0x58   : > { %p5475_p7 = scmp.ne.s32.totalorder %s8013_s11, 0 }
  0x59   : > { %s8014_s29 = sld [smem:[#allocation13_spill]] (!%p5475_p7) }
  0x5a   : > { %999 = sbr.rel (%p5475_p7) target bundleno = 98 (0x62), region = 120  ;;  %s8015_s3 = sld [smem:[#allocation30_spill]] (!%p5475_p7) }
  0x5f   : > { %v1000_v0 = vld [vmem:[%s8014_s29] sm:$0xff]  ;;  %vm1002_vm0 = vcmask 261120   ;;  %v1001_v1 = vld [vmem:[%s8014_s29 + $0x8] sm:$0xff] }
  0x60   : > { %1003 = vst.msk [vmem:[%s8015_s3] sm:$0xff] %vm1002_vm0, %v1000_v0 }
  0x61   : > { %1004 = vst.msk [vmem:[%s8015_s3 + $0x8] sm:$0xff] %vm1002_vm0, %v1001_v1 }
  0x62 PF: > { %v6527_v2 = vld [vmem:[%s7169_s4 + $0x8] sm:$0xff]  ;;  %v6526_v4 = vld [vmem:[%s7169_s4] sm:$0xff]  ;;  %s8016_s10 = sld [smem:[#allocation30_spill]]  ;;  %vm1043_vm1 = vcmask 261120   ;;  %vm1133_vm2 = vcmask 64512   ;;  %v6535_v36 = vld [vmem:[%s7169_s4 + $0x58] sm:$0xff]  ;;  %s8020_s0 = scalar_lea.vmem %s7944_s8, %s7156_s21 }
  0x63   : > { %v6529_v3 = vld [vmem:[%s7169_s4 + $0x48] sm:$0xff]  ;;  %v6528_v5 = vld [vmem:[%s7169_s4 + $0x40] sm:$0xff]  ;;  %1053 = vmatpush.bf16.msra.mxu0 %v6527_v2  ;;  %s8017_s25 = sld [smem:[#allocation15_spill]]  ;;  %v6534_v37 = vld [vmem:[%s7169_s4 + $0x50] sm:$0xff]  ;;  %vm1550_vm11 = vcmask 1043456   ;;  %s8026_s1 = scalar_lea.vmem %s7948_s12, %s7156_s21 }
  0x64   : > { %1089 = vmatpush.bf16.msra.mxu1 %v6529_v3  ;;  %v6779_v9 = vld [vmem:[%s7178_s5 + $0x4] ss:$0 sm:$0xff]  ;;  %v6778_v10 = vld [vmem:[%s7178_s5] ss:$0 sm:$0xff]  ;;  %v6531_v19 = vld [vmem:[%s7169_s4 + $0x88] sm:$0xff]  ;;  %s8018_s23 = sld [smem:[#allocation17_spill]] }
  0x65   : > { %1125 = vmatpush.bf16.msra.mxu2 %v6531_v19  ;;  %v6530_v20 = vld [vmem:[%s7169_s4 + $0x80] sm:$0xff]  ;;  %v6533_v38 = vld [vmem:[%s7169_s4 + $0x18] sm:$0xff]  ;;  %v6532_v39 = vld [vmem:[%s7169_s4 + $0x10] sm:$0xff]  ;;  %s8019_s3 = sld [smem:[#allocation11_spill]] }
  0x66   : > { %v6780_v51 = vld [vmem:[%s7178_s5 + $0x8] ss:$0 sm:$0xff]  ;;  %v6781_v55 = vld [vmem:[%s7178_s5 + $0x5] ss:$0 sm:$0xff]  ;;  %s8021_s28 = sld [smem:[#allocation14_spill]] }
  0x67   : > { %1054 = vmatpush.bf16.msra.mxu0 %v6526_v4  ;;  %s8027_s9 = sld [smem:[#allocation10_spill]] }
  0x68   : > { %v7258_v6 = vld [vmem:[%s8016_s10] sm:$0xff]  ;;  %v7263_v7 = vld [vmem:[%s8016_s10 + $0x8] sm:$0xff]  ;;  %1090 = vmatpush.bf16.msra.mxu1 %v6528_v5  ;;  %s8028_s2 = sld [smem:[#allocation24_spill]] }
  0x69   : > { %v7267_v8 = vpack.c.bf16 %v7263_v7, %v7258_v6  ;;  %1126 = vmatpush.bf16.msra.mxu2 %v6530_v20  ;;  %v1009_v21 = vld [vmem:[%s8017_s25] sm:$0x3]  ;;  %s8022_s25 = scalar_lea.vmem %s7949_s13, %s7156_s21  ;;  %s8030_s22 = sld [smem:[#allocation25_spill]] }
  0x6a   : > { %v1013_v22 = vperm.slane %v1009_v21, 0  ;;  %v1012_v23 = vld [vmem:[%s8018_s23] sm:$0xff]  ;;  %v1011_v25 = vrot.slane %v1009_v21, 1  ;;  %s8023_s23 = scalar_lea.vmem %s7950_s14, %s7156_s21 }
  0x6b   : > { %5484 = vmatmul.msk.bf16.vlgmr.msra.gmra.mxu0 %vm1043_vm1, %v7267_v8  ;;  %5498 = vmatmul.msk.bf16.vlgmr.msra.gmra.mxu1 %vm1043_vm1, %v7267_v8 }
  0x6c   : > { %5512 = vmatmul.msk.bf16.vlgmr.msra.gmra.mxu2 %vm1043_vm1, %v7267_v8  ;;  %v7289_v24 = vadd.f32 %v1013_v22, %v1012_v23  ;;  %v1014_v29 = vperm.slane %v1011_v25, 0  ;;  %1314 = vmatpush.bf16.msrb.mxu1 %v6533_v38 }
  0x6d   : > { %1350 = vmatpush.bf16.msrb.mxu2 %v6535_v36 }
  0x6e   : > { %v7293_v31 = vadd.f32 %v1014_v29, %v1012_v23  ;;  %v6782_v23 = vld [vmem:[%s7178_s5 + $0x1] ss:$0 sm:$0xff]  ;;  %s8029_s19 = scalar_lea.vmem %s8028_s2, %s7156_s21 }
  0x6f   : > { %v1285_v29 = vld [vmem:[%s8019_s3] sm:$0xf] }
  0x70   : > { %1315 = vmatpush.bf16.msrb.mxu1 %v6532_v39 }
  0x71   : > { %1351 = vmatpush.bf16.msrb.mxu2 %v6534_v37 }
  0x7b   : > { %5532 = vmatmul.msk.bf16.vlgmr.msrb.gmra.mxu1 %vm1043_vm1, %v7267_v8 }
  0x7c   : > { %5546 = vmatmul.msk.bf16.vlgmr.msrb.gmra.mxu2 %vm1043_vm1, %v7267_v8 }
  0xe8   : > { %v1056_v11 = vpop.f32.mrf.mxu0  ;;  %v1092_v12 = vpop.f32.mrf.mxu1 }
  0xe9   : > { %v1093_v13 = vadd.f32 %v6779_v9, %v1092_v12  ;;  %v1057_v14 = vadd.f32 %v6778_v10, %v1056_v11 }
  0xeb   : > { %5513 = vmatpush.xpose.msk.msra.mxu3 %vm1133_vm2, %v1093_v13 }
  0xee   : > { %5514 = vmatmul.msk.f32.vlgmr.msra.gmra.mxu3 %vm1133_vm2, %v1057_v14 }
  0xef   : > { %v1128_v50 = vpop.f32.mrf.mxu2 }
  0xf0   : > { %v1094_v15 = vpop.f32.mrf.mxu1  ;;  %v1058_v16 = vpop.f32.mrf.mxu0  ;;  %v1129_v53 = vadd.f32 %v6780_v51, %v1128_v50 }
  0xf1   : > { %v1095_v17 = vadd.f32 %v6779_v9, %v1094_v15  ;;  %v1059_v18 = vadd.f32 %v6778_v10, %v1058_v16 }
  0xf3   : > { %5515 = vmatpush.xpose.msk.msrb.mxu3 %vm1133_vm2, %v1095_v17 }
  0xf6   : > { %5516 = vmatmul.msk.f32.vlgmr.msrb.gmra.mxu3 %vm1133_vm2, %v1059_v18 }
  0xf7   : > { %v1130_v52 = vpop.f32.mrf.mxu2  ;;  %1256 = vmatpush.msra.mxu3 %v1129_v53 }
  0xf8   : > { %v1131_v54 = vadd.f32 %v6780_v51, %v1130_v52  ;;  %v1317_v25 = vpop.f32.mrf.mxu1 }
  0xfa   : > { %1279 = vmatpush.msrb.mxu0 %v1131_v54 }
  0xff   : > { %v1353_v56 = vpop.f32.mrf.mxu2 }
 0x100   : > { %v1354_v57 = vadd.f32 %v6781_v55, %v1353_v56  ;;  %v6783_v56 = vld [vmem:[%s7178_s5 + $0x9] ss:$0 sm:$0xff] }
 0x102   : > { %5561 = vmatpush.xpose.msk.msra.mxu0 %vm1133_vm2, %v1354_v57 }
 0x107   : > { %v1355_v17 = vpop.f32.mrf.mxu2 }
 0x108   : > { %v1356_v21 = vadd.f32 %v6781_v55, %v1355_v17 }
 0x171   : > { %v1157_v26 = vpop.f32.mrf.mxu3 }
 0x172   : > { %v1186_v27 = vmul.f32 0.35355338, %v1157_v26  ;;  %v1318_v26 = vadd.f32 %v6782_v23, %v1317_v25 }
 0x174   : > { %v1188_v28 = vadd.f32 %v1186_v27, %v7289_v24  ;;  %v1319_v27 = vpop.f32.mrf.mxu1 }
 0x176   : > { %v1190_v30 = vsel %vm1133_vm2, %v1188_v28, -inf }
 0x177   : > { %1191 = vmax.xlane.f32.xlu1 %v1190_v30  ;;  %v1572_v30 = vsel %vm1550_vm11, %v1285_v29, 0 }
 0x179   : > { %v1183_v32 = vpop.f32.mrf.mxu3 }
 0x17a   : > { %v1187_v33 = vmul.f32 0.35355338, %v1183_v32  ;;  %v6537_v32 = vld [vmem:[%s7169_s4 + $0x98] sm:$0xff] }
 0x17b   : > { %1386 = vmatpush.bf16.msrb.mxu3 %v6537_v32 }
 0x17c   : > { %v1189_v34 = vadd.f32 %v1187_v33, %v7293_v31 }
 0x17e   : > { %v1193_v35 = vsel %vm1133_vm2, %v1189_v34, -inf }
 0x17f   : > { %1194 = vmax.xlane.f32.xlu0 %v1193_v35 }
 0x1ea   : > { %v1192_v40 = vpop.xlane.xlu1 %1191 }
 0x1eb   : > { %v1196_v41 = vsub.f32 %v1188_v28, %v1192_v40  ;;  %v1320_v28 = vadd.f32 %v6782_v23, %v1319_v27 }
 0x1ed   : > { %v1198_v42 = vmul.f32 1.442695, %v1196_v41 }
 0x1ef   : > { %6811 = vpow2.f32 %v1198_v42 }
 0x1f2   : > { %v1195_v43 = vpop.xlane.xlu0 %1194 }
 0x1f3   : > { %v1197_v44 = vsub.f32 %v1189_v34, %v1195_v43 }
 0x1f5   : > { %v6812_v45 = vpop.eup %6811  ;;  %v1200_v46 = vmul.f32 1.442695, %v1197_v44  ;;  %v6536_v44 = vld [vmem:[%s7169_s4 + $0x90] sm:$0xff] }
 0x1f6   : > { %v1202_v47 = vsel %vm1133_vm2, %v6812_v45, 0.0  ;;  %1387 = vmatpush.bf16.msrb.mxu3 %v6536_v44 }
 0x1f7   : > { %6813 = vpow2.f32 %v1200_v46  ;;  %1203 = vadd.xlane.f32.xlu1 %v1202_v47 }
 0x1fd   : > { %v6814_v48 = vpop.eup %6813 }
 0x1fe   : > { %v1205_v49 = vsel %vm1133_vm2, %v6814_v48, 0.0 }
 0x1ff   : > { %1206 = vadd.xlane.f32.xlu0 %v1205_v49 }
 0x26a   : > { %v1204_v58 = vpop.xlane.xlu1 %1203 }
 0x26b   : > { %6815 = vrcp.f32 %v1204_v58  ;;  %v1219_v63 = vand.u32 2147483648, %v1204_v58  ;;  %v1217_v1 = vand.u32 2147483647, %v1204_v58  ;;  %vm1213_vm4 = vweird.f32 %v1204_v58 }
 0x26d   : > { %v1220_v4 = vor.u32 1.1754944e-38, %v1219_v63  ;;  %vm1218_vm6 = vcmp.eq.f32.partialorder %v1217_v1, 8.507059e+37 }
 0x271   : > { %v6816_v59 = vpop.eup %6815 }
 0x272   : > { %v1209_v60 = vmul.f32 %v6816_v59, %v1204_v58  ;;  %v1207_v61 = vpop.xlane.xlu0 %1206  ;;  %vm1214_vm3 = vweird.f32 %v6816_v59 }
 0x273   : > { %6817 = vrcp.f32 %v1207_v61  ;;  %vm1215_vm5 = vmor %vm1213_vm4, %vm1214_vm3  ;;  %v1234_v13 = vand.u32 2147483648, %v1207_v61  ;;  %v1232_v15 = vand.u32 2147483647, %v1207_v61  ;;  %vm1228_vm8 = vweird.f32 %v1207_v61 }
 0x274   : > { %v1210_v62 = vsub.f32 1.0, %v1209_v60  ;;  %v6539_v60 = vld [vmem:[%s7169_s4 + $0x28] sm:$0xff] }
 0x275   : > { %v1235_v18 = vor.u32 1.1754944e-38, %v1234_v13  ;;  %vm1233_vm10 = vcmp.eq.f32.partialorder %v1232_v15, 8.507059e+37  ;;  %1616 = vmatpush.bf16.msra.mxu1 %v6539_v60  ;;  %v6541_v15 = vld [vmem:[%s7169_s4 + $0x68] sm:$0xff] }
 0x276   : > { %v1211_v0 = vmul.f32 %v6816_v59, %v1210_v62 }
 0x278   : > { %v1212_v2 = vadd.f32 %v6816_v59, %v1211_v0 }
 0x279   : > { %v6818_v3 = vpop.eup %6817 }
 0x27a   : > { %v1216_v5 = vsel %vm1215_vm5, %v6816_v59, %v1212_v2  ;;  %v1224_v9 = vmul.f32 %v6818_v3, %v1207_v61  ;;  %vm1229_vm7 = vweird.f32 %v6818_v3  ;;  %v6538_v61 = vld [vmem:[%s7169_s4 + $0x20] sm:$0xff] }
 0x27b   : > { %v1221_v10 = vsel %vm1218_vm6, %v1220_v4, %v1216_v5  ;;  %vm1230_vm9 = vmor %vm1228_vm8, %vm1229_vm7  ;;  %1617 = vmatpush.bf16.msra.mxu1 %v6538_v61 }
 0x27c   : > { %v1225_v11 = vsub.f32 1.0, %v1224_v9  ;;  %v1222_v12 = vmul.f32 %v6812_v45, %v1221_v10 }
 0x27e   : > { %v1226_v14 = vmul.f32 %v6818_v3, %v1225_v11  ;;  %5517 = vmatmul.msk.f32.vlgmr.msra.gmra.mxu3 %vm1133_vm2, %v1222_v12  ;;  %5583 = vmatmul.msk.bf16.vlgmr.msra.gmra.mxu1 %vm1043_vm1, %v7267_v8 }
 0x280   : > { %v1227_v16 = vadd.f32 %v6818_v3, %v1226_v14 }
 0x282   : > { %v1231_v19 = vsel %vm1230_vm9, %v6818_v3, %v1227_v16 }
 0x283   : > { %v1236_v20 = vsel %vm1233_vm10, %v1235_v18, %v1231_v19 }
 0x284   : > { %v1237_v22 = vmul.f32 %v6814_v48, %v1236_v20 }
 0x286   : > { %5518 = vmatmul.msk.f32.vlgmr.msrb.gmra.mxu0 %vm1133_vm2, %v1237_v22  ;;  %5560 = vmatmul.msk.bf16.vlgmr.msrb.gmra.mxu3 %vm1043_vm1, %v7267_v8 }
 0x287   : > { %5563 = vmatpush.xpose.msk.msrb.mxu0 %vm1133_vm2, %v1356_v21  ;;  %v6540_v21 = vld [vmem:[%s7169_s4 + $0x60] sm:$0xff] }
 0x28e   : > { %5562 = vmatmul.msk.f32.vlgmr.msra.gmra.mxu0 %vm1133_vm2, %v1318_v26 }
 0x28f   : > { %1581 = vmatpush.bf16.msra.mxu0 %v1572_v30 }
 0x296   : > { %5564 = vmatmul.msk.f32.vlgmr.msrb.gmra.mxu0 %vm1133_vm2, %v1320_v28  ;;  %v5567_v28 = vld [vmem:[%s8019_s3 + $0x4] sm:$0xf] }
 0x297   : > { %v1552_v29 = vsel %vm1550_vm11, %v5567_v28, 0 }
 0x298   : > { %1561 = vmatpush.bf16.msra.mxu3 %v1552_v29 }
 0x301   : > { %v1258_v33 = vpop.f32.mrf.mxu3 }
 0x303   : > { %v1281_v34 = vpop.f32.mrf.mxu0 }
 0x304   : > { %v1284_v35 = vpack.c.bf16 %v1281_v34, %v1258_v33  ;;  %v6785_v34 = vld [vmem:[%s7178_s5 + $0x6] ss:$0 sm:$0xff] }
 0x306   : > { %5569 = vmatmul.msk.bf16.vlgmr.msra.gmra.mxu0 %vm1133_vm2, %v1284_v35  ;;  %v6784_v35 = vld [vmem:[%s7178_s5 + $0x2] ss:$0 sm:$0xff] }
 0x309   : > { %v1389_v55 = vpop.f32.mrf.mxu3 }
 0x30a   : > { %v1390_v57 = vadd.f32 %v6783_v56, %v1389_v55  ;;  %v6542_v55 = vld [vmem:[%s7169_s4 + $0xa0] sm:$0xff] }
 0x30b   : > { %v1417_v36 = vpop.f32.mrf.mxu0 }
 0x30c   : > { %v1446_v37 = vmul.f32 0.35355338, %v1417_v36  ;;  %1516 = vmatpush.msra.mxu2 %v1390_v57  ;;  %v1619_v36 = vpop.f32.mrf.mxu1 }
 0x30e   : > { %v1448_v38 = vadd.f32 %v1446_v37, %v7289_v24 }
 0x310   : > { %v1450_v39 = vsel %vm1133_vm2, %v1448_v38, -inf }
 0x311   : > { %1451 = vmax.xlane.f32.xlu2 %v1450_v39  ;;  %v1391_v58 = vpop.f32.mrf.mxu3  ;;  %v1620_v39 = vadd.f32 %v6784_v35, %v1619_v36 }
 0x312   : > { %v1392_v59 = vadd.f32 %v6783_v56, %v1391_v58 }
 0x313   : > { %v1443_v40 = vpop.f32.mrf.mxu0 }
 0x314   : > { %v1447_v41 = vmul.f32 0.35355338, %v1443_v40  ;;  %1539 = vmatpush.msrb.mxu2 %v1392_v59 }
 0x316   : > { %v1449_v42 = vadd.f32 %v1447_v41, %v7293_v31  ;;  %v1621_v41 = vpop.f32.mrf.mxu1 }
 0x318   : > { %v1453_v43 = vsel %vm1133_vm2, %v1449_v42, -inf }
 0x319   : > { %1454 = vmax.xlane.f32.xlu2 %v1453_v43  ;;  %v1622_v43 = vadd.f32 %v6784_v35, %v1621_v41 }
 0x383   : > { %v7349_v44 = vpop.f32.mrf.mxu0 }
 0x384   : > { %v1452_v45 = vpop.xlane.xlu2 %1451 }
 0x385   : > { %v1456_v46 = vsub.f32 %v1448_v38, %v1452_v45  ;;  %v6543_v45 = vld [vmem:[%s7169_s4 + $0xa8] sm:$0xff] }
 0x386   : > { %1688 = vmatpush.bf16.msrb.mxu3 %v6543_v45  ;;  %v5618_v45 = vld [vmem:[%s8019_s3 + $0x8] sm:$0xf] }
 0x387   : > { %v1458_v47 = vmul.f32 1.442695, %v1456_v46 }
 0x389   : > { %6819 = vpow2.f32 %v1458_v47 }
 0x38a   : > { %1689 = vmatpush.bf16.msrb.mxu3 %v6542_v55  ;;  %v6788_v55 = vld [vmem:[%s7178_s5 + $0x3] ss:$0 sm:$0xff] }
 0x38b   : > { %v7352_v46 = vpop.f32.mrf.mxu0 }
 0x38c   : > { %v1455_v48 = vpop.xlane.xlu2 %1454 }
 0x38d   : > { %v1457_v49 = vsub.f32 %v1449_v42, %v1455_v48 }
 0x38f   : > { %v6820_v50 = vpop.eup %6819  ;;  %v1460_v51 = vmul.f32 1.442695, %v1457_v49 }
 0x390   : > { %v1462_v52 = vsel %vm1133_vm2, %v6820_v50, 0.0 }
 0x391   : > { %6821 = vpow2.f32 %v1460_v51  ;;  %1463 = vadd.xlane.f32.xlu0 %v1462_v52 }
 0x397   : > { %v6822_v53 = vpop.eup %6821 }
 0x398   : > { %v1465_v54 = vsel %vm1133_vm2, %v6822_v53, 0.0 }
 0x399   : > { %1466 = vadd.xlane.f32.xlu1 %v1465_v54 }
 0x404   : > { %v1464_v62 = vpop.xlane.xlu0 %1463 }
 0x405   : > { %6823 = vrcp.f32 %v1464_v62  ;;  %v1479_v3 = vand.u32 2147483648, %v1464_v62  ;;  %v1477_v5 = vand.u32 2147483647, %v1464_v62  ;;  %vm1473_vm13 = vweird.f32 %v1464_v62 }
 0x407   : > { %v1480_v11 = vor.u32 1.1754944e-38, %v1479_v3  ;;  %vm1478_vm15 = vcmp.eq.f32.partialorder %v1477_v5, 8.507059e+37  ;;  %v6547_v5 = vld [vmem:[%s7169_s4 + $0x78] sm:$0xff] }
 0x40b   : > { %v6824_v63 = vpop.eup %6823 }
 0x40c   : > { %v1469_v0 = vmul.f32 %v6824_v63, %v1464_v62  ;;  %v1467_v1 = vpop.xlane.xlu1 %1466  ;;  %vm1474_vm12 = vweird.f32 %v6824_v63 }
 0x40d   : > { %6825 = vrcp.f32 %v1467_v1  ;;  %vm1475_vm14 = vmor %vm1473_vm13, %vm1474_vm12  ;;  %v1494_v18 = vand.u32 2147483648, %v1467_v1  ;;  %v1492_v20 = vand.u32 2147483647, %v1467_v1  ;;  %vm1488_vm3 = vweird.f32 %v1467_v1 }
 0x40e   : > { %v1470_v2 = vsub.f32 1.0, %v1469_v0 }
 0x40f   : > { %v1495_v23 = vor.u32 1.1754944e-38, %v1494_v18  ;;  %vm1493_vm5 = vcmp.eq.f32.partialorder %v1492_v20, 8.507059e+37 }
 0x410   : > { %v1471_v4 = vmul.f32 %v6824_v63, %v1470_v2 }
 0x412   : > { %v1472_v9 = vadd.f32 %v6824_v63, %v1471_v4 }
 0x413   : > { %v6826_v10 = vpop.eup %6825 }
 0x414   : > { %v1476_v12 = vsel %vm1475_vm14, %v6824_v63, %v1472_v9  ;;  %v1484_v13 = vmul.f32 %v6826_v10, %v1467_v1  ;;  %vm1489_vm0 = vweird.f32 %v6826_v10  ;;  %v6546_v9 = vld [vmem:[%s7169_s4 + $0x70] sm:$0xff] }
 0x415   : > { %v1481_v14 = vsel %vm1478_vm15, %v1480_v11, %v1476_v12  ;;  %vm1490_vm4 = vmor %vm1488_vm3, %vm1489_vm0 }
 0x416   : > { %v1485_v16 = vsub.f32 1.0, %v1484_v13  ;;  %v1482_v17 = vmul.f32 %v6820_v50, %v1481_v14  ;;  %v6545_v14 = vld [vmem:[%s7169_s4 + $0x38] sm:$0xff] }
 0x418   : > { %v1486_v19 = vmul.f32 %v6826_v10, %v1485_v16  ;;  %5565 = vmatmul.msk.f32.vlgmr.msra.gmra.mxu2 %vm1133_vm2, %v1482_v17 }
 0x419   : > { %1652 = vmatpush.bf16.msra.mxu2 %v6541_v15  ;;  %v6544_v15 = vld [vmem:[%s7169_s4 + $0x30] sm:$0xff] }
 0x41a   : > { %v1487_v22 = vadd.f32 %v6826_v10, %v1486_v19 }
 0x41c   : > { %v1491_v25 = vsel %vm1490_vm4, %v6826_v10, %v1487_v22  ;;  %v6786_v10 = vld [vmem:[%s7178_s5 + $0xa] ss:$0 sm:$0xff] }
 0x41d   : > { %v1496_v26 = vsel %vm1493_vm5, %v1495_v23, %v1491_v25  ;;  %1653 = vmatpush.bf16.msra.mxu2 %v6540_v21 }
 0x41e   : > { %v1497_v27 = vmul.f32 %v6822_v53, %v1496_v26 }
 0x420   : > { %5566 = vmatmul.msk.f32.vlgmr.msrb.gmra.mxu2 %vm1133_vm2, %v1497_v27 }
 0x428   : > { %5597 = vmatmul.msk.bf16.vlgmr.msra.gmra.mxu2 %vm1043_vm1, %v7267_v8 }
 0x49b   : > { %v1518_v30 = vpop.f32.mrf.mxu2 }
 0x4a3   : > { %v1541_v32 = vpop.f32.mrf.mxu2 }
 0x4a4   : > { %v1544_v33 = vpack.c.bf16 %v1541_v32, %v1518_v30 }
 0x4a6   : > { %5568 = vmatmul.msk.bf16.vlgmr.msra.gmra.mxu3 %vm1133_vm2, %v1544_v33 }
 0x4a7   : > { %1935 = vmatpush.bf16.msra.mxu3 %v6547_v5 }
 0x4ab   : > { %v1655_v37 = vpop.f32.mrf.mxu2  ;;  %1936 = vmatpush.bf16.msra.mxu3 %v6546_v9 }
 0x4ac   : > { %v1656_v38 = vadd.f32 %v6785_v34, %v1655_v37 }
 0x4ae   : > { %5612 = vmatpush.xpose.msk.msrb.mxu0 %vm1133_vm2, %v1656_v38 }
 0x4b1   : > { %5613 = vmatmul.msk.f32.vlgmr.msrb.gmra.mxu0 %vm1133_vm2, %v1620_v39 }
 0x4b3   : > { %v1657_v40 = vpop.f32.mrf.mxu2 }
 0x4b4   : > { %v1658_v42 = vadd.f32 %v6785_v34, %v1657_v40 }
 0x4b6   : > { %5614 = vmatpush.xpose.msk.msrb.mxu1 %vm1133_vm2, %v1658_v42  ;;  %5611 = vmatmul.msk.bf16.vlgmr.msrb.gmra.mxu3 %vm1043_vm1, %v7267_v8  ;;  %v6787_v42 = vld [vmem:[%s7178_s5 + $0x7] ss:$0 sm:$0xff] }
 0x4b9   : > { %5615 = vmatmul.msk.f32.vlgmr.msrb.gmra.mxu1 %vm1133_vm2, %v1622_v43 }
 0x4c6   : > { %5647 = vmatmul.msk.bf16.vlgmr.msra.gmra.mxu3 %vm1043_vm1, %v7267_v8 }
 0x529   : > { %v7363_v2 = vpop.f32.mrf.mxu3 }
 0x52e   : > { %v1719_v47 = vpop.f32.mrf.mxu0 }
 0x52f   : > { %v1748_v48 = vmul.f32 0.35355338, %v1719_v47 }
 0x531   : > { %v1750_v49 = vadd.f32 %v1748_v48, %v7289_v24  ;;  %v7365_v3 = vpop.f32.mrf.mxu3  ;;  %v1853_v48 = vsel %vm1550_vm11, %v5618_v45, 0 }
 0x532   : > { %1862 = vmatpush.bf16.msra.mxu1 %v1853_v48 }
 0x533   : > { %v1752_v50 = vsel %vm1133_vm2, %v1750_v49, -inf }
 0x534   : > { %1753 = vmax.xlane.f32.xlu2 %v1752_v50 }
 0x536   : > { %v1745_v51 = vpop.f32.mrf.mxu1 }
 0x537   : > { %v1749_v52 = vmul.f32 0.35355338, %v1745_v51 }
 0x539   : > { %v1751_v53 = vadd.f32 %v1749_v52, %v7293_v31  ;;  %v1691_v4 = vpop.f32.mrf.mxu3 }
 0x53a   : > { %v1692_v12 = vadd.f32 %v6786_v10, %v1691_v4 }
 0x53b   : > { %v1755_v54 = vsel %vm1133_vm2, %v1751_v53, -inf }
 0x53c   : > { %1756 = vmax.xlane.f32.xlu0 %v1755_v54  ;;  %1818 = vmatpush.msrb.mxu2 %v1692_v12 }
 0x53e   : > { %1899 = vmatpush.bf16.msra.mxu2 %v6545_v14 }
 0x541   : > { %v1693_v11 = vpop.f32.mrf.mxu3 }
 0x542   : > { %v1694_v13 = vadd.f32 %v6786_v10, %v1693_v11  ;;  %1900 = vmatpush.bf16.msra.mxu2 %v6544_v15 }
 0x544   : > { %1841 = vmatpush.msra.mxu0 %v1694_v13  ;;  %v6548_v13 = vld [vmem:[%s7169_s4 + $0xb0] sm:$0xff] }
 0x549   : > { %v1938_v43 = vpop.f32.mrf.mxu3 }
 0x54a   : > { %v1939_v47 = vadd.f32 %v6787_v42, %v1938_v43 }
 0x54c   : > { %5662 = vmatpush.xpose.msk.msrb.mxu1 %vm1133_vm2, %v1939_v47 }
 0x5a7   : > { %v1754_v56 = vpop.xlane.xlu2 %1753 }
 0x5a8   : > { %v1758_v57 = vsub.f32 %v1750_v49, %v1754_v56  ;;  %v1940_v49 = vpop.f32.mrf.mxu3 }
 0x5a9   : > { %v1941_v50 = vadd.f32 %v6787_v42, %v1940_v49 }
 0x5aa   : > { %v1760_v58 = vmul.f32 1.442695, %v1758_v57 }
 0x5ac   : > { %6827 = vpow2.f32 %v1760_v58 }
 0x5af   : > { %v1757_v59 = vpop.xlane.xlu0 %1756 }
 0x5b0   : > { %v1759_v60 = vsub.f32 %v1751_v53, %v1757_v59  ;;  %v6549_v59 = vld [vmem:[%s7169_s4 + $0xb8] sm:$0xff]  ;;  %s8024_s4 = sld [smem:[#allocation16_spill]] }
 0x5b1   : > { %1971 = vmatpush.bf16.msrb.mxu0 %v6549_v59  ;;  %v6790_v59 = vld [vmem:[%s8020_s0] ss:$0 sm:$0xff]  ;;  %s8025_s0 = sld [smem:[#allocation12_spill]] }
 0x5b2   : > { %v6828_v61 = vpop.eup %6827  ;;  %v1762_v62 = vmul.f32 1.442695, %v1759_v60 }
 0x5b3   : > { %v1764_v63 = vsel %vm1133_vm2, %v6828_v61, 0.0 }
 0x5b4   : > { %6829 = vpow2.f32 %v1762_v62  ;;  %1765 = vadd.xlane.f32.xlu1 %v1764_v63 }
 0x5b5   : > { %1972 = vmatpush.bf16.msrb.mxu0 %v6548_v13 }
 0x5ba   : > { %v6830_v0 = vpop.eup %6829 }
 0x5bb   : > { %v1767_v1 = vsel %vm1133_vm2, %v6830_v0, 0.0 }
 0x5bc   : > { %1768 = vadd.xlane.f32.xlu2 %v1767_v1 }
 0x627   : > { %v1766_v16 = vpop.xlane.xlu1 %1765 }
 0x628   : > { %6831 = vrcp.f32 %v1766_v16  ;;  %v1781_v21 = vand.u32 2147483648, %v1766_v16  ;;  %v1779_v23 = vand.u32 2147483647, %v1766_v16  ;;  %vm1775_vm7 = vweird.f32 %v1766_v16 }
 0x62a   : > { %v1782_v27 = vor.u32 1.1754944e-38, %v1781_v21  ;;  %vm1780_vm9 = vcmp.eq.f32.partialorder %v1779_v23, 8.507059e+37  ;;  %v6789_v21 = vld [vmem:[%s7178_s5 + $0xb] ss:$0 sm:$0xff] }
 0x62e   : > { %v6832_v17 = vpop.eup %6831 }
 0x62f   : > { %v1771_v18 = vmul.f32 %v6832_v17, %v1766_v16  ;;  %v1769_v19 = vpop.xlane.xlu2 %1768  ;;  %vm1776_vm6 = vweird.f32 %v6832_v17 }
 0x630   : > { %6833 = vrcp.f32 %v1769_v19  ;;  %vm1777_vm8 = vmor %vm1775_vm7, %vm1776_vm6  ;;  %v1796_v34 = vand.u32 2147483648, %v1769_v19  ;;  %v1794_v36 = vand.u32 2147483647, %v1769_v19  ;;  %vm1790_vm12 = vweird.f32 %v1769_v19 }
 0x631   : > { %v1772_v20 = vsub.f32 1.0, %v1771_v18 }
 0x632   : > { %v1797_v38 = vor.u32 1.1754944e-38, %v1796_v34  ;;  %vm1795_vm14 = vcmp.eq.f32.partialorder %v1794_v36, 8.507059e+37 }
 0x633   : > { %v1773_v22 = vmul.f32 %v6832_v17, %v1772_v20 }
 0x635   : > { %v1774_v25 = vadd.f32 %v6832_v17, %v1773_v22 }
 0x636   : > { %v6834_v26 = vpop.eup %6833 }
 0x637   : > { %v1778_v28 = vsel %vm1777_vm8, %v6832_v17, %v1774_v25  ;;  %v1786_v29 = vmul.f32 %v6834_v26, %v1769_v19  ;;  %vm1791_vm10 = vweird.f32 %v6834_v26 }
 0x638   : > { %v1783_v30 = vsel %vm1780_vm9, %v1782_v27, %v1778_v28  ;;  %vm1792_vm13 = vmor %vm1790_vm12, %vm1791_vm10 }
 0x639   : > { %v1787_v32 = vsub.f32 1.0, %v1786_v29  ;;  %v1784_v33 = vmul.f32 %v6828_v61, %v1783_v30  ;;  %v1586_v61 = vadd.f32 %v7352_v46, %v7365_v3 }
 0x63b   : > { %v1788_v35 = vmul.f32 %v6834_v26, %v1787_v32  ;;  %5616 = vmatmul.msk.f32.vlgmr.msrb.gmra.mxu2 %vm1133_vm2, %v1784_v33 }
 0x63c   : > { %5664 = vmatpush.xpose.msk.msrb.mxu2 %vm1133_vm2, %v1941_v50 }
 0x63d   : > { %v1789_v37 = vadd.f32 %v6834_v26, %v1788_v35 }
 0x63f   : > { %v1793_v39 = vsel %vm1792_vm13, %v6834_v26, %v1789_v37 }
 0x640   : > { %v1798_v40 = vsel %vm1795_vm14, %v1797_v38, %v1793_v39 }
 0x641   : > { %v1799_v41 = vmul.f32 %v6830_v0, %v1798_v40 }
 0x643   : > { %5617 = vmatmul.msk.f32.vlgmr.msra.gmra.mxu0 %vm1133_vm2, %v1799_v41  ;;  %5633 = vmatmul.msk.bf16.vlgmr.msra.gmra.mxu2 %vm1043_vm1, %v7267_v8 }
 0x64b   : > { %5661 = vmatmul.msk.bf16.vlgmr.msrb.gmra.mxu0 %vm1043_vm1, %v7267_v8 }
 0x6be   : > { %v1820_v51 = vpop.f32.mrf.mxu2 }
 0x6c0   : > { %v1843_v52 = vpop.f32.mrf.mxu0 }
 0x6c1   : > { %v1846_v53 = vpack.c.bf16 %v1843_v52, %v1820_v51  ;;  %v5668_v52 = vld [vmem:[%s8019_s3 + $0xc] sm:$0xf] }
 0x6c3   : > { %5619 = vmatmul.msk.bf16.vlgmr.msra.gmra.mxu1 %vm1133_vm2, %v1846_v53  ;;  %v2136_v53 = vsel %vm1550_vm11, %v5668_v52, 0  ;;  %v6792_v52 = vld [vmem:[%s8023_s23] ss:$0 sm:$0xff]  ;;  %s8031_s23 = scalar_lea.vmem %s8030_s22, %s7156_s21 }
 0x6c4   : > { %2145 = vmatpush.bf16.msra.mxu1 %v2136_v53 }
 0x6c6   : > { %v1902_v54 = vpop.f32.mrf.mxu2 }
 0x6c7   : > { %v1903_v58 = vadd.f32 %v6788_v55, %v1902_v54 }
 0x6c8   : > { %v1974_v20 = vpop.f32.mrf.mxu0 }
 0x6c9   : > { %v1975_v22 = vadd.f32 %v6789_v21, %v1974_v20  ;;  %v6553_v20 = vld [vmem:[%s7183_s7 + $0x48] sm:$0xff] }
 0x6cb   : > { %2101 = vmatpush.msrb.mxu3 %v1975_v22  ;;  %v1008_v22 = vld [vmem:[%s8021_s28 + $0x8] sm:$0xff] }
 0x6cd   : > { %2295 = vmatpush.bf16.msra.mxu3 %v6553_v20  ;;  %v6558_v20 = vld [vmem:[%s7183_s7 + $0x50] sm:$0xff] }
 0x6ce   : > { %v1904_v56 = vpop.f32.mrf.mxu2 }
 0x6cf   : > { %v1905_v57 = vadd.f32 %v6788_v55, %v1904_v56 }
 0x6d0   : > { %v1976_v8 = vpop.f32.mrf.mxu0 }
 0x6d1   : > { %5665 = vmatmul.msk.f32.vlgmr.msrb.gmra.mxu2 %vm1133_vm2, %v1905_v57  ;;  %v1977_v23 = vadd.f32 %v6789_v21, %v1976_v8  ;;  %v1584_v57 = vadd.f32 %v7349_v44, %v7363_v2  ;;  %v6552_v21 = vld [vmem:[%s7183_s7 + $0x40] sm:$0xff] }
 0x6d2   : > { %2296 = vmatpush.bf16.msra.mxu3 %v6552_v21  ;;  %v1007_v8 = vld [vmem:[%s8021_s28] sm:$0xff] }
 0x6d3   : > { %5663 = vmatmul.msk.f32.vlgmr.msrb.gmra.mxu1 %vm1133_vm2, %v1903_v58  ;;  %2124 = vmatpush.msra.mxu0 %v1977_v23  ;;  %v7436_v23 = vpack.c.bf16 %v1008_v22, %v1007_v8 }
 0x740   : > { %v7388_v60 = vpop.f32.mrf.mxu1 }
 0x741   : > { %v1869_v58 = vadd.f32 %v7388_v60, %v1584_v57  ;;  %v6957_v60 = vmov 32.0  }
 0x748   : > { %v1866_v62 = vpop.f32.mrf.mxu1 }
 0x749   : > { %v7392_v63 = vadd.f32 %v1866_v62, %v1586_v61 }
 0x750   : > { %v2002_v0 = vpop.f32.mrf.mxu1 }
 0x751   : > { %v2031_v1 = vmul.f32 0.35355338, %v2002_v0 }
 0x753   : > { %v2033_v4 = vadd.f32 %v2031_v1, %v7289_v24 }
 0x754   : > { %v2028_v5 = vpop.f32.mrf.mxu2 }
 0x755   : > { %v2032_v9 = vmul.f32 0.35355338, %v2028_v5  ;;  %v2035_v10 = vsel %vm1133_vm2, %v2033_v4, -inf }
 0x756   : > { %2036 = vmax.xlane.f32.xlu0 %v2035_v10 }
 0x757   : > { %v2034_v11 = vadd.f32 %v2032_v9, %v7293_v31 }
 0x759   : > { %v2038_v12 = vsel %vm1133_vm2, %v2034_v11, -inf }
 0x75a   : > { %2039 = vmax.xlane.f32.xlu1 %v2038_v12 }
 0x7c9   : > { %v2037_v46 = vpop.xlane.xlu0 %2036 }
 0x7ca   : > { %v2041_v3 = vsub.f32 %v2033_v4, %v2037_v46 }
 0x7cc   : > { %v2043_v14 = vmul.f32 1.442695, %v2041_v3 }
 0x7cd   : > { %v2040_v24 = vpop.xlane.xlu1 %2039 }
 0x7ce   : > { %6835 = vpow2.f32 %v2043_v14  ;;  %v2042_v15 = vsub.f32 %v2034_v11, %v2040_v24 }
 0x7d0   : > { %v2045_v16 = vmul.f32 1.442695, %v2042_v15 }
 0x7d2   : > { %6837 = vpow2.f32 %v2045_v16 }
 0x7d4   : > { %v6836_v17 = vpop.eup %6835 }
 0x7d5   : > { %v2047_v31 = vsel %vm1133_vm2, %v6836_v17, 0.0 }
 0x7d6   : > { %2048 = vadd.xlane.f32.xlu2 %v2047_v31 }
 0x7d8   : > { %v6838_v18 = vpop.eup %6837 }
 0x7d9   : > { %v2050_v19 = vsel %vm1133_vm2, %v6838_v18, 0.0 }
 0x7da   : > { %2051 = vadd.xlane.f32.xlu0 %v2050_v19 }
 0x849   : > { %v2049_v25 = vpop.xlane.xlu2 %2048 }
 0x84a   : > { %6839 = vrcp.f32 %v2049_v25  ;;  %v2062_v32 = vand.u32 2147483647, %v2049_v25  ;;  %v2064_v33 = vand.u32 2147483648, %v2049_v25  ;;  %vm2058_vm0 = vweird.f32 %v2049_v25 }
 0x84c   : > { %vm2063_vm4 = vcmp.eq.f32.partialorder %v2062_v32, 8.507059e+37  ;;  %v2065_v38 = vor.u32 1.1754944e-38, %v2064_v33 }
 0x84d   : > { %v2052_v26 = vpop.xlane.xlu0 %2051 }
 0x84e   : > { %6841 = vrcp.f32 %v2052_v26  ;;  %v2079_v39 = vand.u32 2147483648, %v2052_v26  ;;  %v2077_v42 = vand.u32 2147483647, %v2052_v26  ;;  %vm2073_vm6 = vweird.f32 %v2052_v26 }
 0x84f   : > { %6843 = vrcp.f32 %v6957_v60 }
 0x850   : > { %v6840_v27 = vpop.eup %6839  ;;  %v2080_v48 = vor.u32 1.1754944e-38, %v2079_v39  ;;  %vm2078_vm8 = vcmp.eq.f32.partialorder %v2077_v42, 8.507059e+37 }
 0x851   : > { %v2054_v28 = vmul.f32 %v6840_v27, %v2049_v25  ;;  %vm2059_vm15 = vweird.f32 %v6840_v27  ;;  %v6551_v25 = vld [vmem:[%s7183_s7 + $0x8] sm:$0xff] }
 0x852   : > { %vm2060_vm3 = vmor %vm2058_vm0, %vm2059_vm15  ;;  %2256 = vmatpush.bf16.msra.mxu2 %v6551_v25 }
 0x853   : > { %v2055_v29 = vsub.f32 1.0, %v2054_v28  ;;  %v6550_v28 = vld [vmem:[%s7183_s7] sm:$0xff] }
 0x854   : > { %v6842_v30 = vpop.eup %6841 }
 0x855   : > { %v2056_v34 = vmul.f32 %v6840_v27, %v2055_v29  ;;  %v2069_v35 = vmul.f32 %v6842_v30, %v2052_v26  ;;  %vm2074_vm5 = vweird.f32 %v6842_v30  ;;  %v6844_v11 = vpop.eup %6843 }
 0x856   : > { %vm2075_vm7 = vmor %vm2073_vm6, %vm2074_vm5  ;;  %v2171_v12 = vmul.f32 32.0, %v6844_v11  ;;  %vm2175_vm9 = vweird.f32 %v6844_v11  ;;  %2257 = vmatpush.bf16.msra.mxu2 %v6550_v28 }
 0x857   : > { %v2057_v36 = vadd.f32 %v6840_v27, %v2056_v34  ;;  %v2070_v37 = vsub.f32 1.0, %v2069_v35 }
 0x858   : > { %v2172_v13 = vsub.f32 1.0, %v2171_v12 }
 0x859   : > { %v2061_v40 = vsel %vm2060_vm3, %v6840_v27, %v2057_v36  ;;  %v2071_v41 = vmul.f32 %v6842_v30, %v2070_v37 }
 0x85a   : > { %v2066_v43 = vsel %vm2063_vm4, %v2065_v38, %v2061_v40  ;;  %v2173_v46 = vmul.f32 %v6844_v11, %v2172_v13 }
 0x85b   : > { %v2072_v45 = vadd.f32 %v6842_v30, %v2071_v41  ;;  %v2067_v47 = vmul.f32 %v6836_v17, %v2066_v43 }
 0x85d   : > { %v2076_v49 = vsel %vm2075_vm7, %v6842_v30, %v2072_v45  ;;  %5666 = vmatmul.msk.f32.vlgmr.msrb.gmra.mxu3 %vm1133_vm2, %v2067_v47 }
 0x85e   : > { %v2081_v50 = vsel %vm2078_vm8, %v2080_v48, %v2076_v49  ;;  %v6791_v48 = vld [vmem:[%s8022_s25] ss:$0 sm:$0xff] }
 0x85f   : > { %v2082_v51 = vmul.f32 %v6838_v18, %v2081_v50 }
 0x861   : > { %5667 = vmatmul.msk.f32.vlgmr.msra.gmra.mxu0 %vm1133_vm2, %v2082_v51 }
 0x865   : > { %5692 = vmatmul.msk.bf16.vlgmr.msra.gmra.mxu3 %vm1043_vm1, %v7436_v23 }
 0x8de   : > { %v2126_v54 = vpop.f32.mrf.mxu0 }
 0x8e0   : > { %v2103_v55 = vpop.f32.mrf.mxu3 }
 0x8e1   : > { %v2129_v56 = vpack.c.bf16 %v2126_v54, %v2103_v55 }
 0x8e3   : > { %5669 = vmatmul.msk.bf16.vlgmr.msra.gmra.mxu1 %vm1133_vm2, %v2129_v56 }
 0x960   : > { %v2147_v61 = vpop.f32.mrf.mxu1 }
 0x961   : > { %v2152_v62 = vadd.f32 %v2147_v61, %v1869_v58  ;;  %v2298_v61 = vpop.f32.mrf.mxu3 }
 0x963   : > { %v2158_v0 = vadd.f32 %v6790_v59, %v2152_v62 }
 0x965   : > { %v2160_v1 = vadd.f32 %v2158_v0, %v7258_v6  ;;  %v2174_v6 = vadd.f32 %v6844_v11, %v2173_v46 }
 0x967   : > { %v2164_v4 = vsel %vm1043_vm1, %v2160_v1, 0.0  ;;  %v7422_v3 = vsel %vm2175_vm9, %v6844_v11, %v2174_v6  ;;  %v1019_v11 = vld [vmem:[%s8024_s4] sm:$0x3] }
 0x968   : > { %v2149_v5 = vpop.f32.mrf.mxu1  ;;  %2165 = vadd.xlane.f32.xlu1 %v2164_v4  ;;  %v6557_v4 = vld [vmem:[%s7183_s7 + $0x18] sm:$0xff]  ;;  %v7477_v12 = vperm.slane %v1019_v11, 0 }
 0x969   : > { %v2153_v9 = vadd.f32 %v2149_v5, %v7392_v63  ;;  %v2300_v0 = vpop.f32.mrf.mxu3  ;;  %v6556_v5 = vld [vmem:[%s7183_s7 + $0x10] sm:$0xff] }
 0x96b   : > { %v2159_v10 = vadd.f32 %v6790_v59, %v2153_v9  ;;  %v6793_v59 = vld [vmem:[%s7188_s27 + $0x4] ss:$0 sm:$0xff]  ;;  %v6794_v9 = vld [vmem:[%s7188_s27] ss:$0 sm:$0xff] }
 0x96c   : > { %v2299_v62 = vadd.f32 %v6793_v59, %v2298_v61 }
 0x96d   : > { %v2161_v44 = vadd.f32 %v2159_v10, %v7263_v7 }
 0x96e   : > { %5707 = vmatpush.xpose.msk.msrb.mxu1 %vm1133_vm2, %v2299_v62 }
 0x96f   : > { %v2167_v2 = vsel %vm1043_vm1, %v2161_v44, 0.0 }
 0x970   : > { %2168 = vadd.xlane.f32.xlu2 %v2167_v2 }
 0x972   : > { %2523 = vmatpush.bf16.msra.mxu1 %v6557_v4 }
 0x976   : > { %2524 = vmatpush.bf16.msra.mxu1 %v6556_v5 }
 0x9db   : > { %v2166_v14 = vpop.xlane.xlu1 %2165 }
 0x9dc   : > { %v2177_v63 = vmul.f32 %v7422_v3, %v2166_v14 }
 0x9de   : > { %v2179_v24 = vsub.f32 %v2160_v1, %v2177_v63  ;;  %v2301_v1 = vadd.f32 %v6793_v59, %v2300_v0  ;;  %v1021_v63 = vrot.slane %v1019_v11, 1 }
 0x9e0   : > { %v2181_v7 = vmul.f32 %v2179_v24, %v2179_v24  ;;  %5709 = vmatpush.xpose.msk.msrb.mxu2 %vm1133_vm2, %v2301_v1 }
 0x9e2   : > { %v2183_v15 = vsel %vm1043_vm1, %v2181_v7, 0.0 }
 0x9e3   : > { %v2169_v16 = vpop.xlane.xlu2 %2168  ;;  %2184 = vadd.xlane.f32.xlu0 %v2183_v15 }
 0x9e4   : > { %v2178_v17 = vmul.f32 %v7422_v3, %v2169_v16 }
 0x9e6   : > { %v2180_v31 = vsub.f32 %v2161_v44, %v2178_v17 }
 0x9e8   : > { %v2182_v18 = vmul.f32 %v2180_v31, %v2180_v31 }
 0x9ea   : > { %v2186_v19 = vsel %vm1043_vm1, %v2182_v18, 0.0  ;;  %v6554_v18 = vld [vmem:[%s7183_s7 + $0x80] sm:$0xff] }
 0x9eb   : > { %2187 = vadd.xlane.f32.xlu1 %v2186_v19  ;;  %v6559_v19 = vld [vmem:[%s7183_s7 + $0x58] sm:$0xff] }
 0xa56   : > { %v2185_v26 = vpop.xlane.xlu0 %2184 }
 0xa57   : > { %v2189_v27 = vmul.f32 %v2185_v26, %v7422_v3 }
 0xa59   : > { %v2191_v29 = vadd.f32 1e-05, %v2189_v27 }
 0xa5b   : > { %6845 = vrsqrt.f32 %v2191_v29  ;;  %vm2199_vm12 = vweird.f32 %v2191_v29 }
 0xa5e   : > { %v2188_v30 = vpop.xlane.xlu1 %2187 }
 0xa5f   : > { %v2190_v32 = vmul.f32 %v2188_v30, %v7422_v3 }
 0xa61   : > { %v6846_v33 = vpop.eup %6845  ;;  %v2192_v34 = vadd.f32 1e-05, %v2190_v32 }
 0xa62   : > { %v2194_v35 = vmul.f32 %v6846_v33, %v2191_v29  ;;  %vm2200_vm10 = vweird.f32 %v6846_v33 }
 0xa63   : > { %6847 = vrsqrt.f32 %v2192_v34  ;;  %vm2201_vm13 = vmor %vm2199_vm12, %vm2200_vm10  ;;  %vm2209_vm15 = vweird.f32 %v2192_v34 }
 0xa64   : > { %v2195_v36 = vmul.f32 %v6846_v33, %v2194_v35 }
 0xa66   : > { %v2196_v37 = vmul.f32 0.5, %v2195_v36 }
 0xa68   : > { %v2197_v38 = vsub.f32 1.5, %v2196_v37 }
 0xa69   : > { %v6848_v39 = vpop.eup %6847 }
 0xa6a   : > { %v2198_v40 = vmul.f32 %v6846_v33, %v2197_v38  ;;  %v2204_v41 = vmul.f32 %v6848_v39, %v2192_v34  ;;  %vm2210_vm14 = vweird.f32 %v6848_v39  ;;  %v6796_v34 = vld [vmem:[%s7188_s27 + $0x8] ss:$0 sm:$0xff]  ;;  %v6797_v38 = vld [vmem:[%s7188_s27 + $0x5] ss:$0 sm:$0xff] }
 0xa6b   : > { %vm2211_vm0 = vmor %vm2209_vm15, %vm2210_vm14 }
 0xa6c   : > { %v2205_v42 = vmul.f32 %v6848_v39, %v2204_v41  ;;  %v2202_v43 = vsel %vm2201_vm13, %v6846_v33, %v2198_v40 }
 0xa6d   : > { %v2213_v49 = vmul.f32 %v2202_v43, %v2179_v24  ;;  %v7481_v24 = vperm.slane %v1021_v63, 0 }
 0xa6e   : > { %v2206_v45 = vmul.f32 0.5, %v2205_v42 }
 0xa6f   : > { %v2218_v53 = vmul.f32 %v6791_v48, %v2213_v49 }
 0xa70   : > { %v2207_v47 = vsub.f32 1.5, %v2206_v45 }
 0xa71   : > { %v7454_v56 = vadd.f32 %v6792_v52, %v2218_v53 }
 0xa72   : > { %v2208_v50 = vmul.f32 %v6848_v39, %v2207_v47 }
 0xa74   : > { %v2212_v51 = vsel %vm2211_vm0, %v6848_v39, %v2208_v50 }
 0xa75   : > { %v2214_v54 = vmul.f32 %v2212_v51, %v2180_v31  ;;  %v6555_v31 = vld [vmem:[%s7183_s7 + $0x88] sm:$0xff] }
 0xa76   : > { %2331 = vmatpush.bf16.msrb.mxu0 %v6555_v31 }
 0xa77   : > { %v2219_v55 = vmul.f32 %v6791_v48, %v2214_v54 }
 0xa79   : > { %v7456_v57 = vadd.f32 %v6792_v52, %v2219_v55 }
 0xa7a   : > { %2332 = vmatpush.bf16.msrb.mxu0 %v6554_v18 }
 0xa7b   : > { %v7460_v58 = vpack.c.bf16 %v7456_v57, %v7454_v56 }
 0xa7d   : > { %5678 = vmatmul.msk.bf16.vlgmr.msra.gmra.mxu2 %vm1043_vm1, %v7460_v58  ;;  %5706 = vmatmul.msk.bf16.vlgmr.msrb.gmra.mxu0 %vm1043_vm1, %v7436_v23 }
 0xa7e   : > { %2559 = vmatpush.bf16.msra.mxu2 %v6559_v19 }
 0xa82   : > { %2560 = vmatpush.bf16.msra.mxu2 %v6558_v20 }
 0xafa   : > { %v2334_v33 = vpop.f32.mrf.mxu0 }
 0xafb   : > { %v2335_v35 = vadd.f32 %v6796_v34, %v2334_v33 }
 0xafd   : > { %2465 = vmatpush.msrb.mxu3 %v2335_v35 }
 0xb00   : > { %v2259_v10 = vpop.f32.mrf.mxu2 }
 0xb01   : > { %v2260_v44 = vadd.f32 %v6794_v9, %v2259_v10 }
 0xb02   : > { %v2336_v36 = vpop.f32.mrf.mxu0 }
 0xb03   : > { %5708 = vmatmul.msk.f32.vlgmr.msrb.gmra.mxu1 %vm1133_vm2, %v2260_v44  ;;  %v2337_v37 = vadd.f32 %v6796_v34, %v2336_v36 }
 0xb05   : > { %2488 = vmatpush.msra.mxu0 %v2337_v37 }
 0xb08   : > { %v2261_v2 = vpop.f32.mrf.mxu2 }
 0xb09   : > { %v2262_v60 = vadd.f32 %v6794_v9, %v2261_v2 }
 0xb0b   : > { %5710 = vmatmul.msk.f32.vlgmr.msrb.gmra.mxu2 %vm1133_vm2, %v2262_v60  ;;  %5726 = vmatmul.msk.bf16.vlgmr.msra.gmra.mxu1 %vm1043_vm1, %v7460_v58 }
 0xb13   : > { %5740 = vmatmul.msk.bf16.vlgmr.msra.gmra.mxu2 %vm1043_vm1, %v7436_v23 }
 0xb80   : > { %v2362_v13 = vpop.f32.mrf.mxu1 }
 0xb81   : > { %v2391_v46 = vmul.f32 0.35355338, %v2362_v13 }
 0xb83   : > { %v2397_v6 = vadd.f32 %v7477_v12, %v2391_v46  ;;  %v6795_v46 = vld [vmem:[%s7188_s27 + $0x1] ss:$0 sm:$0xff] }
 0xb85   : > { %v2399_v14 = vsel %vm1133_vm2, %v2397_v6, -inf }
 0xb86   : > { %2400 = vmax.xlane.f32.xlu1 %v2399_v14 }
 0xb88   : > { %v2526_v13 = vpop.f32.mrf.mxu1 }
 0xb8e   : > { %v2388_v7 = vpop.f32.mrf.mxu2 }
 0xb8f   : > { %v2392_v15 = vmul.f32 0.35355338, %v2388_v7  ;;  %v2494_v7 = vld [vmem:[%s8025_s0] sm:$0xf] }
 0xb90   : > { %v2528_v14 = vpop.f32.mrf.mxu1 }
 0xb91   : > { %v2398_v16 = vadd.f32 %v7481_v24, %v2392_v15  ;;  %v2529_v63 = vadd.f32 %v6795_v46, %v2528_v14  ;;  %v2780_v15 = vsel %vm1550_vm11, %v2494_v7, 0 }
 0xb93   : > { %v2402_v17 = vsel %vm1133_vm2, %v2398_v16, -inf }
 0xb94   : > { %2403 = vmax.xlane.f32.xlu2 %v2402_v17 }
 0xb96   : > { %v2562_v40 = vpop.f32.mrf.mxu2 }
 0xb97   : > { %v2563_v41 = vadd.f32 %v6797_v38, %v2562_v40 }
 0xb99   : > { %5755 = vmatpush.xpose.msk.msrb.mxu0 %vm1133_vm2, %v2563_v41  ;;  %v6798_v41 = vld [vmem:[%s7188_s27 + $0x9] ss:$0 sm:$0xff] }
 0xb9e   : > { %v2564_v9 = vpop.f32.mrf.mxu2 }
 0xb9f   : > { %v2565_v60 = vadd.f32 %v6797_v38, %v2564_v9 }
 0xbf9   : > { %v2401_v21 = vpop.xlane.xlu1 %2400 }
 0xbfa   : > { %v2405_v8 = vsub.f32 %v2397_v6, %v2401_v21  ;;  %v2527_v6 = vadd.f32 %v6795_v46, %v2526_v13 }
 0xbfc   : > { %v2407_v22 = vmul.f32 1.442695, %v2405_v8 }
 0xbfe   : > { %6849 = vpow2.f32 %v2407_v22 }
 0xc04   : > { %v6850_v25 = vpop.eup %6849 }
 0xc05   : > { %v2411_v26 = vsel %vm1133_vm2, %v6850_v25, 0.0 }
 0xc06   : > { %2412 = vadd.xlane.f32.xlu2 %v2411_v26 }
 0xc07   : > { %v2404_v27 = vpop.xlane.xlu2 %2403 }
 0xc08   : > { %v2406_v28 = vsub.f32 %v2398_v16, %v2404_v27  ;;  %v6561_v16 = vld [vmem:[%s7183_s7 + $0x98] sm:$0xff] }
 0xc09   : > { %2595 = vmatpush.bf16.msra.mxu3 %v6561_v16 }
 0xc0a   : > { %v2409_v29 = vmul.f32 1.442695, %v2406_v28  ;;  %v6560_v28 = vld [vmem:[%s7183_s7 + $0x90] sm:$0xff] }
 0xc0c   : > { %6851 = vpow2.f32 %v2409_v29 }
 0xc0d   : > { %2596 = vmatpush.bf16.msra.mxu3 %v6560_v28 }
 0xc12   : > { %v6852_v30 = vpop.eup %6851 }
 0xc13   : > { %v2414_v32 = vsel %vm1133_vm2, %v6852_v30, 0.0 }
 0xc14   : > { %2415 = vadd.xlane.f32.xlu0 %v2414_v32 }
 0xc79   : > { %v2413_v39 = vpop.xlane.xlu2 %2412 }
 0xc7a   : > { %6853 = vrcp.f32 %v2413_v39  ;;  %v2428_v47 = vand.u32 2147483648, %v2413_v39  ;;  %v2426_v49 = vand.u32 2147483647, %v2413_v39  ;;  %vm2422_vm4 = vweird.f32 %v2413_v39 }
 0xc7c   : > { %v2429_v52 = vor.u32 1.1754944e-38, %v2428_v47  ;;  %vm2427_vm6 = vcmp.eq.f32.partialorder %v2426_v49, 8.507059e+37  ;;  %v6563_v47 = vld [vmem:[%s7183_s7 + $0x28] sm:$0xff] }
 0xc7d   : > { %v6565_v49 = vld [vmem:[%s7183_s7 + $0x68] sm:$0xff] }
 0xc80   : > { %v6854_v42 = vpop.eup %6853 }
 0xc81   : > { %v2418_v43 = vmul.f32 %v6854_v42, %v2413_v39  ;;  %vm2423_vm3 = vweird.f32 %v6854_v42 }
 0xc82   : > { %vm2424_vm5 = vmor %vm2422_vm4, %vm2423_vm3 }
 0xc83   : > { %v2419_v45 = vsub.f32 1.0, %v2418_v43 }
 0xc85   : > { %v2420_v48 = vmul.f32 %v6854_v42, %v2419_v45 }
 0xc87   : > { %v2421_v50 = vadd.f32 %v6854_v42, %v2420_v48  ;;  %v2416_v51 = vpop.xlane.xlu0 %2415  ;;  %v6562_v48 = vld [vmem:[%s7183_s7 + $0x20] sm:$0xff] }
 0xc88   : > { %6855 = vrcp.f32 %v2416_v51  ;;  %v2443_v0 = vand.u32 2147483648, %v2416_v51  ;;  %v2441_v4 = vand.u32 2147483647, %v2416_v51  ;;  %vm2437_vm8 = vweird.f32 %v2416_v51 }
 0xc89   : > { %v2425_v53 = vsel %vm2424_vm5, %v6854_v42, %v2421_v50  ;;  %v6564_v50 = vld [vmem:[%s7183_s7 + $0x60] sm:$0xff] }
 0xc8a   : > { %v2430_v54 = vsel %vm2427_vm6, %v2429_v52, %v2425_v53  ;;  %v2444_v10 = vor.u32 1.1754944e-38, %v2443_v0  ;;  %vm2442_vm10 = vcmp.eq.f32.partialorder %v2441_v4, 8.507059e+37 }
 0xc8b   : > { %v2431_v55 = vmul.f32 %v6850_v25, %v2430_v54 }
 0xc8d   : > { %5711 = vmatmul.msk.f32.vlgmr.msrb.gmra.mxu3 %vm1133_vm2, %v2431_v55 }
 0xc8e   : > { %v6856_v59 = vpop.eup %6855 }
 0xc8f   : > { %v2433_v61 = vmul.f32 %v6856_v59, %v2416_v51  ;;  %vm2438_vm7 = vweird.f32 %v6856_v59 }
 0xc90   : > { %vm2439_vm9 = vmor %vm2437_vm8, %vm2438_vm7 }
 0xc91   : > { %v2434_v62 = vsub.f32 1.0, %v2433_v61 }
 0xc93   : > { %v2435_v1 = vmul.f32 %v6856_v59, %v2434_v62 }
 0xc95   : > { %v2436_v5 = vadd.f32 %v6856_v59, %v2435_v1  ;;  %5754 = vmatmul.msk.bf16.vlgmr.msra.gmra.mxu3 %vm1043_vm1, %v7436_v23 }
 0xc97   : > { %v2440_v44 = vsel %vm2439_vm9, %v6856_v59, %v2436_v5 }
 0xc98   : > { %v2445_v2 = vsel %vm2442_vm10, %v2444_v10, %v2440_v44 }
 0xc99   : > { %v2446_v11 = vmul.f32 %v6852_v30, %v2445_v2 }
 0xc9b   : > { %5712 = vmatmul.msk.f32.vlgmr.msra.gmra.mxu0 %vm1133_vm2, %v2446_v11 }
 0xc9c   : > { %5757 = vmatpush.xpose.msk.msra.mxu0 %vm1133_vm2, %v2565_v60 }
 0xca3   : > { %5756 = vmatmul.msk.f32.vlgmr.msrb.gmra.mxu0 %vm1133_vm2, %v2527_v6 }
 0xca4   : > { %2789 = vmatpush.bf16.msrb.mxu0 %v2780_v15  ;;  %v5761_v15 = vld [vmem:[%s8025_s0 + $0x4] sm:$0xf] }
 0xca5   : > { %v2760_v16 = vsel %vm1550_vm11, %v5761_v15, 0 }
 0xca6   : > { %2769 = vmatpush.bf16.msrb.mxu3 %v2760_v16 }
 0xcab   : > { %5758 = vmatmul.msk.f32.vlgmr.msra.gmra.mxu0 %vm1133_vm2, %v2529_v63 }
 0xd10   : > { %v2467_v17 = vpop.f32.mrf.mxu3 }
 0xd18   : > { %v2490_v31 = vpop.f32.mrf.mxu0  ;;  %v2598_v40 = vpop.f32.mrf.mxu3 }
 0xd19   : > { %v2493_v18 = vpack.c.bf16 %v2490_v31, %v2467_v17  ;;  %v2599_v43 = vadd.f32 %v6798_v41, %v2598_v40 }
 0xd1b   : > { %5763 = vmatmul.msk.bf16.vlgmr.msrb.gmra.mxu0 %vm1133_vm2, %v2493_v18  ;;  %2725 = vmatpush.msrb.mxu1 %v2599_v43 }
 0xd1d   : > { %2824 = vmatpush.bf16.msra.mxu1 %v6563_v47 }
 0xd20   : > { %v2626_v19 = vpop.f32.mrf.mxu0  ;;  %v2600_v42 = vpop.f32.mrf.mxu3 }
 0xd21   : > { %v2655_v20 = vmul.f32 0.35355338, %v2626_v19  ;;  %v2601_v45 = vadd.f32 %v6798_v41, %v2600_v42  ;;  %2825 = vmatpush.bf16.msra.mxu1 %v6562_v48  ;;  %v6800_v19 = vld [vmem:[%s7188_s27 + $0x6] ss:$0 sm:$0xff] }
 0xd22   : > { %v6566_v42 = vld [vmem:[%s7183_s7 + $0xa0] sm:$0xff] }
 0xd23   : > { %v2657_v21 = vadd.f32 %v2655_v20, %v7477_v12  ;;  %2748 = vmatpush.msrb.mxu2 %v2601_v45 }
 0xd25   : > { %v2659_v8 = vsel %vm1133_vm2, %v2657_v21, -inf  ;;  %2860 = vmatpush.bf16.msra.mxu2 %v6565_v49 }
 0xd26   : > { %2660 = vmax.xlane.f32.xlu1 %v2659_v8 }
 0xd28   : > { %v2652_v22 = vpop.f32.mrf.mxu0 }
 0xd29   : > { %v2656_v25 = vmul.f32 0.35355338, %v2652_v22  ;;  %2861 = vmatpush.bf16.msra.mxu2 %v6564_v50 }
 0xd2b   : > { %v2658_v26 = vadd.f32 %v2656_v25, %v7481_v24 }
 0xd2d   : > { %v2662_v27 = vsel %vm1133_vm2, %v2658_v26, -inf }
 0xd2e   : > { %2663 = vmax.xlane.f32.xlu0 %v2662_v27 }
 0xd99   : > { %v2661_v29 = vpop.xlane.xlu1 %2660 }
 0xd9a   : > { %v2665_v30 = vsub.f32 %v2657_v21, %v2661_v29  ;;  %v6799_v21 = vld [vmem:[%s7188_s27 + $0x2] ss:$0 sm:$0xff] }
 0xd9c   : > { %v2667_v32 = vmul.f32 1.442695, %v2665_v30  ;;  %v7537_v30 = vpop.f32.mrf.mxu0 }
 0xd9e   : > { %6857 = vpow2.f32 %v2667_v32  ;;  %v6567_v32 = vld [vmem:[%s7183_s7 + $0xa8] sm:$0xff] }
 0xd9f   : > { %2896 = vmatpush.bf16.msra.mxu3 %v6567_v32  ;;  %v6802_v32 = vld [vmem:[%s7188_s27 + $0x7] ss:$0 sm:$0xff] }
 0xda1   : > { %v2664_v33 = vpop.xlane.xlu0 %2663 }
 0xda2   : > { %v2666_v34 = vsub.f32 %v2658_v26, %v2664_v33 }
 0xda3   : > { %2897 = vmatpush.bf16.msra.mxu3 %v6566_v42 }
 0xda4   : > { %v6858_v35 = vpop.eup %6857  ;;  %v2669_v36 = vmul.f32 1.442695, %v2666_v34  ;;  %v7540_v33 = vpop.f32.mrf.mxu0 }
 0xda5   : > { %v2671_v37 = vsel %vm1133_vm2, %v6858_v35, 0.0 }
 0xda6   : > { %6859 = vpow2.f32 %v2669_v36  ;;  %2672 = vadd.xlane.f32.xlu0 %v2671_v37 }
 0xdac   : > { %v6860_v38 = vpop.eup %6859 }
 0xdad   : > { %v2674_v39 = vsel %vm1133_vm2, %v6860_v38, 0.0 }
 0xdae   : > { %2675 = vadd.xlane.f32.xlu2 %v2674_v39 }
 0xe19   : > { %v2673_v51 = vpop.xlane.xlu0 %2672 }
 0xe1a   : > { %6861 = vrcp.f32 %v2673_v51  ;;  %v2688_v59 = vand.u32 2147483648, %v2673_v51  ;;  %v2686_v62 = vand.u32 2147483647, %v2673_v51  ;;  %vm2682_vm13 = vweird.f32 %v2673_v51 }
 0xe1c   : > { %v2689_v4 = vor.u32 1.1754944e-38, %v2688_v59  ;;  %vm2687_vm15 = vcmp.eq.f32.partialorder %v2686_v62, 8.507059e+37  ;;  %v6571_v62 = vld [vmem:[%s7183_s7 + $0x78] sm:$0xff] }
 0xe20   : > { %v6862_v52 = vpop.eup %6861 }
 0xe21   : > { %v2678_v53 = vmul.f32 %v6862_v52, %v2673_v51  ;;  %v2676_v54 = vpop.xlane.xlu2 %2675  ;;  %vm2683_vm12 = vweird.f32 %v6862_v52 }
 0xe22   : > { %6863 = vrcp.f32 %v2676_v54  ;;  %vm2684_vm14 = vmor %vm2682_vm13, %vm2683_vm12  ;;  %v2703_v60 = vand.u32 2147483648, %v2676_v54  ;;  %v2701_v13 = vand.u32 2147483647, %v2676_v54  ;;  %vm2697_vm3 = vweird.f32 %v2676_v54 }
 0xe23   : > { %v2679_v55 = vsub.f32 1.0, %v2678_v53 }
 0xe24   : > { %v2704_v6 = vor.u32 1.1754944e-38, %v2703_v60  ;;  %vm2702_vm5 = vcmp.eq.f32.partialorder %v2701_v13, 8.507059e+37 }
 0xe25   : > { %v2680_v61 = vmul.f32 %v6862_v52, %v2679_v55 }
 0xe27   : > { %v2681_v0 = vadd.f32 %v6862_v52, %v2680_v61 }
 0xe28   : > { %v6864_v1 = vpop.eup %6863 }
 0xe29   : > { %v2685_v5 = vsel %vm2684_vm14, %v6862_v52, %v2681_v0  ;;  %v2693_v9 = vmul.f32 %v6864_v1, %v2676_v54  ;;  %vm2698_vm0 = vweird.f32 %v6864_v1  ;;  %v6570_v0 = vld [vmem:[%s7183_s7 + $0x70] sm:$0xff] }
 0xe2a   : > { %v2690_v10 = vsel %vm2687_vm15, %v2689_v4, %v2685_v5  ;;  %vm2699_vm4 = vmor %vm2697_vm3, %vm2698_vm0 }
 0xe2b   : > { %v2694_v44 = vsub.f32 1.0, %v2693_v9  ;;  %v2691_v2 = vmul.f32 %v6858_v35, %v2690_v10  ;;  %v6569_v10 = vld [vmem:[%s7183_s7 + $0x38] sm:$0xff] }
 0xe2d   : > { %v2695_v11 = vmul.f32 %v6864_v1, %v2694_v44  ;;  %5759 = vmatmul.msk.f32.vlgmr.msrb.gmra.mxu1 %vm1133_vm2, %v2691_v2  ;;  %v6568_v44 = vld [vmem:[%s7183_s7 + $0x30] sm:$0xff] }
 0xe2f   : > { %v2696_v46 = vadd.f32 %v6864_v1, %v2695_v11 }
 0xe31   : > { %v2700_v14 = vsel %vm2699_vm4, %v6864_v1, %v2696_v46  ;;  %v6801_v1 = vld [vmem:[%s7188_s27 + $0xa] ss:$0 sm:$0xff] }
 0xe32   : > { %v2705_v63 = vsel %vm2702_vm5, %v2704_v6, %v2700_v14 }
 0xe33   : > { %v2706_v7 = vmul.f32 %v6860_v38, %v2705_v63 }
 0xe35   : > { %5760 = vmatmul.msk.f32.vlgmr.msrb.gmra.mxu2 %vm1133_vm2, %v2706_v7  ;;  %5777 = vmatmul.msk.bf16.vlgmr.msra.gmra.mxu1 %vm1043_vm1, %v7460_v58 }
 0xe3d   : > { %5791 = vmatmul.msk.bf16.vlgmr.msra.gmra.mxu2 %vm1043_vm1, %v7436_v23 }
 0xeaa   : > { %v2727_v17 = vpop.f32.mrf.mxu1 }
 0xeb2   : > { %v2827_v20 = vpop.f32.mrf.mxu1 }
 0xeb3   : > { %v2828_v25 = vadd.f32 %v6799_v21, %v2827_v20 }
 0xeb8   : > { %v2750_v31 = vpop.f32.mrf.mxu2 }
 0xeb9   : > { %v2753_v18 = vpack.c.bf16 %v2750_v31, %v2727_v17 }
 0xeba   : > { %v2829_v27 = vpop.f32.mrf.mxu1 }
 0xebb   : > { %5762 = vmatmul.msk.bf16.vlgmr.msrb.gmra.mxu3 %vm1133_vm2, %v2753_v18  ;;  %v2830_v29 = vadd.f32 %v6799_v21, %v2829_v27 }
 0xebc   : > { %3143 = vmatpush.bf16.msrb.mxu3 %v6571_v62 }
 0xec0   : > { %v2863_v8 = vpop.f32.mrf.mxu2  ;;  %3144 = vmatpush.bf16.msrb.mxu3 %v6570_v0 }
 0xec1   : > { %v2864_v22 = vadd.f32 %v6800_v19, %v2863_v8 }
 0xec3   : > { %5806 = vmatpush.xpose.msk.msra.mxu0 %vm1133_vm2, %v2864_v22 }
 0xec6   : > { %5807 = vmatmul.msk.f32.vlgmr.msra.gmra.mxu0 %vm1133_vm2, %v2828_v25 }
 0xec8   : > { %v2865_v26 = vpop.f32.mrf.mxu2 }
 0xec9   : > { %v2866_v28 = vadd.f32 %v6800_v19, %v2865_v26 }
 0xecb   : > { %5808 = vmatpush.xpose.msk.msrb.mxu1 %vm1133_vm2, %v2866_v28  ;;  %5805 = vmatmul.msk.bf16.vlgmr.msra.gmra.mxu3 %vm1043_vm1, %v7436_v23 }
 0xece   : > { %5809 = vmatmul.msk.f32.vlgmr.msrb.gmra.mxu1 %vm1133_vm2, %v2830_v29 }
 0xedb   : > { %5841 = vmatmul.msk.bf16.vlgmr.msrb.gmra.mxu3 %vm1043_vm1, %v7436_v23 }
 0xf3e   : > { %v7551_v55 = vpop.f32.mrf.mxu3 }
 0xf43   : > { %v2927_v34 = vpop.f32.mrf.mxu0 }
 0xf44   : > { %v2956_v35 = vmul.f32 0.35355338, %v2927_v34 }
 0xf46   : > { %v2958_v36 = vadd.f32 %v2956_v35, %v7477_v12  ;;  %v7553_v59 = vpop.f32.mrf.mxu3  ;;  %v5812_v35 = vld [vmem:[%s8025_s0 + $0x8] sm:$0xf] }
 0xf48   : > { %v2960_v37 = vsel %vm1133_vm2, %v2958_v36, -inf }
 0xf49   : > { %2961 = vmax.xlane.f32.xlu1 %v2960_v37  ;;  %v3061_v37 = vsel %vm1550_vm11, %v5812_v35, 0 }
 0xf4a   : > { %3070 = vmatpush.bf16.msra.mxu1 %v3061_v37 }
 0xf4b   : > { %v2953_v38 = vpop.f32.mrf.mxu1 }
 0xf4c   : > { %v2957_v39 = vmul.f32 0.35355338, %v2953_v38 }
 0xf4e   : > { %v2959_v40 = vadd.f32 %v2957_v39, %v7481_v24  ;;  %v2899_v61 = vpop.f32.mrf.mxu3 }
 0xf4f   : > { %v2900_v5 = vadd.f32 %v6801_v1, %v2899_v61 }
 0xf50   : > { %v2963_v41 = vsel %vm1133_vm2, %v2959_v40, -inf }
 0xf51   : > { %2964 = vmax.xlane.f32.xlu2 %v2963_v41  ;;  %3026 = vmatpush.msrb.mxu2 %v2900_v5 }
 0xf53   : > { %3107 = vmatpush.bf16.msra.mxu2 %v6569_v10  ;;  %v6572_v10 = vld [vmem:[%s7183_s7 + $0xb0] sm:$0xff] }
 0xf56   : > { %v2901_v4 = vpop.f32.mrf.mxu3 }
 0xf57   : > { %v2902_v9 = vadd.f32 %v6801_v1, %v2901_v4  ;;  %3108 = vmatpush.bf16.msra.mxu2 %v6568_v44 }
 0xf59   : > { %3049 = vmatpush.msrb.mxu0 %v2902_v9 }
 0xf5e   : > { %v3146_v34 = vpop.f32.mrf.mxu3 }
 0xf66   : > { %v3148_v38 = vpop.f32.mrf.mxu3 }
 0xf67   : > { %v3149_v39 = vadd.f32 %v6802_v32, %v3148_v38 }
 0xfbc   : > { %v2962_v43 = vpop.xlane.xlu1 %2961 }
 0xfbd   : > { %v2966_v45 = vsub.f32 %v2958_v36, %v2962_v43  ;;  %v3147_v36 = vadd.f32 %v6802_v32, %v3146_v34  ;;  %v6803_v43 = vld [vmem:[%s7188_s27 + $0x3] ss:$0 sm:$0xff] }
 0xfbf   : > { %v2968_v47 = vmul.f32 1.442695, %v2966_v45  ;;  %5856 = vmatpush.xpose.msk.msrb.mxu1 %vm1133_vm2, %v3147_v36 }
 0xfc1   : > { %6865 = vpow2.f32 %v2968_v47 }
 0xfc4   : > { %v2965_v48 = vpop.xlane.xlu2 %2964 }
 0xfc5   : > { %v2967_v49 = vsub.f32 %v2959_v40, %v2965_v48 }
 0xfc7   : > { %v6866_v50 = vpop.eup %6865  ;;  %v2970_v51 = vmul.f32 1.442695, %v2967_v49  ;;  %v6573_v49 = vld [vmem:[%s7183_s7 + $0xb8] sm:$0xff] }
 0xfc8   : > { %v2972_v52 = vsel %vm1133_vm2, %v6866_v50, 0.0  ;;  %3179 = vmatpush.bf16.msra.mxu0 %v6573_v49 }
 0xfc9   : > { %6867 = vpow2.f32 %v2970_v51  ;;  %2973 = vadd.xlane.f32.xlu0 %v2972_v52 }
 0xfcc   : > { %3180 = vmatpush.bf16.msra.mxu0 %v6572_v10 }
 0xfcf   : > { %v6868_v53 = vpop.eup %6867 }
 0xfd0   : > { %v2975_v54 = vsel %vm1133_vm2, %v6868_v53, 0.0 }
 0xfd1   : > { %2976 = vadd.xlane.f32.xlu1 %v2975_v54 }
0x103c   : > { %v2974_v2 = vpop.xlane.xlu0 %2973 }
0x103d   : > { %6869 = vrcp.f32 %v2974_v2  ;;  %v2989_v6 = vand.u32 2147483648, %v2974_v2  ;;  %v2987_v63 = vand.u32 2147483647, %v2974_v2  ;;  %vm2983_vm7 = vweird.f32 %v2974_v2 }
0x103f   : > { %v2990_v16 = vor.u32 1.1754944e-38, %v2989_v6  ;;  %vm2988_vm9 = vcmp.eq.f32.partialorder %v2987_v63, 8.507059e+37 }
0x1043   : > { %v6870_v60 = vpop.eup %6869 }
0x1044   : > { %v2979_v11 = vmul.f32 %v6870_v60, %v2974_v2  ;;  %v2977_v13 = vpop.xlane.xlu1 %2976  ;;  %vm2984_vm6 = vweird.f32 %v6870_v60 }
0x1045   : > { %6871 = vrcp.f32 %v2977_v13  ;;  %vm2985_vm8 = vmor %vm2983_vm7, %vm2984_vm6  ;;  %v3004_v21 = vand.u32 2147483648, %v2977_v13  ;;  %v3002_v22 = vand.u32 2147483647, %v2977_v13  ;;  %vm2998_vm12 = vweird.f32 %v2977_v13 }
0x1046   : > { %v2980_v46 = vsub.f32 1.0, %v2979_v11 }
0x1047   : > { %v3005_v26 = vor.u32 1.1754944e-38, %v3004_v21  ;;  %vm3003_vm14 = vcmp.eq.f32.partialorder %v3002_v22, 8.507059e+37 }
0x1048   : > { %v2981_v14 = vmul.f32 %v6870_v60, %v2980_v46 }
0x104a   : > { %v2982_v7 = vadd.f32 %v6870_v60, %v2981_v14  ;;  %v6804_v14 = vld [vmem:[%s7188_s27 + $0xb] ss:$0 sm:$0xff] }
0x104b   : > { %v6872_v15 = vpop.eup %6871 }
0x104c   : > { %v2986_v17 = vsel %vm2985_vm8, %v6870_v60, %v2982_v7  ;;  %v2994_v31 = vmul.f32 %v6872_v15, %v2977_v13  ;;  %vm2999_vm10 = vweird.f32 %v6872_v15 }
0x104d   : > { %v2991_v18 = vsel %vm2988_vm9, %v2990_v16, %v2986_v17  ;;  %vm3000_vm13 = vmor %vm2998_vm12, %vm2999_vm10 }
0x104e   : > { %v2995_v19 = vsub.f32 1.0, %v2994_v31  ;;  %v2992_v20 = vmul.f32 %v6866_v50, %v2991_v18  ;;  %v2792_v50 = vadd.f32 %v7537_v30, %v7551_v55 }
0x1050   : > { %v2996_v8 = vmul.f32 %v6872_v15, %v2995_v19  ;;  %5810 = vmatmul.msk.f32.vlgmr.msrb.gmra.mxu2 %vm1133_vm2, %v2992_v20 }
0x1051   : > { %5858 = vmatpush.xpose.msk.msrb.mxu2 %vm1133_vm2, %v3149_v39 }
0x1052   : > { %v2997_v25 = vadd.f32 %v6872_v15, %v2996_v8 }
0x1054   : > { %v3001_v27 = vsel %vm3000_vm13, %v6872_v15, %v2997_v25 }
0x1055   : > { %v3006_v28 = vsel %vm3003_vm14, %v3005_v26, %v3001_v27 }
0x1056   : > { %v3007_v29 = vmul.f32 %v6868_v53, %v3006_v28  ;;  %v2794_v53 = vadd.f32 %v7540_v33, %v7553_v59 }
0x1058   : > { %5811 = vmatmul.msk.f32.vlgmr.msrb.gmra.mxu0 %vm1133_vm2, %v3007_v29  ;;  %5827 = vmatmul.msk.bf16.vlgmr.msra.gmra.mxu2 %vm1043_vm1, %v7460_v58 }
0x1060   : > { %5855 = vmatmul.msk.bf16.vlgmr.msra.gmra.mxu0 %vm1043_vm1, %v7436_v23 }
0x10d3   : > { %v3028_v40 = vpop.f32.mrf.mxu2 }
0x10d5   : > { %v3051_v41 = vpop.f32.mrf.mxu0 }
0x10d6   : > { %v3054_v42 = vpack.c.bf16 %v3051_v41, %v3028_v40 }
0x10d8   : > { %5813 = vmatmul.msk.bf16.vlgmr.msra.gmra.mxu1 %vm1133_vm2, %v3054_v42  ;;  %v5862_v42 = vld [vmem:[%s8025_s0 + $0xc] sm:$0xf] }
0x10db   : > { %v3110_v58 = vpop.f32.mrf.mxu2 }
0x10dc   : > { %v3111_v48 = vadd.f32 %v6803_v43, %v3110_v58  ;;  %v3344_v58 = vsel %vm1550_vm11, %v5862_v42, 0 }
0x10dd   : > { %v3182_v6 = vpop.f32.mrf.mxu0  ;;  %3353 = vmatpush.bf16.msra.mxu1 %v3344_v58  ;;  %v6593_v58 = vld [vmem:[%s8027_s9 + $0x9c] sm:$0xf] }
0x10de   : > { %v3183_v63 = vadd.f32 %v6804_v14, %v3182_v6 }
0x10e0   : > { %3309 = vmatpush.msra.mxu3 %v3183_v63 }
0x10e3   : > { %v3112_v45 = vpop.f32.mrf.mxu2 }
0x10e4   : > { %v3113_v47 = vadd.f32 %v6803_v43, %v3112_v45 }
0x10e5   : > { %v3184_v23 = vpop.f32.mrf.mxu0 }
0x10e6   : > { %5859 = vmatmul.msk.f32.vlgmr.msrb.gmra.mxu2 %vm1133_vm2, %v3113_v47  ;;  %v3185_v7 = vadd.f32 %v6804_v14, %v3184_v23  ;;  %v6591_v14 = vld [vmem:[%s8027_s9 + $0x8c] sm:$0xf] }
0x10e7   : > { %v5940_v23 = vld [vmem:[%s8027_s9 + $0xc8] sm:$0xf0] }
0x10e8   : > { %5857 = vmatmul.msk.f32.vlgmr.msrb.gmra.mxu1 %vm1133_vm2, %v3111_v48  ;;  %3332 = vmatpush.msrb.mxu0 %v3185_v7  ;;  %v6805_v48 = vld [vmem:[%s8026_s1] ss:$0 sm:$0xff]  ;;  %v5943_v7 = vor.u32 %v6591_v14, %v5940_v23 }
0x10e9   : > { %v6807_v14 = vld [vmem:[%s8031_s23] ss:$0 sm:$0xff] }
0x10ea   : > { %3963 = vmatpush.bf16.msrb.mxu1 %v5943_v7 }
0x1155   : > { %v3072_v51 = vpop.f32.mrf.mxu1 }
0x1156   : > { %v7578_v52 = vadd.f32 %v3072_v51, %v2792_v50 }
0x115d   : > { %v3074_v54 = vpop.f32.mrf.mxu1 }
0x115e   : > { %v7582_v61 = vadd.f32 %v3074_v54, %v2794_v53 }
0x1165   : > { %v3210_v62 = vpop.f32.mrf.mxu1 }
0x1166   : > { %v3239_v0 = vmul.f32 0.35355338, %v3210_v62 }
0x1168   : > { %v3241_v1 = vadd.f32 %v3239_v0, %v7477_v12 }
0x1169   : > { %v3236_v4 = vpop.f32.mrf.mxu2 }
0x116a   : > { %v3240_v5 = vmul.f32 0.35355338, %v3236_v4  ;;  %v3243_v9 = vsel %vm1133_vm2, %v3241_v1, -inf }
0x116b   : > { %3244 = vmax.xlane.f32.xlu2 %v3243_v9 }
0x116c   : > { %v3242_v30 = vadd.f32 %v3240_v5, %v7481_v24 }
0x116e   : > { %v3246_v55 = vsel %vm1133_vm2, %v3242_v30, -inf }
0x116f   : > { %3247 = vmax.xlane.f32.xlu0 %v3246_v55 }
0x11de   : > { %v3245_v33 = vpop.xlane.xlu2 %3244 }
0x11df   : > { %v3249_v59 = vsub.f32 %v3241_v1, %v3245_v33 }
0x11e1   : > { %v3251_v44 = vmul.f32 1.442695, %v3249_v59 }
0x11e2   : > { %v3248_v12 = vpop.xlane.xlu0 %3247 }
0x11e3   : > { %6873 = vpow2.f32 %v3251_v44  ;;  %v3250_v2 = vsub.f32 %v3242_v30, %v3248_v12  ;;  %v5930_v44 = vld [vmem:[%s8027_s9 + $0x80] sm:$0xf] }
0x11e4   : > { %v6598_v12 = vld [vmem:[%s8027_s9 + $0xbc] sm:$0xf0] }
0x11e5   : > { %v3253_v60 = vmul.f32 1.442695, %v3250_v2  ;;  %v6590_v2 = vld [vmem:[%s8027_s9 + $0x84] sm:$0xf] }
0x11e7   : > { %6875 = vpow2.f32 %v3253_v60  ;;  %v5931_v60 = vor.u32 %v6598_v12, %v5930_v44 }
0x11e9   : > { %v6874_v11 = vpop.eup %6873  ;;  %3921 = vmatpush.bf16.msra.mxu2 %v5931_v60 }
0x11ea   : > { %v3255_v24 = vsel %vm1133_vm2, %v6874_v11, 0.0 }
0x11eb   : > { %3256 = vadd.xlane.f32.xlu1 %v3255_v24  ;;  %v5938_v24 = vld [vmem:[%s8027_s9 + $0x88] sm:$0xf] }
0x11ed   : > { %v6876_v13 = vpop.eup %6875 }
0x11ee   : > { %v3258_v46 = vsel %vm1133_vm2, %v6876_v13, 0.0 }
0x11ef   : > { %3259 = vadd.xlane.f32.xlu2 %v3258_v46 }
0x125e   : > { %v3257_v15 = vpop.xlane.xlu1 %3256 }
0x125f   : > { %6877 = vrcp.f32 %v3257_v15  ;;  %v3270_v20 = vand.u32 2147483647, %v3257_v15  ;;  %v3272_v21 = vand.u32 2147483648, %v3257_v15  ;;  %vm3266_vm0 = vweird.f32 %v3257_v15 }
0x1261   : > { %vm3271_vm4 = vcmp.eq.f32.partialorder %v3270_v20, 8.507059e+37  ;;  %v3273_v27 = vor.u32 1.1754944e-38, %v3272_v21  ;;  %v5874_v20 = vld [vmem:[%s8027_s9 + $0x8] sm:$0xf] }
0x1262   : > { %v3260_v16 = vpop.xlane.xlu2 %3259  ;;  %v6583_v21 = vld [vmem:[%s8027_s9 + $0x44] sm:$0xf0] }
0x1263   : > { %6879 = vrcp.f32 %v3260_v16  ;;  %v3287_v28 = vand.u32 2147483648, %v3260_v16  ;;  %v3285_v34 = vand.u32 2147483647, %v3260_v16  ;;  %vm3281_vm6 = vweird.f32 %v3260_v16 }
0x1265   : > { %v6878_v17 = vpop.eup %6877  ;;  %v3288_v38 = vor.u32 1.1754944e-38, %v3287_v28  ;;  %vm3286_vm8 = vcmp.eq.f32.partialorder %v3285_v34, 8.507059e+37  ;;  %v6600_v34 = vld [vmem:[%s8027_s9 + $0xcc] sm:$0xf0] }
0x1266   : > { %v3262_v31 = vmul.f32 %v6878_v17, %v3257_v15  ;;  %vm3267_vm15 = vweird.f32 %v6878_v17 }
0x1267   : > { %vm3268_vm3 = vmor %vm3266_vm0, %vm3267_vm15 }
0x1268   : > { %v3263_v18 = vsub.f32 1.0, %v3262_v31  ;;  %v6574_v31 = vld [vmem:[%s8027_s9 + $0x4] sm:$0xf] }
0x1269   : > { %v6880_v19 = vpop.eup %6879 }
0x126a   : > { %v3264_v8 = vmul.f32 %v6878_v17, %v3263_v18  ;;  %v3277_v22 = vmul.f32 %v6880_v19, %v3260_v16  ;;  %vm3282_vm5 = vweird.f32 %v6880_v19  ;;  %v5866_v16 = vld [vmem:[%s8027_s9] sm:$0xf] }
0x126b   : > { %vm3283_vm7 = vmor %vm3281_vm6, %vm3282_vm5 }
0x126c   : > { %v3265_v25 = vadd.f32 %v6878_v17, %v3264_v8  ;;  %v3278_v26 = vsub.f32 1.0, %v3277_v22 }
0x126e   : > { %v3269_v29 = vsel %vm3268_vm3, %v6878_v17, %v3265_v25  ;;  %v3279_v32 = vmul.f32 %v6880_v19, %v3278_v26  ;;  %v6582_v17 = vld [vmem:[%s8027_s9 + $0x3c] sm:$0xf0]  ;;  %v5875_v25 = vor.u32 %v6583_v21, %v5874_v20  ;;  %v6575_v26 = vld [vmem:[%s8027_s9 + $0xc] sm:$0xf]  ;;  %v6603_v20 = vld [vmem:[%s8027_s9 + $0xe4] sm:$0xf0] }
0x126f   : > { %v3274_v35 = vsel %vm3271_vm4, %v3273_v27, %v3269_v29  ;;  %v5867_v18 = vor.u32 %v6582_v17, %v5866_v16  ;;  %v5876_v27 = vld [vmem:[%s8027_s9 + $0x48] sm:$0xf0]  ;;  %v6594_v16 = vld [vmem:[%s8027_s9 + $0xa4] sm:$0xf] }
0x1270   : > { %v3280_v36 = vadd.f32 %v6880_v19, %v3279_v32  ;;  %v3275_v37 = vmul.f32 %v6874_v11, %v3274_v35  ;;  %v5932_v11 = vld [vmem:[%s8027_s9 + $0xc0] sm:$0xf0]  ;;  %v5879_v28 = vor.u32 %v6575_v26, %v5876_v27  ;;  %v5946_v32 = vld [vmem:[%s8027_s9 + $0x90] sm:$0xf]  ;;  %v6592_v35 = vld [vmem:[%s8027_s9 + $0x94] sm:$0xf] }
0x1271   : > { %v5935_v46 = vor.u32 %v6590_v2, %v5932_v11  ;;  %3922 = vmatpush.bf16.msra.mxu2 %v5867_v18  ;;  %v5964_v17 = vld [vmem:[%s8027_s9 + $0xe0] sm:$0xf0]  ;;  %v6595_v21 = vld [vmem:[%s8027_s9 + $0xac] sm:$0xf]  ;;  %v5898_v26 = vld [vmem:[%s8027_s9 + $0x20] sm:$0xf] }
0x1272   : > { %v3284_v39 = vsel %vm3283_vm7, %v6880_v19, %v3280_v36  ;;  %5860 = vmatmul.msk.f32.vlgmr.msra.gmra.mxu3 %vm1133_vm2, %v3275_v37  ;;  %v5868_v19 = vld [vmem:[%s8027_s9 + $0x40] sm:$0xf0]  ;;  %3964 = vmatpush.bf16.msrb.mxu1 %v5879_v28  ;;  %v5947_v37 = vor.u32 %v6600_v34, %v5946_v32  ;;  %v6586_v27 = vld [vmem:[%s8027_s9 + $0x5c] sm:$0xf0] }
0x1273   : > { %v3289_v40 = vsel %vm3286_vm8, %v3288_v38, %v3284_v39  ;;  %3935 = vmatpush.bf16.msrb.mxu3 %v5935_v46  ;;  %v5871_v22 = vor.u32 %v6574_v31, %v5868_v19  ;;  %v5948_v38 = vld [vmem:[%s8027_s9 + $0xd0] sm:$0xf0]  ;;  %v5954_v39 = vld [vmem:[%s8027_s9 + $0x98] sm:$0xf]  ;;  %v5970_v31 = vld [vmem:[%s8027_s9 + $0xa8] sm:$0xf] }
0x1274   : > { %v3290_v41 = vmul.f32 %v6876_v13, %v3289_v40  ;;  %v6599_v13 = vld [vmem:[%s8027_s9 + $0xc4] sm:$0xf0]  ;;  %v6601_v40 = vld [vmem:[%s8027_s9 + $0xd4] sm:$0xf0]  ;;  %v5971_v28 = vor.u32 %v6603_v20, %v5970_v31  ;;  %v6578_v32 = vld [vmem:[%s8027_s9 + $0x24] sm:$0xf] }
0x1275   : > { %v5939_v6 = vor.u32 %v6599_v13, %v5938_v24  ;;  %v5955_v42 = vor.u32 %v6601_v40, %v5954_v39  ;;  %3977 = vmatpush.bf16.msrb.mxu2 %v5947_v37  ;;  %v6806_v24 = vld [vmem:[%s8029_s19] ss:$0 sm:$0xff]  ;;  %v5900_v34 = vld [vmem:[%s8027_s9 + $0x60] sm:$0xf0]  ;;  %v6579_v37 = vld [vmem:[%s8027_s9 + $0x2c] sm:$0xf]  ;;  %v5899_v39 = vor.u32 %v6586_v27, %v5898_v26 }
0x1276   : > { %5861 = vmatmul.msk.f32.vlgmr.msrb.gmra.mxu0 %vm1133_vm2, %v3290_v41  ;;  %v5951_v41 = vor.u32 %v6592_v35, %v5948_v38  ;;  %v5906_v35 = vld [vmem:[%s8027_s9 + $0x28] sm:$0xf]  ;;  %v5908_v38 = vld [vmem:[%s8027_s9 + $0x68] sm:$0xf0]  ;;  %v5903_v40 = vor.u32 %v6578_v32, %v5900_v34  ;;  %v6625_v31 = vld [vmem:[%s7236_s16 + $0x98] sm:$0xff] }
0x1277   : > { %3949 = vmatpush.bf16.msra.mxu0 %v5939_v6  ;;  %3936 = vmatpush.bf16.msrb.mxu3 %v5871_v22  ;;  %v6633_v20 = vld [vmem:[%s7236_s16 + $0xd8] sm:$0xff]  ;;  %v6608_v26 = vld [vmem:[%s7236_s16 + $0x10] sm:$0xff]  ;;  %v6615_v32 = vld [vmem:[%s7236_s16 + $0x48] sm:$0xff] }
0x1278   : > { %v6616_v27 = vld [vmem:[%s7236_s16 + $0x50] sm:$0xff]  ;;  %v6622_v34 = vld [vmem:[%s7236_s16 + $0x80] sm:$0xff] }
0x127b   : > { %3950 = vmatpush.bf16.msra.mxu0 %v5875_v25  ;;  %3991 = vmatpush.bf16.msra.mxu3 %v5951_v41  ;;  %v5967_v25 = vor.u32 %v6594_v16, %v5964_v17  ;;  %v6610_v16 = vld [vmem:[%s7236_s16 + $0x20] sm:$0xff] }
0x127c   : > { %v6618_v17 = vld [vmem:[%s7236_s16 + $0x60] sm:$0xff] }
0x127f   : > { %4005 = vmatpush.bf16.msrb.mxu0 %v5955_v42  ;;  %v5911_v42 = vor.u32 %v6579_v37, %v5908_v38  ;;  %v6669_v37 = vld [vmem:[%s7236_s16 + $0x1f8] sm:$0xff]  ;;  %v6606_v38 = vld [vmem:[%s7236_s16] sm:$0xff] }
0x12f3   : > { %v3334_v43 = vpop.f32.mrf.mxu0 }
0x12f5   : > { %v3311_v45 = vpop.f32.mrf.mxu3 }
0x12f6   : > { %v3337_v47 = vpack.c.bf16 %v3334_v43, %v3311_v45  ;;  %v5956_v43 = vld [vmem:[%s8027_s9 + $0xd8] sm:$0xf0]  ;;  %v5882_v45 = vld [vmem:[%s8027_s9 + $0x10] sm:$0xf] }
0x12f8   : > { %5863 = vmatmul.msk.bf16.vlgmr.msra.gmra.mxu1 %vm1133_vm2, %v3337_v47 }
0x1375   : > { %v3355_v49 = vpop.f32.mrf.mxu1 }
0x1376   : > { %v3360_v50 = vadd.f32 %v3355_v49, %v7578_v52  ;;  %v5959_v49 = vor.u32 %v6593_v58, %v5956_v43  ;;  %v5978_v58 = vld [vmem:[%s8027_s9 + $0xb0] sm:$0xf] }
0x1377   : > { %v6604_v43 = vld [vmem:[%s8027_s9 + $0xec] sm:$0xf0] }
0x1378   : > { %v3366_v51 = vadd.f32 %v6805_v48, %v3360_v50  ;;  %v6584_v50 = vld [vmem:[%s8027_s9 + $0x4c] sm:$0xf0]  ;;  %4019 = vmatpush.bf16.msra.mxu1 %v5959_v49  ;;  %v6605_v49 = vld [vmem:[%s8027_s9 + $0xf4] sm:$0xf0] }
0x137a   : > { %v3368_v53 = vadd.f32 %v3366_v51, %v7454_v56  ;;  %v6576_v51 = vld [vmem:[%s8027_s9 + $0x14] sm:$0xf] }
0x137c   : > { %v3372_v54 = vsel %vm1043_vm1, %v3368_v53, 0.0 }
0x137d   : > { %3373 = vadd.xlane.f32.xlu0 %v3372_v54  ;;  %v3357_v62 = vpop.f32.mrf.mxu1  ;;  %v5883_v54 = vor.u32 %v6584_v50, %v5882_v45  ;;  %v6596_v45 = vld [vmem:[%s8027_s9 + $0xb4] sm:$0xf]  ;;  %v6597_v50 = vld [vmem:[%s8027_s9 + $0xbc] sm:$0xf] }
0x137e   : > { %v3361_v0 = vadd.f32 %v3357_v62, %v7582_v61  ;;  %v5884_v62 = vld [vmem:[%s8027_s9 + $0x50] sm:$0xf0] }
0x137f   : > { %3978 = vmatpush.bf16.msrb.mxu2 %v5883_v54 }
0x1380   : > { %v3367_v1 = vadd.f32 %v6805_v48, %v3361_v0  ;;  %v5890_v0 = vld [vmem:[%s8027_s9 + $0x18] sm:$0xf] }
0x1382   : > { %v3369_v4 = vadd.f32 %v3367_v1, %v7456_v57  ;;  %v6585_v1 = vld [vmem:[%s8027_s9 + $0x54] sm:$0xf0] }
0x1384   : > { %v3375_v5 = vsel %vm1043_vm1, %v3369_v4, 0.0 }
0x1385   : > { %3376 = vadd.xlane.f32.xlu1 %v3375_v5  ;;  %v5891_v5 = vor.u32 %v6585_v1, %v5890_v0  ;;  %v6588_v0 = vld [vmem:[%s8027_s9 + $0x6c] sm:$0xf0] }
0x1387   : > { %4006 = vmatpush.bf16.msrb.mxu0 %v5891_v5  ;;  %v6580_v5 = vld [vmem:[%s8027_s9 + $0x34] sm:$0xf] }
0x13f0   : > { %v3374_v9 = vpop.xlane.xlu0 %3373 }
0x13f1   : > { %v3378_v52 = vmul.f32 %v3374_v9, %v7422_v3  ;;  %v6577_v9 = vld [vmem:[%s8027_s9 + $0x1c] sm:$0xf] }
0x13f3   : > { %v7611_v56 = vsub.f32 %v3368_v53, %v3378_v52  ;;  %v5892_v52 = vld [vmem:[%s8027_s9 + $0x58] sm:$0xf0] }
0x13f5   : > { %v3382_v61 = vmul.f32 %v7611_v56, %v7611_v56 }
0x13f7   : > { %v3384_v30 = vsel %vm1043_vm1, %v3382_v61, 0.0 }
0x13f8   : > { %3385 = vadd.xlane.f32.xlu2 %v3384_v30  ;;  %v3377_v57 = vpop.xlane.xlu1 %3376  ;;  %v5895_v30 = vor.u32 %v6577_v9, %v5892_v52  ;;  %v5916_v9 = vld [vmem:[%s8027_s9 + $0x70] sm:$0xf0]  ;;  %v5922_v52 = vld [vmem:[%s8027_s9 + $0x38] sm:$0xf] }
0x13f9   : > { %v3379_v55 = vmul.f32 %v3377_v57, %v7422_v3 }
0x13fa   : > { %4020 = vmatpush.bf16.msra.mxu1 %v5895_v30  ;;  %v6581_v30 = vld [vmem:[%s8027_s9 + $0x3c] sm:$0xf] }
0x13fb   : > { %v7617_v10 = vsub.f32 %v3369_v4, %v3379_v55  ;;  %v5887_v4 = vor.u32 %v6576_v51, %v5884_v62  ;;  %v5988_v51 = vld [vmem:[%s8027_s9 + $0xf8] sm:$0xf0]  ;;  %v5914_v62 = vld [vmem:[%s8027_s9 + $0x30] sm:$0xf] }
0x13fd   : > { %v3383_v33 = vmul.f32 %v7617_v10, %v7617_v10  ;;  %3992 = vmatpush.bf16.msra.mxu3 %v5887_v4  ;;  %v5991_v4 = vor.u32 %v6597_v50, %v5988_v51  ;;  %v6666_v50 = vld [vmem:[%s7236_s16 + $0x1e0] sm:$0xff]  ;;  %v6643_v51 = vld [vmem:[%s7236_s16 + $0x128] sm:$0xff] }
0x13ff   : > { %v3387_v59 = vsel %vm1043_vm1, %v3383_v33, 0.0 }
0x1400   : > { %3388 = vadd.xlane.f32.xlu0 %v3387_v59 }
0x146b   : > { %v3386_v63 = vpop.xlane.xlu2 %3385 }
0x146c   : > { %v3390_v15 = vmul.f32 %v3386_v63, %v7422_v3 }
0x146e   : > { %v3392_v8 = vadd.f32 1e-05, %v3390_v15  ;;  %v5962_v15 = vld [vmem:[%s8027_s9 + $0xa0] sm:$0xf] }
0x1470   : > { %6881 = vrsqrt.f32 %v3392_v8  ;;  %vm3400_vm11 = vweird.f32 %v3392_v8 }
0x1473   : > { %v3389_v29 = vpop.xlane.xlu0 %3388 }
0x1474   : > { %v3391_v36 = vmul.f32 %v3389_v29, %v7422_v3 }
0x1476   : > { %v6882_v47 = vpop.eup %6881  ;;  %v3393_v48 = vadd.f32 1e-05, %v3391_v36  ;;  %v6587_v36 = vld [vmem:[%s8027_s9 + $0x64] sm:$0xf0] }
0x1477   : > { %v3395_v53 = vmul.f32 %v6882_v47, %v3392_v8  ;;  %vm3401_vm2 = vweird.f32 %v6882_v47  ;;  %v5907_v41 = vor.u32 %v6587_v36, %v5906_v35  ;;  %v6630_v35 = vld [vmem:[%s7236_s16 + $0xc0] sm:$0xff]  ;;  %v6661_v36 = vld [vmem:[%s7236_s16 + $0x1b8] sm:$0xff] }
0x1478   : > { %6883 = vrsqrt.f32 %v3393_v48  ;;  %vm3402_vm9 = vmor %vm3400_vm11, %vm3401_vm2  ;;  %vm3410_vm12 = vweird.f32 %v3393_v48 }
0x1479   : > { %v3396_v61 = vmul.f32 %v6882_v47, %v3395_v53  ;;  %v5979_v53 = vor.u32 %v6604_v43, %v5978_v58  ;;  %v6668_v58 = vld [vmem:[%s7236_s16 + $0x1f0] sm:$0xff] }
0x147a   : > { %v6644_v43 = vld [vmem:[%s7236_s16 + $0x130] sm:$0xff] }
0x147b   : > { %v3397_v57 = vmul.f32 0.5, %v3396_v61  ;;  %v6589_v61 = vld [vmem:[%s8027_s9 + $0x74] sm:$0xf0] }
0x147d   : > { %v3398_v55 = vsub.f32 1.5, %v3397_v57  ;;  %v5924_v57 = vld [vmem:[%s8027_s9 + $0x78] sm:$0xf0] }
0x147e   : > { %v6884_v33 = vpop.eup %6883 }
0x147f   : > { %v3399_v59 = vmul.f32 %v6882_v47, %v3398_v55  ;;  %v3405_v44 = vmul.f32 %v6884_v33, %v3393_v48  ;;  %vm3411_vm10 = vweird.f32 %v6884_v33  ;;  %v5986_v48 = vld [vmem:[%s8027_s9 + $0xb8] sm:$0xf]  ;;  %v5915_v55 = vor.u32 %v6588_v0, %v5914_v62  ;;  %v6642_v0 = vld [vmem:[%s7236_s16 + $0x120] sm:$0xff] }
0x1480   : > { %vm3412_vm13 = vmor %vm3410_vm12, %vm3411_vm10  ;;  %v5987_v1 = vor.u32 %v6605_v49, %v5986_v48  ;;  %v6667_v48 = vld [vmem:[%s7236_s16 + $0x1e8] sm:$0xff]  ;;  %v6658_v49 = vld [vmem:[%s7236_s16 + $0x1a0] sm:$0xff] }
0x1481   : > { %v3406_v12 = vmul.f32 %v6884_v33, %v3405_v44  ;;  %v3403_v2 = vsel %vm3402_vm9, %v6882_v47, %v3399_v59  ;;  %v5980_v47 = vld [vmem:[%s8027_s9 + $0xf0] sm:$0xf0]  ;;  %v5923_v59 = vor.u32 %v6589_v61, %v5922_v52  ;;  %v5927_v44 = vor.u32 %v6581_v30, %v5924_v57  ;;  %v6665_v62 = vld [vmem:[%s7236_s16 + $0x1d8] sm:$0xff]  ;;  %v6655_v61 = vld [vmem:[%s7236_s16 + $0x188] sm:$0xff] }
0x1482   : > { %v3414_v13 = vmul.f32 %v3403_v2, %v7611_v56  ;;  %v6602_v56 = vld [vmem:[%s8027_s9 + $0xdc] sm:$0xf0]  ;;  %v5983_v54 = vor.u32 %v6596_v45, %v5980_v47  ;;  %v6637_v2 = vld [vmem:[%s7236_s16 + $0xf8] sm:$0xff]  ;;  %v6652_v45 = vld [vmem:[%s7236_s16 + $0x170] sm:$0xff] }
0x1483   : > { %v3407_v60 = vmul.f32 0.5, %v3406_v12  ;;  %v5963_v22 = vor.u32 %v6602_v56, %v5962_v15  ;;  %v6629_v12 = vld [vmem:[%s7236_s16 + $0xb8] sm:$0xff]  ;;  %v6626_v15 = vld [vmem:[%s7236_s16 + $0xa0] sm:$0xff]  ;;  %v6659_v47 = vld [vmem:[%s7236_s16 + $0x1a8] sm:$0xff] }
0x1484   : > { %v3419_v23 = vmul.f32 %v6806_v24, %v3414_v13  ;;  %v6636_v13 = vld [vmem:[%s7236_s16 + $0xf0] sm:$0xff]  ;;  %v6634_v56 = vld [vmem:[%s7236_s16 + $0xe0] sm:$0xff]  ;;  %v6649_v52 = vld [vmem:[%s7236_s16 + $0x158] sm:$0xff] }
0x1485   : > { %v3408_v11 = vsub.f32 1.5, %v3407_v60  ;;  %v6613_v60 = vld [vmem:[%s7236_s16 + $0x38] sm:$0xff]  ;;  %v6663_v30 = vld [vmem:[%s7236_s16 + $0x1c8] sm:$0xff]  ;;  %v6640_v57 = vld [vmem:[%s7236_s16 + $0x110] sm:$0xff] }
0x1486   : > { %v7673_v18 = vadd.f32 %v6807_v14, %v3419_v23  ;;  %v6635_v23 = vld [vmem:[%s7236_s16 + $0xe8] sm:$0xff] }
0x1487   : > { %v3409_v46 = vmul.f32 %v6884_v33, %v3408_v11  ;;  %v6621_v11 = vld [vmem:[%s7236_s16 + $0x78] sm:$0xff] }
0x1489   : > { %v3413_v6 = vsel %vm3412_vm13, %v6884_v33, %v3409_v46  ;;  %v5919_v33 = vor.u32 %v6580_v5, %v5916_v9  ;;  %v6612_v46 = vld [vmem:[%s7236_s16 + $0x30] sm:$0xff]  ;;  %v6641_v9 = vld [vmem:[%s7236_s16 + $0x118] sm:$0xff] }
0x148a   : > { %v3415_v63 = vmul.f32 %v3413_v6, %v7617_v10  ;;  %v5972_v10 = vld [vmem:[%s8027_s9 + $0xe8] sm:$0xf0]  ;;  %v6620_v6 = vld [vmem:[%s7236_s16 + $0x70] sm:$0xff] }
0x148b   : > { %v5975_v29 = vor.u32 %v6595_v21, %v5972_v10  ;;  %v6609_v21 = vld [vmem:[%s7236_s16 + $0x18] sm:$0xff]  ;;  %v6664_v5 = vld [vmem:[%s7236_s16 + $0x1d0] sm:$0xff] }
0x148c   : > { %v3420_v7 = vmul.f32 %v6806_v24, %v3415_v63  ;;  %v6628_v24 = vld [vmem:[%s7236_s16 + $0xb0] sm:$0xff]  ;;  %v6611_v63 = vld [vmem:[%s7236_s16 + $0x28] sm:$0xff]  ;;  %v6617_v10 = vld [vmem:[%s7236_s16 + $0x58] sm:$0xff] }
0x148e   : > { %v7675_v19 = vadd.f32 %v6807_v14, %v3420_v7  ;;  %v6627_v14 = vld [vmem:[%s7236_s16 + $0xa8] sm:$0xff] }
0x148f   : > { %v6619_v7 = vld [vmem:[%s7236_s16 + $0x68] sm:$0xff] }
0x1490   : > { %v7682_v8 = vpack.c.bf16 %v7675_v19, %v7673_v18 }
0x1492   : > { %5992 = vmatmul.msk.bf16.vlgmr.msra.gmra.mxu2 %vm1043_vm1, %v7682_v8  ;;  %5993 = vmatmul.msk.bf16.vlgmr.msrb.gmra.mxu3 %vm1043_vm1, %v7682_v8 }
0x1493   : > { %5994 = vmatmul.msk.bf16.vlgmr.msra.gmra.mxu0 %vm1043_vm1, %v7682_v8  ;;  %5995 = vmatmul.msk.bf16.vlgmr.msrb.gmra.mxu1 %vm1043_vm1, %v7682_v8 }
0x1494   : > { %4033 = vmatpush.bf16.msra.mxu2 %v5963_v22  ;;  %4047 = vmatpush.bf16.msrb.mxu3 %v5967_v25  ;;  %v6624_v22 = vld [vmem:[%s7236_s16 + $0x90] sm:$0xff] }
0x1495   : > { %4061 = vmatpush.bf16.msra.mxu0 %v5971_v28  ;;  %4075 = vmatpush.bf16.msrb.mxu1 %v5975_v29  ;;  %v6632_v25 = vld [vmem:[%s7236_s16 + $0xd0] sm:$0xff]  ;;  %v6623_v28 = vld [vmem:[%s7236_s16 + $0x88] sm:$0xff] }
0x1496   : > { %v6607_v29 = vld [vmem:[%s7236_s16 + $0x8] sm:$0xff] }
0x1498   : > { %4034 = vmatpush.bf16.msra.mxu2 %v5899_v39  ;;  %4048 = vmatpush.bf16.msrb.mxu3 %v5903_v40  ;;  %v6614_v39 = vld [vmem:[%s7236_s16 + $0x40] sm:$0xff]  ;;  %v6645_v40 = vld [vmem:[%s7236_s16 + $0x138] sm:$0xff] }
0x1499   : > { %4062 = vmatpush.bf16.msra.mxu0 %v5907_v41  ;;  %4076 = vmatpush.bf16.msrb.mxu1 %v5911_v42  ;;  %v6653_v41 = vld [vmem:[%s7236_s16 + $0x178] sm:$0xff]  ;;  %v6660_v42 = vld [vmem:[%s7236_s16 + $0x1b0] sm:$0xff] }
0x14a2   : > { %5996 = vmatmul.msk.bf16.vlgmr.msrb.gmra.mxu2 %vm1043_vm1, %v7682_v8  ;;  %5997 = vmatmul.msk.bf16.vlgmr.msra.gmra.mxu3 %vm1043_vm1, %v7682_v8 }
0x14a3   : > { %5998 = vmatmul.msk.bf16.vlgmr.msrb.gmra.mxu0 %vm1043_vm1, %v7682_v8  ;;  %5999 = vmatmul.msk.bf16.vlgmr.msra.gmra.mxu1 %vm1043_vm1, %v7682_v8 }
0x14a4   : > { %4089 = vmatpush.bf16.msrb.mxu2 %v5979_v53  ;;  %4103 = vmatpush.bf16.msra.mxu3 %v5983_v54  ;;  %v6651_v53 = vld [vmem:[%s7236_s16 + $0x168] sm:$0xff]  ;;  %v6657_v54 = vld [vmem:[%s7236_s16 + $0x198] sm:$0xff] }
0x14a5   : > { %4117 = vmatpush.bf16.msrb.mxu0 %v5987_v1  ;;  %4131 = vmatpush.bf16.msra.mxu1 %v5991_v4  ;;  %v6650_v1 = vld [vmem:[%s7236_s16 + $0x160] sm:$0xff]  ;;  %v6656_v4 = vld [vmem:[%s7236_s16 + $0x190] sm:$0xff] }
0x14a8   : > { %4090 = vmatpush.bf16.msrb.mxu2 %v5915_v55  ;;  %4104 = vmatpush.bf16.msra.mxu3 %v5919_v33  ;;  %v6648_v55 = vld [vmem:[%s7236_s16 + $0x150] sm:$0xff]  ;;  %v6654_v33 = vld [vmem:[%s7236_s16 + $0x180] sm:$0xff] }
0x14a9   : > { %4118 = vmatpush.bf16.msrb.mxu0 %v5923_v59  ;;  %4132 = vmatpush.bf16.msra.mxu1 %v5927_v44  ;;  %v6662_v59 = vld [vmem:[%s7236_s16 + $0x1c0] sm:$0xff]  ;;  %v6639_v44 = vld [vmem:[%s7236_s16 + $0x108] sm:$0xff] }
0x14b2   : > { %6000 = vmatmul.msk.bf16.vlgmr.msra.gmra.mxu2 %vm1043_vm1, %v7682_v8  ;;  %6001 = vmatmul.msk.bf16.vlgmr.msrb.gmra.mxu3 %vm1043_vm1, %v7682_v8 }
0x14b3   : > { %6002 = vmatmul.msk.bf16.vlgmr.msra.gmra.mxu0 %vm1043_vm1, %v7682_v8  ;;  %6003 = vmatmul.msk.bf16.vlgmr.msrb.gmra.mxu1 %vm1043_vm1, %v7682_v8 }
0x14b4   : > { %4986 = vmatpush.bf16.msra.mxu0 %v6629_v12  ;;  %5000 = vmatpush.bf16.msrb.mxu1 %v6637_v2  ;;  %v6647_v12 = vld [vmem:[%s7236_s16 + $0x148] sm:$0xff]  ;;  %v6638_v2 = vld [vmem:[%s7236_s16 + $0x100] sm:$0xff] }
0x14b5   : > { %4958 = vmatpush.bf16.msra.mxu2 %v6613_v60  ;;  %4972 = vmatpush.bf16.msrb.mxu3 %v6621_v11  ;;  %v6646_v60 = vld [vmem:[%s7236_s16 + $0x140] sm:$0xff] }
0x14b6   : > { %v7805_v11 = vld [vmem:[%s7226_s6] sm:$0xff] }
0x14b8   : > { %4987 = vmatpush.bf16.msra.mxu0 %v6628_v24  ;;  %5001 = vmatpush.bf16.msrb.mxu1 %v6636_v13 }
0x14b9   : > { %4959 = vmatpush.bf16.msra.mxu2 %v6612_v46  ;;  %4973 = vmatpush.bf16.msrb.mxu3 %v6620_v6  ;;  %v3722_v46 = vperm.slane %v7805_v11, 2  ;;  %v3723_v6 = vperm.slane %v7805_v11, 3 }
0x14bc   : > { %4988 = vmatpush.bf16.msra.mxu0 %v6627_v14  ;;  %5002 = vmatpush.bf16.msrb.mxu1 %v6635_v23 }
0x14bd   : > { %4960 = vmatpush.bf16.msra.mxu2 %v6611_v63  ;;  %4974 = vmatpush.bf16.msrb.mxu3 %v6619_v7 }
0x14c0   : > { %4989 = vmatpush.bf16.msra.mxu0 %v6626_v15  ;;  %5003 = vmatpush.bf16.msrb.mxu1 %v6634_v56  ;;  %v3720_v15 = vperm.slane %v7805_v11, 0  ;;  %v3721_v56 = vperm.slane %v7805_v11, 1 }
0x14c1   : > { %4961 = vmatpush.bf16.msra.mxu2 %v6610_v16  ;;  %4975 = vmatpush.bf16.msrb.mxu3 %v6618_v17 }
0x14c2   : > { %6004 = vmatmul.msk.bf16.vlgmr.msrb.gmra.mxu2 %vm1043_vm1, %v7682_v8  ;;  %6005 = vmatmul.msk.bf16.vlgmr.msra.gmra.mxu3 %vm1043_vm1, %v7682_v8 }
0x14c3   : > { %6006 = vmatmul.msk.bf16.vlgmr.msrb.gmra.mxu0 %vm1043_vm1, %v7682_v8  ;;  %6007 = vmatmul.msk.bf16.vlgmr.msra.gmra.mxu1 %vm1043_vm1, %v7682_v8  ;;  %v6631_v8 = vld [vmem:[%s7236_s16 + $0xc8] sm:$0xff] }
0x14c4   : > { %4990 = vmatpush.bf16.msra.mxu0 %v6625_v31  ;;  %5004 = vmatpush.bf16.msrb.mxu1 %v6633_v20 }
0x14c5   : > { %4962 = vmatpush.bf16.msra.mxu2 %v6609_v21  ;;  %4976 = vmatpush.bf16.msrb.mxu3 %v6617_v10 }
0x14c8   : > { %4991 = vmatpush.bf16.msra.mxu0 %v6624_v22  ;;  %5005 = vmatpush.bf16.msrb.mxu1 %v6632_v25 }
0x14c9   : > { %4963 = vmatpush.bf16.msra.mxu2 %v6608_v26  ;;  %4977 = vmatpush.bf16.msrb.mxu3 %v6616_v27 }
0x14cc   : > { %4992 = vmatpush.bf16.msra.mxu0 %v6623_v28  ;;  %5006 = vmatpush.bf16.msrb.mxu1 %v6631_v8  ;;  %v6693_v28 = vld [vmem:[%s7236_s16 + $0x2b8] sm:$0xff] }
0x14cd   : > { %4964 = vmatpush.bf16.msra.mxu2 %v6607_v29  ;;  %4978 = vmatpush.bf16.msrb.mxu3 %v6615_v32  ;;  %v6701_v8 = vld [vmem:[%s7236_s16 + $0x2f8] sm:$0xff] }
0x14d0   : > { %4993 = vmatpush.bf16.msra.mxu0 %v6622_v34  ;;  %5007 = vmatpush.bf16.msrb.mxu1 %v6630_v35 }
0x14d1   : > { %4965 = vmatpush.bf16.msra.mxu2 %v6606_v38  ;;  %4979 = vmatpush.bf16.msrb.mxu3 %v6614_v39 }
0x14d4   : > { %5042 = vmatpush.bf16.msrb.mxu0 %v6661_v36  ;;  %5056 = vmatpush.bf16.msra.mxu1 %v6669_v37 }
0x14d5   : > { %5014 = vmatpush.bf16.msrb.mxu2 %v6645_v40  ;;  %5028 = vmatpush.bf16.msra.mxu3 %v6653_v41 }
0x14d8   : > { %5043 = vmatpush.bf16.msrb.mxu0 %v6660_v42  ;;  %5057 = vmatpush.bf16.msra.mxu1 %v6668_v58 }
0x14d9   : > { %5015 = vmatpush.bf16.msrb.mxu2 %v6644_v43  ;;  %5029 = vmatpush.bf16.msra.mxu3 %v6652_v45  ;;  %v6692_v43 = vld [vmem:[%s7236_s16 + $0x2b0] sm:$0xff] }
0x14da   : > { %v6700_v45 = vld [vmem:[%s7236_s16 + $0x2f0] sm:$0xff] }
0x14dc   : > { %5044 = vmatpush.bf16.msrb.mxu0 %v6659_v47  ;;  %5058 = vmatpush.bf16.msra.mxu1 %v6667_v48 }
0x14dd   : > { %5016 = vmatpush.bf16.msrb.mxu2 %v6643_v51  ;;  %5030 = vmatpush.bf16.msra.mxu3 %v6651_v53  ;;  %v3726_v51 = vperm.slane %v7805_v11, 6  ;;  %v3727_v53 = vperm.slane %v7805_v11, 7 }
0x14e0   : > { %5045 = vmatpush.bf16.msrb.mxu0 %v6658_v49  ;;  %5059 = vmatpush.bf16.msra.mxu1 %v6666_v50  ;;  %v6677_v49 = vld [vmem:[%s7236_s16 + $0x238] sm:$0xff] }
0x14e1   : > { %5017 = vmatpush.bf16.msrb.mxu2 %v6642_v0  ;;  %5031 = vmatpush.bf16.msra.mxu3 %v6650_v1  ;;  %v6685_v50 = vld [vmem:[%s7236_s16 + $0x278] sm:$0xff] }
0x14e4   : > { %5046 = vmatpush.bf16.msrb.mxu0 %v6657_v54  ;;  %5060 = vmatpush.bf16.msra.mxu1 %v6665_v62  ;;  %v6691_v54 = vld [vmem:[%s7236_s16 + $0x2a8] sm:$0xff] }
0x14e5   : > { %5018 = vmatpush.bf16.msrb.mxu2 %v6641_v9  ;;  %5032 = vmatpush.bf16.msra.mxu3 %v6649_v52  ;;  %v6699_v62 = vld [vmem:[%s7236_s16 + $0x2e8] sm:$0xff] }
0x14e8   : > { %5047 = vmatpush.bf16.msrb.mxu0 %v6656_v4  ;;  %5061 = vmatpush.bf16.msra.mxu1 %v6664_v5  ;;  %v6676_v4 = vld [vmem:[%s7236_s16 + $0x230] sm:$0xff] }
0x14e9   : > { %5019 = vmatpush.bf16.msrb.mxu2 %v6640_v57  ;;  %5033 = vmatpush.bf16.msra.mxu3 %v6648_v55  ;;  %v6684_v5 = vld [vmem:[%s7236_s16 + $0x270] sm:$0xff] }
0x14ec   : > { %5048 = vmatpush.bf16.msrb.mxu0 %v6655_v61  ;;  %5062 = vmatpush.bf16.msra.mxu1 %v6663_v30  ;;  %v3724_v61 = vperm.slane %v7805_v11, 4  ;;  %v3725_v30 = vperm.slane %v7805_v11, 5 }
0x14ed   : > { %5020 = vmatpush.bf16.msrb.mxu2 %v6639_v44  ;;  %5034 = vmatpush.bf16.msra.mxu3 %v6647_v12 }
0x14f0   : > { %5049 = vmatpush.bf16.msrb.mxu0 %v6654_v33  ;;  %5063 = vmatpush.bf16.msra.mxu1 %v6662_v59  ;;  %v6690_v33 = vld [vmem:[%s7236_s16 + $0x2a0] sm:$0xff] }
0x14f1   : > { %5021 = vmatpush.bf16.msrb.mxu2 %v6638_v2  ;;  %5035 = vmatpush.bf16.msra.mxu3 %v6646_v60  ;;  %v6698_v59 = vld [vmem:[%s7236_s16 + $0x2e0] sm:$0xff]  ;;  %v6675_v2 = vld [vmem:[%s7236_s16 + $0x228] sm:$0xff] }
0x14f2   : > { %v6683_v60 = vld [vmem:[%s7236_s16 + $0x268] sm:$0xff] }
0x1510   : > { %v3952_v24 = vpop.f32.mrf.mxu0  ;;  %v3966_v13 = vpop.f32.mrf.mxu1 }
0x1511   : > { %v3953_v63 = vadd.f32 %v3952_v24, %v3722_v46  ;;  %v3967_v7 = vadd.f32 %v3966_v13, %v3723_v6 }
0x1513   : > { %v4141_v21 = vmax.f32 %v3953_v63, 0.0  ;;  %v4142_v10 = vmax.f32 %v3967_v7, 0.0  ;;  %v6697_v63 = vld [vmem:[%s7236_s16 + $0x2d8] sm:$0xff] }
0x1515   : > { %v3924_v14 = vpop.f32.mrf.mxu2  ;;  %v3938_v23 = vpop.f32.mrf.mxu3 }
0x1516   : > { %v3925_v26 = vadd.f32 %v3924_v14, %v3720_v15  ;;  %v3939_v27 = vadd.f32 %v3938_v23, %v3721_v56  ;;  %v6689_v23 = vld [vmem:[%s7236_s16 + $0x298] sm:$0xff] }
0x1518   : > { %v3954_v16 = vpop.f32.mrf.mxu0  ;;  %v3968_v17 = vpop.f32.mrf.mxu1  ;;  %v4139_v38 = vmax.f32 %v3925_v26, 0.0  ;;  %v4140_v39 = vmax.f32 %v3939_v27, 0.0 }
0x1519   : > { %v3955_v31 = vadd.f32 %v3954_v16, %v3722_v46  ;;  %v3969_v20 = vadd.f32 %v3968_v17, %v3723_v6 }
0x151b   : > { %v4157_v22 = vmax.f32 %v3955_v31, 0.0  ;;  %v4158_v25 = vmax.f32 %v3969_v20, 0.0  ;;  %v6674_v20 = vld [vmem:[%s7236_s16 + $0x220] sm:$0xff] }
0x151d   : > { %v4173_v29 = vpack.c.bf16 %v4157_v22, %v4141_v21  ;;  %v4174_v32 = vpack.c.bf16 %v4158_v25, %v4142_v10  ;;  %v3926_v34 = vpop.f32.mrf.mxu2  ;;  %v3940_v35 = vpop.f32.mrf.mxu3  ;;  %v6682_v21 = vld [vmem:[%s7236_s16 + $0x260] sm:$0xff]  ;;  %v7834_v10 = vld [vmem:[%s7226_s6 + $0x8] sm:$0xff] }
0x151e   : > { %v3927_v36 = vadd.f32 %v3926_v34, %v3720_v15  ;;  %v3941_v37 = vadd.f32 %v3940_v35, %v3721_v56 }
0x151f   : > { %4994 = vmatmul.bf16.vlgmr.msra.gmra.mxu0 %v4173_v29  ;;  %5008 = vmatmul.bf16.vlgmr.msrb.gmra.mxu1 %v4174_v32  ;;  %v6688_v29 = vld [vmem:[%s7236_s16 + $0x290] sm:$0xff] }
0x1520   : > { %v4155_v40 = vmax.f32 %v3927_v36, 0.0  ;;  %v4156_v41 = vmax.f32 %v3941_v37, 0.0  ;;  %5098 = vmatpush.bf16.msra.mxu0 %v6693_v28  ;;  %5112 = vmatpush.bf16.msrb.mxu1 %v6701_v8  ;;  %v4008_v42 = vpop.f32.mrf.mxu0  ;;  %v4022_v58 = vpop.f32.mrf.mxu1  ;;  %v6696_v32 = vld [vmem:[%s7236_s16 + $0x2d0] sm:$0xff]  ;;  %v6673_v36 = vld [vmem:[%s7236_s16 + $0x218] sm:$0xff] }
0x1521   : > { %v4009_v9 = vadd.f32 %v4008_v42, %v3726_v51  ;;  %v4023_v52 = vadd.f32 %v4022_v58, %v3727_v53  ;;  %v6681_v37 = vld [vmem:[%s7236_s16 + $0x258] sm:$0xff] }
0x1522   : > { %v4171_v47 = vpack.c.bf16 %v4155_v40, %v4139_v38  ;;  %v4172_v48 = vpack.c.bf16 %v4156_v41, %v4140_v39  ;;  %v3730_v38 = vperm.slane %v7834_v10, 2  ;;  %v3731_v39 = vperm.slane %v7834_v10, 3  ;;  %v6687_v40 = vld [vmem:[%s7236_s16 + $0x288] sm:$0xff] }
0x1523   : > { %v4145_v24 = vmax.f32 %v4009_v9, 0.0  ;;  %v4146_v13 = vmax.f32 %v4023_v52, 0.0  ;;  %v6695_v41 = vld [vmem:[%s7236_s16 + $0x2c8] sm:$0xff] }
0x1524   : > { %5099 = vmatpush.bf16.msra.mxu0 %v6692_v43  ;;  %5113 = vmatpush.bf16.msrb.mxu1 %v6700_v45  ;;  %v6672_v43 = vld [vmem:[%s7236_s16 + $0x210] sm:$0xff]  ;;  %v6671_v9 = vld [vmem:[%s7236_s16 + $0x208] sm:$0xff] }
0x1525   : > { %4966 = vmatmul.bf16.vlgmr.msra.gmra.mxu2 %v4171_v47  ;;  %4980 = vmatmul.bf16.vlgmr.msrb.gmra.mxu3 %v4172_v48  ;;  %v3980_v0 = vpop.f32.mrf.mxu2  ;;  %v3994_v1 = vpop.f32.mrf.mxu3  ;;  %v6680_v45 = vld [vmem:[%s7236_s16 + $0x250] sm:$0xff]  ;;  %v6679_v52 = vld [vmem:[%s7236_s16 + $0x248] sm:$0xff] }
0x1526   : > { %5070 = vmatpush.bf16.msra.mxu2 %v6677_v49  ;;  %5084 = vmatpush.bf16.msrb.mxu3 %v6685_v50  ;;  %v3981_v11 = vadd.f32 %v3980_v0, %v3724_v61  ;;  %v3995_v14 = vadd.f32 %v3994_v1, %v3725_v30  ;;  %v3728_v49 = vperm.slane %v7834_v10, 0  ;;  %v3729_v50 = vperm.slane %v7834_v10, 1 }
0x1528   : > { %5100 = vmatpush.bf16.msra.mxu0 %v6691_v54  ;;  %5114 = vmatpush.bf16.msrb.mxu1 %v6699_v62  ;;  %v4010_v57 = vpop.f32.mrf.mxu0  ;;  %v4024_v55 = vpop.f32.mrf.mxu1  ;;  %v4143_v22 = vmax.f32 %v3981_v11, 0.0  ;;  %v4144_v25 = vmax.f32 %v3995_v14, 0.0  ;;  %v6686_v54 = vld [vmem:[%s7236_s16 + $0x280] sm:$0xff] }
0x1529   : > { %v4011_v44 = vadd.f32 %v4010_v57, %v3726_v51  ;;  %v4025_v12 = vadd.f32 %v4024_v55, %v3727_v53  ;;  %v6694_v62 = vld [vmem:[%s7236_s16 + $0x2c0] sm:$0xff] }
0x152a   : > { %5071 = vmatpush.bf16.msra.mxu2 %v6676_v4  ;;  %5085 = vmatpush.bf16.msrb.mxu3 %v6684_v5  ;;  %v6725_v4 = vld [vmem:[%s7236_s16 + $0x3b8] sm:$0xff]  ;;  %v6670_v11 = vld [vmem:[%s7236_s16 + $0x200] sm:$0xff] }
0x152b   : > { %v4161_v46 = vmax.f32 %v4011_v44, 0.0  ;;  %v4162_v6 = vmax.f32 %v4025_v12, 0.0  ;;  %v6733_v5 = vld [vmem:[%s7236_s16 + $0x3f8] sm:$0xff]  ;;  %v6678_v14 = vld [vmem:[%s7236_s16 + $0x240] sm:$0xff] }
0x152c   : > { %5101 = vmatpush.bf16.msra.mxu0 %v6690_v33  ;;  %5115 = vmatpush.bf16.msrb.mxu1 %v6698_v59 }
0x152d   : > { %v4177_v7 = vpack.c.bf16 %v4161_v46, %v4145_v24  ;;  %v4178_v15 = vpack.c.bf16 %v4162_v6, %v4146_v13  ;;  %v3982_v56 = vpop.f32.mrf.mxu2  ;;  %v3996_v16 = vpop.f32.mrf.mxu3  ;;  %v6724_v24 = vld [vmem:[%s7236_s16 + $0x3b0] sm:$0xff] }
0x152e   : > { %5072 = vmatpush.bf16.msra.mxu2 %v6675_v2  ;;  %5086 = vmatpush.bf16.msrb.mxu3 %v6683_v60  ;;  %v3983_v17 = vadd.f32 %v3982_v56, %v3724_v61  ;;  %v3997_v31 = vadd.f32 %v3996_v16, %v3725_v30  ;;  %v6732_v13 = vld [vmem:[%s7236_s16 + $0x3f0] sm:$0xff] }
0x152f   : > { %5050 = vmatmul.bf16.vlgmr.msrb.gmra.mxu0 %v4177_v7  ;;  %5064 = vmatmul.bf16.vlgmr.msra.gmra.mxu1 %v4178_v15 }
0x1530   : > { %v4159_v26 = vmax.f32 %v3983_v17, 0.0  ;;  %v4160_v27 = vmax.f32 %v3997_v31, 0.0  ;;  %5102 = vmatpush.bf16.msra.mxu0 %v6689_v23  ;;  %5116 = vmatpush.bf16.msrb.mxu1 %v6697_v63  ;;  %v4064_v28 = vpop.f32.mrf.mxu0  ;;  %v4078_v8 = vpop.f32.mrf.mxu1  ;;  %v6709_v23 = vld [vmem:[%s7236_s16 + $0x338] sm:$0xff]  ;;  %v6723_v17 = vld [vmem:[%s7236_s16 + $0x3a8] sm:$0xff] }
0x1531   : > { %v4065_v47 = vadd.f32 %v4064_v28, %v3730_v38  ;;  %v4079_v48 = vadd.f32 %v4078_v8, %v3731_v39  ;;  %v6717_v63 = vld [vmem:[%s7236_s16 + $0x378] sm:$0xff]  ;;  %v6731_v31 = vld [vmem:[%s7236_s16 + $0x3e8] sm:$0xff]  ;;  %v6722_v28 = vld [vmem:[%s7236_s16 + $0x3a0] sm:$0xff] }
0x1532   : > { %v4175_v34 = vpack.c.bf16 %v4159_v26, %v4143_v22  ;;  %v4176_v35 = vpack.c.bf16 %v4160_v27, %v4144_v25  ;;  %5073 = vmatpush.bf16.msra.mxu2 %v6674_v20  ;;  %5087 = vmatpush.bf16.msrb.mxu3 %v6682_v21  ;;  %v6708_v22 = vld [vmem:[%s7236_s16 + $0x330] sm:$0xff]  ;;  %v6730_v8 = vld [vmem:[%s7236_s16 + $0x3e0] sm:$0xff] }
0x1533   : > { %v4149_v61 = vmax.f32 %v4065_v47, 0.0  ;;  %v4150_v30 = vmax.f32 %v4079_v48, 0.0  ;;  %v6716_v25 = vld [vmem:[%s7236_s16 + $0x370] sm:$0xff]  ;;  %v3734_v47 = vperm.slane %v7834_v10, 6  ;;  %v3735_v48 = vperm.slane %v7834_v10, 7 }
0x1534   : > { %5103 = vmatpush.bf16.msra.mxu0 %v6688_v29  ;;  %5117 = vmatpush.bf16.msrb.mxu1 %v6696_v32  ;;  %v6707_v29 = vld [vmem:[%s7236_s16 + $0x328] sm:$0xff] }
0x1535   : > { %5022 = vmatmul.bf16.vlgmr.msrb.gmra.mxu2 %v4175_v34  ;;  %5036 = vmatmul.bf16.vlgmr.msra.gmra.mxu3 %v4176_v35  ;;  %v4036_v42 = vpop.f32.mrf.mxu2  ;;  %v4050_v58 = vpop.f32.mrf.mxu3  ;;  %v6715_v32 = vld [vmem:[%s7236_s16 + $0x368] sm:$0xff]  ;;  %v6721_v34 = vld [vmem:[%s7236_s16 + $0x398] sm:$0xff] }
0x1536   : > { %5074 = vmatpush.bf16.msra.mxu2 %v6673_v36  ;;  %5088 = vmatpush.bf16.msrb.mxu3 %v6681_v37  ;;  %v4037_v33 = vadd.f32 %v4036_v42, %v3728_v49  ;;  %v4051_v59 = vadd.f32 %v4050_v58, %v3729_v50  ;;  %v6729_v35 = vld [vmem:[%s7236_s16 + $0x3d8] sm:$0xff] }
0x1538   : > { %5104 = vmatpush.bf16.msra.mxu0 %v6687_v40  ;;  %5118 = vmatpush.bf16.msrb.mxu1 %v6695_v41  ;;  %v4066_v51 = vpop.f32.mrf.mxu0  ;;  %v4080_v53 = vpop.f32.mrf.mxu1  ;;  %v4147_v7 = vmax.f32 %v4037_v33, 0.0  ;;  %v4148_v15 = vmax.f32 %v4051_v59, 0.0  ;;  %v6720_v40 = vld [vmem:[%s7236_s16 + $0x390] sm:$0xff]  ;;  %v6703_v33 = vld [vmem:[%s7236_s16 + $0x308] sm:$0xff] }
0x1539   : > { %v4067_v0 = vadd.f32 %v4066_v51, %v3730_v38  ;;  %v4081_v1 = vadd.f32 %v4080_v53, %v3731_v39  ;;  %v6706_v38 = vld [vmem:[%s7236_s16 + $0x320] sm:$0xff]  ;;  %v6728_v41 = vld [vmem:[%s7236_s16 + $0x3d0] sm:$0xff]  ;;  %v6711_v59 = vld [vmem:[%s7236_s16 + $0x348] sm:$0xff] }
0x153a   : > { %5075 = vmatpush.bf16.msra.mxu2 %v6672_v43  ;;  %5089 = vmatpush.bf16.msrb.mxu3 %v6680_v45  ;;  %v6714_v39 = vld [vmem:[%s7236_s16 + $0x360] sm:$0xff]  ;;  %v6705_v43 = vld [vmem:[%s7236_s16 + $0x318] sm:$0xff] }
0x153b   : > { %v4165_v57 = vmax.f32 %v4067_v0, 0.0  ;;  %v4166_v55 = vmax.f32 %v4081_v1, 0.0  ;;  %v6713_v45 = vld [vmem:[%s7236_s16 + $0x358] sm:$0xff] }
0x153c   : > { %5105 = vmatpush.bf16.msra.mxu0 %v6686_v54  ;;  %5119 = vmatpush.bf16.msrb.mxu1 %v6694_v62  ;;  %v6704_v54 = vld [vmem:[%s7236_s16 + $0x310] sm:$0xff] }
0x153d   : > { %v4181_v44 = vpack.c.bf16 %v4165_v57, %v4149_v61  ;;  %v4182_v12 = vpack.c.bf16 %v4166_v55, %v4150_v30  ;;  %v4038_v2 = vpop.f32.mrf.mxu2  ;;  %v4052_v60 = vpop.f32.mrf.mxu3  ;;  %v6712_v62 = vld [vmem:[%s7236_s16 + $0x350] sm:$0xff]  ;;  %v3732_v61 = vperm.slane %v7834_v10, 4  ;;  %v3733_v30 = vperm.slane %v7834_v10, 5  ;;  %v6702_v10 = vld [vmem:[%s7236_s16 + $0x300] sm:$0xff] }
0x153e   : > { %5076 = vmatpush.bf16.msra.mxu2 %v6671_v9  ;;  %5090 = vmatpush.bf16.msrb.mxu3 %v6679_v52  ;;  %v4039_v46 = vadd.f32 %v4038_v2, %v3728_v49  ;;  %v4053_v6 = vadd.f32 %v4052_v60, %v3729_v50  ;;  %v6719_v49 = vld [vmem:[%s7236_s16 + $0x388] sm:$0xff]  ;;  %v6718_v9 = vld [vmem:[%s7236_s16 + $0x380] sm:$0xff] }
0x153f   : > { %5106 = vmatmul.bf16.vlgmr.msra.gmra.mxu0 %v4181_v44  ;;  %5120 = vmatmul.bf16.vlgmr.msrb.gmra.mxu1 %v4182_v12  ;;  %v6727_v50 = vld [vmem:[%s7236_s16 + $0x3c8] sm:$0xff]  ;;  %v6726_v52 = vld [vmem:[%s7236_s16 + $0x3c0] sm:$0xff] }
0x1540   : > { %5154 = vmatpush.bf16.msrb.mxu0 %v6725_v4  ;;  %5168 = vmatpush.bf16.msra.mxu1 %v6733_v5  ;;  %v4163_v56 = vmax.f32 %v4039_v46, 0.0  ;;  %v4164_v16 = vmax.f32 %v4053_v6, 0.0  ;;  %v4120_v26 = vpop.f32.mrf.mxu0  ;;  %v4134_v27 = vpop.f32.mrf.mxu1 }
0x1541   : > { %v4121_v0 = vadd.f32 %v4120_v26, %v3734_v47  ;;  %v4135_v1 = vadd.f32 %v4134_v27, %v3735_v48  ;;  %v6808_v26 = vld [vmem:[%s994_s15] ss:$0 sm:$0xff] }
0x1542   : > { %v4179_v20 = vpack.c.bf16 %v4163_v56, %v4147_v7  ;;  %v4180_v21 = vpack.c.bf16 %v4164_v16, %v4148_v15  ;;  %5077 = vmatpush.bf16.msra.mxu2 %v6670_v11  ;;  %5091 = vmatpush.bf16.msrb.mxu3 %v6678_v14  ;;  %v6710_v11 = vld [vmem:[%s7236_s16 + $0x340] sm:$0xff] }
0x1543   : > { %v4153_v44 = vmax.f32 %v4121_v0, 0.0  ;;  %v4154_v12 = vmax.f32 %v4135_v1, 0.0 }
0x1544   : > { %5155 = vmatpush.bf16.msrb.mxu0 %v6724_v24  ;;  %5169 = vmatpush.bf16.msra.mxu1 %v6732_v13 }
0x1545   : > { %5078 = vmatmul.bf16.vlgmr.msra.gmra.mxu2 %v4179_v20  ;;  %5092 = vmatmul.bf16.vlgmr.msrb.gmra.mxu3 %v4180_v21  ;;  %v4092_v36 = vpop.f32.mrf.mxu2  ;;  %v4106_v37 = vpop.f32.mrf.mxu3 }
0x1546   : > { %5126 = vmatpush.bf16.msrb.mxu2 %v6709_v23  ;;  %5140 = vmatpush.bf16.msra.mxu3 %v6717_v63  ;;  %v4093_v24 = vadd.f32 %v4092_v36, %v3732_v61  ;;  %v4107_v13 = vadd.f32 %v4106_v37, %v3733_v30 }
0x1548   : > { %5156 = vmatpush.bf16.msrb.mxu0 %v6723_v17  ;;  %5170 = vmatpush.bf16.msra.mxu1 %v6731_v31  ;;  %v4122_v42 = vpop.f32.mrf.mxu0  ;;  %v4136_v58 = vpop.f32.mrf.mxu1  ;;  %v4151_v63 = vmax.f32 %v4093_v24, 0.0  ;;  %v4152_v7 = vmax.f32 %v4107_v13, 0.0 }
0x1549   : > { %v4123_v51 = vadd.f32 %v4122_v42, %v3734_v47  ;;  %v4137_v53 = vadd.f32 %v4136_v58, %v3735_v48 }
0x154a   : > { %5127 = vmatpush.bf16.msrb.mxu2 %v6708_v22  ;;  %5141 = vmatpush.bf16.msra.mxu3 %v6716_v25 }
0x154b   : > { %v4169_v57 = vmax.f32 %v4123_v51, 0.0  ;;  %v4170_v55 = vmax.f32 %v4137_v53, 0.0 }
0x154c   : > { %5157 = vmatpush.bf16.msrb.mxu0 %v6722_v28  ;;  %5171 = vmatpush.bf16.msra.mxu1 %v6730_v8 }
0x154d   : > { %v4094_v4 = vpop.f32.mrf.mxu2  ;;  %v4108_v5 = vpop.f32.mrf.mxu3  ;;  %v4185_v46 = vpack.c.bf16 %v4169_v57, %v4153_v44  ;;  %v4186_v6 = vpack.c.bf16 %v4170_v55, %v4154_v12 }
0x154e   : > { %5128 = vmatpush.bf16.msrb.mxu2 %v6707_v29  ;;  %5142 = vmatpush.bf16.msra.mxu3 %v6715_v32  ;;  %v4095_v2 = vadd.f32 %v4094_v4, %v3732_v61  ;;  %v4109_v60 = vadd.f32 %v4108_v5, %v3733_v30 }
0x1550   : > { %5158 = vmatpush.bf16.msrb.mxu0 %v6721_v34  ;;  %5172 = vmatpush.bf16.msra.mxu1 %v6729_v35  ;;  %v4167_v14 = vmax.f32 %v4095_v2, 0.0  ;;  %v4168_v23 = vmax.f32 %v4109_v60, 0.0 }
0x1552   : > { %5129 = vmatpush.bf16.msrb.mxu2 %v6706_v38  ;;  %5143 = vmatpush.bf16.msra.mxu3 %v6714_v39  ;;  %v4183_v15 = vpack.c.bf16 %v4167_v14, %v4151_v63  ;;  %v4184_v56 = vpack.c.bf16 %v4168_v23, %v4152_v7 }
0x1554   : > { %5159 = vmatpush.bf16.msrb.mxu0 %v6720_v40  ;;  %5173 = vmatpush.bf16.msra.mxu1 %v6728_v41 }
0x1556   : > { %5130 = vmatpush.bf16.msrb.mxu2 %v6705_v43  ;;  %5144 = vmatpush.bf16.msra.mxu3 %v6713_v45 }
0x1558   : > { %5160 = vmatpush.bf16.msrb.mxu0 %v6719_v49  ;;  %5174 = vmatpush.bf16.msra.mxu1 %v6727_v50 }
0x155a   : > { %5131 = vmatpush.bf16.msrb.mxu2 %v6704_v54  ;;  %5145 = vmatpush.bf16.msra.mxu3 %v6712_v62 }
0x155c   : > { %5161 = vmatpush.bf16.msrb.mxu0 %v6718_v9  ;;  %5175 = vmatpush.bf16.msra.mxu1 %v6726_v52 }
0x155e   : > { %5132 = vmatpush.bf16.msrb.mxu2 %v6703_v33  ;;  %5146 = vmatpush.bf16.msra.mxu3 %v6711_v59 }
0x155f   : > { %5162 = vmatmul.bf16.vlgmr.msrb.gmra.mxu0 %v4185_v46  ;;  %5176 = vmatmul.bf16.vlgmr.msra.gmra.mxu1 %v4186_v6 }
0x1562   : > { %5133 = vmatpush.bf16.msrb.mxu2 %v6702_v10  ;;  %5147 = vmatpush.bf16.msra.mxu3 %v6710_v11 }
0x1565   : > { %5134 = vmatmul.bf16.vlgmr.msrb.gmra.mxu2 %v4183_v15  ;;  %5148 = vmatmul.bf16.vlgmr.msra.gmra.mxu3 %v4184_v56 }
0x159c   : > { %v4995_v31 = vpop.f32.mrf.mxu0  ;;  %v5009_v20 = vpop.f32.mrf.mxu1 }
0x15a4   : > { %v4997_v25 = vpop.f32.mrf.mxu0  ;;  %v5011_v27 = vpop.f32.mrf.mxu1 }
0x15a8   : > { %v4967_v16 = vpop.f32.mrf.mxu2  ;;  %v4981_v17 = vpop.f32.mrf.mxu3 }
0x15a9   : > { %v4968_v28 = vadd.f32 %v6808_v26, %v4967_v16 }
0x15ab   : > { %v4982_v32 = vadd.f32 %v4981_v17, %v4968_v28 }
0x15ac   : > { %v5051_v34 = vpop.f32.mrf.mxu0  ;;  %v5065_v35 = vpop.f32.mrf.mxu1 }
0x15ad   : > { %v4996_v36 = vadd.f32 %v4995_v31, %v4982_v32 }
0x15af   : > { %v5010_v39 = vadd.f32 %v5009_v20, %v4996_v36 }
0x15b0   : > { %v4969_v21 = vpop.f32.mrf.mxu2  ;;  %v4983_v22 = vpop.f32.mrf.mxu3 }
0x15b1   : > { %v4970_v37 = vadd.f32 %v6808_v26, %v4969_v21 }
0x15b3   : > { %v4984_v38 = vadd.f32 %v4983_v22, %v4970_v37 }
0x15b4   : > { %v5053_v58 = vpop.f32.mrf.mxu0  ;;  %v5067_v45 = vpop.f32.mrf.mxu1 }
0x15b5   : > { %v4998_v43 = vadd.f32 %v4997_v25, %v4984_v38 }
0x15b7   : > { %v5012_v48 = vadd.f32 %v5011_v27, %v4998_v43 }
0x15b8   : > { %v5023_v8 = vpop.f32.mrf.mxu2  ;;  %v5037_v29 = vpop.f32.mrf.mxu3 }
0x15b9   : > { %v5024_v42 = vadd.f32 %v5023_v8, %v5010_v39 }
0x15bb   : > { %v5038_v47 = vadd.f32 %v5037_v29, %v5024_v42 }
0x15bc   : > { %v5107_v54 = vpop.f32.mrf.mxu0  ;;  %v5121_v1 = vpop.f32.mrf.mxu1 }
0x15bd   : > { %v5052_v49 = vadd.f32 %v5051_v34, %v5038_v47 }
0x15bf   : > { %v5066_v0 = vadd.f32 %v5065_v35, %v5052_v49 }
0x15c0   : > { %v5025_v40 = vpop.f32.mrf.mxu2  ;;  %v5039_v41 = vpop.f32.mrf.mxu3 }
0x15c1   : > { %v5026_v50 = vadd.f32 %v5025_v40, %v5012_v48 }
0x15c3   : > { %v5040_v62 = vadd.f32 %v5039_v41, %v5026_v50 }
0x15c4   : > { %v5109_v57 = vpop.f32.mrf.mxu0  ;;  %v5123_v59 = vpop.f32.mrf.mxu1 }
0x15c5   : > { %v5054_v5 = vadd.f32 %v5053_v58, %v5040_v62  ;;  %v6810_v62 = vld [vmem:[%s982_s30] ss:$0 sm:$0xff] }
0x15c7   : > { %v5068_v30 = vadd.f32 %v5067_v45, %v5054_v5 }
0x15c8   : > { %v5079_v51 = vpop.f32.mrf.mxu2  ;;  %v5093_v53 = vpop.f32.mrf.mxu3 }
0x15c9   : > { %v5080_v4 = vadd.f32 %v5079_v51, %v5066_v0 }
0x15cb   : > { %v5094_v9 = vadd.f32 %v5093_v53, %v5080_v4  ;;  %v6809_v53 = vld [vmem:[%s979_s24] ss:$0 sm:$0xff] }
0x15cd   : > { %v5108_v55 = vadd.f32 %v5107_v54, %v5094_v9 }
0x15cf   : > { %v5122_v12 = vadd.f32 %v5121_v1, %v5108_v55 }
0x15d0   : > { %v5081_v52 = vpop.f32.mrf.mxu2  ;;  %v5095_v61 = vpop.f32.mrf.mxu3 }
0x15d1   : > { %v5082_v33 = vadd.f32 %v5081_v52, %v5068_v30 }
0x15d3   : > { %v5096_v44 = vadd.f32 %v5095_v61, %v5082_v33 }
0x15d5   : > { %v5110_v46 = vadd.f32 %v5109_v57, %v5096_v44 }
0x15d7   : > { %v5124_v14 = vadd.f32 %v5123_v59, %v5110_v46 }
0x15dc   : > { %v5163_v13 = vpop.f32.mrf.mxu0  ;;  %v5177_v10 = vpop.f32.mrf.mxu1 }
0x15e4   : > { %v5165_v31 = vpop.f32.mrf.mxu0  ;;  %v5179_v21 = vpop.f32.mrf.mxu1 }
0x15e8   : > { %v5135_v2 = vpop.f32.mrf.mxu2  ;;  %v5149_v60 = vpop.f32.mrf.mxu3 }
0x15e9   : > { %v5136_v24 = vadd.f32 %v5135_v2, %v5122_v12 }
0x15eb   : > { %v5150_v6 = vadd.f32 %v5149_v60, %v5136_v24 }
0x15ed   : > { %v5164_v11 = vadd.f32 %v5163_v13, %v5150_v6 }
0x15ef   : > { %v5178_v23 = vadd.f32 %v5177_v10, %v5164_v11 }
0x15f0   : > { %v5137_v63 = vpop.f32.mrf.mxu2  ;;  %v5151_v56 = vpop.f32.mrf.mxu3 }
0x15f1   : > { %v5138_v7 = vadd.f32 %v5137_v63, %v5124_v14  ;;  %v5182_v15 = vadd.f32 %v5178_v23, %v7673_v18 }
0x15f3   : > { %v5152_v16 = vadd.f32 %v5151_v56, %v5138_v7  ;;  %v5186_v17 = vsel %vm1043_vm1, %v5182_v15, 0.0 }
0x15f4   : > { %5187 = vadd.xlane.f32.xlu1 %v5186_v17 }
0x15f5   : > { %v5166_v20 = vadd.f32 %v5165_v31, %v5152_v16 }
0x15f7   : > { %v5180_v22 = vadd.f32 %v5179_v21, %v5166_v20 }
0x15f9   : > { %v5183_v25 = vadd.f32 %v5180_v22, %v7675_v19 }
0x15fb   : > { %v5189_v26 = vsel %vm1043_vm1, %v5183_v25, 0.0 }
0x15fc   : > { %5190 = vadd.xlane.f32.xlu2 %v5189_v26 }
0x1667   : > { %v5188_v27 = vpop.xlane.xlu1 %5187 }
0x1668   : > { %v5192_v28 = vmul.f32 %v5188_v27, %v7422_v3 }
0x166a   : > { %v5194_v8 = vsub.f32 %v5182_v15, %v5192_v28 }
0x166c   : > { %v5196_v29 = vmul.f32 %v5194_v8, %v5194_v8 }
0x166e   : > { %v5198_v18 = vsel %vm1043_vm1, %v5196_v29, 0.0 }
0x166f   : > { %v5191_v32 = vpop.xlane.xlu2 %5190  ;;  %5199 = vadd.xlane.f32.xlu0 %v5198_v18 }
0x1670   : > { %v5193_v34 = vmul.f32 %v5191_v32, %v7422_v3 }
0x1672   : > { %v5195_v35 = vsub.f32 %v5183_v25, %v5193_v34 }
0x1674   : > { %v5197_v36 = vmul.f32 %v5195_v35, %v5195_v35 }
0x1676   : > { %v5201_v37 = vsel %vm1043_vm1, %v5197_v36, 0.0 }
0x1677   : > { %5202 = vadd.xlane.f32.xlu1 %v5201_v37 }
0x16e2   : > { %v5200_v19 = vpop.xlane.xlu0 %5199 }
0x16e3   : > { %v5204_v38 = vmul.f32 %v5200_v19, %v7422_v3 }
0x16e5   : > { %v5206_v39 = vadd.f32 1e-05, %v5204_v38 }
0x16e7   : > { %6885 = vrsqrt.f32 %v5206_v39  ;;  %vm5214_vm15 = vweird.f32 %v5206_v39 }
0x16ea   : > { %v5203_v40 = vpop.xlane.xlu1 %5202 }
0x16eb   : > { %v5205_v41 = vmul.f32 %v5203_v40, %v7422_v3 }
0x16ed   : > { %v6886_v42 = vpop.eup %6885  ;;  %v5207_v58 = vadd.f32 1e-05, %v5205_v41 }
0x16ee   : > { %v5209_v43 = vmul.f32 %v6886_v42, %v5206_v39  ;;  %vm5215_vm14 = vweird.f32 %v6886_v42 }
0x16ef   : > { %6887 = vrsqrt.f32 %v5207_v58  ;;  %vm5216_vm0 = vmor %vm5214_vm15, %vm5215_vm14  ;;  %vm5224_vm4 = vweird.f32 %v5207_v58 }
0x16f0   : > { %v5210_v45 = vmul.f32 %v6886_v42, %v5209_v43 }
0x16f2   : > { %v5211_v47 = vmul.f32 0.5, %v5210_v45 }
0x16f4   : > { %v5212_v48 = vsub.f32 1.5, %v5211_v47 }
0x16f5   : > { %v6888_v49 = vpop.eup %6887 }
0x16f6   : > { %v5213_v50 = vmul.f32 %v6886_v42, %v5212_v48  ;;  %v5219_v51 = vmul.f32 %v6888_v49, %v5207_v58  ;;  %vm5225_vm3 = vweird.f32 %v6888_v49 }
0x16f7   : > { %vm5226_vm5 = vmor %vm5224_vm4, %vm5225_vm3 }
0x16f8   : > { %v5217_v3 = vsel %vm5216_vm0, %v6886_v42, %v5213_v50  ;;  %v5220_v54 = vmul.f32 %v6888_v49, %v5219_v51 }
0x16f9   : > { %v5228_v0 = vmul.f32 %v5217_v3, %v5194_v8 }
0x16fa   : > { %v5221_v1 = vmul.f32 0.5, %v5220_v54 }
0x16fb   : > { %v5233_v4 = vmul.f32 %v6809_v53, %v5228_v0 }
0x16fc   : > { %v5222_v5 = vsub.f32 1.5, %v5221_v1 }
0x16fd   : > { %v5238_v9 = vadd.f32 %v6810_v62, %v5233_v4 }
0x16fe   : > { %v5223_v52 = vmul.f32 %v6888_v49, %v5222_v5 }
0x16ff   : > { %5240 = vst.msk [vmem:[%s8016_s10] sm:$0xff] %vm1043_vm1, %v5238_v9 }
0x1700   : > { %v5227_v61 = vsel %vm5226_vm5, %v6888_v49, %v5223_v52 }
0x1701   : > { %v5229_v30 = vmul.f32 %v5227_v61, %v5195_v35 }
0x1703   : > { %v5234_v57 = vmul.f32 %v6809_v53, %v5229_v30 }
0x1705   : > { %v5239_v55 = vadd.f32 %v6810_v62, %v5234_v57 }
0x1707   : > { %5241 = vst.msk [vmem:[%s8016_s10 + $0x8] sm:$0xff] %vm1043_vm1, %v5239_v55 }
0x1708 PF: > { %s8033_s25 = sld [smem:[#allocation8_spill]] }
0x1709   : > { %s8034_s4 = sld [smem:[#allocation5_spill]] }
0x170a   : > { %s8035_s30 = sld [smem:[#allocation6_spill]] }
0x170b   : > { %s8036_s24 = sld [smem:[#allocation9_spill]] }
0x170e   : > { %p33_p8 = scmp.ge.s32.totalorder %s8033_s25, 4  }
0x1710   :  { %35 = sbr.rel (!%p33_p8) target bundleno = 22 (0x16), region = 253 }
0x1715   :  { %5253 = vsyncpa [#allocation3], 1 }
0x1716   :  { %5255 = vsyncpa [#allocation3 + $0x1], 1 }

</bundles_post_ra>
